<compile_context>
chip_gen: v7x
topology: tpu7x:2x2x1
jax: 0.10.0
libtpu: 0.0.40
codegen_flags: <defaults>
</compile_context>

<pallas_src>
import functools

import jax
import jax.numpy as jnp
from jax.experimental import pallas as pl
from jax.experimental.pallas import tpu as pltpu

LEAKY_RATE = 0.1


def _leaky(x):
    return jnp.where(x > 0, x, LEAKY_RATE * x)


def _pick_tile(total, target):
    """Whole axis if it fits, else the largest multiple-of-128 divisor <= target.

    Returning either `total` or a multiple of 128 keeps every BlockSpec legal
    (last two block dims must be (8,128)-aligned or span the full array), even
    when the sampled-point tile ends up in the lane position of the output block.
    """
    if total <= target:
        return total
    for t in range(target, 127, -1):
        if total % t == 0 and t % 128 == 0:
            return t
    return total


def _compiler_params():
    # 32 MiB scoped VMEM is legal on every generation (v7x has 64 MiB per TC) and
    # lifts v5e's 16 MiB default.  Both grids are fully "parallel" so v7x's two
    # TensorCores can split the (B, S-tiles) grid.
    return pltpu.CompilerParams(
        dimension_semantics=("parallel", "parallel"),
        vmem_limit_bytes=32 * 1024 * 1024,
    )


# --------------------------------------------------------------------------
# Kernel 1: fused kNN — square distances + iterative k-smallest selection.
#   query block:    [ts, 3]
#   database block: [3, N]   (channels-first -> lane dim N is dense)
#   xsq block:      [1, N]   (precomputed x^2 row sums, hoisted out of the body)
#   output block:   [ts, K]  int32 neighbour indices (distances stay in VMEM)
# --------------------------------------------------------------------------
def _knn_kernel(q_ref, x_ref, xsq_ref, idx_ref, *, nsample, n_total):
    q = q_ref[0]                                                   # [ts, 3]
    x = x_ref[0]                                                   # [3, N]
    g = jnp.dot(q, x, preferred_element_type=jnp.float32)          # [ts, N]
    q_sq = jnp.sum(q * q, axis=1, keepdims=True)                   # [ts, 1]
    d = q_sq + xsq_ref[0] - 2.0 * g                                # [ts, N]

    # Iterative selection of the K smallest distances (ties -> smallest index).
    # torch.topk(..., largest=False, sorted=False) only needs the index *set*,
    # and the downstream contraction is permutation-invariant over K.
    iota = jax.lax.broadcasted_iota(jnp.int32, d.shape, 1).astype(jnp.float32)
    big_idx = jnp.float32(n_total)
    big_val = jnp.float32(3.0e38)
    cols = []
    for _ in range(nsample):
        mn = jnp.min(d, axis=1, keepdims=True)                     # [ts, 1]
        cand = jnp.where(d == mn, iota, big_idx)                   # [ts, N]
        amin = jnp.min(cand, axis=1, keepdims=True)                # [ts, 1]
        cols.append(amin)
        d = jnp.where(cand == amin, big_val, d)                    # knock out winner
    idx_ref[0] = jnp.concatenate(cols, axis=1).astype(jnp.int32)   # [ts, K]


def knn_topk_indices(new_xyz_nl, xyz_cf, xsq, nsample, *, tile_target=128):
    """new_xyz_nl [B,S,3], xyz_cf [B,3,N], xsq [B,1,N] -> knn indices [B,S,K]."""
    B, S, _ = new_xyz_nl.shape
    N = xyz_cf.shape[2]
    ts = _pick_tile(S, tile_target)
    # TODO(synk): for very large N (>~16K points) add an N grid axis with a
    # running best-K merge in VMEM scratch so the [ts, N] distance block stays
    # inside v7x's 64 MiB budget.
    kernel = functools.partial(_knn_kernel, nsample=nsample, n_total=N)
    return pl.pallas_call(
        kernel,
        out_shape=jax.ShapeDtypeStruct((B, S, nsample), jnp.int32),
        grid=(B, S // ts),
        in_specs=[
            pl.BlockSpec((1, ts, 3), lambda b, s: (b, s, 0)),
            pl.BlockSpec((1, 3, N), lambda b, s: (b, 0, 0)),
            pl.BlockSpec((1, 1, N), lambda b, s: (b, 0, 0)),
        ],
        out_specs=pl.BlockSpec((1, ts, nsample), lambda b, s: (b, s, 0)),
        compiler_params=_compiler_params(),
    )(new_xyz_nl, xyz_cf, xsq)


# --------------------------------------------------------------------------
# Kernel 2: fused PointConv body.
#   WeightNet(3->8->8->W, ReLU) on local xyz offsets, then Linear1 fused into the
#   per-point K-contraction via one full-width MXU matmul, then Linear2 + LeakyReLU.
#   Output is emitted lane-dense as [B, OUT, S].
# --------------------------------------------------------------------------
def pointconv_fused(feats_flat, params, S, K, *, tile_target=256):
    """feats_flat: [B, S*K, 3+D] (grouped_xyz_norm ++ grouped_points, K flattened)."""
    B, SK, C = feats_flat.shape
    assert SK == S * K
    w1, b1 = params["w1"], params["b1"]
    w2, b2 = params["w2"], params["b2"]
    w3, b3 = params["w3"], params["b3"]
    W = w3.shape[1]
    H1 = params["l1"].shape[1]
    OUT = params["l2"].shape[1]
    # torch flattens the per-point [C, W] matmul result with index (c*W + w);
    # reshaping l1 [C*W, H1] -> [C, W*H1] keeps exactly that ordering, with the
    # kernel's column index = w*H1 + h.
    l1f = params["l1"].reshape(C, W * H1)
    bl1, l2, bl2 = params["bl1"], params["l2"], params["bl2"]

    ts = _pick_tile(S, tile_target)

    def kernel(f_ref, w1_ref, b1_ref, w2_ref, b2_ref, w3_ref, b3_ref,
               l1_ref, bl1_ref, l2_ref, bl2_ref, out_ref):
        f = f_ref[0]                                               # [ts*K, C]

        # WeightNet on the local xyz offsets (first 3 feature columns).
        xyz_loc = f[:, :3]
        h = jnp.maximum(
            jnp.dot(xyz_loc, w1_ref[...], preferred_element_type=jnp.float32)
            + b1_ref[...], 0.0)
        h = jnp.maximum(
            jnp.dot(h, w2_ref[...], preferred_element_type=jnp.float32)
            + b2_ref[...], 0.0)
        wgt = jnp.maximum(
            jnp.dot(h, w3_ref[...], preferred_element_type=jnp.float32)
            + b3_ref[...], 0.0)                                    # [ts*K, W]

        # Linear1 fused into the K-contraction:
        #   out1[s,h] = sum_{k,c,w} f[s,k,c] * wgt[s,k,w] * L1[c,w,h]
        # One big MXU matmul over all ts*K rows, then a W-step VPU multiply-add
        # and a single sublane reduction over K (no tiny per-point matmuls, no
        # lane-merging reshapes).
        g = jnp.dot(f, l1_ref[...], preferred_element_type=jnp.float32)  # [ts*K, W*H1]
        acc = jnp.zeros((ts * K, H1), jnp.float32)
        for w in range(W):
            acc = acc + wgt[:, w:w + 1] * g[:, w * H1:(w + 1) * H1]
        acc3 = acc.reshape(ts, K, H1)                               # leading split only
        h1 = jnp.sum(acc3, axis=1) + bl1_ref[...]                   # [ts, H1]

        # Linear2 + LeakyReLU; emit transposed so S (>=128 tile or full S) is the
        # lane dim of the output block (unmasked lane-dense stores).
        h2 = jnp.dot(h1, l2_ref[...], preferred_element_type=jnp.float32) + bl2_ref[...]
        out_ref[0] = jnp.transpose(_leaky(h2))                      # [OUT, ts]

    return pl.pallas_call(
        kernel,
        out_shape=jax.ShapeDtypeStruct((B, OUT, S), jnp.float32),
        grid=(B, S // ts),
        in_specs=[
            pl.BlockSpec((1, ts * K, C), lambda b, s: (b, s, 0)),
            pl.BlockSpec(w1.shape, lambda b, s: (0, 0)),
            pl.BlockSpec(b1.shape, lambda b, s: (0, 0)),
            pl.BlockSpec(w2.shape, lambda b, s: (0, 0)),
            pl.BlockSpec(b2.shape, lambda b, s: (0, 0)),
            pl.BlockSpec(w3.shape, lambda b, s: (0, 0)),
            pl.BlockSpec(b3.shape, lambda b, s: (0, 0)),
            pl.BlockSpec(l1f.shape, lambda b, s: (0, 0)),
            pl.BlockSpec(bl1.shape, lambda b, s: (0, 0)),
            pl.BlockSpec(l2.shape, lambda b, s: (0, 0)),
            pl.BlockSpec(bl2.shape, lambda b, s: (0, 0)),
        ],
        out_specs=pl.BlockSpec((1, OUT, ts), lambda b, s: (b, 0, s)),
        compiler_params=_compiler_params(),
    )(feats_flat, w1, b1, w2, b2, w3, b3, l1f, bl1, l2, bl2)


# --------------------------------------------------------------------------
# Plain-JAX glue: furthest point sampling and neighbour gathers.
# --------------------------------------------------------------------------
def furthest_point_sample(xyz_nl, npoint):
    """Iterative FPS (matches pointnet2's CUDA op: first index is 0)."""
    # TODO(synk): sequential data-dependent argmax has no clean Pallas mapping;
    # kept as a plain-JAX lax.fori_loop.
    B, N, _ = xyz_nl.shape

    def body(i, state):
        idx, min_d, last = state
        last_xyz = jax.vmap(lambda p, j: p[j])(xyz_nl, last)        # [B, 3]
        d = jnp.sum((xyz_nl - last_xyz[:, None, :]) ** 2, axis=-1)  # [B, N]
        min_d = jnp.minimum(min_d, d)
        nxt = jnp.argmax(min_d, axis=-1).astype(jnp.int32)          # [B]
        idx = idx.at[:, i].set(nxt)
        return idx, min_d, nxt

    idx0 = jnp.zeros((B, npoint), jnp.int32)
    dist0 = jnp.full((B, N), 1e10, jnp.float32)
    last0 = jnp.zeros((B,), jnp.int32)
    idx, _, _ = jax.lax.fori_loop(1, npoint, body, (idx0, dist0, last0))
    return idx


def _gather_rows(points, idx):
    """points [B, N, C], idx [B, ...] int -> [B, ..., C]."""
    return jax.vmap(lambda p, i: p[i])(points, idx)


@functools.partial(jax.jit, static_argnames=("npoint", "nsample"))
def pointconv_svdd(params, xyz, points, *, npoint, nsample):
    """xyz [B, 3, N], points [B, D, N] ->
       (new_xyz [B, 3, npoint], new_points [B, out, npoint], fps_idx [B, npoint])."""
    B, _, N = xyz.shape
    D = points.shape[1]
    xyz_nl = jnp.transpose(xyz, (0, 2, 1))                           # [B, N, 3]
    pts_nl = jnp.transpose(points, (0, 2, 1))                        # [B, N, D]

    # 1) Farthest point sampling + centre gather (plain JAX).
    fps_idx = furthest_point_sample(xyz_nl, npoint)                  # [B, S]
    new_xyz_nl = _gather_rows(xyz_nl, fps_idx)                       # [B, S, 3]

    # 2) Fused kNN (Pallas): distances stay in VMEM, only indices hit HBM.
    xsq = jnp.sum(xyz * xyz, axis=1, keepdims=True)                  # [B, 1, N]
    knn_idx = knn_topk_indices(new_xyz_nl, xyz, xsq, nsample)        # [B, S, K] int32

    # 3) Group neighbours (XLA gather) and flatten K into the row axis so the
    #    fused kernel sees dense sublanes and a lane dim of 3 + D.
    # TODO(synk): second-tier — move this gather inside the fused kernel via
    # PrefetchScalarGridSpec + manual DMA from xyz/points kept in pl.ANY, so the
    # [B, S*K, C] grouped features never round-trip through HBM.
    grouped_xyz = _gather_rows(xyz_nl, knn_idx)                      # [B, S, K, 3]
    grouped_pts = _gather_rows(pts_nl, knn_idx)                      # [B, S, K, D]
    grouped_xyz_norm = grouped_xyz - new_xyz_nl[:, :, None, :]
    feats = jnp.concatenate([grouped_xyz_norm, grouped_pts], axis=-1)
    feats = feats.reshape(B, npoint * nsample, 3 + D)                # [B, S*K, C]

    # 4) Fused WeightNet + K-contraction + linear head + LeakyReLU (Pallas),
    #    output already in the PyTorch [B, OUT, S] layout (lane-dense stores).
    new_points = pointconv_fused(feats, params, npoint, nsample)     # [B, OUT, S]

    new_xyz_out = jnp.transpose(new_xyz_nl, (0, 2, 1))               # [B, 3, S]
    return new_xyz_out, new_points, fps_idx


# --------------------------------------------------------------------------
# Deterministic parameter initialization (layouts: weights [in, out], biases [1, out]).
# --------------------------------------------------------------------------
def init_params(key, in_channel, out_channel, weightnet=16, hidden=(8, 8)):
    """in_channel = D + 3 (feature dim after concatenating the local xyz offsets)."""
    ks = jax.random.split(key, 10)
    h1u, h2u = hidden
    mid = out_channel // 2

    def lin(k, fan_in, fan_out):
        return jax.random.normal(k, (fan_in, fan_out), jnp.float32) / jnp.sqrt(float(fan_in))

    return {
        # WeightNet 1x1 convs.
        "w1": lin(ks[0], 3, h1u),
        "b1": 0.05 * jax.random.normal(ks[1], (1, h1u), jnp.float32),
        "w2": lin(ks[2], h1u, h2u),
        "b2": 0.05 * jax.random.normal(ks[3], (1, h2u), jnp.float32),
        "w3": lin(ks[4], h2u, weightnet),
        "b3": 0.05 * jax.random.normal(ks[5], (1, weightnet), jnp.float32),
        # Linear head; l1 rows indexed (c * weightnet + w), matching torch's view().
        "l1": lin(ks[6], in_channel * weightnet, mid),
        "bl1": 0.05 * jax.random.normal(ks[7], (1, mid), jnp.float32),
        "l2": lin(ks[8], mid, out_channel),
        "bl2": 0.05 * jax.random.normal(ks[9], (1, out_channel), jnp.float32),
    }


# --------------------------------------------------------------------------
if __name__ == "__main__":
    B, N, D = 2, 32, 16
    npoint, nsample = 16, 16
    weightnet, out_channel = 16, 64
    in_channel = D + 3                      # PointConvSVDD's `in_channel`

    key = jax.random.PRNGKey(0)
    kx, kp, kw = jax.random.split(key, 3)
    xyz = jax.random.normal(kx, (B, 3, N), jnp.float32)
    points = jax.random.normal(kp, (B, D, N), jnp.float32)
    params = init_params(kw, in_channel, out_channel, weightnet)

    new_xyz, new_points, fps_idx = pointconv_svdd(
        params, xyz, points, npoint=npoint, nsample=nsample)
    jax.block_until_ready((new_xyz, new_points, fps_idx))

    assert new_xyz.shape == (B, 3, npoint), new_xyz.shape
    assert new_points.shape == (B, out_channel, npoint), new_points.shape
    assert fps_idx.shape == (B, npoint), fps_idx.shape
    assert bool(jnp.all(jnp.isfinite(new_xyz)))
    assert bool(jnp.all(jnp.isfinite(new_points)))
    assert bool(jnp.all((fps_idx >= 0) & (fps_idx < N)))
    print("KERNEL_OK")
</pallas_src>

<mosaic_0001>
module attributes {stable_mosaic.version = 11 : i64} {
  func.func @_knn_kernel(%arg0: i32, %arg1: i32, %arg2: memref<1x16x3xf32, #tpu.memory_space<vmem>>, %arg3: memref<1x3x32xf32, #tpu.memory_space<vmem>>, %arg4: memref<1x1x32xf32, #tpu.memory_space<vmem>>, %arg5: memref<1x16x16xi32, #tpu.memory_space<vmem>>) attributes {dimension_semantics = [#tpu.dimension_semantics<parallel>, #tpu.dimension_semantics<parallel>], iteration_bounds = array<i64: 2, 1>, scalar_prefetch = 0 : i64, scratch_operands = 0 : i64, tpu.core_type = #tpu.core_type<tc>, window_params = [{transform_indices = @transform_0, window_bounds = array<i64: 1, 16, 3>}, {transform_indices = @transform_1, window_bounds = array<i64: 1, 3, 32>}, {transform_indices = @transform_2, window_bounds = array<i64: 1, 1, 32>}, {transform_indices = @transform_3, window_bounds = array<i64: 1, 16, 16>}]} {
    %c0 = arith.constant 0 : index
    %c0_0 = arith.constant 0 : index
    %c0_1 = arith.constant 0 : index
    %0 = vector.load %arg2[%c0, %c0_0, %c0_1] : memref<1x16x3xf32, #tpu.memory_space<vmem>>, vector<1x16x3xf32>
    %1 = vector.shape_cast %0 : vector<1x16x3xf32> to vector<16x3xf32>
    %c0_2 = arith.constant 0 : index
    %c0_3 = arith.constant 0 : index
    %c0_4 = arith.constant 0 : index
    %2 = vector.load %arg3[%c0_2, %c0_3, %c0_4] : memref<1x3x32xf32, #tpu.memory_space<vmem>>, vector<1x3x32xf32>
    %3 = vector.shape_cast %2 : vector<1x3x32xf32> to vector<3x32xf32>
    %cst = arith.constant dense<0.000000e+00> : vector<16x32xf32>
    %4 = tpu.matmul %1, %3, %cst {dimension_numbers = #tpu.dot_dimension_numbers<[1], [0], [0], [1], [0, 0, 1, 1], [], []>} : vector<16x3xf32>, vector<3x32xf32>, vector<16x32xf32> -> vector<16x32xf32>
    %5 = arith.mulf %1, %1 : vector<16x3xf32>
    %cst_5 = arith.constant dense<0.000000e+00> : vector<16xf32>
    %6 = vector.multi_reduction <add>, %5, %cst_5 [1] : vector<16x3xf32> to vector<16xf32>
    %7 = vector.shape_cast %6 : vector<16xf32> to vector<16x1xf32>
    %c0_6 = arith.constant 0 : index
    %c0_7 = arith.constant 0 : index
    %c0_8 = arith.constant 0 : index
    %8 = vector.load %arg4[%c0_6, %c0_7, %c0_8] : memref<1x1x32xf32, #tpu.memory_space<vmem>>, vector<1x1x32xf32>
    %9 = vector.shape_cast %8 : vector<1x1x32xf32> to vector<1x32xf32>
    %10 = vector.broadcast %7 : vector<16x1xf32> to vector<16x32xf32>
    %11 = vector.broadcast %9 : vector<1x32xf32> to vector<16x32xf32>
    %12 = arith.addf %10, %11 : vector<16x32xf32>
    %cst_9 = arith.constant 2.000000e+00 : f32
    %13 = vector.broadcast %cst_9 : f32 to vector<16x32xf32>
    %14 = arith.mulf %13, %4 : vector<16x32xf32>
    %15 = arith.subf %12, %14 : vector<16x32xf32>
    %16 = tpu.iota {dimensions = array<i32: 1>} : vector<16x32xi32>
    %17 = arith.sitofp %16 : vector<16x32xi32> to vector<16x32xf32>
    %cst_10 = arith.constant dense<0x7F800000> : vector<16xf32>
    %18 = vector.multi_reduction <minimumf>, %15, %cst_10 [1] : vector<16x32xf32> to vector<16xf32>
    %19 = vector.shape_cast %18 : vector<16xf32> to vector<16x1xf32>
    %20 = vector.broadcast %19 : vector<16x1xf32> to vector<16x32xf32>
    %21 = arith.cmpf oeq, %15, %20 : vector<16x32xf32>
    %cst_11 = arith.constant 3.200000e+01 : f32
    %22 = vector.broadcast %cst_11 : f32 to vector<16x32xf32>
    %23 = arith.select %21, %17, %22 : vector<16x32xi1>, vector<16x32xf32>
    %cst_12 = arith.constant dense<0x7F800000> : vector<16xf32>
    %24 = vector.multi_reduction <minimumf>, %23, %cst_12 [1] : vector<16x32xf32> to vector<16xf32>
    %25 = vector.shape_cast %24 : vector<16xf32> to vector<16x1xf32>
    %26 = vector.broadcast %25 : vector<16x1xf32> to vector<16x32xf32>
    %27 = arith.cmpf oeq, %23, %26 : vector<16x32xf32>
    %cst_13 = arith.constant 3.000000e+38 : f32
    %28 = vector.broadcast %cst_13 : f32 to vector<16x32xf32>
    %29 = arith.select %27, %28, %15 : vector<16x32xi1>, vector<16x32xf32>
    %cst_14 = arith.constant dense<0x7F800000> : vector<16xf32>
    %30 = vector.multi_reduction <minimumf>, %29, %cst_14 [1] : vector<16x32xf32> to vector<16xf32>
    %31 = vector.shape_cast %30 : vector<16xf32> to vector<16x1xf32>
    %32 = vector.broadcast %31 : vector<16x1xf32> to vector<16x32xf32>
    %33 = arith.cmpf oeq, %29, %32 : vector<16x32xf32>
    %cst_15 = arith.constant 3.200000e+01 : f32
    %34 = vector.broadcast %cst_15 : f32 to vector<16x32xf32>
    %35 = arith.select %33, %17, %34 : vector<16x32xi1>, vector<16x32xf32>
    %cst_16 = arith.constant dense<0x7F800000> : vector<16xf32>
    %36 = vector.multi_reduction <minimumf>, %35, %cst_16 [1] : vector<16x32xf32> to vector<16xf32>
    %37 = vector.shape_cast %36 : vector<16xf32> to vector<16x1xf32>
    %38 = vector.broadcast %37 : vector<16x1xf32> to vector<16x32xf32>
    %39 = arith.cmpf oeq, %35, %38 : vector<16x32xf32>
    %cst_17 = arith.constant 3.000000e+38 : f32
    %40 = vector.broadcast %cst_17 : f32 to vector<16x32xf32>
    %41 = arith.select %39, %40, %29 : vector<16x32xi1>, vector<16x32xf32>
    %cst_18 = arith.constant dense<0x7F800000> : vector<16xf32>
    %42 = vector.multi_reduction <minimumf>, %41, %cst_18 [1] : vector<16x32xf32> to vector<16xf32>
    %43 = vector.shape_cast %42 : vector<16xf32> to vector<16x1xf32>
    %44 = vector.broadcast %43 : vector<16x1xf32> to vector<16x32xf32>
    %45 = arith.cmpf oeq, %41, %44 : vector<16x32xf32>
    %cst_19 = arith.constant 3.200000e+01 : f32
    %46 = vector.broadcast %cst_19 : f32 to vector<16x32xf32>
    %47 = arith.select %45, %17, %46 : vector<16x32xi1>, vector<16x32xf32>
    %cst_20 = arith.constant dense<0x7F800000> : vector<16xf32>
    %48 = vector.multi_reduction <minimumf>, %47, %cst_20 [1] : vector<16x32xf32> to vector<16xf32>
    %49 = vector.shape_cast %48 : vector<16xf32> to vector<16x1xf32>
    %50 = vector.broadcast %49 : vector<16x1xf32> to vector<16x32xf32>
    %51 = arith.cmpf oeq, %47, %50 : vector<16x32xf32>
    %cst_21 = arith.constant 3.000000e+38 : f32
    %52 = vector.broadcast %cst_21 : f32 to vector<16x32xf32>
    %53 = arith.select %51, %52, %41 : vector<16x32xi1>, vector<16x32xf32>
    %cst_22 = arith.constant dense<0x7F800000> : vector<16xf32>
    %54 = vector.multi_reduction <minimumf>, %53, %cst_22 [1] : vector<16x32xf32> to vector<16xf32>
    %55 = vector.shape_cast %54 : vector<16xf32> to vector<16x1xf32>
    %56 = vector.broadcast %55 : vector<16x1xf32> to vector<16x32xf32>
    %57 = arith.cmpf oeq, %53, %56 : vector<16x32xf32>
    %cst_23 = arith.constant 3.200000e+01 : f32
    %58 = vector.broadcast %cst_23 : f32 to vector<16x32xf32>
    %59 = arith.select %57, %17, %58 : vector<16x32xi1>, vector<16x32xf32>
    %cst_24 = arith.constant dense<0x7F800000> : vector<16xf32>
    %60 = vector.multi_reduction <minimumf>, %59, %cst_24 [1] : vector<16x32xf32> to vector<16xf32>
    %61 = vector.shape_cast %60 : vector<16xf32> to vector<16x1xf32>
    %62 = vector.broadcast %61 : vector<16x1xf32> to vector<16x32xf32>
    %63 = arith.cmpf oeq, %59, %62 : vector<16x32xf32>
    %cst_25 = arith.constant 3.000000e+38 : f32
    %64 = vector.broadcast %cst_25 : f32 to vector<16x32xf32>
    %65 = arith.select %63, %64, %53 : vector<16x32xi1>, vector<16x32xf32>
    %cst_26 = arith.constant dense<0x7F800000> : vector<16xf32>
    %66 = vector.multi_reduction <minimumf>, %65, %cst_26 [1] : vector<16x32xf32> to vector<16xf32>
    %67 = vector.shape_cast %66 : vector<16xf32> to vector<16x1xf32>
    %68 = vector.broadcast %67 : vector<16x1xf32> to vector<16x32xf32>
    %69 = arith.cmpf oeq, %65, %68 : vector<16x32xf32>
    %cst_27 = arith.constant 3.200000e+01 : f32
    %70 = vector.broadcast %cst_27 : f32 to vector<16x32xf32>
    %71 = arith.select %69, %17, %70 : vector<16x32xi1>, vector<16x32xf32>
    %cst_28 = arith.constant dense<0x7F800000> : vector<16xf32>
    %72 = vector.multi_reduction <minimumf>, %71, %cst_28 [1] : vector<16x32xf32> to vector<16xf32>
    %73 = vector.shape_cast %72 : vector<16xf32> to vector<16x1xf32>
    %74 = vector.broadcast %73 : vector<16x1xf32> to vector<16x32xf32>
    %75 = arith.cmpf oeq, %71, %74 : vector<16x32xf32>
    %cst_29 = arith.constant 3.000000e+38 : f32
    %76 = vector.broadcast %cst_29 : f32 to vector<16x32xf32>
    %77 = arith.select %75, %76, %65 : vector<16x32xi1>, vector<16x32xf32>
    %cst_30 = arith.constant dense<0x7F800000> : vector<16xf32>
    %78 = vector.multi_reduction <minimumf>, %77, %cst_30 [1] : vector<16x32xf32> to vector<16xf32>
    %79 = vector.shape_cast %78 : vector<16xf32> to vector<16x1xf32>
    %80 = vector.broadcast %79 : vector<16x1xf32> to vector<16x32xf32>
    %81 = arith.cmpf oeq, %77, %80 : vector<16x32xf32>
    %cst_31 = arith.constant 3.200000e+01 : f32
    %82 = vector.broadcast %cst_31 : f32 to vector<16x32xf32>
    %83 = arith.select %81, %17, %82 : vector<16x32xi1>, vector<16x32xf32>
    %cst_32 = arith.constant dense<0x7F800000> : vector<16xf32>
    %84 = vector.multi_reduction <minimumf>, %83, %cst_32 [1] : vector<16x32xf32> to vector<16xf32>
    %85 = vector.shape_cast %84 : vector<16xf32> to vector<16x1xf32>
    %86 = vector.broadcast %85 : vector<16x1xf32> to vector<16x32xf32>
    %87 = arith.cmpf oeq, %83, %86 : vector<16x32xf32>
    %cst_33 = arith.constant 3.000000e+38 : f32
    %88 = vector.broadcast %cst_33 : f32 to vector<16x32xf32>
    %89 = arith.select %87, %88, %77 : vector<16x32xi1>, vector<16x32xf32>
    %cst_34 = arith.constant dense<0x7F800000> : vector<16xf32>
    %90 = vector.multi_reduction <minimumf>, %89, %cst_34 [1] : vector<16x32xf32> to vector<16xf32>
    %91 = vector.shape_cast %90 : vector<16xf32> to vector<16x1xf32>
    %92 = vector.broadcast %91 : vector<16x1xf32> to vector<16x32xf32>
    %93 = arith.cmpf oeq, %89, %92 : vector<16x32xf32>
    %cst_35 = arith.constant 3.200000e+01 : f32
    %94 = vector.broadcast %cst_35 : f32 to vector<16x32xf32>
    %95 = arith.select %93, %17, %94 : vector<16x32xi1>, vector<16x32xf32>
    %cst_36 = arith.constant dense<0x7F800000> : vector<16xf32>
    %96 = vector.multi_reduction <minimumf>, %95, %cst_36 [1] : vector<16x32xf32> to vector<16xf32>
    %97 = vector.shape_cast %96 : vector<16xf32> to vector<16x1xf32>
    %98 = vector.broadcast %97 : vector<16x1xf32> to vector<16x32xf32>
    %99 = arith.cmpf oeq, %95, %98 : vector<16x32xf32>
    %cst_37 = arith.constant 3.000000e+38 : f32
    %100 = vector.broadcast %cst_37 : f32 to vector<16x32xf32>
    %101 = arith.select %99, %100, %89 : vector<16x32xi1>, vector<16x32xf32>
    %cst_38 = arith.constant dense<0x7F800000> : vector<16xf32>
    %102 = vector.multi_reduction <minimumf>, %101, %cst_38 [1] : vector<16x32xf32> to vector<16xf32>
    %103 = vector.shape_cast %102 : vector<16xf32> to vector<16x1xf32>
    %104 = vector.broadcast %103 : vector<16x1xf32> to vector<16x32xf32>
    %105 = arith.cmpf oeq, %101, %104 : vector<16x32xf32>
    %cst_39 = arith.constant 3.200000e+01 : f32
    %106 = vector.broadcast %cst_39 : f32 to vector<16x32xf32>
    %107 = arith.select %105, %17, %106 : vector<16x32xi1>, vector<16x32xf32>
    %cst_40 = arith.constant dense<0x7F800000> : vector<16xf32>
    %108 = vector.multi_reduction <minimumf>, %107, %cst_40 [1] : vector<16x32xf32> to vector<16xf32>
    %109 = vector.shape_cast %108 : vector<16xf32> to vector<16x1xf32>
    %110 = vector.broadcast %109 : vector<16x1xf32> to vector<16x32xf32>
    %111 = arith.cmpf oeq, %107, %110 : vector<16x32xf32>
    %cst_41 = arith.constant 3.000000e+38 : f32
    %112 = vector.broadcast %cst_41 : f32 to vector<16x32xf32>
    %113 = arith.select %111, %112, %101 : vector<16x32xi1>, vector<16x32xf32>
    %cst_42 = arith.constant dense<0x7F800000> : vector<16xf32>
    %114 = vector.multi_reduction <minimumf>, %113, %cst_42 [1] : vector<16x32xf32> to vector<16xf32>
    %115 = vector.shape_cast %114 : vector<16xf32> to vector<16x1xf32>
    %116 = vector.broadcast %115 : vector<16x1xf32> to vector<16x32xf32>
    %117 = arith.cmpf oeq, %113, %116 : vector<16x32xf32>
    %cst_43 = arith.constant 3.200000e+01 : f32
    %118 = vector.broadcast %cst_43 : f32 to vector<16x32xf32>
    %119 = arith.select %117, %17, %118 : vector<16x32xi1>, vector<16x32xf32>
    %cst_44 = arith.constant dense<0x7F800000> : vector<16xf32>
    %120 = vector.multi_reduction <minimumf>, %119, %cst_44 [1] : vector<16x32xf32> to vector<16xf32>
    %121 = vector.shape_cast %120 : vector<16xf32> to vector<16x1xf32>
    %122 = vector.broadcast %121 : vector<16x1xf32> to vector<16x32xf32>
    %123 = arith.cmpf oeq, %119, %122 : vector<16x32xf32>
    %cst_45 = arith.constant 3.000000e+38 : f32
    %124 = vector.broadcast %cst_45 : f32 to vector<16x32xf32>
    %125 = arith.select %123, %124, %113 : vector<16x32xi1>, vector<16x32xf32>
    %cst_46 = arith.constant dense<0x7F800000> : vector<16xf32>
    %126 = vector.multi_reduction <minimumf>, %125, %cst_46 [1] : vector<16x32xf32> to vector<16xf32>
    %127 = vector.shape_cast %126 : vector<16xf32> to vector<16x1xf32>
    %128 = vector.broadcast %127 : vector<16x1xf32> to vector<16x32xf32>
    %129 = arith.cmpf oeq, %125, %128 : vector<16x32xf32>
    %cst_47 = arith.constant 3.200000e+01 : f32
    %130 = vector.broadcast %cst_47 : f32 to vector<16x32xf32>
    %131 = arith.select %129, %17, %130 : vector<16x32xi1>, vector<16x32xf32>
    %cst_48 = arith.constant dense<0x7F800000> : vector<16xf32>
    %132 = vector.multi_reduction <minimumf>, %131, %cst_48 [1] : vector<16x32xf32> to vector<16xf32>
    %133 = vector.shape_cast %132 : vector<16xf32> to vector<16x1xf32>
    %134 = vector.broadcast %133 : vector<16x1xf32> to vector<16x32xf32>
    %135 = arith.cmpf oeq, %131, %134 : vector<16x32xf32>
    %cst_49 = arith.constant 3.000000e+38 : f32
    %136 = vector.broadcast %cst_49 : f32 to vector<16x32xf32>
    %137 = arith.select %135, %136, %125 : vector<16x32xi1>, vector<16x32xf32>
    %cst_50 = arith.constant dense<0x7F800000> : vector<16xf32>
    %138 = vector.multi_reduction <minimumf>, %137, %cst_50 [1] : vector<16x32xf32> to vector<16xf32>
    %139 = vector.shape_cast %138 : vector<16xf32> to vector<16x1xf32>
    %140 = vector.broadcast %139 : vector<16x1xf32> to vector<16x32xf32>
    %141 = arith.cmpf oeq, %137, %140 : vector<16x32xf32>
    %cst_51 = arith.constant 3.200000e+01 : f32
    %142 = vector.broadcast %cst_51 : f32 to vector<16x32xf32>
    %143 = arith.select %141, %17, %142 : vector<16x32xi1>, vector<16x32xf32>
    %cst_52 = arith.constant dense<0x7F800000> : vector<16xf32>
    %144 = vector.multi_reduction <minimumf>, %143, %cst_52 [1] : vector<16x32xf32> to vector<16xf32>
    %145 = vector.shape_cast %144 : vector<16xf32> to vector<16x1xf32>
    %146 = vector.broadcast %145 : vector<16x1xf32> to vector<16x32xf32>
    %147 = arith.cmpf oeq, %143, %146 : vector<16x32xf32>
    %cst_53 = arith.constant 3.000000e+38 : f32
    %148 = vector.broadcast %cst_53 : f32 to vector<16x32xf32>
    %149 = arith.select %147, %148, %137 : vector<16x32xi1>, vector<16x32xf32>
    %cst_54 = arith.constant dense<0x7F800000> : vector<16xf32>
    %150 = vector.multi_reduction <minimumf>, %149, %cst_54 [1] : vector<16x32xf32> to vector<16xf32>
    %151 = vector.shape_cast %150 : vector<16xf32> to vector<16x1xf32>
    %152 = vector.broadcast %151 : vector<16x1xf32> to vector<16x32xf32>
    %153 = arith.cmpf oeq, %149, %152 : vector<16x32xf32>
    %cst_55 = arith.constant 3.200000e+01 : f32
    %154 = vector.broadcast %cst_55 : f32 to vector<16x32xf32>
    %155 = arith.select %153, %17, %154 : vector<16x32xi1>, vector<16x32xf32>
    %cst_56 = arith.constant dense<0x7F800000> : vector<16xf32>
    %156 = vector.multi_reduction <minimumf>, %155, %cst_56 [1] : vector<16x32xf32> to vector<16xf32>
    %157 = vector.shape_cast %156 : vector<16xf32> to vector<16x1xf32>
    %158 = vector.broadcast %157 : vector<16x1xf32> to vector<16x32xf32>
    %159 = arith.cmpf oeq, %155, %158 : vector<16x32xf32>
    %cst_57 = arith.constant 3.000000e+38 : f32
    %160 = vector.broadcast %cst_57 : f32 to vector<16x32xf32>
    %161 = arith.select %159, %160, %149 : vector<16x32xi1>, vector<16x32xf32>
    %cst_58 = arith.constant dense<0x7F800000> : vector<16xf32>
    %162 = vector.multi_reduction <minimumf>, %161, %cst_58 [1] : vector<16x32xf32> to vector<16xf32>
    %163 = vector.shape_cast %162 : vector<16xf32> to vector<16x1xf32>
    %164 = vector.broadcast %163 : vector<16x1xf32> to vector<16x32xf32>
    %165 = arith.cmpf oeq, %161, %164 : vector<16x32xf32>
    %cst_59 = arith.constant 3.200000e+01 : f32
    %166 = vector.broadcast %cst_59 : f32 to vector<16x32xf32>
    %167 = arith.select %165, %17, %166 : vector<16x32xi1>, vector<16x32xf32>
    %cst_60 = arith.constant dense<0x7F800000> : vector<16xf32>
    %168 = vector.multi_reduction <minimumf>, %167, %cst_60 [1] : vector<16x32xf32> to vector<16xf32>
    %169 = vector.shape_cast %168 : vector<16xf32> to vector<16x1xf32>
    %170 = vector.broadcast %169 : vector<16x1xf32> to vector<16x32xf32>
    %171 = arith.cmpf oeq, %167, %170 : vector<16x32xf32>
    %cst_61 = arith.constant 3.000000e+38 : f32
    %172 = vector.broadcast %cst_61 : f32 to vector<16x32xf32>
    %173 = arith.select %171, %172, %161 : vector<16x32xi1>, vector<16x32xf32>
    %cst_62 = arith.constant dense<0x7F800000> : vector<16xf32>
    %174 = vector.multi_reduction <minimumf>, %173, %cst_62 [1] : vector<16x32xf32> to vector<16xf32>
    %175 = vector.shape_cast %174 : vector<16xf32> to vector<16x1xf32>
    %176 = vector.broadcast %175 : vector<16x1xf32> to vector<16x32xf32>
    %177 = arith.cmpf oeq, %173, %176 : vector<16x32xf32>
    %cst_63 = arith.constant 3.200000e+01 : f32
    %178 = vector.broadcast %cst_63 : f32 to vector<16x32xf32>
    %179 = arith.select %177, %17, %178 : vector<16x32xi1>, vector<16x32xf32>
    %cst_64 = arith.constant dense<0x7F800000> : vector<16xf32>
    %180 = vector.multi_reduction <minimumf>, %179, %cst_64 [1] : vector<16x32xf32> to vector<16xf32>
    %181 = vector.shape_cast %180 : vector<16xf32> to vector<16x1xf32>
    %182 = vector.broadcast %181 : vector<16x1xf32> to vector<16x32xf32>
    %183 = arith.cmpf oeq, %179, %182 : vector<16x32xf32>
    %cst_65 = arith.constant 3.000000e+38 : f32
    %184 = vector.broadcast %cst_65 : f32 to vector<16x32xf32>
    %185 = arith.select %183, %184, %173 : vector<16x32xi1>, vector<16x32xf32>
    %cst_66 = arith.constant dense<0x7F800000> : vector<16xf32>
    %186 = vector.multi_reduction <minimumf>, %185, %cst_66 [1] : vector<16x32xf32> to vector<16xf32>
    %187 = vector.shape_cast %186 : vector<16xf32> to vector<16x1xf32>
    %188 = vector.broadcast %187 : vector<16x1xf32> to vector<16x32xf32>
    %189 = arith.cmpf oeq, %185, %188 : vector<16x32xf32>
    %cst_67 = arith.constant 3.200000e+01 : f32
    %190 = vector.broadcast %cst_67 : f32 to vector<16x32xf32>
    %191 = arith.select %189, %17, %190 : vector<16x32xi1>, vector<16x32xf32>
    %cst_68 = arith.constant dense<0x7F800000> : vector<16xf32>
    %192 = vector.multi_reduction <minimumf>, %191, %cst_68 [1] : vector<16x32xf32> to vector<16xf32>
    %193 = vector.shape_cast %192 : vector<16xf32> to vector<16x1xf32>
    %194 = vector.broadcast %193 : vector<16x1xf32> to vector<16x32xf32>
    %195 = arith.cmpf oeq, %191, %194 : vector<16x32xf32>
    %cst_69 = arith.constant 3.000000e+38 : f32
    %196 = vector.broadcast %cst_69 : f32 to vector<16x32xf32>
    %197 = arith.select %195, %196, %185 : vector<16x32xi1>, vector<16x32xf32>
    %cst_70 = arith.constant dense<0x7F800000> : vector<16xf32>
    %198 = vector.multi_reduction <minimumf>, %197, %cst_70 [1] : vector<16x32xf32> to vector<16xf32>
    %199 = vector.shape_cast %198 : vector<16xf32> to vector<16x1xf32>
    %200 = vector.broadcast %199 : vector<16x1xf32> to vector<16x32xf32>
    %201 = arith.cmpf oeq, %197, %200 : vector<16x32xf32>
    %cst_71 = arith.constant 3.200000e+01 : f32
    %202 = vector.broadcast %cst_71 : f32 to vector<16x32xf32>
    %203 = arith.select %201, %17, %202 : vector<16x32xi1>, vector<16x32xf32>
    %cst_72 = arith.constant dense<0x7F800000> : vector<16xf32>
    %204 = vector.multi_reduction <minimumf>, %203, %cst_72 [1] : vector<16x32xf32> to vector<16xf32>
    %205 = vector.shape_cast %204 : vector<16xf32> to vector<16x1xf32>
    %206 = tpu.concatenate %25, %37, %49, %61, %73, %85, %97, %109, %121, %133, %145, %157, %169, %181, %193, %205 in 1 : vector<16x1xf32>, vector<16x1xf32>, vector<16x1xf32>, vector<16x1xf32>, vector<16x1xf32>, vector<16x1xf32>, vector<16x1xf32>, vector<16x1xf32>, vector<16x1xf32>, vector<16x1xf32>, vector<16x1xf32>, vector<16x1xf32>, vector<16x1xf32>, vector<16x1xf32>, vector<16x1xf32>, vector<16x1xf32> -> vector<16x16xf32>
    %207 = arith.fptosi %206 : vector<16x16xf32> to vector<16x16xi32>
    %c0_73 = arith.constant 0 : index
    %c0_74 = arith.constant 0 : index
    %c0_75 = arith.constant 0 : index
    %208 = vector.load %arg5[%c0_73, %c0_74, %c0_75] : memref<1x16x16xi32, #tpu.memory_space<vmem>>, vector<1x16x16xi32>
    %209 = vector.shape_cast %208 : vector<1x16x16xi32> to vector<16x16xi32>
    %210 = vector.shape_cast %207 : vector<16x16xi32> to vector<1x16x16xi32>
    tpu.vector_store %arg5[%c0_73, %c0_74, %c0_75], %210 {strides = array<i32>} : memref<1x16x16xi32, #tpu.memory_space<vmem>>, vector<1x16x16xi32>,
    return
  }
  func.func @transform_0(%arg0: i32, %arg1: i32) -> (i32, i32, i32) {
    %c0_i32 = arith.constant 0 : i32
    %c0_i32_0 = arith.constant 0 : i32
    return %arg0, %arg1, %c0_i32 : i32, i32, i32
  }
  func.func @transform_1(%arg0: i32, %arg1: i32) -> (i32, i32, i32) {
    %c0_i32 = arith.constant 0 : i32
    %c0_i32_0 = arith.constant 0 : i32
    %c0_i32_1 = arith.constant 0 : i32
    return %arg0, %c0_i32, %c0_i32_0 : i32, i32, i32
  }
  func.func @transform_2(%arg0: i32, %arg1: i32) -> (i32, i32, i32) {
    %c0_i32 = arith.constant 0 : i32
    %c0_i32_0 = arith.constant 0 : i32
    %c0_i32_1 = arith.constant 0 : i32
    return %arg0, %c0_i32, %c0_i32_0 : i32, i32, i32
  }
  func.func @transform_3(%arg0: i32, %arg1: i32) -> (i32, i32, i32) {
    %c0_i32 = arith.constant 0 : i32
    %c0_i32_0 = arith.constant 0 : i32
    return %arg0, %arg1, %c0_i32 : i32, i32, i32
  }
}

module attributes {stable_mosaic.version = 11 : i64} {
  func.func @kernel(%arg0: i32, %arg1: i32, %arg2: memref<1x256x19xf32, #tpu.memory_space<vmem>>, %arg3: memref<3x8xf32, #tpu.memory_space<vmem>>, %arg4: memref<1x8xf32, #tpu.memory_space<vmem>>, %arg5: memref<8x8xf32, #tpu.memory_space<vmem>>, %arg6: memref<1x8xf32, #tpu.memory_space<vmem>>, %arg7: memref<8x16xf32, #tpu.memory_space<vmem>>, %arg8: memref<1x16xf32, #tpu.memory_space<vmem>>, %arg9: memref<19x512xf32, #tpu.memory_space<vmem>>, %arg10: memref<1x32xf32, #tpu.memory_space<vmem>>, %arg11: memref<32x64xf32, #tpu.memory_space<vmem>>, %arg12: memref<1x64xf32, #tpu.memory_space<vmem>>, %arg13: memref<1x64x16xf32, #tpu.memory_space<vmem>>) attributes {dimension_semantics = [#tpu.dimension_semantics<parallel>, #tpu.dimension_semantics<parallel>], iteration_bounds = array<i64: 2, 1>, scalar_prefetch = 0 : i64, scratch_operands = 0 : i64, tpu.core_type = #tpu.core_type<tc>, window_params = [{transform_indices = @transform_0, window_bounds = array<i64: 1, 256, 19>}, {pipeline_mode = #tpu.pipeline_mode<synchronous>, transform_indices = @transform_1, window_bounds = array<i64: 3, 8>}, {pipeline_mode = #tpu.pipeline_mode<synchronous>, transform_indices = @transform_2, window_bounds = array<i64: 1, 8>}, {pipeline_mode = #tpu.pipeline_mode<synchronous>, transform_indices = @transform_3, window_bounds = array<i64: 8, 8>}, {pipeline_mode = #tpu.pipeline_mode<synchronous>, transform_indices = @transform_4, window_bounds = array<i64: 1, 8>}, {pipeline_mode = #tpu.pipeline_mode<synchronous>, transform_indices = @transform_5, window_bounds = array<i64: 8, 16>}, {pipeline_mode = #tpu.pipeline_mode<synchronous>, transform_indices = @transform_6, window_bounds = array<i64: 1, 16>}, {pipeline_mode = #tpu.pipeline_mode<synchronous>, transform_indices = @transform_7, window_bounds = array<i64: 19, 512>}, {pipeline_mode = #tpu.pipeline_mode<synchronous>, transform_indices = @transform_8, window_bounds = array<i64: 1, 32>}, {pipeline_mode = #tpu.pipeline_mode<synchronous>, transform_indices = @transform_9, window_bounds = array<i64: 32, 64>}, {pipeline_mode = #tpu.pipeline_mode<synchronous>, transform_indices = @transform_10, window_bounds = array<i64: 1, 64>}, {transform_indices = @transform_11, window_bounds = array<i64: 1, 64, 16>}]} {
    %c0 = arith.constant 0 : index
    %c0_0 = arith.constant 0 : index
    %c0_1 = arith.constant 0 : index
    %0 = vector.load %arg2[%c0, %c0_0, %c0_1] : memref<1x256x19xf32, #tpu.memory_space<vmem>>, vector<1x256x19xf32>
    %1 = vector.shape_cast %0 : vector<1x256x19xf32> to vector<256x19xf32>
    %2 = vector.extract_strided_slice %1 {offsets = [0, 0], sizes = [256, 3], strides = [1, 1]} : vector<256x19xf32> to vector<256x3xf32>
    %c0_2 = arith.constant 0 : index
    %c0_3 = arith.constant 0 : index
    %3 = vector.load %arg3[%c0_2, %c0_3] : memref<3x8xf32, #tpu.memory_space<vmem>>, vector<3x8xf32>
    %cst = arith.constant dense<0.000000e+00> : vector<256x8xf32>
    %4 = tpu.matmul %2, %3, %cst {dimension_numbers = #tpu.dot_dimension_numbers<[1], [0], [0], [1], [0, 0, 1, 1], [], []>} : vector<256x3xf32>, vector<3x8xf32>, vector<256x8xf32> -> vector<256x8xf32>
    %c0_4 = arith.constant 0 : index
    %c0_5 = arith.constant 0 : index
    %5 = vector.load %arg4[%c0_4, %c0_5] : memref<1x8xf32, #tpu.memory_space<vmem>>, vector<1x8xf32>
    %6 = vector.broadcast %5 : vector<1x8xf32> to vector<256x8xf32>
    %7 = arith.addf %4, %6 : vector<256x8xf32>
    %cst_6 = arith.constant 0.000000e+00 : f32
    %8 = vector.broadcast %cst_6 : f32 to vector<256x8xf32>
    %9 = arith.maximumf %7, %8 : vector<256x8xf32>
    %c0_7 = arith.constant 0 : index
    %c0_8 = arith.constant 0 : index
    %10 = vector.load %arg5[%c0_7, %c0_8] : memref<8x8xf32, #tpu.memory_space<vmem>>, vector<8x8xf32>
    %cst_9 = arith.constant dense<0.000000e+00> : vector<256x8xf32>
    %11 = tpu.matmul %9, %10, %cst_9 {dimension_numbers = #tpu.dot_dimension_numbers<[1], [0], [0], [1], [0, 0, 1, 1], [], []>} : vector<256x8xf32>, vector<8x8xf32>, vector<256x8xf32> -> vector<256x8xf32>
    %c0_10 = arith.constant 0 : index
    %c0_11 = arith.constant 0 : index
    %12 = vector.load %arg6[%c0_10, %c0_11] : memref<1x8xf32, #tpu.memory_space<vmem>>, vector<1x8xf32>
    %13 = vector.broadcast %12 : vector<1x8xf32> to vector<256x8xf32>
    %14 = arith.addf %11, %13 : vector<256x8xf32>
    %cst_12 = arith.constant 0.000000e+00 : f32
    %15 = vector.broadcast %cst_12 : f32 to vector<256x8xf32>
    %16 = arith.maximumf %14, %15 : vector<256x8xf32>
    %c0_13 = arith.constant 0 : index
    %c0_14 = arith.constant 0 : index
    %17 = vector.load %arg7[%c0_13, %c0_14] : memref<8x16xf32, #tpu.memory_space<vmem>>, vector<8x16xf32>
    %cst_15 = arith.constant dense<0.000000e+00> : vector<256x16xf32>
    %18 = tpu.matmul %16, %17, %cst_15 {dimension_numbers = #tpu.dot_dimension_numbers<[1], [0], [0], [1], [0, 0, 1, 1], [], []>} : vector<256x8xf32>, vector<8x16xf32>, vector<256x16xf32> -> vector<256x16xf32>
    %c0_16 = arith.constant 0 : index
    %c0_17 = arith.constant 0 : index
    %19 = vector.load %arg8[%c0_16, %c0_17] : memref<1x16xf32, #tpu.memory_space<vmem>>, vector<1x16xf32>
    %20 = vector.broadcast %19 : vector<1x16xf32> to vector<256x16xf32>
    %21 = arith.addf %18, %20 : vector<256x16xf32>
    %cst_18 = arith.constant 0.000000e+00 : f32
    %22 = vector.broadcast %cst_18 : f32 to vector<256x16xf32>
    %23 = arith.maximumf %21, %22 : vector<256x16xf32>
    %c0_19 = arith.constant 0 : index
    %c0_20 = arith.constant 0 : index
    %24 = vector.load %arg9[%c0_19, %c0_20] : memref<19x512xf32, #tpu.memory_space<vmem>>, vector<19x512xf32>
    %cst_21 = arith.constant dense<0.000000e+00> : vector<256x512xf32>
    %25 = tpu.matmul %1, %24, %cst_21 {dimension_numbers = #tpu.dot_dimension_numbers<[1], [0], [0], [1], [0, 0, 1, 1], [], []>} : vector<256x19xf32>, vector<19x512xf32>, vector<256x512xf32> -> vector<256x512xf32>
    %cst_22 = arith.constant 0.000000e+00 : f32
    %26 = vector.broadcast %cst_22 : f32 to vector<256x32xf32>
    %27 = vector.extract_strided_slice %23 {offsets = [0, 0], sizes = [256, 1], strides = [1, 1]} : vector<256x16xf32> to vector<256x1xf32>
    %28 = vector.extract_strided_slice %25 {offsets = [0, 0], sizes = [256, 32], strides = [1, 1]} : vector<256x512xf32> to vector<256x32xf32>
    %29 = vector.broadcast %27 : vector<256x1xf32> to vector<256x32xf32>
    %30 = arith.mulf %29, %28 : vector<256x32xf32>
    %31 = arith.addf %26, %30 : vector<256x32xf32>
    %32 = vector.extract_strided_slice %23 {offsets = [0, 1], sizes = [256, 1], strides = [1, 1]} : vector<256x16xf32> to vector<256x1xf32>
    %33 = vector.extract_strided_slice %25 {offsets = [0, 32], sizes = [256, 32], strides = [1, 1]} : vector<256x512xf32> to vector<256x32xf32>
    %34 = vector.broadcast %32 : vector<256x1xf32> to vector<256x32xf32>
    %35 = arith.mulf %34, %33 : vector<256x32xf32>
    %36 = arith.addf %31, %35 : vector<256x32xf32>
    %37 = vector.extract_strided_slice %23 {offsets = [0, 2], sizes = [256, 1], strides = [1, 1]} : vector<256x16xf32> to vector<256x1xf32>
    %38 = vector.extract_strided_slice %25 {offsets = [0, 64], sizes = [256, 32], strides = [1, 1]} : vector<256x512xf32> to vector<256x32xf32>
    %39 = vector.broadcast %37 : vector<256x1xf32> to vector<256x32xf32>
    %40 = arith.mulf %39, %38 : vector<256x32xf32>
    %41 = arith.addf %36, %40 : vector<256x32xf32>
    %42 = vector.extract_strided_slice %23 {offsets = [0, 3], sizes = [256, 1], strides = [1, 1]} : vector<256x16xf32> to vector<256x1xf32>
    %43 = vector.extract_strided_slice %25 {offsets = [0, 96], sizes = [256, 32], strides = [1, 1]} : vector<256x512xf32> to vector<256x32xf32>
    %44 = vector.broadcast %42 : vector<256x1xf32> to vector<256x32xf32>
    %45 = arith.mulf %44, %43 : vector<256x32xf32>
    %46 = arith.addf %41, %45 : vector<256x32xf32>
    %47 = vector.extract_strided_slice %23 {offsets = [0, 4], sizes = [256, 1], strides = [1, 1]} : vector<256x16xf32> to vector<256x1xf32>
    %48 = vector.extract_strided_slice %25 {offsets = [0, 128], sizes = [256, 32], strides = [1, 1]} : vector<256x512xf32> to vector<256x32xf32>
    %49 = vector.broadcast %47 : vector<256x1xf32> to vector<256x32xf32>
    %50 = arith.mulf %49, %48 : vector<256x32xf32>
    %51 = arith.addf %46, %50 : vector<256x32xf32>
    %52 = vector.extract_strided_slice %23 {offsets = [0, 5], sizes = [256, 1], strides = [1, 1]} : vector<256x16xf32> to vector<256x1xf32>
    %53 = vector.extract_strided_slice %25 {offsets = [0, 160], sizes = [256, 32], strides = [1, 1]} : vector<256x512xf32> to vector<256x32xf32>
    %54 = vector.broadcast %52 : vector<256x1xf32> to vector<256x32xf32>
    %55 = arith.mulf %54, %53 : vector<256x32xf32>
    %56 = arith.addf %51, %55 : vector<256x32xf32>
    %57 = vector.extract_strided_slice %23 {offsets = [0, 6], sizes = [256, 1], strides = [1, 1]} : vector<256x16xf32> to vector<256x1xf32>
    %58 = vector.extract_strided_slice %25 {offsets = [0, 192], sizes = [256, 32], strides = [1, 1]} : vector<256x512xf32> to vector<256x32xf32>
    %59 = vector.broadcast %57 : vector<256x1xf32> to vector<256x32xf32>
    %60 = arith.mulf %59, %58 : vector<256x32xf32>
    %61 = arith.addf %56, %60 : vector<256x32xf32>
    %62 = vector.extract_strided_slice %23 {offsets = [0, 7], sizes = [256, 1], strides = [1, 1]} : vector<256x16xf32> to vector<256x1xf32>
    %63 = vector.extract_strided_slice %25 {offsets = [0, 224], sizes = [256, 32], strides = [1, 1]} : vector<256x512xf32> to vector<256x32xf32>
    %64 = vector.broadcast %62 : vector<256x1xf32> to vector<256x32xf32>
    %65 = arith.mulf %64, %63 : vector<256x32xf32>
    %66 = arith.addf %61, %65 : vector<256x32xf32>
    %67 = vector.extract_strided_slice %23 {offsets = [0, 8], sizes = [256, 1], strides = [1, 1]} : vector<256x16xf32> to vector<256x1xf32>
    %68 = vector.extract_strided_slice %25 {offsets = [0, 256], sizes = [256, 32], strides = [1, 1]} : vector<256x512xf32> to vector<256x32xf32>
    %69 = vector.broadcast %67 : vector<256x1xf32> to vector<256x32xf32>
    %70 = arith.mulf %69, %68 : vector<256x32xf32>
    %71 = arith.addf %66, %70 : vector<256x32xf32>
    %72 = vector.extract_strided_slice %23 {offsets = [0, 9], sizes = [256, 1], strides = [1, 1]} : vector<256x16xf32> to vector<256x1xf32>
    %73 = vector.extract_strided_slice %25 {offsets = [0, 288], sizes = [256, 32], strides = [1, 1]} : vector<256x512xf32> to vector<256x32xf32>
    %74 = vector.broadcast %72 : vector<256x1xf32> to vector<256x32xf32>
    %75 = arith.mulf %74, %73 : vector<256x32xf32>
    %76 = arith.addf %71, %75 : vector<256x32xf32>
    %77 = vector.extract_strided_slice %23 {offsets = [0, 10], sizes = [256, 1], strides = [1, 1]} : vector<256x16xf32> to vector<256x1xf32>
    %78 = vector.extract_strided_slice %25 {offsets = [0, 320], sizes = [256, 32], strides = [1, 1]} : vector<256x512xf32> to vector<256x32xf32>
    %79 = vector.broadcast %77 : vector<256x1xf32> to vector<256x32xf32>
    %80 = arith.mulf %79, %78 : vector<256x32xf32>
    %81 = arith.addf %76, %80 : vector<256x32xf32>
    %82 = vector.extract_strided_slice %23 {offsets = [0, 11], sizes = [256, 1], strides = [1, 1]} : vector<256x16xf32> to vector<256x1xf32>
    %83 = vector.extract_strided_slice %25 {offsets = [0, 352], sizes = [256, 32], strides = [1, 1]} : vector<256x512xf32> to vector<256x32xf32>
    %84 = vector.broadcast %82 : vector<256x1xf32> to vector<256x32xf32>
    %85 = arith.mulf %84, %83 : vector<256x32xf32>
    %86 = arith.addf %81, %85 : vector<256x32xf32>
    %87 = vector.extract_strided_slice %23 {offsets = [0, 12], sizes = [256, 1], strides = [1, 1]} : vector<256x16xf32> to vector<256x1xf32>
    %88 = vector.extract_strided_slice %25 {offsets = [0, 384], sizes = [256, 32], strides = [1, 1]} : vector<256x512xf32> to vector<256x32xf32>
    %89 = vector.broadcast %87 : vector<256x1xf32> to vector<256x32xf32>
    %90 = arith.mulf %89, %88 : vector<256x32xf32>
    %91 = arith.addf %86, %90 : vector<256x32xf32>
    %92 = vector.extract_strided_slice %23 {offsets = [0, 13], sizes = [256, 1], strides = [1, 1]} : vector<256x16xf32> to vector<256x1xf32>
    %93 = vector.extract_strided_slice %25 {offsets = [0, 416], sizes = [256, 32], strides = [1, 1]} : vector<256x512xf32> to vector<256x32xf32>
    %94 = vector.broadcast %92 : vector<256x1xf32> to vector<256x32xf32>
    %95 = arith.mulf %94, %93 : vector<256x32xf32>
    %96 = arith.addf %91, %95 : vector<256x32xf32>
    %97 = vector.extract_strided_slice %23 {offsets = [0, 14], sizes = [256, 1], strides = [1, 1]} : vector<256x16xf32> to vector<256x1xf32>
    %98 = vector.extract_strided_slice %25 {offsets = [0, 448], sizes = [256, 32], strides = [1, 1]} : vector<256x512xf32> to vector<256x32xf32>
    %99 = vector.broadcast %97 : vector<256x1xf32> to vector<256x32xf32>
    %100 = arith.mulf %99, %98 : vector<256x32xf32>
    %101 = arith.addf %96, %100 : vector<256x32xf32>
    %102 = vector.extract_strided_slice %23 {offsets = [0, 15], sizes = [256, 1], strides = [1, 1]} : vector<256x16xf32> to vector<256x1xf32>
    %103 = vector.extract_strided_slice %25 {offsets = [0, 480], sizes = [256, 32], strides = [1, 1]} : vector<256x512xf32> to vector<256x32xf32>
    %104 = vector.broadcast %102 : vector<256x1xf32> to vector<256x32xf32>
    %105 = arith.mulf %104, %103 : vector<256x32xf32>
    %106 = arith.addf %101, %105 : vector<256x32xf32>
    %107 = vector.shape_cast %106 : vector<256x32xf32> to vector<16x16x32xf32>
    %cst_23 = arith.constant dense<0.000000e+00> : vector<16x32xf32>
    %108 = vector.multi_reduction <add>, %107, %cst_23 [1] : vector<16x16x32xf32> to vector<16x32xf32>
    %c0_24 = arith.constant 0 : index
    %c0_25 = arith.constant 0 : index
    %109 = vector.load %arg10[%c0_24, %c0_25] : memref<1x32xf32, #tpu.memory_space<vmem>>, vector<1x32xf32>
    %110 = vector.broadcast %109 : vector<1x32xf32> to vector<16x32xf32>
    %111 = arith.addf %108, %110 : vector<16x32xf32>
    %c0_26 = arith.constant 0 : index
    %c0_27 = arith.constant 0 : index
    %112 = vector.load %arg11[%c0_26, %c0_27] : memref<32x64xf32, #tpu.memory_space<vmem>>, vector<32x64xf32>
    %cst_28 = arith.constant dense<0.000000e+00> : vector<16x64xf32>
    %113 = tpu.matmul %111, %112, %cst_28 {dimension_numbers = #tpu.dot_dimension_numbers<[1], [0], [0], [1], [0, 0, 1, 1], [], []>} : vector<16x32xf32>, vector<32x64xf32>, vector<16x64xf32> -> vector<16x64xf32>
    %c0_29 = arith.constant 0 : index
    %c0_30 = arith.constant 0 : index
    %114 = vector.load %arg12[%c0_29, %c0_30] : memref<1x64xf32, #tpu.memory_space<vmem>>, vector<1x64xf32>
    %115 = vector.broadcast %114 : vector<1x64xf32> to vector<16x64xf32>
    %116 = arith.addf %113, %115 : vector<16x64xf32>
    %cst_31 = arith.constant 0.000000e+00 : f32
    %117 = vector.broadcast %cst_31 : f32 to vector<16x64xf32>
    %118 = arith.cmpf ogt, %116, %117 : vector<16x64xf32>
    %cst_32 = arith.constant 1.000000e-01 : f32
    %119 = vector.broadcast %cst_32 : f32 to vector<16x64xf32>
    %120 = arith.mulf %119, %116 : vector<16x64xf32>
    %121 = arith.select %118, %116, %120 : vector<16x64xi1>, vector<16x64xf32>
    %122 = tpu.transpose %121, [1, 0] : vector<16x64xf32> -> vector<64x16xf32>
    %c0_33 = arith.constant 0 : index
    %c0_34 = arith.constant 0 : index
    %c0_35 = arith.constant 0 : index
    %123 = vector.load %arg13[%c0_33, %c0_34, %c0_35] : memref<1x64x16xf32, #tpu.memory_space<vmem>>, vector<1x64x16xf32>
    %124 = vector.shape_cast %123 : vector<1x64x16xf32> to vector<64x16xf32>
    %125 = vector.shape_cast %122 : vector<64x16xf32> to vector<1x64x16xf32>
    tpu.vector_store %arg13[%c0_33, %c0_34, %c0_35], %125 {strides = array<i32>} : memref<1x64x16xf32, #tpu.memory_space<vmem>>, vector<1x64x16xf32>,
    return
  }
  func.func @transform_0(%arg0: i32, %arg1: i32) -> (i32, i32, i32) {
    %c0_i32 = arith.constant 0 : i32
    %c0_i32_0 = arith.constant 0 : i32
    return %arg0, %arg1, %c0_i32 : i32, i32, i32
  }
  func.func @transform_1(%arg0: i32, %arg1: i32) -> (i32, i32) {
    %c0_i32 = arith.constant 0 : i32
    %c0_i32_0 = arith.constant 0 : i32
    %c0_i32_1 = arith.constant 0 : i32
    return %c0_i32, %c0_i32_0 : i32, i32
  }
  func.func @transform_2(%arg0: i32, %arg1: i32) -> (i32, i32) {
    %c0_i32 = arith.constant 0 : i32
    %c0_i32_0 = arith.constant 0 : i32
    %c0_i32_1 = arith.constant 0 : i32
    return %c0_i32, %c0_i32_0 : i32, i32
  }
  func.func @transform_3(%arg0: i32, %arg1: i32) -> (i32, i32) {
    %c0_i32 = arith.constant 0 : i32
    %c0_i32_0 = arith.constant 0 : i32
    %c0_i32_1 = arith.constant 0 : i32
    return %c0_i32, %c0_i32_0 : i32, i32
  }
  func.func @transform_4(%arg0: i32, %arg1: i32) -> (i32, i32) {
    %c0_i32 = arith.constant 0 : i32
    %c0_i32_0 = arith.constant 0 : i32
    %c0_i32_1 = arith.constant 0 : i32
    return %c0_i32, %c0_i32_0 : i32, i32
  }
  func.func @transform_5(%arg0: i32, %arg1: i32) -> (i32, i32) {
    %c0_i32 = arith.constant 0 : i32
    %c0_i32_0 = arith.constant 0 : i32
    %c0_i32_1 = arith.constant 0 : i32
    return %c0_i32, %c0_i32_0 : i32, i32
  }
  func.func @transform_6(%arg0: i32, %arg1: i32) -> (i32, i32) {
    %c0_i32 = arith.constant 0 : i32
    %c0_i32_0 = arith.constant 0 : i32
    %c0_i32_1 = arith.constant 0 : i32
    return %c0_i32, %c0_i32_0 : i32, i32
  }
  func.func @transform_7(%arg0: i32, %arg1: i32) -> (i32, i32) {
    %c0_i32 = arith.constant 0 : i32
    %c0_i32_0 = arith.constant 0 : i32
    %c0_i32_1 = arith.constant 0 : i32
    return %c0_i32, %c0_i32_0 : i32, i32
  }
  func.func @transform_8(%arg0: i32, %arg1: i32) -> (i32, i32) {
    %c0_i32 = arith.constant 0 : i32
    %c0_i32_0 = arith.constant 0 : i32
    %c0_i32_1 = arith.constant 0 : i32
    return %c0_i32, %c0_i32_0 : i32, i32
  }
  func.func @transform_9(%arg0: i32, %arg1: i32) -> (i32, i32) {
    %c0_i32 = arith.constant 0 : i32
    %c0_i32_0 = arith.constant 0 : i32
    %c0_i32_1 = arith.constant 0 : i32
    return %c0_i32, %c0_i32_0 : i32, i32
  }
  func.func @transform_10(%arg0: i32, %arg1: i32) -> (i32, i32) {
    %c0_i32 = arith.constant 0 : i32
    %c0_i32_0 = arith.constant 0 : i32
    %c0_i32_1 = arith.constant 0 : i32
    return %c0_i32, %c0_i32_0 : i32, i32
  }
  func.func @transform_11(%arg0: i32, %arg1: i32) -> (i32, i32, i32) {
    %c0_i32 = arith.constant 0 : i32
    %c0_i32_0 = arith.constant 0 : i32
    return %arg0, %c0_i32, %arg1 : i32, i32, i32
  }
}

</mosaic_0001>

<bundles_post_ra>
// kernel: custom-call.8
= control target key start
LH: loop header
LB: loop body
LE: loop exit
PB: predicated region body
PF: predicated region fallthrough
CT: control target
= control target key end

     0   :  { %s6_s0 = inlined_call_operand.vmem [shape: f32[2,32], index: 0, kind: output, shape index: {}]  }

// kernel: pointconv_svdd.2
= control target key start
LH: loop header
LB: loop body
LE: loop exit
PB: predicated region body
PF: predicated region fallthrough
CT: control target
= control target key end

     0   :  { %s926_s12 = smov 0   ;;  %s928_s13 = smov 0   ;;  %s1214_s0 = inlined_call_operand.vmem [shape: f32[2,16,3], index: 0, kind: input, shape index: {}]   ;;  %s1215_s1 = inlined_call_operand.vmem [shape: f32[2,3,32], index: 1, kind: input, shape index: {}]   ;;  %s1216_s2 = inlined_call_operand.vmem [shape: f32[2,1,32], index: 2, kind: input, shape index: {}]   ;;  %s1217_s3 = inlined_call_operand.vmem [shape: s32[2,16,16], index: 3, kind: output, shape index: {}]  }
   0x1   :  { %s930_s14 = smov 0  }
   0x2 LB: > { %s25_s15 = sadd.s32 1, %s900_s13  ;;  %p832_p0 = scmp.ge.s32.totalorder %s904_s14, 1  ;;  %s904_s14 = sphi %s930_s14, %s13_s14   ;;  %s900_s13 = sphi %s928_s13, %s1219_s13   ;;  %s896_s12 = sphi %s926_s12, %s1218_s12  }
   0x3   : > { %p27_p1 = scmp.ge.s32.totalorder %s25_s15, 2  ;;  %p175_p2 = scmp.lt.s32.totalorder %s904_s14, 3 }
   0x5   : > { %s1221_s15 = smov (%p27_p1, %s25_s15), 0  ;;  %p176_p3 = pnand %p832_p0, %p175_p2 }
   0x6   : > { %p215_p4 = scmp.lt.s32.totalorder (!%p176_p3), %s896_s12, 1  ;;  %vm251_vm0 = vcmask (!%p176_p3), 1042432   ;;  %vm244_vm1 = vcmask (!%p176_p3), 23552   ;;  %vm354_vm2 = vcmask (!%p176_p3), 261120   ;;  %v351_v20 = vlaneseq (!%p176_p3) }
   0x7   : > { %179 = sbr.rel (%p176_p3) target bundleno = 4885 (0x1315), region = 32 }
   0x8   : > { %v352_v21 = vand.u32 (!%p176_p3), 127, %v351_v20 }
   0xa   : > { %v966_v22 = vcvt.s32.f32 (!%p176_p3), %v352_v21 }
   0xe   : > { %s1223_s12 = smov (!%p215_p4, %s896_s12), 1 }
   0xf   : > { %s835_s16 = sshll.u32 %s1223_s12, 2  ;;  %s844_s17 = sshll.u32 %s1223_s12, 4 }
  0x10   : > { %s227_s20 = scalar_lea.vmem %s1215_s1, %s835_s16  ;;  %s222_s23 = scalar_lea.vmem %s1214_s0, %s844_s17 }
  0x11   : > { %v243_v0 = vld [vmem:[%s227_s20] sm:$0x7]  ;;  %v242_v2 = vld [vmem:[%s222_s23 + $0x8] sm:$0xff]  ;;  %s230_s26 = scalar_lea.vmem %s1216_s2, %s1223_s12  ;;  %s239_s29 = scalar_lea.vmem %s1217_s3, %s844_s17 }
  0x12   : > { %v241_v1 = vld [vmem:[%s222_s23] sm:$0xff]  ;;  %849 = vmatprep.subr.msk.mxu0 %vm251_vm0, %v243_v0  ;;  %v331_v4 = vmul.f32 %v242_v2, %v242_v2 }
  0x13   : > { %851 = vmatprep.mubr.msk.f32.mxu0 %vm244_vm1, %v241_v1  ;;  %v330_v3 = vmul.f32 %v241_v1, %v241_v1  ;;  %850 = vmatpush3.msk.msra.mxu0 %vm251_vm0, %v243_v0  ;;  %v841_v8 = vld [vmem:[%s230_s26] ss:$0 sm:$0xff] }
  0x14   : > { %852 = vmatmul.mubr.msk.f32.vlgmr.msra.gmra.mrb[0].mxu0 %vm244_vm1, %v242_v2  ;;  %v335_v6 = vsel %vm244_vm1, %v331_v4, 0.0 }
  0x15   : > { %v332_v5 = vsel %vm244_vm1, %v330_v3, 0.0 }
  0x16   : > { %333 = vadd.xlane.f32.xlu0 %v332_v5 }
  0x1a   : > { %336 = vadd.xlane.f32.xlu0 %v335_v6 }
  0xa3   : > { %v334_v7 = vpop.xlane.xlu0 %333 }
  0xa4   : > { %v345_v11 = vadd.f32 %v841_v8, %v334_v7 }
  0xa7   : > { %v337_v9 = vpop.xlane.xlu0 %336 }
  0xa8   : > { %v346_v10 = vadd.f32 %v841_v8, %v337_v9 }
  0xe7   : > { %v853_v12 = vpop.f32.mrb[0].mxu0 }
  0xe8   : > { %v348_v13 = vmul.f32 2.0, %v853_v12  ;;  %v321_v14 = vpop.f32.mrb[1].mxu0 }
  0xe9   : > { %v347_v15 = vmul.f32 2.0, %v321_v14 }
  0xea   : > { %v350_v16 = vsub.f32 %v346_v10, %v348_v13 }
  0xeb   : > { %v349_v17 = vsub.f32 %v345_v11, %v347_v15 }
  0xec   : > { %v358_v19 = vsel %vm354_vm2, %v350_v16, inf }
  0xed   : > { %v355_v18 = vsel %vm354_vm2, %v349_v17, inf }
  0xee   : > { %356 = vmin.xlane.f32.xlu1 %v355_v18 }
  0xf2   : > { %359 = vmin.xlane.f32.xlu1 %v358_v19 }
 0x17b   : > { %v357_v23 = vpop.xlane.xlu1 %356 }
 0x17c   : > { %vm361_vm3 = vcmp.eq.f32.partialorder %v349_v17, %v357_v23 }
 0x17d   : > { %v363_v24 = vsel %vm361_vm3, %v966_v22, 32.0 }
 0x17e   : > { %v365_v25 = vsel %vm354_vm2, %v363_v24, inf }
 0x17f   : > { %366 = vmin.xlane.f32.xlu0 %v365_v25  ;;  %v360_v26 = vpop.xlane.xlu1 %359 }
 0x180   : > { %vm362_vm4 = vcmp.eq.f32.partialorder %v350_v16, %v360_v26 }
 0x181   : > { %v364_v27 = vsel %vm362_vm4, %v966_v22, 32.0 }
 0x182   : > { %v368_v28 = vsel %vm354_vm2, %v364_v27, inf }
 0x183   : > { %369 = vmin.xlane.f32.xlu1 %v368_v28 }
 0x20c   : > { %v972_v29 = vpop.xlane.xlu0 %366 }
 0x20d   : > { %vm371_vm5 = vcmp.eq.f32.partialorder %v363_v24, %v972_v29 }
 0x20e   : > { %v373_v30 = vsel %vm371_vm5, 3e+38, %v349_v17 }
 0x20f   : > { %v375_v31 = vsel %vm354_vm2, %v373_v30, inf }
 0x210   : > { %376 = vmin.xlane.f32.xlu0 %v375_v31  ;;  %v976_v32 = vpop.xlane.xlu1 %369 }
 0x211   : > { %vm372_vm6 = vcmp.eq.f32.partialorder %v364_v27, %v976_v32 }
 0x212   : > { %v374_v33 = vsel %vm372_vm6, 3e+38, %v350_v16 }
 0x213   : > { %v378_v34 = vsel %vm354_vm2, %v374_v33, inf }
 0x214   : > { %379 = vmin.xlane.f32.xlu1 %v378_v34 }
 0x29d   : > { %v377_v35 = vpop.xlane.xlu0 %376 }
 0x29e   : > { %vm381_vm7 = vcmp.eq.f32.partialorder %v373_v30, %v377_v35 }
 0x29f   : > { %v383_v36 = vsel %vm381_vm7, %v966_v22, 32.0 }
 0x2a0   : > { %v385_v37 = vsel %vm354_vm2, %v383_v36, inf }
 0x2a1   : > { %386 = vmin.xlane.f32.xlu0 %v385_v37  ;;  %v380_v38 = vpop.xlane.xlu1 %379 }
 0x2a2   : > { %vm382_vm8 = vcmp.eq.f32.partialorder %v374_v33, %v380_v38 }
 0x2a3   : > { %v384_v39 = vsel %vm382_vm8, %v966_v22, 32.0 }
 0x2a4   : > { %v388_v40 = vsel %vm354_vm2, %v384_v39, inf }
 0x2a5   : > { %389 = vmin.xlane.f32.xlu1 %v388_v40 }
 0x32e   : > { %v984_v41 = vpop.xlane.xlu0 %386 }
 0x32f   : > { %vm391_vm9 = vcmp.eq.f32.partialorder %v383_v36, %v984_v41 }
 0x330   : > { %v393_v42 = vsel %vm391_vm9, 3e+38, %v373_v30 }
 0x331   : > { %v395_v43 = vsel %vm354_vm2, %v393_v42, inf }
 0x332   : > { %396 = vmin.xlane.f32.xlu0 %v395_v43  ;;  %v988_v44 = vpop.xlane.xlu1 %389 }
 0x333   : > { %vm392_vm10 = vcmp.eq.f32.partialorder %v384_v39, %v988_v44 }
 0x334   : > { %v394_v45 = vsel %vm392_vm10, 3e+38, %v374_v33 }
 0x335   : > { %v398_v46 = vsel %vm354_vm2, %v394_v45, inf }
 0x336   : > { %399 = vmin.xlane.f32.xlu1 %v398_v46 }
 0x3bf   : > { %v397_v47 = vpop.xlane.xlu0 %396 }
 0x3c0   : > { %vm401_vm11 = vcmp.eq.f32.partialorder %v393_v42, %v397_v47 }
 0x3c1   : > { %v403_v48 = vsel %vm401_vm11, %v966_v22, 32.0 }
 0x3c2   : > { %v405_v49 = vsel %vm354_vm2, %v403_v48, inf }
 0x3c3   : > { %406 = vmin.xlane.f32.xlu0 %v405_v49  ;;  %v400_v50 = vpop.xlane.xlu1 %399 }
 0x3c4   : > { %vm402_vm12 = vcmp.eq.f32.partialorder %v394_v45, %v400_v50 }
 0x3c5   : > { %v404_v51 = vsel %vm402_vm12, %v966_v22, 32.0 }
 0x3c6   : > { %v408_v52 = vsel %vm354_vm2, %v404_v51, inf }
 0x3c7   : > { %409 = vmin.xlane.f32.xlu1 %v408_v52 }
 0x450   : > { %v996_v53 = vpop.xlane.xlu0 %406 }
 0x451   : > { %vm411_vm13 = vcmp.eq.f32.partialorder %v403_v48, %v996_v53 }
 0x452   : > { %v413_v54 = vsel %vm411_vm13, 3e+38, %v393_v42 }
 0x453   : > { %v415_v55 = vsel %vm354_vm2, %v413_v54, inf }
 0x454   : > { %416 = vmin.xlane.f32.xlu0 %v415_v55  ;;  %v1000_v56 = vpop.xlane.xlu1 %409 }
 0x455   : > { %vm412_vm14 = vcmp.eq.f32.partialorder %v404_v51, %v1000_v56 }
 0x456   : > { %v414_v57 = vsel %vm412_vm14, 3e+38, %v394_v45 }
 0x457   : > { %v418_v58 = vsel %vm354_vm2, %v414_v57, inf }
 0x458   : > { %419 = vmin.xlane.f32.xlu1 %v418_v58 }
 0x4e1   : > { %v417_v59 = vpop.xlane.xlu0 %416 }
 0x4e2   : > { %vm421_vm15 = vcmp.eq.f32.partialorder %v413_v54, %v417_v59 }
 0x4e3   : > { %v423_v60 = vsel %vm421_vm15, %v966_v22, 32.0 }
 0x4e4   : > { %v425_v61 = vsel %vm354_vm2, %v423_v60, inf }
 0x4e5   : > { %426 = vmin.xlane.f32.xlu0 %v425_v61  ;;  %v420_v62 = vpop.xlane.xlu1 %419 }
 0x4e6   : > { %vm422_vm0 = vcmp.eq.f32.partialorder %v414_v57, %v420_v62 }
 0x4e7   : > { %v424_v63 = vsel %vm422_vm0, %v966_v22, 32.0 }
 0x4e8   : > { %v428_v0 = vsel %vm354_vm2, %v424_v63, inf }
 0x4e9   : > { %429 = vmin.xlane.f32.xlu1 %v428_v0 }
 0x572   : > { %v1008_v1 = vpop.xlane.xlu0 %426 }
 0x573   : > { %vm431_vm3 = vcmp.eq.f32.partialorder %v423_v60, %v1008_v1 }
 0x574   : > { %v433_v2 = vsel %vm431_vm3, 3e+38, %v413_v54 }
 0x575   : > { %v435_v3 = vsel %vm354_vm2, %v433_v2, inf }
 0x576   : > { %436 = vmin.xlane.f32.xlu0 %v435_v3  ;;  %v1012_v4 = vpop.xlane.xlu1 %429 }
 0x577   : > { %vm432_vm4 = vcmp.eq.f32.partialorder %v424_v63, %v1012_v4 }
 0x578   : > { %v434_v5 = vsel %vm432_vm4, 3e+38, %v414_v57 }
 0x579   : > { %v438_v6 = vsel %vm354_vm2, %v434_v5, inf }
 0x57a   : > { %439 = vmin.xlane.f32.xlu1 %v438_v6 }
 0x603   : > { %v437_v7 = vpop.xlane.xlu0 %436 }
 0x604   : > { %vm441_vm5 = vcmp.eq.f32.partialorder %v433_v2, %v437_v7 }
 0x605   : > { %v443_v8 = vsel %vm441_vm5, %v966_v22, 32.0 }
 0x606   : > { %v445_v9 = vsel %vm354_vm2, %v443_v8, inf }
 0x607   : > { %446 = vmin.xlane.f32.xlu0 %v445_v9  ;;  %v440_v10 = vpop.xlane.xlu1 %439 }
 0x608   : > { %vm442_vm6 = vcmp.eq.f32.partialorder %v434_v5, %v440_v10 }
 0x609   : > { %v444_v11 = vsel %vm442_vm6, %v966_v22, 32.0 }
 0x60a   : > { %v448_v12 = vsel %vm354_vm2, %v444_v11, inf }
 0x60b   : > { %449 = vmin.xlane.f32.xlu1 %v448_v12 }
 0x694   : > { %v1020_v13 = vpop.xlane.xlu0 %446 }
 0x695   : > { %vm451_vm7 = vcmp.eq.f32.partialorder %v443_v8, %v1020_v13 }
 0x696   : > { %v453_v14 = vsel %vm451_vm7, 3e+38, %v433_v2 }
 0x697   : > { %v455_v15 = vsel %vm354_vm2, %v453_v14, inf }
 0x698   : > { %456 = vmin.xlane.f32.xlu0 %v455_v15  ;;  %v1024_v16 = vpop.xlane.xlu1 %449 }
 0x699   : > { %vm452_vm8 = vcmp.eq.f32.partialorder %v444_v11, %v1024_v16 }
 0x69a   : > { %v454_v17 = vsel %vm452_vm8, 3e+38, %v434_v5 }
 0x69b   : > { %v458_v18 = vsel %vm354_vm2, %v454_v17, inf }
 0x69c   : > { %459 = vmin.xlane.f32.xlu1 %v458_v18 }
 0x725   : > { %v457_v19 = vpop.xlane.xlu0 %456 }
 0x726   : > { %vm461_vm9 = vcmp.eq.f32.partialorder %v453_v14, %v457_v19 }
 0x727   : > { %v463_v20 = vsel %vm461_vm9, %v966_v22, 32.0 }
 0x728   : > { %v465_v21 = vsel %vm354_vm2, %v463_v20, inf }
 0x729   : > { %466 = vmin.xlane.f32.xlu0 %v465_v21  ;;  %v460_v23 = vpop.xlane.xlu1 %459 }
 0x72a   : > { %vm462_vm10 = vcmp.eq.f32.partialorder %v454_v17, %v460_v23 }
 0x72b   : > { %v464_v24 = vsel %vm462_vm10, %v966_v22, 32.0 }
 0x72c   : > { %v468_v25 = vsel %vm354_vm2, %v464_v24, inf }
 0x72d   : > { %469 = vmin.xlane.f32.xlu1 %v468_v25 }
 0x7b6   : > { %v1032_v26 = vpop.xlane.xlu0 %466 }
 0x7b7   : > { %vm471_vm11 = vcmp.eq.f32.partialorder %v463_v20, %v1032_v26 }
 0x7b8   : > { %v473_v27 = vsel %vm471_vm11, 3e+38, %v453_v14 }
 0x7b9   : > { %v475_v28 = vsel %vm354_vm2, %v473_v27, inf }
 0x7ba   : > { %476 = vmin.xlane.f32.xlu0 %v475_v28  ;;  %v1036_v30 = vpop.xlane.xlu1 %469 }
 0x7bb   : > { %vm472_vm12 = vcmp.eq.f32.partialorder %v464_v24, %v1036_v30 }
 0x7bc   : > { %v474_v31 = vsel %vm472_vm12, 3e+38, %v454_v17 }
 0x7bd   : > { %v478_v33 = vsel %vm354_vm2, %v474_v31, inf }
 0x7be   : > { %479 = vmin.xlane.f32.xlu1 %v478_v33 }
 0x847   : > { %v477_v34 = vpop.xlane.xlu0 %476 }
 0x848   : > { %vm481_vm13 = vcmp.eq.f32.partialorder %v473_v27, %v477_v34 }
 0x849   : > { %v483_v35 = vsel %vm481_vm13, %v966_v22, 32.0 }
 0x84a   : > { %v485_v36 = vsel %vm354_vm2, %v483_v35, inf }
 0x84b   : > { %486 = vmin.xlane.f32.xlu0 %v485_v36  ;;  %v480_v37 = vpop.xlane.xlu1 %479 }
 0x84c   : > { %vm482_vm14 = vcmp.eq.f32.partialorder %v474_v31, %v480_v37 }
 0x84d   : > { %v484_v38 = vsel %vm482_vm14, %v966_v22, 32.0 }
 0x84e   : > { %v488_v39 = vsel %vm354_vm2, %v484_v38, inf }
 0x84f   : > { %489 = vmin.xlane.f32.xlu1 %v488_v39 }
 0x8d8   : > { %v1044_v40 = vpop.xlane.xlu0 %486 }
 0x8d9   : > { %vm491_vm15 = vcmp.eq.f32.partialorder %v483_v35, %v1044_v40 }
 0x8da   : > { %v493_v42 = vsel %vm491_vm15, 3e+38, %v473_v27 }
 0x8db   : > { %v495_v43 = vsel %vm354_vm2, %v493_v42, inf }
 0x8dc   : > { %496 = vmin.xlane.f32.xlu0 %v495_v43  ;;  %v1048_v45 = vpop.xlane.xlu1 %489 }
 0x8dd   : > { %vm492_vm0 = vcmp.eq.f32.partialorder %v484_v38, %v1048_v45 }
 0x8de   : > { %v494_v46 = vsel %vm492_vm0, 3e+38, %v474_v31 }
 0x8df   : > { %v498_v47 = vsel %vm354_vm2, %v494_v46, inf }
 0x8e0   : > { %499 = vmin.xlane.f32.xlu1 %v498_v47 }
 0x969   : > { %v497_v48 = vpop.xlane.xlu0 %496 }
 0x96a   : > { %vm501_vm3 = vcmp.eq.f32.partialorder %v493_v42, %v497_v48 }
 0x96b   : > { %v503_v49 = vsel %vm501_vm3, %v966_v22, 32.0 }
 0x96c   : > { %v505_v50 = vsel %vm354_vm2, %v503_v49, inf }
 0x96d   : > { %506 = vmin.xlane.f32.xlu0 %v505_v50  ;;  %v500_v51 = vpop.xlane.xlu1 %499 }
 0x96e   : > { %vm502_vm4 = vcmp.eq.f32.partialorder %v494_v46, %v500_v51 }
 0x96f   : > { %v504_v52 = vsel %vm502_vm4, %v966_v22, 32.0 }
 0x970   : > { %v508_v54 = vsel %vm354_vm2, %v504_v52, inf }
 0x971   : > { %509 = vmin.xlane.f32.xlu1 %v508_v54 }
 0x9fa   : > { %v1056_v55 = vpop.xlane.xlu0 %506 }
 0x9fb   : > { %vm511_vm5 = vcmp.eq.f32.partialorder %v503_v49, %v1056_v55 }
 0x9fc   : > { %v513_v57 = vsel %vm511_vm5, 3e+38, %v493_v42 }
 0x9fd   : > { %v515_v58 = vsel %vm354_vm2, %v513_v57, inf }
 0x9fe   : > { %516 = vmin.xlane.f32.xlu0 %v515_v58  ;;  %v1060_v59 = vpop.xlane.xlu1 %509 }
 0x9ff   : > { %vm512_vm6 = vcmp.eq.f32.partialorder %v504_v52, %v1060_v59 }
 0xa00   : > { %v514_v60 = vsel %vm512_vm6, 3e+38, %v494_v46 }
 0xa01   : > { %v518_v61 = vsel %vm354_vm2, %v514_v60, inf }
 0xa02   : > { %519 = vmin.xlane.f32.xlu1 %v518_v61 }
 0xa8b   : > { %v517_v62 = vpop.xlane.xlu0 %516 }
 0xa8c   : > { %vm521_vm7 = vcmp.eq.f32.partialorder %v513_v57, %v517_v62 }
 0xa8d   : > { %v523_v63 = vsel %vm521_vm7, %v966_v22, 32.0 }
 0xa8e   : > { %v525_v0 = vsel %vm354_vm2, %v523_v63, inf }
 0xa8f   : > { %526 = vmin.xlane.f32.xlu0 %v525_v0  ;;  %v520_v2 = vpop.xlane.xlu1 %519 }
 0xa90   : > { %vm522_vm8 = vcmp.eq.f32.partialorder %v514_v60, %v520_v2 }
 0xa91   : > { %v524_v3 = vsel %vm522_vm8, %v966_v22, 32.0 }
 0xa92   : > { %v528_v5 = vsel %vm354_vm2, %v524_v3, inf }
 0xa93   : > { %529 = vmin.xlane.f32.xlu1 %v528_v5 }
 0xb1c   : > { %v1068_v6 = vpop.xlane.xlu0 %526 }
 0xb1d   : > { %vm531_vm9 = vcmp.eq.f32.partialorder %v523_v63, %v1068_v6 }
 0xb1e   : > { %v533_v7 = vsel %vm531_vm9, 3e+38, %v513_v57 }
 0xb1f   : > { %v535_v8 = vsel %vm354_vm2, %v533_v7, inf }
 0xb20   : > { %536 = vmin.xlane.f32.xlu0 %v535_v8  ;;  %v1072_v9 = vpop.xlane.xlu1 %529 }
 0xb21   : > { %vm532_vm10 = vcmp.eq.f32.partialorder %v524_v3, %v1072_v9 }
 0xb22   : > { %v534_v10 = vsel %vm532_vm10, 3e+38, %v514_v60 }
 0xb23   : > { %v538_v11 = vsel %vm354_vm2, %v534_v10, inf }
 0xb24   : > { %539 = vmin.xlane.f32.xlu1 %v538_v11 }
 0xbad   : > { %v537_v12 = vpop.xlane.xlu0 %536 }
 0xbae   : > { %vm541_vm11 = vcmp.eq.f32.partialorder %v533_v7, %v537_v12 }
 0xbaf   : > { %v543_v14 = vsel %vm541_vm11, %v966_v22, 32.0 }
 0xbb0   : > { %v545_v15 = vsel %vm354_vm2, %v543_v14, inf }
 0xbb1   : > { %546 = vmin.xlane.f32.xlu0 %v545_v15  ;;  %v540_v17 = vpop.xlane.xlu1 %539 }
 0xbb2   : > { %vm542_vm12 = vcmp.eq.f32.partialorder %v534_v10, %v540_v17 }
 0xbb3   : > { %v544_v18 = vsel %vm542_vm12, %v966_v22, 32.0 }
 0xbb4   : > { %v548_v19 = vsel %vm354_vm2, %v544_v18, inf }
 0xbb5   : > { %549 = vmin.xlane.f32.xlu1 %v548_v19 }
 0xc3e   : > { %v1080_v20 = vpop.xlane.xlu0 %546 }
 0xc3f   : > { %vm551_vm13 = vcmp.eq.f32.partialorder %v543_v14, %v1080_v20 }
 0xc40   : > { %v553_v21 = vsel %vm551_vm13, 3e+38, %v533_v7 }
 0xc41   : > { %v555_v23 = vsel %vm354_vm2, %v553_v21, inf }
 0xc42   : > { %556 = vmin.xlane.f32.xlu0 %v555_v23  ;;  %v1084_v24 = vpop.xlane.xlu1 %549 }
 0xc43   : > { %vm552_vm14 = vcmp.eq.f32.partialorder %v544_v18, %v1084_v24 }
 0xc44   : > { %v554_v25 = vsel %vm552_vm14, 3e+38, %v534_v10 }
 0xc45   : > { %v558_v27 = vsel %vm354_vm2, %v554_v25, inf }
 0xc46   : > { %559 = vmin.xlane.f32.xlu1 %v558_v27 }
 0xccf   : > { %v557_v28 = vpop.xlane.xlu0 %556 }
 0xcd0   : > { %vm561_vm15 = vcmp.eq.f32.partialorder %v553_v21, %v557_v28 }
 0xcd1   : > { %v563_v31 = vsel %vm561_vm15, %v966_v22, 32.0 }
 0xcd2   : > { %v565_v33 = vsel %vm354_vm2, %v563_v31, inf }
 0xcd3   : > { %566 = vmin.xlane.f32.xlu0 %v565_v33  ;;  %v560_v34 = vpop.xlane.xlu1 %559 }
 0xcd4   : > { %vm562_vm0 = vcmp.eq.f32.partialorder %v554_v25, %v560_v34 }
 0xcd5   : > { %v564_v35 = vsel %vm562_vm0, %v966_v22, 32.0 }
 0xcd6   : > { %v568_v36 = vsel %vm354_vm2, %v564_v35, inf }
 0xcd7   : > { %569 = vmin.xlane.f32.xlu1 %v568_v36 }
 0xd60   : > { %v1092_v37 = vpop.xlane.xlu0 %566 }
 0xd61   : > { %vm571_vm3 = vcmp.eq.f32.partialorder %v563_v31, %v1092_v37 }
 0xd62   : > { %v573_v38 = vsel %vm571_vm3, 3e+38, %v553_v21 }
 0xd63   : > { %v575_v39 = vsel %vm354_vm2, %v573_v38, inf }
 0xd64   : > { %576 = vmin.xlane.f32.xlu0 %v575_v39  ;;  %v1096_v42 = vpop.xlane.xlu1 %569 }
 0xd65   : > { %vm572_vm4 = vcmp.eq.f32.partialorder %v564_v35, %v1096_v42 }
 0xd66   : > { %v574_v43 = vsel %vm572_vm4, 3e+38, %v554_v25 }
 0xd67   : > { %v578_v46 = vsel %vm354_vm2, %v574_v43, inf }
 0xd68   : > { %579 = vmin.xlane.f32.xlu1 %v578_v46 }
 0xdf1   : > { %v577_v47 = vpop.xlane.xlu0 %576 }
 0xdf2   : > { %vm581_vm5 = vcmp.eq.f32.partialorder %v573_v38, %v577_v47 }
 0xdf3   : > { %v583_v48 = vsel %vm581_vm5, %v966_v22, 32.0 }
 0xdf4   : > { %v585_v49 = vsel %vm354_vm2, %v583_v48, inf }
 0xdf5   : > { %586 = vmin.xlane.f32.xlu0 %v585_v49  ;;  %v580_v50 = vpop.xlane.xlu1 %579 }
 0xdf6   : > { %vm582_vm6 = vcmp.eq.f32.partialorder %v574_v43, %v580_v50 }
 0xdf7   : > { %v584_v51 = vsel %vm582_vm6, %v966_v22, 32.0 }
 0xdf8   : > { %v588_v52 = vsel %vm354_vm2, %v584_v51, inf }
 0xdf9   : > { %589 = vmin.xlane.f32.xlu1 %v588_v52 }
 0xe82   : > { %v1104_v54 = vpop.xlane.xlu0 %586 }
 0xe83   : > { %vm591_vm7 = vcmp.eq.f32.partialorder %v583_v48, %v1104_v54 }
 0xe84   : > { %v593_v57 = vsel %vm591_vm7, 3e+38, %v573_v38 }
 0xe85   : > { %v595_v58 = vsel %vm354_vm2, %v593_v57, inf }
 0xe86   : > { %596 = vmin.xlane.f32.xlu0 %v595_v58  ;;  %v1108_v60 = vpop.xlane.xlu1 %589 }
 0xe87   : > { %vm592_vm8 = vcmp.eq.f32.partialorder %v584_v51, %v1108_v60 }
 0xe88   : > { %v594_v61 = vsel %vm592_vm8, 3e+38, %v574_v43 }
 0xe89   : > { %v598_v62 = vsel %vm354_vm2, %v594_v61, inf }
 0xe8a   : > { %599 = vmin.xlane.f32.xlu1 %v598_v62 }
 0xf13   : > { %v597_v63 = vpop.xlane.xlu0 %596 }
 0xf14   : > { %vm601_vm9 = vcmp.eq.f32.partialorder %v593_v57, %v597_v63 }
 0xf15   : > { %v603_v0 = vsel %vm601_vm9, %v966_v22, 32.0  ;;  %vm671_vm9 = vcmask 7168  }
 0xf16   : > { %v605_v2 = vsel %vm354_vm2, %v603_v0, inf }
 0xf17   : > { %606 = vmin.xlane.f32.xlu0 %v605_v2  ;;  %v600_v3 = vpop.xlane.xlu1 %599 }
 0xf18   : > { %vm602_vm10 = vcmp.eq.f32.partialorder %v594_v61, %v600_v3  ;;  %v672_v3 = vsel %vm671_vm9, %v972_v29, %v984_v41 }
 0xf19   : > { %v604_v5 = vsel %vm602_vm10, %v966_v22, 32.0  ;;  %vm674_vm10 = vcmask 15360  }
 0xf1a   : > { %v608_v7 = vsel %vm354_vm2, %v604_v5, inf }
 0xf1b   : > { %609 = vmin.xlane.f32.xlu1 %v608_v7 }
 0xfa4   : > { %v1116_v8 = vpop.xlane.xlu0 %606 }
 0xfa5   : > { %vm611_vm11 = vcmp.eq.f32.partialorder %v603_v0, %v1116_v8 }
 0xfa6   : > { %v613_v10 = vsel %vm611_vm11, 3e+38, %v593_v57  ;;  %vm679_vm11 = vcmask 31744  }
 0xfa7   : > { %v615_v11 = vsel %vm354_vm2, %v613_v10, inf }
 0xfa8   : > { %616 = vmin.xlane.f32.xlu0 %v615_v11  ;;  %v1120_v12 = vpop.xlane.xlu1 %609 }
 0xfa9   : > { %vm612_vm12 = vcmp.eq.f32.partialorder %v604_v5, %v1120_v12  ;;  %v675_v5 = vsel %vm674_vm10, %v672_v3, %v996_v53 }
 0xfaa   : > { %v614_v14 = vsel %vm612_vm12, 3e+38, %v594_v61  ;;  %vm682_vm12 = vcmask 39936   ;;  %v677_v7 = vsel %vm244_vm1, %v675_v5, %v1008_v1 }
 0xfab   : > { %v618_v15 = vsel %vm354_vm2, %v614_v14, inf }
 0xfac   : > { %619 = vmin.xlane.f32.xlu1 %v618_v15 }
0x1035   : > { %v617_v17 = vpop.xlane.xlu0 %616 }
0x1036   : > { %vm621_vm13 = vcmp.eq.f32.partialorder %v613_v10, %v617_v17 }
0x1037   : > { %v623_v18 = vsel %vm621_vm13, %v966_v22, 32.0  ;;  %vm685_vm13 = vcmask 48128  }
0x1038   : > { %v625_v19 = vsel %vm354_vm2, %v623_v18, inf }
0x1039   : > { %626 = vmin.xlane.f32.xlu0 %v625_v19  ;;  %v620_v21 = vpop.xlane.xlu1 %619 }
0x103a   : > { %vm622_vm14 = vcmp.eq.f32.partialorder %v614_v14, %v620_v21 }
0x103b   : > { %v624_v23 = vsel %vm622_vm14, %v966_v22, 32.0  ;;  %vm688_vm14 = vcmask 56320  }
0x103c   : > { %v628_v25 = vsel %vm354_vm2, %v624_v23, inf }
0x103d   : > { %629 = vmin.xlane.f32.xlu1 %v628_v25 }
0x10c6   : > { %v1128_v27 = vpop.xlane.xlu0 %626 }
0x10c7   : > { %vm631_vm15 = vcmp.eq.f32.partialorder %v623_v18, %v1128_v27 }
0x10c8   : > { %v633_v28 = vsel %vm631_vm15, 3e+38, %v613_v10  ;;  %v680_v10 = vsel %vm679_vm11, %v677_v7, %v1020_v13  ;;  %vm694_vm15 = vcmask 72704  }
0x10c9   : > { %v635_v31 = vsel %vm354_vm2, %v633_v28, inf  ;;  %v683_v11 = vsel %vm682_vm12, %v680_v10, %v1032_v26 }
0x10ca   : > { %636 = vmin.xlane.f32.xlu0 %v635_v31  ;;  %v1132_v33 = vpop.xlane.xlu1 %629  ;;  %v686_v41 = vsel %vm685_vm13, %v683_v11, %v1044_v40 }
0x10cb   : > { %vm632_vm0 = vcmp.eq.f32.partialorder %v624_v23, %v1132_v33  ;;  %v689_v1 = vsel %vm688_vm14, %v686_v41, %v1056_v55 }
0x10cc   : > { %v634_v34 = vsel %vm632_vm0, 3e+38, %v614_v14  ;;  %vm697_vm0 = vcmask 80896  }
0x10cd   : > { %v638_v35 = vsel %vm354_vm2, %v634_v34, inf }
0x10ce   : > { %639 = vmin.xlane.f32.xlu1 %v638_v35 }
0x1157   : > { %v637_v36 = vpop.xlane.xlu0 %636 }
0x1158   : > { %vm641_vm3 = vcmp.eq.f32.partialorder %v633_v28, %v637_v36 }
0x1159   : > { %v643_v38 = vsel %vm641_vm3, %v966_v22, 32.0  ;;  %vm700_vm3 = vcmask 89088  }
0x115a   : > { %v645_v39 = vsel %vm354_vm2, %v643_v38, inf }
0x115b   : > { %646 = vmin.xlane.f32.xlu0 %v645_v39  ;;  %v640_v43 = vpop.xlane.xlu1 %639 }
0x115c   : > { %vm642_vm4 = vcmp.eq.f32.partialorder %v634_v34, %v640_v43 }
0x115d   : > { %v644_v46 = vsel %vm642_vm4, %v966_v22, 32.0  ;;  %vm703_vm4 = vcmask 97280  }
0x115e   : > { %v648_v47 = vsel %vm354_vm2, %v644_v46, inf }
0x115f   : > { %649 = vmin.xlane.f32.xlu1 %v648_v47 }
0x11e8   : > { %v647_v48 = vpop.xlane.xlu0 %646 }
0x11e9   : > { %vm651_vm5 = vcmp.eq.f32.partialorder %v643_v38, %v647_v48 }
0x11ea   : > { %v653_v49 = vsel %vm651_vm5, 3e+38, %v633_v28  ;;  %vm709_vm5 = vcmask 113664  }
0x11eb   : > { %v655_v50 = vsel %vm354_vm2, %v653_v49, inf }
0x11ec   : > { %656 = vmin.xlane.f32.xlu0 %v655_v50  ;;  %v650_v51 = vpop.xlane.xlu1 %649 }
0x11ed   : > { %vm652_vm6 = vcmp.eq.f32.partialorder %v644_v46, %v650_v51 }
0x11ee   : > { %v654_v52 = vsel %vm652_vm6, 3e+38, %v634_v34  ;;  %vm712_vm6 = vcmask 121856  }
0x11ef   : > { %v658_v57 = vsel %vm354_vm2, %v654_v52, inf }
0x11f0   : > { %659 = vmin.xlane.f32.xlu1 %v658_v57 }
0x1279   : > { %v657_v58 = vpop.xlane.xlu0 %656 }
0x127a   : > { %vm661_vm7 = vcmp.eq.f32.partialorder %v653_v49, %v657_v58 }
0x127b   : > { %v663_v61 = vsel %vm661_vm7, %v966_v22, 32.0  ;;  %vm717_vm7 = vcmask 130048  }
0x127c   : > { %v665_v62 = vsel %vm354_vm2, %v663_v61, inf }
0x127d   : > { %666 = vmin.xlane.f32.xlu0 %v665_v62  ;;  %v660_v63 = vpop.xlane.xlu1 %659 }
0x127e   : > { %vm662_vm8 = vcmp.eq.f32.partialorder %v654_v52, %v660_v63 }
0x127f   : > { %v664_v0 = vsel %vm662_vm8, %v966_v22, 32.0  ;;  %v673_v22 = vsel %vm671_vm9, %v976_v32, %v988_v44 }
0x1280   : > { %v668_v2 = vsel %vm354_vm2, %v664_v0, inf  ;;  %vm691_vm2 = vcmask 64512   ;;  %v676_v29 = vsel %vm674_vm10, %v673_v22, %v1000_v56 }
0x1281   : > { %669 = vmin.xlane.f32.xlu1 %v668_v2  ;;  %v678_v53 = vsel %vm244_vm1, %v676_v29, %v1012_v4  ;;  %v692_v44 = vsel %vm691_vm2, %v689_v1, %v1068_v6  ;;  %vm706_vm1 = vcmask 105472  }
0x1282   : > { %v681_v32 = vsel %vm679_vm11, %v678_v53, %v1024_v16  ;;  %v695_v13 = vsel %vm694_vm15, %v692_v44, %v1080_v20 }
0x1283   : > { %v684_v56 = vsel %vm682_vm12, %v681_v32, %v1036_v30  ;;  %v698_v26 = vsel %vm697_vm0, %v695_v13, %v1092_v37 }
0x1284   : > { %v687_v4 = vsel %vm685_vm13, %v684_v56, %v1048_v45  ;;  %v701_v40 = vsel %vm700_vm3, %v698_v26, %v1104_v54 }
0x1285   : > { %v690_v16 = vsel %vm688_vm14, %v687_v4, %v1060_v59  ;;  %v704_v55 = vsel %vm703_vm4, %v701_v40, %v1116_v8 }
0x1286   : > { %v693_v30 = vsel %vm691_vm2, %v690_v16, %v1072_v9  ;;  %v707_v6 = vsel %vm706_vm1, %v704_v55, %v1128_v27 }
0x1287   : > { %v696_v45 = vsel %vm694_vm15, %v693_v30, %v1084_v24  ;;  %v710_v20 = vsel %vm709_vm5, %v707_v6, %v647_v48 }
0x1288   : > { %v699_v59 = vsel %vm697_vm0, %v696_v45, %v1096_v42 }
0x1289   : > { %v702_v54 = vsel %vm700_vm3, %v699_v59, %v1108_v60 }
0x128a   : > { %v705_v8 = vsel %vm703_vm4, %v702_v54, %v1120_v12 }
0x128b   : > { %v708_v24 = vsel %vm706_vm1, %v705_v8, %v1132_v33 }
0x128c   : > { %v711_v42 = vsel %vm709_vm5, %v708_v24, %v650_v51 }
0x130a   : > { %v667_v37 = vpop.xlane.xlu0 %666 }
0x130b   : > { %v713_v9 = vsel %vm712_vm6, %v710_v20, %v667_v37 }
0x130c   : > { %v854_v14 = vtrunc.f32 %v713_v9 }
0x130e   : > { %v855_v15 = vcvt.f32.s32 %v854_v14  ;;  %v670_v17 = vpop.xlane.xlu1 %669 }
0x130f   : > { %v714_v60 = vsel %vm712_vm6, %v711_v42, %v670_v17 }
0x1310   : > { %718 = vst.msk [vmem:[%s239_s29] sm:$0xff] %vm717_vm7, %v855_v15  ;;  %v856_v18 = vtrunc.f32 %v714_v60 }
0x1312   : > { %v857_v19 = vcvt.f32.s32 %v856_v18 }
0x1314   : > { %719 = vst.msk [vmem:[%s239_s29 + $0x8] sm:$0xff] %vm717_vm7, %v857_v19 }
0x1315 PF: > { %s13_s14 = sadd.s32 1, %s904_s14   ;;  %s1218_s12 = smov %s900_s13 }
0x1316   : > { %p10_p5 = scmp.ge.s32.totalorder %s13_s14, 4   ;;  %s1219_s13 = smov %s1221_s15 }
0x1318   :  { %12 = sbr.rel (!%p10_p5) target bundleno = 2 (0x2), region = 68 }

// kernel: pointconv_svdd.3
= control target key start
LH: loop header
LB: loop body
LE: loop exit
PB: predicated region body
PF: predicated region fallthrough
CT: control target
= control target key end

     0   :  { %s8158_s17 = smov 0   ;;  %s8160_s18 = smov 0   ;;  %s12994_s0 = inlined_call_operand.vmem [shape: f32[2,256,19], index: 0, kind: input, shape index: {}]   ;;  %s12995_s1 = inlined_call_operand.vmem [shape: f32[3,8], index: 1, kind: input, shape index: {}]   ;;  %s12996_s2 = inlined_call_operand.vmem [shape: f32[1,8], index: 2, kind: input, shape index: {}]   ;;  %s12997_s3 = inlined_call_operand.vmem [shape: f32[8,8], index: 3, kind: input, shape index: {}]   ;;  %s12998_s4 = inlined_call_operand.vmem [shape: f32[1,8], index: 4, kind: input, shape index: {}]   ;;  %s12999_s5 = inlined_call_operand.vmem [shape: f32[8,16], index: 5, kind: input, shape index: {}]   ;;  %s13000_s6 = inlined_call_operand.vmem [shape: f32[1,16], index: 6, kind: input, shape index: {}]   ;;  %s13001_s7 = inlined_call_operand.vmem [shape: f32[19,512], index: 7, kind: input, shape index: {}]   ;;  %s13002_s8 = inlined_call_operand.vmem [shape: f32[1,32], index: 8, kind: input, shape index: {}]   ;;  %s13003_s9 = inlined_call_operand.vmem [shape: f32[32,64], index: 9, kind: input, shape index: {}]   ;;  %s13004_s10 = inlined_call_operand.vmem [shape: f32[1,64], index: 10, kind: input, shape index: {}]   ;;  %s13005_s11 = inlined_call_operand.vmem [shape: f32[2,64,16], index: 11, kind: output, shape index: {}]  }
   0x1   :  { %s8162_s19 = smov 0  }
   0x2 LB: > { %s33_s20 = sadd.s32 1, %s8072_s18  ;;  %p7230_p0 = scmp.ge.s32.totalorder %s8076_s19, 1  ;;  %s8076_s19 = sphi %s8162_s19, %s21_s19   ;;  %s8072_s18 = sphi %s8160_s18, %s14531_s18   ;;  %s8068_s17 = sphi %s8158_s17, %s14530_s17  }
   0x3   : > { %p35_p1 = scmp.ge.s32.totalorder %s33_s20, 2  ;;  %p358_p2 = scmp.lt.s32.totalorder %s8076_s19, 3 }
   0x5   : > { %s14533_s20 = smov (%p35_p1, %s33_s20), 0  ;;  %p359_p3 = pnand %p7230_p0, %p358_p2 }
   0x7   : > { %362 = sbr.rel (%p359_p3) target bundleno = 3442 (0xd72), region = 64 }
   0xe   : > { %v455_v0 = vld [vmem:[%s12995_s1] sm:$0x7]  ;;  %vm560_vm0 = vcmask 1042432   ;;  %p406_p4 = scmp.lt.s32.totalorder %s8068_s17, 1  ;;  %vm463_vm1 = vcmask 23552   ;;  %vm829_vm2 = vcmask 64512  }
   0xf   : > { %v821_v1 = vld [vmem:[%s12997_s3] sm:$0xff]  ;;  %7516 = vmatprep.subr.msk.mxu0 %vm560_vm0, %v455_v0  ;;  %7693 = vmatprep.subr.msk.mxu1 %vm560_vm0, %v455_v0  ;;  %vm1556_vm3 = vcmask 154624   ;;  %s8087_s22 = smov 96   ;;  %s8088_s23 = smov 32   ;;  %vm6787_vm4 = vcmask 261120   ;;  %vm6983_vm5 = vcmask 1041409  }
  0x10   : > { %7517 = vmatpush3.msk.msra.mxu0 %vm560_vm0, %v455_v0  ;;  %s14535_s17 = smov (!%p406_p4, %s8068_s17), 1  ;;  %7694 = vmatpush3.msk.msra.mxu1 %vm560_vm0, %v455_v0  ;;  %v1183_v34 = vld [vmem:[%s12999_s5] sm:$0xff]  ;;  %s8089_s24 = smov 64   ;;  %vm6986_vm6 = vcmask 1042434   ;;  %vm6989_vm7 = vcmask 1043459   ;;  %vm6992_vm8 = vcmask 1044484  }
  0x11   : > { %7566 = vmatprep.subr.mxu1 %v821_v1  ;;  %s7409_s25 = sshll.u32 %s14535_s17, 8  ;;  %7616 = vmatprep.subr.mxu0 %v1183_v34  ;;  %v8360_v35 = vld [vmem:[%s12996_s2] ss:$0 sm:$0xff]  ;;  %vm6995_vm9 = vcmask 1045509   ;;  %vm6998_vm10 = vcmask 1046534   ;;  %vm7001_vm11 = vcmask 1047559  }
  0x12   : > { %s8192_s28 = scalar_lea.vmem %s12994_s0, %s7409_s25  ;;  %s7410_s16 = sshll.u32 %s14535_s17, 6  ;;  %vm7134_vm14 = vcmask 130048  }
  0x13   : > { %v8195_v2 = vld [vmem:[%s8192_s28] sm:$0xff]  ;;  %v8198_v3 = vld [vmem:[%s8192_s28 + $0x8] sm:$0xff]  ;;  %v8201_v4 = vld [vmem:[%s8192_s28 + $0x10] sm:$0xff] }
  0x14   : > { %7518 = vmatprep.mubr.msk.f32.mxu0 %vm463_vm1, %v8195_v2  ;;  %v8210_v5 = vld [vmem:[%s8192_s28 + $0x18] sm:$0xff]  ;;  %v8213_v6 = vld [vmem:[%s8192_s28 + $0x20] sm:$0xff]  ;;  %v8218_v7 = vld [vmem:[%s8192_s28 + $0x90] sm:$0xff] }
  0x15   : > { %7519 = vmatmul.mubr.msk.f32.vlgmr.msra.gmra.mrb[0].mxu0 %vm463_vm1, %v8198_v3  ;;  %v8221_v8 = vld [vmem:[%s8192_s28 + $0x98] sm:$0xff]  ;;  %v8224_v9 = vld [vmem:[%s8192_s28 + $0xa0] sm:$0xff]  ;;  %v8229_v10 = vld [vmem:[%s8192_s28 + $0x28] sm:$0xff]  ;;  %7545 = vmatprep.mubr.msk.f32.mxu1 %vm463_vm1, %v8218_v7 }
  0x16   : > { %7521 = vmatprep.mubr.msk.f32.mxu0 %vm463_vm1, %v8201_v4  ;;  %v8234_v11 = vld [vmem:[%s8192_s28 + $0x30] sm:$0xff]  ;;  %7546 = vmatmul.mubr.msk.f32.vlgmr.msra.gmra.mrb[0].mxu1 %vm463_vm1, %v8221_v8  ;;  %v8241_v12 = vld [vmem:[%s8192_s28 + $0xa8] sm:$0xff]  ;;  %v8251_v14 = vld [vmem:[%s8192_s28 + $0x38] sm:$0xff] }
  0x17   : > { %7548 = vmatprep.mubr.msk.f32.mxu1 %vm463_vm1, %v8224_v9  ;;  %7567 = vmatpush3.msra.mxu1 %v821_v1  ;;  %v8246_v13 = vld [vmem:[%s8192_s28 + $0xb0] sm:$0xff]  ;;  %v8254_v15 = vld [vmem:[%s8192_s28 + $0x40] sm:$0xff]  ;;  %v8261_v16 = vld [vmem:[%s8192_s28 + $0xb8] sm:$0xff] }
  0x18   : > { %v8266_v17 = vld [vmem:[%s8192_s28 + $0xc0] sm:$0xff]  ;;  %v8271_v18 = vld [vmem:[%s8192_s28 + $0x48] sm:$0xff]  ;;  %v8274_v19 = vld [vmem:[%s8192_s28 + $0x50] sm:$0xff]  ;;  %7617 = vmatpush3.msra.mxu0 %v1183_v34 }
  0x19   : > { %7522 = vmatmul.mubr.msk.f32.gmra.mrb[2].mxu0 %vm463_vm1, %v8210_v5  ;;  %v8281_v20 = vld [vmem:[%s8192_s28 + $0xc8] sm:$0xff]  ;;  %v8286_v21 = vld [vmem:[%s8192_s28 + $0xd0] sm:$0xff]  ;;  %v8291_v22 = vld [vmem:[%s8192_s28 + $0x58] sm:$0xff] }
  0x1a   : > { %7524 = vmatprep.mubr.msk.f32.mxu0 %vm463_vm1, %v8213_v6  ;;  %7549 = vmatmul.mubr.msk.f32.gmra.mrb[2].mxu1 %vm463_vm1, %v8241_v12  ;;  %v8294_v23 = vld [vmem:[%s8192_s28 + $0x60] sm:$0xff]  ;;  %v8301_v24 = vld [vmem:[%s8192_s28 + $0xd8] sm:$0xff]  ;;  %v8311_v26 = vld [vmem:[%s8192_s28 + $0x68] sm:$0xff] }
  0x1b   : > { %7551 = vmatprep.mubr.msk.f32.mxu1 %vm463_vm1, %v8246_v13  ;;  %v8306_v25 = vld [vmem:[%s8192_s28 + $0xe0] sm:$0xff]  ;;  %v8314_v27 = vld [vmem:[%s8192_s28 + $0x70] sm:$0xff]  ;;  %v8321_v28 = vld [vmem:[%s8192_s28 + $0xe8] sm:$0xff] }
  0x1c   : > { %v8326_v29 = vld [vmem:[%s8192_s28 + $0xf0] sm:$0xff]  ;;  %v8331_v30 = vld [vmem:[%s8192_s28 + $0x78] sm:$0xff]  ;;  %v8334_v31 = vld [vmem:[%s8192_s28 + $0x80] sm:$0xff] }
  0x1d   : > { %7525 = vmatmul.mubr.msk.f32.gmra.mrb[4].mxu0 %vm463_vm1, %v8229_v10  ;;  %v8341_v32 = vld [vmem:[%s8192_s28 + $0xf8] sm:$0xff]  ;;  %v8348_v33 = vld [vmem:[%s8192_s28 + $0x88] sm:$0xff] }
  0x1e   : > { %7527 = vmatprep.mubr.msk.f32.mxu0 %vm463_vm1, %v8234_v11  ;;  %7552 = vmatmul.mubr.msk.f32.gmra.mrb[4].mxu1 %vm463_vm1, %v8261_v16 }
  0x1f   : > { %7554 = vmatprep.mubr.msk.f32.mxu1 %vm463_vm1, %v8266_v17 }
  0x21   : > { %7528 = vmatmul.mubr.msk.f32.gmra.mrb[6].mxu0 %vm463_vm1, %v8251_v14 }
  0x22   : > { %7530 = vmatprep.mubr.msk.f32.mxu0 %vm463_vm1, %v8254_v15  ;;  %7555 = vmatmul.mubr.msk.f32.gmra.mrb[6].mxu1 %vm463_vm1, %v8281_v20 }
  0x23   : > { %7557 = vmatprep.mubr.msk.f32.mxu1 %vm463_vm1, %v8286_v21 }
  0x25   : > { %7531 = vmatmul.mubr.msk.f32.gmra.mrb[8].mxu0 %vm463_vm1, %v8271_v18 }
  0x26   : > { %7533 = vmatprep.mubr.msk.f32.mxu0 %vm463_vm1, %v8274_v19  ;;  %7558 = vmatmul.mubr.msk.f32.gmra.mrb[8].mxu1 %vm463_vm1, %v8301_v24 }
  0x27   : > { %7560 = vmatprep.mubr.msk.f32.mxu1 %vm463_vm1, %v8306_v25 }
  0x29   : > { %7534 = vmatmul.mubr.msk.f32.gmra.mrb[10].mxu0 %vm463_vm1, %v8291_v22 }
  0x2a   : > { %7536 = vmatprep.mubr.msk.f32.mxu0 %vm463_vm1, %v8294_v23  ;;  %7561 = vmatmul.mubr.msk.f32.gmra.mrb[10].mxu1 %vm463_vm1, %v8321_v28 }
  0x2b   : > { %7563 = vmatprep.mubr.msk.f32.mxu1 %vm463_vm1, %v8326_v29 }
  0x2d   : > { %7537 = vmatmul.mubr.msk.f32.gmra.mrb[12].mxu0 %vm463_vm1, %v8311_v26 }
  0x2e   : > { %7539 = vmatprep.mubr.msk.f32.mxu0 %vm463_vm1, %v8314_v27  ;;  %7564 = vmatmul.mubr.msk.f32.gmra.mrb[12].mxu1 %vm463_vm1, %v8341_v32 }
  0x31   : > { %7540 = vmatmul.mubr.msk.f32.gmra.mrb[14].mxu0 %vm463_vm1, %v8331_v30 }
  0x32   : > { %7542 = vmatprep.mubr.msk.f32.mxu0 %vm463_vm1, %v8334_v31 }
  0x35   : > { %7543 = vmatmul.mubr.msk.f32.gmra.mrb[16].mxu0 %vm463_vm1, %v8348_v33 }
  0xe8   : > { %v7520_v36 = vpop.f32.mrb[0].mxu0 }
  0xe9   : > { %v636_v37 = vadd.f32 %v7520_v36, %v8360_v35  ;;  %v630_v38 = vpop.f32.mrb[1].mxu0  ;;  %v8367_v46 = vpop.f32.mrb[0].mxu1 }
  0xea   : > { %v631_v39 = vadd.f32 %v8360_v35, %v630_v38  ;;  %v8370_v48 = vpop.f32.mrb[1].mxu1 }
  0xeb   : > { %v790_v42 = vmax.f32 %v636_v37, 0.0 }
  0xec   : > { %v789_v40 = vmax.f32 %v631_v39, 0.0  ;;  %v7523_v41 = vpop.f32.mrb[2].mxu0 }
  0xed   : > { %v646_v43 = vadd.f32 %v7523_v41, %v8360_v35  ;;  %v640_v44 = vpop.f32.mrb[3].mxu0  ;;  %v8375_v54 = vpop.f32.mrb[2].mxu1 }
  0xee   : > { %7568 = vmatprep.mubr.msk.f32.mxu1 %vm829_vm2, %v789_v40  ;;  %v641_v45 = vadd.f32 %v8360_v35, %v640_v44  ;;  %v8378_v56 = vpop.f32.mrb[3].mxu1 }
  0xef   : > { %7569 = vmatmul.mubr.msk.f32.vlgmr.msra.gmra.mrb[14].mxu1 %vm829_vm2, %v790_v42  ;;  %v792_v47 = vmax.f32 %v646_v43, 0.0 }
  0xf0   : > { %v791_v49 = vmax.f32 %v641_v45, 0.0  ;;  %v7526_v50 = vpop.f32.mrb[4].mxu0 }
  0xf1   : > { %v656_v51 = vadd.f32 %v7526_v50, %v8360_v35  ;;  %v650_v52 = vpop.f32.mrb[5].mxu0  ;;  %v8383_v62 = vpop.f32.mrb[4].mxu1 }
  0xf2   : > { %7571 = vmatprep.mubr.msk.f32.mxu1 %vm829_vm2, %v791_v49  ;;  %v651_v53 = vadd.f32 %v8360_v35, %v650_v52  ;;  %v740_v0 = vpop.f32.mrb[5].mxu1 }
  0xf3   : > { %7572 = vmatmul.mubr.msk.f32.gmra.mrb[16].mxu1 %vm829_vm2, %v792_v47  ;;  %v794_v55 = vmax.f32 %v656_v51, 0.0 }
  0xf4   : > { %v793_v57 = vmax.f32 %v651_v53, 0.0  ;;  %v7529_v58 = vpop.f32.mrb[6].mxu0 }
  0xf5   : > { %v666_v59 = vadd.f32 %v7529_v58, %v8360_v35  ;;  %v660_v60 = vpop.f32.mrb[7].mxu0  ;;  %v7556_v39 = vpop.f32.mrb[6].mxu1 }
  0xf6   : > { %7574 = vmatprep.mubr.msk.f32.mxu1 %vm829_vm2, %v793_v57  ;;  %v661_v61 = vadd.f32 %v8360_v35, %v660_v60  ;;  %v750_v41 = vpop.f32.mrb[7].mxu1 }
  0xf7   : > { %7575 = vmatmul.mubr.msk.f32.gmra.mrb[18].mxu1 %vm829_vm2, %v794_v55  ;;  %v796_v63 = vmax.f32 %v666_v59, 0.0 }
  0xf8   : > { %v795_v1 = vmax.f32 %v661_v61, 0.0  ;;  %v7532_v34 = vpop.f32.mrb[8].mxu0 }
  0xf9   : > { %v676_v36 = vadd.f32 %v7532_v34, %v8360_v35  ;;  %v670_v37 = vpop.f32.mrb[9].mxu0  ;;  %v7559_v49 = vpop.f32.mrb[8].mxu1 }
  0xfa   : > { %7577 = vmatprep.mubr.msk.f32.mxu1 %vm829_vm2, %v795_v1  ;;  %v671_v38 = vadd.f32 %v8360_v35, %v670_v37  ;;  %v760_v51 = vpop.f32.mrb[9].mxu1 }
  0xfb   : > { %7578 = vmatmul.mubr.msk.f32.gmra.mrb[20].mxu1 %vm829_vm2, %v796_v63  ;;  %v798_v40 = vmax.f32 %v676_v36, 0.0 }
  0xfc   : > { %v797_v42 = vmax.f32 %v671_v38, 0.0  ;;  %v7535_v43 = vpop.f32.mrb[10].mxu0 }
  0xfd   : > { %v686_v44 = vadd.f32 %v7535_v43, %v8360_v35  ;;  %v680_v45 = vpop.f32.mrb[11].mxu0  ;;  %v7562_v59 = vpop.f32.mrb[10].mxu1 }
  0xfe   : > { %7580 = vmatprep.mubr.msk.f32.mxu1 %vm829_vm2, %v797_v42  ;;  %v681_v47 = vadd.f32 %v8360_v35, %v680_v45  ;;  %v770_v61 = vpop.f32.mrb[11].mxu1  ;;  %v721_v45 = vadd.f32 %v8360_v35, %v8370_v48 }
  0xff   : > { %7581 = vmatmul.mubr.msk.f32.gmra.mrb[22].mxu1 %vm829_vm2, %v798_v40  ;;  %v800_v50 = vmax.f32 %v686_v44, 0.0 }
 0x100   : > { %v799_v52 = vmax.f32 %v681_v47, 0.0  ;;  %v7538_v53 = vpop.f32.mrb[12].mxu0 }
 0x101   : > { %v696_v55 = vadd.f32 %v7538_v53, %v8360_v35  ;;  %v690_v57 = vpop.f32.mrb[13].mxu0  ;;  %v7565_v38 = vpop.f32.mrb[12].mxu1 }
 0x102   : > { %v691_v58 = vadd.f32 %v8360_v35, %v690_v57  ;;  %7583 = vmatprep.mubr.msk.f32.mxu1 %vm829_vm2, %v799_v52  ;;  %v780_v42 = vpop.f32.mrb[13].mxu1 }
 0x103   : > { %v802_v60 = vmax.f32 %v696_v55, 0.0  ;;  %7584 = vmatmul.mubr.msk.f32.gmra.mrb[24].mxu1 %vm829_vm2, %v800_v50  ;;  %v726_v55 = vadd.f32 %v8367_v46, %v8360_v35  ;;  %v746_v46 = vadd.f32 %v8383_v62, %v8360_v35  ;;  %v766_v62 = vadd.f32 %v7559_v49, %v8360_v35 }
 0x104   : > { %v801_v63 = vmax.f32 %v691_v58, 0.0  ;;  %v7541_v1 = vpop.f32.mrb[14].mxu0  ;;  %v807_v58 = vmax.f32 %v721_v45, 0.0  ;;  %v786_v49 = vadd.f32 %v7565_v38, %v8360_v35 }
 0x105   : > { %v706_v34 = vadd.f32 %v7541_v1, %v8360_v35  ;;  %v700_v36 = vpop.f32.mrb[15].mxu0  ;;  %v808_v48 = vmax.f32 %v726_v55, 0.0 }
 0x106   : > { %v701_v37 = vadd.f32 %v8360_v35, %v700_v36  ;;  %7586 = vmatprep.mubr.msk.f32.mxu1 %vm829_vm2, %v801_v63  ;;  %v736_v63 = vadd.f32 %v8375_v54, %v8360_v35  ;;  %v756_v54 = vadd.f32 %v7556_v39, %v8360_v35  ;;  %v776_v39 = vadd.f32 %v7562_v59, %v8360_v35  ;;  %v1545_v59 = vld [vmem:[%s13001_s7 + $0x8] sm:$0xff] }
 0x107   : > { %v804_v40 = vmax.f32 %v706_v34, 0.0  ;;  %7587 = vmatmul.mubr.msk.f32.gmra.mrb[26].mxu1 %vm829_vm2, %v802_v60  ;;  %v731_v60 = vadd.f32 %v8360_v35, %v8378_v56  ;;  %v741_v34 = vadd.f32 %v8360_v35, %v740_v0  ;;  %v761_v0 = vadd.f32 %v8360_v35, %v760_v51 }
 0x108   : > { %v803_v43 = vmax.f32 %v701_v37, 0.0  ;;  %v7544_v44 = vpop.f32.mrb[16].mxu0  ;;  %v810_v36 = vmax.f32 %v736_v63, 0.0  ;;  %v751_v37 = vadd.f32 %v8360_v35, %v750_v41  ;;  %v771_v41 = vadd.f32 %v8360_v35, %v770_v61  ;;  %v1549_v61 = vld [vmem:[%s13001_s7 + $0x28] sm:$0xff] }
 0x109   : > { %v716_v47 = vadd.f32 %v7544_v44, %v8360_v35  ;;  %v710_v50 = vpop.f32.mrb[17].mxu0  ;;  %v809_v1 = vmax.f32 %v731_v60, 0.0  ;;  %v811_v56 = vmax.f32 %v741_v34, 0.0  ;;  %v814_v44 = vmax.f32 %v756_v54, 0.0  ;;  %v1553_v60 = vld [vmem:[%s13001_s7 + $0x48] sm:$0x7] }
 0x10a   : > { %v711_v52 = vadd.f32 %v8360_v35, %v710_v50  ;;  %7589 = vmatprep.mubr.msk.f32.mxu1 %vm829_vm2, %v803_v43  ;;  %v813_v43 = vmax.f32 %v751_v37, 0.0  ;;  %v815_v45 = vmax.f32 %v761_v0, 0.0  ;;  %v817_v50 = vmax.f32 %v771_v41, 0.0 }
 0x10b   : > { %v806_v53 = vmax.f32 %v716_v47, 0.0  ;;  %7590 = vmatmul.mubr.msk.f32.gmra.mrb[28].mxu1 %vm829_vm2, %v804_v40  ;;  %v812_v40 = vmax.f32 %v746_v46, 0.0  ;;  %v816_v47 = vmax.f32 %v766_v62, 0.0  ;;  %v781_v51 = vadd.f32 %v8360_v35, %v780_v42  ;;  %v1544_v35 = vld [vmem:[%s13001_s7] sm:$0xff] }
 0x10c   : > { %v805_v57 = vmax.f32 %v711_v52, 0.0  ;;  %v818_v52 = vmax.f32 %v776_v39, 0.0  ;;  %v820_v55 = vmax.f32 %v786_v49, 0.0  ;;  %v7677_v38 = vpack.c.bf16 %v1549_v61, %v1545_v59  ;;  %v1548_v42 = vld [vmem:[%s13001_s7 + $0x20] sm:$0xff] }
 0x10e   : > { %7592 = vmatprep.mubr.msk.f32.mxu1 %vm829_vm2, %v805_v57  ;;  %v13006_v57 = vmov 0.0   ;;  %7678 = vmatprep.subr.bf16.mxu1 %v7677_v38 }
 0x10f   : > { %7593 = vmatmul.mubr.msk.f32.gmra.mrb[30].mxu1 %vm829_vm2, %v806_v53  ;;  %v819_v53 = vmax.f32 %v781_v51, 0.0 }
 0x110   : > { %7595 = vmatprep.mubr.msk.f32.mxu1 %vm829_vm2, %v807_v58  ;;  %v7679_v58 = vpack.c.bf16 %v1548_v42, %v1544_v35 }
 0x112   : > { %7680 = vmatpush1.bf16.msra.mxu1 %v7679_v58 }
 0x113   : > { %7596 = vmatmul.mubr.msk.f32.gmra.mrb[32].mxu1 %vm829_vm2, %v808_v48  ;;  %7335 = vmatprep.subr.msk.mxu1 %vm560_vm0, %v1553_v60  ;;  %v1552_v48 = vld [vmem:[%s13001_s7 + $0x40] sm:$0x7] }
 0x114   : > { %7598 = vmatprep.mubr.msk.f32.mxu1 %vm829_vm2, %v809_v1 }
 0x116   : > { %7336 = vmatpush1.msk.msra.mxu1 %vm560_vm0, %v1552_v48 }
 0x117   : > { %7599 = vmatmul.mubr.msk.f32.gmra.mrb[34].mxu1 %vm829_vm2, %v810_v36 }
 0x118   : > { %7601 = vmatprep.mubr.msk.f32.mxu1 %vm829_vm2, %v811_v56 }
 0x11b   : > { %7602 = vmatmul.mubr.msk.f32.gmra.mrb[36].mxu1 %vm829_vm2, %v812_v40 }
 0x11c   : > { %7604 = vmatprep.mubr.msk.f32.mxu1 %vm829_vm2, %v813_v43 }
 0x11f   : > { %7605 = vmatmul.mubr.msk.f32.gmra.mrb[38].mxu1 %vm829_vm2, %v814_v44 }
 0x120   : > { %7607 = vmatprep.mubr.msk.f32.mxu1 %vm829_vm2, %v815_v45 }
 0x123   : > { %7608 = vmatmul.mubr.msk.f32.gmra.mrb[40].mxu1 %vm829_vm2, %v816_v47 }
 0x124   : > { %7610 = vmatprep.mubr.msk.f32.mxu1 %vm829_vm2, %v817_v50 }
 0x127   : > { %7611 = vmatmul.mubr.msk.f32.gmra.mrb[42].mxu1 %vm829_vm2, %v818_v52 }
 0x128   : > { %7613 = vmatprep.mubr.msk.f32.mxu1 %vm829_vm2, %v819_v53 }
 0x12b   : > { %7614 = vmatmul.mubr.msk.f32.gmra.mrb[44].mxu1 %vm829_vm2, %v820_v55 }
 0x12c   : > { %1697 = vmatprep.mubr.f32.mxu1 %v13006_v57 }
 0x12f   : > { %7337 = vmatmul.mubr.msk.f32.vlgmr.msra.gmra.mrb[46].mxu1 %vm1556_vm3, %v8195_v2  ;;  %v8540_v2 = vld [vmem:[%s12998_s4] ss:$0 sm:$0xff] }
 0x130   : > { %1703 = vmatprep.mubr.f32.mxu1 %v13006_v57 }
 0x133   : > { %7338 = vmatmul.mubr.msk.f32.gmra.mrb[48].mxu1 %vm1556_vm3, %v8198_v3 }
 0x134   : > { %1709 = vmatprep.mubr.f32.mxu1 %v13006_v57 }
 0x137   : > { %7339 = vmatmul.mubr.msk.f32.gmra.mrb[50].mxu1 %vm1556_vm3, %v8201_v4 }
 0x138   : > { %1715 = vmatprep.mubr.f32.mxu1 %v13006_v57 }
 0x13b   : > { %7340 = vmatmul.mubr.msk.f32.gmra.mrb[52].mxu1 %vm1556_vm3, %v8210_v5 }
 0x13c   : > { %1721 = vmatprep.mubr.f32.mxu1 %v13006_v57 }
 0x13f   : > { %7341 = vmatmul.mubr.msk.f32.gmra.mrb[54].mxu1 %vm1556_vm3, %v8213_v6 }
 0x140   : > { %1727 = vmatprep.mubr.f32.mxu1 %v13006_v57 }
 0x143   : > { %7342 = vmatmul.mubr.msk.f32.gmra.mrb[56].mxu1 %vm1556_vm3, %v8229_v10 }
 0x144   : > { %1733 = vmatprep.mubr.f32.mxu1 %v13006_v57 }
 0x147   : > { %7343 = vmatmul.mubr.msk.f32.gmra.mrb[58].mxu1 %vm1556_vm3, %v8234_v11 }
 0x148   : > { %1739 = vmatprep.mubr.f32.mxu1 %v13006_v57 }
 0x14b   : > { %7344 = vmatmul.mubr.msk.f32.gmra.mrb[60].mxu1 %vm1556_vm3, %v8251_v14 }
 0x14c   : > { %1745 = vmatprep.mubr.f32.mxu1 %v13006_v57 }
 0x14f   : > { %7345 = vmatmul.mubr.msk.f32.gmra.mrb[62].mxu1 %vm1556_vm3, %v8254_v15 }
 0x150   : > { %1751 = vmatprep.mubr.f32.mxu1 %v13006_v57 }
 0x153   : > { %7346 = vmatmul.mubr.msk.f32.gmra.mrb[64].mxu1 %vm1556_vm3, %v8271_v18 }
 0x154   : > { %1757 = vmatprep.mubr.f32.mxu1 %v13006_v57 }
 0x157   : > { %7347 = vmatmul.mubr.msk.f32.gmra.mrb[66].mxu1 %vm1556_vm3, %v8274_v19 }
 0x158   : > { %1763 = vmatprep.mubr.f32.mxu1 %v13006_v57 }
 0x15b   : > { %7348 = vmatmul.mubr.msk.f32.gmra.mrb[68].mxu1 %vm1556_vm3, %v8291_v22 }
 0x15c   : > { %1769 = vmatprep.mubr.f32.mxu1 %v13006_v57 }
 0x15f   : > { %7349 = vmatmul.mubr.msk.f32.gmra.mrb[70].mxu1 %vm1556_vm3, %v8294_v23 }
 0x160   : > { %1775 = vmatprep.mubr.f32.mxu1 %v13006_v57 }
 0x163   : > { %7350 = vmatmul.mubr.msk.f32.gmra.mrb[72].mxu1 %vm1556_vm3, %v8311_v26 }
 0x164   : > { %1781 = vmatprep.mubr.f32.mxu1 %v13006_v57 }
 0x167   : > { %7351 = vmatmul.mubr.msk.f32.gmra.mrb[74].mxu1 %vm1556_vm3, %v8314_v27 }
 0x168   : > { %1787 = vmatprep.mubr.f32.mxu1 %v13006_v57 }
 0x16b   : > { %7352 = vmatmul.mubr.msk.f32.gmra.mrb[76].mxu1 %vm1556_vm3, %v8331_v30 }
 0x16c   : > { %1793 = vmatprep.mubr.f32.mxu1 %v13006_v57 }
 0x16f   : > { %7353 = vmatmul.mubr.msk.f32.gmra.mrb[78].mxu1 %vm1556_vm3, %v8334_v31 }
 0x170   : > { %1799 = vmatprep.mubr.f32.mxu1 %v13006_v57 }
 0x173   : > { %7354 = vmatmul.mubr.msk.f32.gmra.mrb[80].mxu1 %vm1556_vm3, %v8348_v33 }
 0x174   : > { %1805 = vmatprep.mubr.f32.mxu1 %v13006_v57 }
 0x177   : > { %7355 = vmatmul.mubr.msk.f32.gmra.mrb[82].mxu1 %vm1556_vm3, %v8218_v7 }
 0x178   : > { %1811 = vmatprep.mubr.f32.mxu1 %v13006_v57 }
 0x17b   : > { %7356 = vmatmul.mubr.msk.f32.gmra.mrb[84].mxu1 %vm1556_vm3, %v8221_v8 }
 0x17c   : > { %1817 = vmatprep.mubr.f32.mxu1 %v13006_v57 }
 0x17f   : > { %7357 = vmatmul.mubr.msk.f32.gmra.mrb[86].mxu1 %vm1556_vm3, %v8224_v9 }
 0x180   : > { %1823 = vmatprep.mubr.f32.mxu1 %v13006_v57 }
 0x183   : > { %7358 = vmatmul.mubr.msk.f32.gmra.mrb[88].mxu1 %vm1556_vm3, %v8241_v12 }
 0x184   : > { %1829 = vmatprep.mubr.f32.mxu1 %v13006_v57 }
 0x187   : > { %7359 = vmatmul.mubr.msk.f32.gmra.mrb[90].mxu1 %vm1556_vm3, %v8246_v13 }
 0x188   : > { %1835 = vmatprep.mubr.f32.mxu1 %v13006_v57 }
 0x18b   : > { %7360 = vmatmul.mubr.msk.f32.gmra.mrb[92].mxu1 %vm1556_vm3, %v8261_v16 }
 0x18c   : > { %1841 = vmatprep.mubr.f32.mxu1 %v13006_v57 }
 0x18f   : > { %7361 = vmatmul.mubr.msk.f32.gmra.mrb[94].mxu1 %vm1556_vm3, %v8266_v17 }
 0x190   : > { %1847 = vmatprep.mubr.f32.mxu1 %v13006_v57 }
 0x193   : > { %7362 = vmatmul.mubr.msk.f32.gmra.mrb[96].mxu1 %vm1556_vm3, %v8281_v20 }
 0x194   : > { %1853 = vmatprep.mubr.f32.mxu1 %v13006_v57 }
 0x197   : > { %7363 = vmatmul.mubr.msk.f32.gmra.mrb[98].mxu1 %vm1556_vm3, %v8286_v21 }
 0x198   : > { %1859 = vmatprep.mubr.f32.mxu1 %v13006_v57 }
 0x19b   : > { %7364 = vmatmul.mubr.msk.f32.gmra.mrb[100].mxu1 %vm1556_vm3, %v8301_v24 }
 0x19c   : > { %1865 = vmatprep.mubr.f32.mxu1 %v13006_v57 }
 0x19f   : > { %7365 = vmatmul.mubr.msk.f32.gmra.mrb[102].mxu1 %vm1556_vm3, %v8306_v25 }
 0x1a0   : > { %1871 = vmatprep.mubr.f32.mxu1 %v13006_v57 }
 0x1a3   : > { %7366 = vmatmul.mubr.msk.f32.gmra.mrb[104].mxu1 %vm1556_vm3, %v8321_v28 }
 0x1a4   : > { %1877 = vmatprep.mubr.f32.mxu1 %v13006_v57 }
 0x1a7   : > { %7367 = vmatmul.mubr.msk.f32.gmra.mrb[106].mxu1 %vm1556_vm3, %v8326_v29 }
 0x1a8   : > { %1883 = vmatprep.mubr.f32.mxu1 %v13006_v57 }
 0x1ab   : > { %7368 = vmatmul.mubr.msk.f32.gmra.mrb[108].mxu1 %vm1556_vm3, %v8341_v32 }
 0x1c2   : > { %v7570_v3 = vpop.f32.mrb[14].mxu1 }
 0x1c3   : > { %v998_v4 = vadd.f32 %v7570_v3, %v8540_v2  ;;  %v992_v5 = vpop.f32.mrb[15].mxu1 }
 0x1c4   : > { %v993_v6 = vadd.f32 %v8540_v2, %v992_v5 }
 0x1c5   : > { %v1152_v9 = vmax.f32 %v998_v4, 0.0 }
 0x1c6   : > { %v1151_v7 = vmax.f32 %v993_v6, 0.0  ;;  %v7573_v8 = vpop.f32.mrb[16].mxu1 }
 0x1c7   : > { %v1008_v10 = vadd.f32 %v7573_v8, %v8540_v2  ;;  %v1002_v11 = vpop.f32.mrb[17].mxu1 }
 0x1c8   : > { %7618 = vmatprep.mubr.msk.f32.mxu0 %vm829_vm2, %v1151_v7  ;;  %v1003_v12 = vadd.f32 %v8540_v2, %v1002_v11 }
 0x1c9   : > { %7619 = vmatmul.mubr.msk.f32.vlgmr.msra.gmra.mrb[18].mxu0 %vm829_vm2, %v1152_v9  ;;  %v1154_v13 = vmax.f32 %v1008_v10, 0.0 }
 0x1ca   : > { %v1153_v14 = vmax.f32 %v1003_v12, 0.0  ;;  %v7576_v15 = vpop.f32.mrb[18].mxu1 }
 0x1cb   : > { %v1018_v16 = vadd.f32 %v7576_v15, %v8540_v2  ;;  %v1012_v17 = vpop.f32.mrb[19].mxu1 }
 0x1cc   : > { %7621 = vmatprep.mubr.msk.f32.mxu0 %vm829_vm2, %v1153_v14  ;;  %v1013_v18 = vadd.f32 %v8540_v2, %v1012_v17 }
 0x1cd   : > { %7622 = vmatmul.mubr.msk.f32.gmra.mrb[20].mxu0 %vm829_vm2, %v1154_v13  ;;  %v1156_v19 = vmax.f32 %v1018_v16, 0.0 }
 0x1ce   : > { %v1155_v20 = vmax.f32 %v1013_v18, 0.0  ;;  %v7579_v21 = vpop.f32.mrb[20].mxu1 }
 0x1cf   : > { %v1028_v22 = vadd.f32 %v7579_v21, %v8540_v2  ;;  %v1022_v23 = vpop.f32.mrb[21].mxu1 }
 0x1d0   : > { %7624 = vmatprep.mubr.msk.f32.mxu0 %vm829_vm2, %v1155_v20  ;;  %v1023_v24 = vadd.f32 %v8540_v2, %v1022_v23 }
 0x1d1   : > { %7625 = vmatmul.mubr.msk.f32.gmra.mrb[22].mxu0 %vm829_vm2, %v1156_v19  ;;  %v1158_v26 = vmax.f32 %v1028_v22, 0.0 }
 0x1d2   : > { %v1157_v27 = vmax.f32 %v1023_v24, 0.0  ;;  %v7582_v30 = vpop.f32.mrb[22].mxu1 }
 0x1d3   : > { %v1038_v31 = vadd.f32 %v7582_v30, %v8540_v2  ;;  %v1032_v25 = vpop.f32.mrb[23].mxu1 }
 0x1d4   : > { %7627 = vmatprep.mubr.msk.f32.mxu0 %vm829_vm2, %v1157_v27  ;;  %v1033_v33 = vadd.f32 %v8540_v2, %v1032_v25 }
 0x1d5   : > { %7628 = vmatmul.mubr.msk.f32.gmra.mrb[24].mxu0 %vm829_vm2, %v1158_v26  ;;  %v1160_v63 = vmax.f32 %v1038_v31, 0.0 }
 0x1d6   : > { %v1159_v1 = vmax.f32 %v1033_v33, 0.0  ;;  %v7585_v34 = vpop.f32.mrb[24].mxu1 }
 0x1d7   : > { %v1048_v36 = vadd.f32 %v7585_v34, %v8540_v2  ;;  %v1042_v28 = vpop.f32.mrb[25].mxu1 }
 0x1d8   : > { %7630 = vmatprep.mubr.msk.f32.mxu0 %vm829_vm2, %v1159_v1  ;;  %v1043_v46 = vadd.f32 %v8540_v2, %v1042_v28 }
 0x1d9   : > { %7631 = vmatmul.mubr.msk.f32.gmra.mrb[26].mxu0 %vm829_vm2, %v1160_v63  ;;  %v1162_v56 = vmax.f32 %v1048_v36, 0.0 }
 0x1da   : > { %v1161_v37 = vmax.f32 %v1043_v46, 0.0  ;;  %v7588_v40 = vpop.f32.mrb[26].mxu1 }
 0x1db   : > { %v1058_v54 = vadd.f32 %v7588_v40, %v8540_v2  ;;  %v1052_v29 = vpop.f32.mrb[27].mxu1 }
 0x1dc   : > { %v1053_v43 = vadd.f32 %v8540_v2, %v1052_v29  ;;  %7633 = vmatprep.mubr.msk.f32.mxu0 %vm829_vm2, %v1161_v37  ;;  %v13008_v37 = vmov 0  }
 0x1dd   : > { %v1164_v0 = vmax.f32 %v1058_v54, 0.0  ;;  %7634 = vmatmul.mubr.msk.f32.gmra.mrb[28].mxu0 %vm829_vm2, %v1162_v56  ;;  %v13030_v56 = vmov 1   ;;  %7739 = vset.pattern.permute.xlu0 %v13008_v37 }
 0x1de   : > { %v1163_v44 = vmax.f32 %v1053_v43, 0.0  ;;  %v7591_v62 = vpop.f32.mrb[28].mxu1  ;;  %7740 = vset.pattern.permute.xlu1 %v13030_v56 }
 0x1df   : > { %v1068_v45 = vadd.f32 %v7591_v62, %v8540_v2  ;;  %v1062_v41 = vpop.f32.mrb[29].mxu1 }
 0x1e0   : > { %v1063_v47 = vadd.f32 %v8540_v2, %v1062_v41  ;;  %7636 = vmatprep.mubr.msk.f32.mxu0 %vm829_vm2, %v1163_v44 }
 0x1e1   : > { %v1166_v32 = vmax.f32 %v1068_v45, 0.0  ;;  %7637 = vmatmul.mubr.msk.f32.gmra.mrb[30].mxu0 %vm829_vm2, %v1164_v0 }
 0x1e2   : > { %v1165_v39 = vmax.f32 %v1063_v47, 0.0  ;;  %v7594_v50 = vpop.f32.mrb[30].mxu1 }
 0x1e3   : > { %v1078_v51 = vadd.f32 %v7594_v50, %v8540_v2  ;;  %v1072_v52 = vpop.f32.mrb[31].mxu1 }
 0x1e4   : > { %v1073_v49 = vadd.f32 %v8540_v2, %v1072_v52  ;;  %7639 = vmatprep.mubr.msk.f32.mxu0 %vm829_vm2, %v1165_v39  ;;  %v13014_v39 = vmov 2  }
 0x1e5   : > { %v1168_v53 = vmax.f32 %v1078_v51, 0.0  ;;  %7640 = vmatmul.mubr.msk.f32.gmra.mrb[32].mxu0 %vm829_vm2, %v1166_v32  ;;  %v13024_v32 = vmov 3  }
 0x1e6   : > { %v1167_v55 = vmax.f32 %v1073_v49, 0.0  ;;  %v7597_v59 = vpop.f32.mrb[32].mxu1 }
 0x1e7   : > { %v1088_v61 = vadd.f32 %v7597_v59, %v8540_v2  ;;  %v1082_v35 = vpop.f32.mrb[33].mxu1 }
 0x1e8   : > { %v1083_v38 = vadd.f32 %v8540_v2, %v1082_v35  ;;  %7642 = vmatprep.mubr.msk.f32.mxu0 %vm829_vm2, %v1167_v55  ;;  %v13016_v55 = vmov 4   ;;  %v13010_v35 = vmov 7  }
 0x1e9   : > { %v1170_v42 = vmax.f32 %v1088_v61, 0.0  ;;  %7643 = vmatmul.mubr.msk.f32.gmra.mrb[34].mxu0 %vm829_vm2, %v1168_v53  ;;  %v13012_v53 = vmov 5  }
 0x1ea   : > { %v1169_v58 = vmax.f32 %v1083_v38, 0.0  ;;  %v7600_v60 = vpop.f32.mrb[34].mxu1  ;;  %v13022_v38 = vmov 6  }
 0x1eb   : > { %v1098_v48 = vadd.f32 %v7600_v60, %v8540_v2  ;;  %v1092_v3 = vpop.f32.mrb[35].mxu1 }
 0x1ec   : > { %v1093_v4 = vadd.f32 %v8540_v2, %v1092_v3  ;;  %7645 = vmatprep.mubr.msk.f32.mxu0 %vm829_vm2, %v1169_v58 }
 0x1ed   : > { %v1172_v5 = vmax.f32 %v1098_v48, 0.0  ;;  %7646 = vmatmul.mubr.msk.f32.gmra.mrb[36].mxu0 %vm829_vm2, %v1170_v42 }
 0x1ee   : > { %v1171_v6 = vmax.f32 %v1093_v4, 0.0  ;;  %v7603_v7 = vpop.f32.mrb[36].mxu1 }
 0x1ef   : > { %v1108_v8 = vadd.f32 %v7603_v7, %v8540_v2  ;;  %v1102_v9 = vpop.f32.mrb[37].mxu1 }
 0x1f0   : > { %v1103_v10 = vadd.f32 %v8540_v2, %v1102_v9  ;;  %7648 = vmatprep.mubr.msk.f32.mxu0 %vm829_vm2, %v1171_v6 }
 0x1f1   : > { %v1174_v11 = vmax.f32 %v1108_v8, 0.0  ;;  %7649 = vmatmul.mubr.msk.f32.gmra.mrb[38].mxu0 %vm829_vm2, %v1172_v5 }
 0x1f2   : > { %v1173_v12 = vmax.f32 %v1103_v10, 0.0  ;;  %v7606_v13 = vpop.f32.mrb[38].mxu1 }
 0x1f3   : > { %v1118_v14 = vadd.f32 %v7606_v13, %v8540_v2  ;;  %v1112_v15 = vpop.f32.mrb[39].mxu1 }
 0x1f4   : > { %v1113_v16 = vadd.f32 %v8540_v2, %v1112_v15  ;;  %7651 = vmatprep.mubr.msk.f32.mxu0 %vm829_vm2, %v1173_v12 }
 0x1f5   : > { %v1176_v17 = vmax.f32 %v1118_v14, 0.0  ;;  %7652 = vmatmul.mubr.msk.f32.gmra.mrb[40].mxu0 %vm829_vm2, %v1174_v11 }
 0x1f6   : > { %v1175_v18 = vmax.f32 %v1113_v16, 0.0  ;;  %v7609_v19 = vpop.f32.mrb[40].mxu1 }
 0x1f7   : > { %v1128_v20 = vadd.f32 %v7609_v19, %v8540_v2  ;;  %v1122_v21 = vpop.f32.mrb[41].mxu1 }
 0x1f8   : > { %v1123_v22 = vadd.f32 %v8540_v2, %v1122_v21  ;;  %7654 = vmatprep.mubr.msk.f32.mxu0 %vm829_vm2, %v1175_v18 }
 0x1f9   : > { %v1178_v23 = vmax.f32 %v1128_v20, 0.0  ;;  %7655 = vmatmul.mubr.msk.f32.gmra.mrb[42].mxu0 %vm829_vm2, %v1176_v17 }
 0x1fa   : > { %v1177_v24 = vmax.f32 %v1123_v22, 0.0  ;;  %v7612_v26 = vpop.f32.mrb[42].mxu1 }
 0x1fb   : > { %v1138_v27 = vadd.f32 %v7612_v26, %v8540_v2  ;;  %v1132_v30 = vpop.f32.mrb[43].mxu1 }
 0x1fc   : > { %v1133_v31 = vadd.f32 %v8540_v2, %v1132_v30  ;;  %7657 = vmatprep.mubr.msk.f32.mxu0 %vm829_vm2, %v1177_v24 }
 0x1fd   : > { %v1180_v25 = vmax.f32 %v1138_v27, 0.0  ;;  %7658 = vmatmul.mubr.msk.f32.gmra.mrb[44].mxu0 %vm829_vm2, %v1178_v23 }
 0x1fe   : > { %v1179_v33 = vmax.f32 %v1133_v31, 0.0  ;;  %v7615_v63 = vpop.f32.mrb[44].mxu1 }
 0x1ff   : > { %v1148_v1 = vadd.f32 %v7615_v63, %v8540_v2  ;;  %v1142_v34 = vpop.f32.mrb[45].mxu1 }
 0x200   : > { %v1143_v36 = vadd.f32 %v8540_v2, %v1142_v34  ;;  %7660 = vmatprep.mubr.msk.f32.mxu0 %vm829_vm2, %v1179_v33  ;;  %v8632_v2 = vld [vmem:[%s13000_s6] ss:$0 sm:$0xff] }
 0x201   : > { %v1182_v28 = vmax.f32 %v1148_v1, 0.0  ;;  %7661 = vmatmul.mubr.msk.f32.gmra.mrb[46].mxu0 %vm829_vm2, %v1180_v25 }
 0x202   : > { %v1181_v46 = vmax.f32 %v1143_v36, 0.0  ;;  %v8635_v43 = vpop.f32.mrb[46].mxu1 }
 0x203   : > { %v8637_v0 = vpop.f32.mrb[47].mxu1 }
 0x204   : > { %7663 = vmatprep.mubr.msk.f32.mxu0 %vm829_vm2, %v1181_v46 }
 0x205   : > { %7664 = vmatmul.mubr.msk.f32.gmra.mrb[48].mxu0 %vm829_vm2, %v1182_v28 }
 0x206   : > { %1954 = vmatprep.mubr.f32.mxu0 %v13006_v57  ;;  %v8641_v62 = vpop.f32.mrb[48].mxu1 }
 0x207   : > { %v8657_v52 = vpop.f32.mrb[49].mxu1 }
 0x20a   : > { %v8689_v48 = vpop.f32.mrb[50].mxu1 }
 0x20b   : > { %v8691_v3 = vpop.f32.mrb[51].mxu1 }
 0x20e   : > { %v8695_v5 = vpop.f32.mrb[52].mxu1 }
 0x20f   : > { %v8707_v7 = vpop.f32.mrb[53].mxu1 }
 0x212   : > { %v8799_v28 = vpop.f32.mrb[54].mxu1 }
 0x213   : > { %13272 = vst [vmem:[#allocation8_spill] sm:$0xff] %v8799_v28  ;;  %v8801_v46 = vpop.f32.mrb[55].mxu1 }
 0x214   : > { %13273 = vst [vmem:[#allocation9_spill] sm:$0xff] %v8801_v46 }
 0x29c   : > { %v7620_v40 = vpop.f32.mrb[18].mxu0 }
 0x29d   : > { %v1359_v54 = vadd.f32 %v7620_v40, %v8632_v2  ;;  %v1353_v29 = vpop.f32.mrb[19].mxu0  ;;  %v8803_v40 = vpop.f32.mrb[56].mxu1 }
 0x29e   : > { %v1354_v61 = vadd.f32 %v8632_v2, %v1353_v29 }
 0x29f   : > { %v8639_v44 = vmax.f32 %v1359_v54, 0.0  ;;  %v8809_v54 = vpop.f32.mrb[57].mxu1 }
 0x2a0   : > { %v7623_v45 = vpop.f32.mrb[20].mxu0  ;;  %v8672_v42 = vmax.f32 %v1354_v61, 0.0  ;;  %13274 = vst [vmem:[#allocation10_spill] sm:$0xff] %v8809_v54 }
 0x2a1   : > { %13266 = vst [vmem:[#allocation2_spill] sm:$0xff] %v8639_v44  ;;  %2376 = vperm.xlu1 %7740, %v8639_v44   ;;  %2154 = vperm.xlu0 %7739, %v8639_v44   ;;  %v8645_v41 = vpop.f32.mrb[21].mxu0  ;;  %v1369_v58 = vadd.f32 %v7623_v45, %v8632_v2 }
 0x2a2   : > { %13267 = vst [vmem:[#allocation3_spill] sm:$0xff] %v8672_v42  ;;  %v1364_v12 = vadd.f32 %v8632_v2, %v8645_v41 }
 0x2a3   : > { %v8693_v4 = vmax.f32 %v1369_v58, 0.0 }
 0x2a4   : > { %v8647_v47 = vpop.f32.mrb[22].mxu0  ;;  %v8735_v17 = vmax.f32 %v1364_v12, 0.0 }
 0x2a5   : > { %7742 = vset.pattern.permute.xlu1 %v13024_v32  ;;  %7741 = vset.pattern.permute.xlu0 %v13014_v39  ;;  %v8651_v50 = vpop.f32.mrb[23].mxu0  ;;  %13268 = vst [vmem:[#allocation4_spill] sm:$0xff] %v8693_v4  ;;  %v1379_v21 = vadd.f32 %v8647_v47, %v8632_v2 }
 0x2a6   : > { %3016 = vperm.xlu1 %7742, %v8639_v44   ;;  %2696 = vperm.xlu0 %7741, %v8639_v44   ;;  %13269 = vst [vmem:[#allocation5_spill] sm:$0xff] %v8735_v17  ;;  %v1374_v34 = vadd.f32 %v8632_v2, %v8651_v50  ;;  %v8847_v50 = vpop.f32.mrb[58].mxu1 }
 0x2a7   : > { %v8755_v23 = vmax.f32 %v1379_v21, 0.0  ;;  %13277 = vst [vmem:[#allocation13_spill] sm:$0xff] %v8847_v50  ;;  %v8853_v61 = vpop.f32.mrb[59].mxu1  ;;  %v13300_v50 = vmov 4  }
 0x2a8   : > { %v8655_v51 = vpop.f32.mrb[24].mxu0  ;;  %v8793_v36 = vmax.f32 %v1374_v34, 0.0  ;;  %13279 = vst [vmem:[#allocation15_spill] sm:$0xff] %v8853_v61  ;;  %v8857_v58 = vpop.f32.mrb[60].mxu1 }
 0x2a9   : > { %v8659_v49 = vpop.f32.mrb[25].mxu0  ;;  %13270 = vst [vmem:[#allocation6_spill] sm:$0xff] %v8755_v23  ;;  %v1389_v29 = vadd.f32 %v8655_v51, %v8632_v2  ;;  %13280 = vst [vmem:[#allocation16_spill] sm:$0xff] %v8857_v58  ;;  %v8861_v12 = vpop.f32.mrb[61].mxu1 }
 0x2aa   : > { %7744 = vset.pattern.permute.xlu1 %v13012_v53  ;;  %7743 = vset.pattern.permute.xlu0 %v13016_v55  ;;  %13271 = vst [vmem:[#allocation7_spill] sm:$0xff] %v8793_v36  ;;  %v1384_v41 = vadd.f32 %v8632_v2, %v8659_v49  ;;  %13281 = vst [vmem:[#allocation17_spill] sm:$0xff] %v8861_v12 }
 0x2ab   : > { %3528 = vperm.xlu1 %7744, %v8639_v44   ;;  %3336 = vperm.xlu0 %7743, %v8639_v44   ;;  %v8821_v45 = vmax.f32 %v1389_v29, 0.0 }
 0x2ac   : > { %v8665_v59 = vpop.f32.mrb[26].mxu0  ;;  %v8841_v47 = vmax.f32 %v1384_v41, 0.0 }
 0x2ad   : > { %v8687_v60 = vpop.f32.mrb[27].mxu0  ;;  %13275 = vst [vmem:[#allocation11_spill] sm:$0xff] %v8821_v45  ;;  %v1399_v57 = vadd.f32 %v8665_v59, %v8632_v2 }
 0x2ae   : > { %13276 = vst [vmem:[#allocation12_spill] sm:$0xff] %v8841_v47 }
 0x2af   : > { %7746 = vset.pattern.permute.xlu1 %v13010_v35  ;;  %7745 = vset.pattern.permute.xlu0 %v13022_v38 }
 0x2b0   : > { %4168 = vperm.xlu1 %7746, %v8639_v44   ;;  %3848 = vperm.xlu0 %7745, %v8639_v44   ;;  %v8705_v6 = vpop.f32.mrb[28].mxu0  ;;  %v13291_v44 = vmov 0  }
 0x2b1   : > { %v8713_v8 = vpop.f32.mrb[29].mxu0 }
 0x2b4   : > { %7749 = vset.pattern.permute.xlu1 %v13014_v39  ;;  %7747 = vset.pattern.permute.xlu0 %v13008_v37  ;;  %v8715_v9 = vpop.f32.mrb[30].mxu0 }
 0x2b5   : > { %2692 = vperm.xlu1 %7749, %v8672_v42   ;;  %2149 = vperm.xlu0 %7747, %v8672_v42   ;;  %v8717_v10 = vpop.f32.mrb[31].mxu0 }
 0x2b8   : > { %v8719_v11 = vpop.f32.mrb[32].mxu0 }
 0x2b9   : > { %7751 = vset.pattern.permute.xlu1 %v13016_v55  ;;  %7748 = vset.pattern.permute.xlu0 %v13030_v56  ;;  %v8725_v13 = vpop.f32.mrb[33].mxu0 }
 0x2ba   : > { %3332 = vperm.xlu1 %7751, %v8672_v42   ;;  %2372 = vperm.xlu0 %7748, %v8672_v42  }
 0x2bc   : > { %v8729_v14 = vpop.f32.mrb[34].mxu0 }
 0x2bd   : > { %v8731_v15 = vpop.f32.mrb[35].mxu0 }
 0x2be   : > { %7753 = vset.pattern.permute.xlu1 %v13022_v38  ;;  %7750 = vset.pattern.permute.xlu0 %v13024_v32 }
 0x2bf   : > { %3844 = vperm.xlu1 %7753, %v8672_v42   ;;  %3012 = vperm.xlu0 %7750, %v8672_v42  }
 0x2c0   : > { %v8733_v16 = vpop.f32.mrb[36].mxu0 }
 0x2c1   : > { %v8737_v18 = vpop.f32.mrb[37].mxu0 }
 0x2c3   : > { %7755 = vset.pattern.permute.xlu1 %v13008_v37  ;;  %7752 = vset.pattern.permute.xlu0 %v13012_v53 }
 0x2c4   : > { %2164 = vperm.xlu1 %7755, %v8693_v4   ;;  %3524 = vperm.xlu0 %7752, %v8672_v42   ;;  %v8743_v19 = vpop.f32.mrb[38].mxu0 }
 0x2c5   : > { %v8745_v20 = vpop.f32.mrb[39].mxu0 }
 0x2c8   : > { %7757 = vset.pattern.permute.xlu1 %v13014_v39  ;;  %7754 = vset.pattern.permute.xlu0 %v13010_v35  ;;  %v8753_v22 = vpop.f32.mrb[40].mxu0 }
 0x2c9   : > { %2704 = vperm.xlu1 %7757, %v8693_v4   ;;  %4164 = vperm.xlu0 %7754, %v8672_v42   ;;  %v8757_v24 = vpop.f32.mrb[41].mxu0 }
 0x2cc   : > { %v8759_v26 = vpop.f32.mrb[42].mxu0 }
 0x2cd   : > { %7759 = vset.pattern.permute.xlu1 %v13016_v55  ;;  %7756 = vset.pattern.permute.xlu0 %v13030_v56  ;;  %v8765_v27 = vpop.f32.mrb[43].mxu0 }
 0x2ce   : > { %3344 = vperm.xlu1 %7759, %v8693_v4   ;;  %2384 = vperm.xlu0 %7756, %v8693_v4  }
 0x2d0   : > { %v8767_v30 = vpop.f32.mrb[44].mxu0 }
 0x2d1   : > { %v8769_v31 = vpop.f32.mrb[45].mxu0 }
 0x2d2   : > { %7761 = vset.pattern.permute.xlu1 %v13022_v38  ;;  %7758 = vset.pattern.permute.xlu0 %v13024_v32 }
 0x2d3   : > { %3856 = vperm.xlu1 %7761, %v8693_v4   ;;  %3024 = vperm.xlu0 %7758, %v8693_v4  }
 0x2d4   : > { %v8775_v25 = vpop.f32.mrb[46].mxu0 }
 0x2d5   : > { %v8777_v33 = vpop.f32.mrb[47].mxu0 }
 0x2d7   : > { %7763 = vset.pattern.permute.xlu1 %v13008_v37  ;;  %7760 = vset.pattern.permute.xlu0 %v13012_v53 }
 0x2d8   : > { %2159 = vperm.xlu1 %7763, %v8735_v17   ;;  %3536 = vperm.xlu0 %7760, %v8693_v4   ;;  %v8783_v63 = vpop.f32.mrb[48].mxu0 }
 0x2d9   : > { %v8785_v1 = vpop.f32.mrb[49].mxu0 }
 0x2dc   : > { %7764 = vset.pattern.permute.xlu1 %v13030_v56  ;;  %7762 = vset.pattern.permute.xlu0 %v13010_v35 }
 0x2dd   : > { %2380 = vperm.xlu1 %7764, %v8735_v17   ;;  %4176 = vperm.xlu0 %7762, %v8693_v4  }
 0x2e1   : > { %7765 = vset.pattern.permute.xlu1 %v13014_v39  ;;  %7772 = vset.pattern.permute.xlu0 %v13030_v56 }
 0x2e2   : > { %2700 = vperm.xlu1 %7765, %v8735_v17   ;;  %2392 = vperm.xlu0 %7772, %v8755_v23  }
 0x2e6   : > { %7766 = vset.pattern.permute.xlu1 %v13024_v32  ;;  %7774 = vset.pattern.permute.xlu0 %v13024_v32 }
 0x2e7   : > { %3020 = vperm.xlu1 %7766, %v8735_v17   ;;  %3032 = vperm.xlu0 %7774, %v8755_v23  }
 0x2eb   : > { %7767 = vset.pattern.permute.xlu1 %v13016_v55  ;;  %7776 = vset.pattern.permute.xlu0 %v13012_v53 }
 0x2ec   : > { %3340 = vperm.xlu1 %7767, %v8735_v17   ;;  %3544 = vperm.xlu0 %7776, %v8755_v23  }
 0x2f0   : > { %7768 = vset.pattern.permute.xlu1 %v13012_v53  ;;  %7778 = vset.pattern.permute.xlu0 %v13010_v35 }
 0x2f1   : > { %3532 = vperm.xlu1 %7768, %v8735_v17   ;;  %4184 = vperm.xlu0 %7778, %v8755_v23  }
 0x2f5   : > { %7769 = vset.pattern.permute.xlu1 %v13022_v38  ;;  %7779 = vset.pattern.permute.xlu0 %v13008_v37 }
 0x2f6   : > { %3852 = vperm.xlu1 %7769, %v8735_v17   ;;  %2169 = vperm.xlu0 %7779, %v8793_v36  }
 0x2fa   : > { %7770 = vset.pattern.permute.xlu1 %v13010_v35  ;;  %7781 = vset.pattern.permute.xlu0 %v13014_v39 }
 0x2fb   : > { %4172 = vperm.xlu1 %7770, %v8735_v17   ;;  %2708 = vperm.xlu0 %7781, %v8793_v36   ;;  %v13288_v17 = vmov 7  }
 0x2ff   : > { %7771 = vset.pattern.permute.xlu1 %v13008_v37  ;;  %7783 = vset.pattern.permute.xlu0 %v13016_v55 }
 0x300   : > { %2174 = vperm.xlu1 %7771, %v8755_v23   ;;  %3348 = vperm.xlu0 %7783, %v8793_v36  }
 0x304   : > { %7773 = vset.pattern.permute.xlu1 %v13014_v39  ;;  %7785 = vset.pattern.permute.xlu0 %v13022_v38 }
 0x305   : > { %2712 = vperm.xlu1 %7773, %v8755_v23   ;;  %3860 = vperm.xlu0 %7785, %v8793_v36  }
 0x309   : > { %7775 = vset.pattern.permute.xlu1 %v13016_v55  ;;  %7788 = vset.pattern.permute.xlu0 %v13030_v56 }
 0x30a   : > { %3352 = vperm.xlu1 %7775, %v8755_v23   ;;  %2400 = vperm.xlu0 %7788, %v8821_v45  }
 0x30e   : > { %7777 = vset.pattern.permute.xlu1 %v13022_v38  ;;  %7790 = vset.pattern.permute.xlu0 %v13024_v32 }
 0x30f   : > { %3864 = vperm.xlu1 %7777, %v8755_v23   ;;  %3040 = vperm.xlu0 %7790, %v8821_v45   ;;  %v13286_v23 = vmov 5  }
 0x313   : > { %7780 = vset.pattern.permute.xlu1 %v13030_v56  ;;  %7792 = vset.pattern.permute.xlu0 %v13012_v53 }
 0x314   : > { %2388 = vperm.xlu1 %7780, %v8793_v36   ;;  %3552 = vperm.xlu0 %7792, %v8821_v45  }
 0x318   : > { %7782 = vset.pattern.permute.xlu1 %v13024_v32  ;;  %7794 = vset.pattern.permute.xlu0 %v13010_v35 }
 0x319   : > { %3028 = vperm.xlu1 %7782, %v8793_v36   ;;  %4192 = vperm.xlu0 %7794, %v8821_v45  }
 0x31d   : > { %7784 = vset.pattern.permute.xlu1 %v13012_v53  ;;  %7795 = vset.pattern.permute.xlu0 %v13008_v37 }
 0x31e   : > { %3540 = vperm.xlu1 %7784, %v8793_v36   ;;  %2179 = vperm.xlu0 %7795, %v8841_v47  }
 0x320   : > { %v8849_v51 = vpop.permute.xlu1 %2376  ;;  %v8851_v49 = vpop.permute.xlu0 %2154 }
 0x321   : > { %13278 = vst [vmem:[#allocation14_spill] sm:$0xff] %v8851_v49 }
 0x322   : > { %7786 = vset.pattern.permute.xlu1 %v13010_v35  ;;  %7797 = vset.pattern.permute.xlu0 %v13014_v39 }
 0x323   : > { %4180 = vperm.xlu1 %7786, %v8793_v36   ;;  %2716 = vperm.xlu0 %7797, %v8841_v47  }
 0x325   : > { %v8863_v21 = vpop.permute.xlu1 %3016  ;;  %v8865_v34 = vpop.permute.xlu0 %2696 }
 0x327   : > { %7787 = vset.pattern.permute.xlu1 %v13008_v37  ;;  %7799 = vset.pattern.permute.xlu0 %v13016_v55  ;;  %v8881_v37 = vmax.f32 %v1399_v57, 0.0 }
 0x328   : > { %2184 = vperm.xlu1 %7787, %v8821_v45   ;;  %3356 = vperm.xlu0 %7799, %v8841_v47  }
 0x329   : > { %13283 = vst [vmem:[#allocation19_spill] sm:$0xff] %v8881_v37 }
 0x32a   : > { %v8871_v29 = vpop.permute.xlu1 %3528  ;;  %v8873_v41 = vpop.permute.xlu0 %3336 }
 0x32b   : > { %13282 = vst [vmem:[#allocation18_spill] sm:$0xff] %v8873_v41 }
 0x32c   : > { %7789 = vset.pattern.permute.xlu1 %v13014_v39  ;;  %7801 = vset.pattern.permute.xlu0 %v13022_v38 }
 0x32d   : > { %2720 = vperm.xlu1 %7789, %v8821_v45   ;;  %3868 = vperm.xlu0 %7801, %v8841_v47  }
 0x32f   : > { %v8883_v35 = vpop.permute.xlu1 %4168  ;;  %v8885_v53 = vpop.permute.xlu0 %3848 }
 0x331   : > { %7791 = vset.pattern.permute.xlu1 %v13016_v55  ;;  %7804 = vset.pattern.permute.xlu0 %v13030_v56 }
 0x332   : > { %3360 = vperm.xlu1 %7791, %v8821_v45   ;;  %2408 = vperm.xlu0 %7804, %v8881_v37  }
 0x334   : > { %v8891_v59 = vpop.permute.xlu1 %2692  ;;  %v8893_v39 = vpop.permute.xlu0 %2149 }
 0x335   : > { %13284 = vst [vmem:[#allocation20_spill] sm:$0xff] %v8893_v39 }
 0x336   : > { %7793 = vset.pattern.permute.xlu1 %v13022_v38  ;;  %7806 = vset.pattern.permute.xlu0 %v13024_v32  ;;  %v1394_v32 = vadd.f32 %v8632_v2, %v8687_v60  ;;  %v8927_v60 = vpop.f32.mrb[62].mxu1 }
 0x337   : > { %3872 = vperm.xlu1 %7793, %v8821_v45   ;;  %3048 = vperm.xlu0 %7806, %v8881_v37   ;;  %v13287_v45 = vmov 3   ;;  %13292 = vst [vmem:[#allocation24_spill] sm:$0xff] %v8927_v60 }
 0x339   : > { %v8899_v57 = vpop.permute.xlu1 %3332  ;;  %v8901_v55 = vpop.permute.xlu0 %2372 }
 0x33a   : > { %13285 = vst [vmem:[#allocation21_spill] sm:$0xff] %v8899_v57 }
 0x33b   : > { %7796 = vset.pattern.permute.xlu1 %v13030_v56  ;;  %7808 = vset.pattern.permute.xlu0 %v13286_v23  ;;  %v8917_v56 = vmax.f32 %v1394_v32, 0.0  ;;  %v8933_v32 = vpop.f32.mrb[63].mxu1 }
 0x33c   : > { %2396 = vperm.xlu1 %7796, %v8841_v47   ;;  %3560 = vperm.xlu0 %7808, %v8881_v37   ;;  %13295 = vst [vmem:[#allocation27_spill] sm:$0xff] %v8933_v32  ;;  %v8937_v41 = vpop.f32.mrb[64].mxu1  ;;  %v1409_v32 = vadd.f32 %v8705_v6, %v8632_v2  ;;  %v13305_v6 = vmov 1  }
 0x33d   : > { %13289 = vst [vmem:[#allocation22_spill] sm:$0xff] %v8917_v56  ;;  %13297 = vst [vmem:[#allocation28_spill] sm:$0xff] %v8937_v41  ;;  %v8941_v49 = vpop.f32.mrb[65].mxu1 }
 0x33e   : > { %v8907_v4 = vpop.permute.xlu1 %3844  ;;  %v8909_v38 = vpop.permute.xlu0 %3012  ;;  %13298 = vst [vmem:[#allocation29_spill] sm:$0xff] %v8941_v49  ;;  %v8961_v49 = vmax.f32 %v1409_v32, 0.0 }
 0x340   : > { %7798 = vset.pattern.permute.xlu1 %v13287_v45  ;;  %7810 = vset.pattern.permute.xlu0 %v13288_v17  ;;  %13303 = vst [vmem:[#allocation32_spill] sm:$0xff] %v8961_v49 }
 0x341   : > { %3036 = vperm.xlu1 %7798, %v8841_v47   ;;  %4200 = vperm.xlu0 %7810, %v8881_v37  }
 0x343   : > { %v8919_v42 = vpop.permute.xlu1 %2164  ;;  %v8921_v36 = vpop.permute.xlu0 %3524 }
 0x344   : > { %13290 = vst [vmem:[#allocation23_spill] sm:$0xff] %v8919_v42  ;;  %v13296_v42 = vmov 2  }
 0x345   : > { %7800 = vset.pattern.permute.xlu1 %v13286_v23  ;;  %7811 = vset.pattern.permute.xlu0 %v13291_v44 }
 0x346   : > { %3548 = vperm.xlu1 %7800, %v8841_v47   ;;  %2189 = vperm.xlu0 %7811, %v8917_v56  }
 0x348   : > { %v8929_v57 = vpop.permute.xlu1 %2704  ;;  %v8931_v39 = vpop.permute.xlu0 %4164 }
 0x349   : > { %13293 = vst [vmem:[#allocation25_spill] sm:$0xff] %v8929_v57  ;;  %13294 = vst [vmem:[#allocation26_spill] sm:$0xff] %v8931_v39 }
 0x34a   : > { %7802 = vset.pattern.permute.xlu1 %v13288_v17  ;;  %7813 = vset.pattern.permute.xlu0 %v13296_v42 }
 0x34b   : > { %4188 = vperm.xlu1 %7802, %v8841_v47   ;;  %2724 = vperm.xlu0 %7813, %v8917_v56  }
 0x34d   : > { %v8943_v61 = vpop.permute.xlu1 %3344  ;;  %v8945_v60 = vpop.permute.xlu0 %2384 }
 0x34e   : > { %13299 = vst [vmem:[#allocation30_spill] sm:$0xff] %v8943_v61  ;;  %v13302_v61 = vmov 6  }
 0x34f   : > { %7803 = vset.pattern.permute.xlu1 %v13291_v44  ;;  %7815 = vset.pattern.permute.xlu0 %v13300_v50 }
 0x350   : > { %2194 = vperm.xlu1 %7803, %v8881_v37   ;;  %3364 = vperm.xlu0 %7815, %v8917_v56  }
 0x352   : > { %v8953_v47 = vpop.permute.xlu1 %3856  ;;  %v8955_v41 = vpop.permute.xlu0 %3024 }
 0x353   : > { %13301 = vst [vmem:[#allocation31_spill] sm:$0xff] %v8953_v47 }
 0x354   : > { %7805 = vset.pattern.permute.xlu1 %v13296_v42  ;;  %7817 = vset.pattern.permute.xlu0 %v13302_v61 }
 0x355   : > { %2728 = vperm.xlu1 %7805, %v8881_v37   ;;  %3876 = vperm.xlu0 %7817, %v8917_v56  }
 0x357   : > { %v8963_v12 = vpop.permute.xlu1 %2159  ;;  %v8965_v58 = vpop.permute.xlu0 %3536 }
 0x358   : > { %13304 = vst [vmem:[#allocation33_spill] sm:$0xff] %v8963_v12 }
 0x359   : > { %7807 = vset.pattern.permute.xlu1 %v13300_v50  ;;  %7820 = vset.pattern.permute.xlu0 %v13305_v6 }
 0x35a   : > { %3368 = vperm.xlu1 %7807, %v8881_v37   ;;  %2416 = vperm.xlu0 %7820, %v8961_v49  }
 0x35c   : > { %v8971_v46 = vpop.permute.xlu1 %2380  ;;  %v8973_v47 = vpop.permute.xlu0 %4176 }
 0x35d   : > { %13306 = vst [vmem:[#allocation34_spill] sm:$0xff] %v8971_v46  ;;  %13307 = vst [vmem:[#allocation35_spill] sm:$0xff] %v8973_v47  ;;  %v1404_v47 = vadd.f32 %v8632_v2, %v8713_v8  ;;  %v9007_v8 = vpop.f32.mrb[66].mxu1 }
 0x35e   : > { %7809 = vset.pattern.permute.xlu1 %v13302_v61  ;;  %7822 = vset.pattern.permute.xlu0 %v13287_v45  ;;  %13313 = vst [vmem:[#allocation41_spill] sm:$0xff] %v9007_v8 }
 0x35f   : > { %3880 = vperm.xlu1 %7809, %v8881_v37   ;;  %3056 = vperm.xlu0 %7822, %v8961_v49   ;;  %v8997_v28 = vmax.f32 %v1404_v47, 0.0  ;;  %v9013_v47 = vpop.f32.mrb[67].mxu1 }
 0x360   : > { %13316 = vst [vmem:[#allocation44_spill] sm:$0xff] %v9013_v47 }
 0x361   : > { %v8979_v32 = vpop.permute.xlu1 %2700  ;;  %v8981_v12 = vpop.permute.xlu0 %2392  ;;  %13310 = vst [vmem:[#allocation38_spill] sm:$0xff] %v8997_v28 }
 0x363   : > { %7812 = vset.pattern.permute.xlu1 %v13305_v6  ;;  %7824 = vset.pattern.permute.xlu0 %v13286_v23 }
 0x364   : > { %2404 = vperm.xlu1 %7812, %v8917_v56   ;;  %3568 = vperm.xlu0 %7824, %v8961_v49  }
 0x366   : > { %v8989_v46 = vpop.permute.xlu1 %3020  ;;  %v8991_v37 = vpop.permute.xlu0 %3032 }
 0x367   : > { %13308 = vst [vmem:[#allocation36_spill] sm:$0xff] %v8989_v46  ;;  %13309 = vst [vmem:[#allocation37_spill] sm:$0xff] %v8991_v37 }
 0x368   : > { %7814 = vset.pattern.permute.xlu1 %v13287_v45  ;;  %7826 = vset.pattern.permute.xlu0 %v13288_v17 }
 0x369   : > { %3044 = vperm.xlu1 %7814, %v8917_v56   ;;  %4208 = vperm.xlu0 %7826, %v8961_v49  }
 0x36b   : > { %v8999_v57 = vpop.permute.xlu1 %3340  ;;  %v9001_v54 = vpop.permute.xlu0 %3544 }
 0x36c   : > { %13311 = vst [vmem:[#allocation39_spill] sm:$0xff] %v8999_v57  ;;  %13312 = vst [vmem:[#allocation40_spill] sm:$0xff] %v9001_v54  ;;  %v9017_v57 = vpop.f32.mrb[68].mxu1 }
 0x36d   : > { %7816 = vset.pattern.permute.xlu1 %v13286_v23  ;;  %7827 = vset.pattern.permute.xlu0 %v13291_v44  ;;  %13317 = vst [vmem:[#allocation45_spill] sm:$0xff] %v9017_v57  ;;  %v9021_v54 = vpop.f32.mrb[69].mxu1 }
 0x36e   : > { %3556 = vperm.xlu1 %7816, %v8917_v56   ;;  %2199 = vperm.xlu0 %7827, %v8997_v28   ;;  %13318 = vst [vmem:[#allocation46_spill] sm:$0xff] %v9021_v54 }
 0x370   : > { %v9009_v46 = vpop.permute.xlu1 %3532  ;;  %v9011_v39 = vpop.permute.xlu0 %4184 }
 0x371   : > { %13314 = vst [vmem:[#allocation42_spill] sm:$0xff] %v9009_v46  ;;  %13315 = vst [vmem:[#allocation43_spill] sm:$0xff] %v9011_v39  ;;  %v1419_v39 = vadd.f32 %v8715_v9, %v8632_v2 }
 0x372   : > { %7818 = vset.pattern.permute.xlu1 %v13288_v17  ;;  %7829 = vset.pattern.permute.xlu0 %v13296_v42 }
 0x373   : > { %4196 = vperm.xlu1 %7818, %v8917_v56   ;;  %2732 = vperm.xlu0 %7829, %v8997_v28  }
 0x375   : > { %v9023_v37 = vpop.permute.xlu1 %3852  ;;  %v9025_v8 = vpop.permute.xlu0 %2169 }
 0x376   : > { %13319 = vst [vmem:[#allocation47_spill] sm:$0xff] %v9025_v8  ;;  %v9041_v8 = vmax.f32 %v1419_v39, 0.0 }
 0x377   : > { %7819 = vset.pattern.permute.xlu1 %v13291_v44  ;;  %7831 = vset.pattern.permute.xlu0 %v13300_v50 }
 0x378   : > { %2204 = vperm.xlu1 %7819, %v8961_v49   ;;  %3372 = vperm.xlu0 %7831, %v8997_v28   ;;  %13321 = vst [vmem:[#allocation49_spill] sm:$0xff] %v9041_v8 }
 0x37a   : > { %v9033_v56 = vpop.permute.xlu1 %4172  ;;  %v9035_v47 = vpop.permute.xlu0 %2708 }
 0x37b   : > { %13320 = vst [vmem:[#allocation48_spill] sm:$0xff] %v9033_v56 }
 0x37c   : > { %7821 = vset.pattern.permute.xlu1 %v13296_v42  ;;  %7833 = vset.pattern.permute.xlu0 %v13302_v61 }
 0x37d   : > { %2736 = vperm.xlu1 %7821, %v8961_v49   ;;  %3884 = vperm.xlu0 %7833, %v8997_v28  }
 0x37f   : > { %v9043_v54 = vpop.permute.xlu1 %2174  ;;  %v9045_v57 = vpop.permute.xlu0 %3348 }
 0x380   : > { %13322 = vst [vmem:[#allocation50_spill] sm:$0xff] %v9043_v54  ;;  %13323 = vst [vmem:[#allocation51_spill] sm:$0xff] %v9045_v57  ;;  %v1414_v54 = vadd.f32 %v8632_v2, %v8717_v10  ;;  %v9087_v10 = vpop.f32.mrb[70].mxu1 }
 0x381   : > { %7823 = vset.pattern.permute.xlu1 %v13300_v50  ;;  %7836 = vset.pattern.permute.xlu0 %v13305_v6  ;;  %13333 = vst [vmem:[#allocation61_spill] sm:$0xff] %v9087_v10 }
 0x382   : > { %3376 = vperm.xlu1 %7823, %v8961_v49   ;;  %2424 = vperm.xlu0 %7836, %v9041_v8  }
 0x384   : > { %v9051_v9 = vpop.permute.xlu1 %2712  ;;  %v9053_v56 = vpop.permute.xlu0 %3860 }
 0x385   : > { %13324 = vst [vmem:[#allocation52_spill] sm:$0xff] %v9051_v9  ;;  %13325 = vst [vmem:[#allocation53_spill] sm:$0xff] %v9053_v56 }
 0x386   : > { %7825 = vset.pattern.permute.xlu1 %v13302_v61  ;;  %7838 = vset.pattern.permute.xlu0 %v13287_v45 }
 0x387   : > { %3888 = vperm.xlu1 %7825, %v8961_v49   ;;  %3064 = vperm.xlu0 %7838, %v9041_v8  }
 0x389   : > { %v9059_v39 = vpop.permute.xlu1 %3352  ;;  %v9061_v57 = vpop.permute.xlu0 %2400 }
 0x38a   : > { %13326 = vst [vmem:[#allocation54_spill] sm:$0xff] %v9059_v39  ;;  %13327 = vst [vmem:[#allocation55_spill] sm:$0xff] %v9061_v57  ;;  %v9077_v39 = vmax.f32 %v1414_v54, 0.0  ;;  %v9093_v54 = vpop.f32.mrb[71].mxu1 }
 0x38b   : > { %7828 = vset.pattern.permute.xlu1 %v13305_v6  ;;  %7840 = vset.pattern.permute.xlu0 %v13286_v23  ;;  %13336 = vst [vmem:[#allocation64_spill] sm:$0xff] %v9093_v54 }
 0x38c   : > { %2412 = vperm.xlu1 %7828, %v8997_v28   ;;  %3576 = vperm.xlu0 %7840, %v9041_v8   ;;  %13330 = vst [vmem:[#allocation58_spill] sm:$0xff] %v9077_v39 }
 0x38e   : > { %v9069_v9 = vpop.permute.xlu1 %3864  ;;  %v9071_v49 = vpop.permute.xlu0 %3040 }
 0x38f   : > { %13328 = vst [vmem:[#allocation56_spill] sm:$0xff] %v9069_v9  ;;  %13329 = vst [vmem:[#allocation57_spill] sm:$0xff] %v9071_v49 }
 0x390   : > { %7830 = vset.pattern.permute.xlu1 %v13287_v45  ;;  %7842 = vset.pattern.permute.xlu0 %v13288_v17 }
 0x391   : > { %3052 = vperm.xlu1 %7830, %v8997_v28   ;;  %4216 = vperm.xlu0 %7842, %v9041_v8  }
 0x393   : > { %v9079_v46 = vpop.permute.xlu1 %2388  ;;  %v9081_v57 = vpop.permute.xlu0 %3552 }
 0x394   : > { %13331 = vst [vmem:[#allocation59_spill] sm:$0xff] %v9079_v46  ;;  %13332 = vst [vmem:[#allocation60_spill] sm:$0xff] %v9081_v57  ;;  %v9097_v46 = vpop.f32.mrb[72].mxu1 }
 0x395   : > { %7832 = vset.pattern.permute.xlu1 %v13286_v23  ;;  %7843 = vset.pattern.permute.xlu0 %v13291_v44  ;;  %13337 = vst [vmem:[#allocation65_spill] sm:$0xff] %v9097_v46  ;;  %v9101_v57 = vpop.f32.mrb[73].mxu1 }
 0x396   : > { %3564 = vperm.xlu1 %7832, %v8997_v28   ;;  %2209 = vperm.xlu0 %7843, %v9077_v39   ;;  %13338 = vst [vmem:[#allocation66_spill] sm:$0xff] %v9101_v57 }
 0x398   : > { %v9089_v9 = vpop.permute.xlu1 %3028  ;;  %v9091_v49 = vpop.permute.xlu0 %4192 }
 0x399   : > { %13334 = vst [vmem:[#allocation62_spill] sm:$0xff] %v9089_v9  ;;  %13335 = vst [vmem:[#allocation63_spill] sm:$0xff] %v9091_v49  ;;  %v1429_v49 = vadd.f32 %v8719_v11, %v8632_v2 }
 0x39a   : > { %7834 = vset.pattern.permute.xlu1 %v13288_v17  ;;  %7845 = vset.pattern.permute.xlu0 %v13296_v42 }
 0x39b   : > { %4204 = vperm.xlu1 %7834, %v8997_v28   ;;  %2740 = vperm.xlu0 %7845, %v9077_v39  }
 0x39d   : > { %v9103_v56 = vpop.permute.xlu1 %3540  ;;  %v9105_v10 = vpop.permute.xlu0 %2179 }
 0x39e   : > { %13339 = vst [vmem:[#allocation67_spill] sm:$0xff] %v9103_v56  ;;  %13340 = vst [vmem:[#allocation68_spill] sm:$0xff] %v9105_v10  ;;  %v9121_v10 = vmax.f32 %v1429_v49, 0.0 }
 0x39f   : > { %7835 = vset.pattern.permute.xlu1 %v13291_v44  ;;  %7847 = vset.pattern.permute.xlu0 %v13300_v50 }
 0x3a0   : > { %2214 = vperm.xlu1 %7835, %v9041_v8   ;;  %3380 = vperm.xlu0 %7847, %v9077_v39   ;;  %13342 = vst [vmem:[#allocation70_spill] sm:$0xff] %v9121_v10 }
 0x3a2   : > { %v9113_v28 = vpop.permute.xlu1 %4180  ;;  %v9115_v54 = vpop.permute.xlu0 %2716 }
 0x3a3   : > { %13341 = vst [vmem:[#allocation69_spill] sm:$0xff] %v9113_v28 }
 0x3a4   : > { %7837 = vset.pattern.permute.xlu1 %v13296_v42  ;;  %7849 = vset.pattern.permute.xlu0 %v13302_v61 }
 0x3a5   : > { %2744 = vperm.xlu1 %7837, %v9041_v8   ;;  %3892 = vperm.xlu0 %7849, %v9077_v39  }
 0x3a7   : > { %v9123_v57 = vpop.permute.xlu1 %2184  ;;  %v9125_v46 = vpop.permute.xlu0 %3356 }
 0x3a8   : > { %13343 = vst [vmem:[#allocation71_spill] sm:$0xff] %v9123_v57  ;;  %13344 = vst [vmem:[#allocation72_spill] sm:$0xff] %v9125_v46  ;;  %v1424_v57 = vadd.f32 %v8632_v2, %v8725_v13  ;;  %v9167_v13 = vpop.f32.mrb[74].mxu1 }
 0x3a9   : > { %7839 = vset.pattern.permute.xlu1 %v13300_v50  ;;  %7852 = vset.pattern.permute.xlu0 %v13305_v6  ;;  %13353 = vst [vmem:[#allocation81_spill] sm:$0xff] %v9167_v13 }
 0x3aa   : > { %3384 = vperm.xlu1 %7839, %v9041_v8   ;;  %2432 = vperm.xlu0 %7852, %v9121_v10  }
 0x3ac   : > { %v9131_v11 = vpop.permute.xlu1 %2720  ;;  %v9133_v28 = vpop.permute.xlu0 %3868 }
 0x3ad   : > { %13345 = vst [vmem:[#allocation73_spill] sm:$0xff] %v9131_v11 }
 0x3ae   : > { %7841 = vset.pattern.permute.xlu1 %v13302_v61  ;;  %7854 = vset.pattern.permute.xlu0 %v13287_v45 }
 0x3af   : > { %3896 = vperm.xlu1 %7841, %v9041_v8   ;;  %3072 = vperm.xlu0 %7854, %v9121_v10  }
 0x3b1   : > { %v9139_v49 = vpop.permute.xlu1 %3360  ;;  %v9141_v46 = vpop.permute.xlu0 %2408 }
 0x3b2   : > { %13346 = vst [vmem:[#allocation74_spill] sm:$0xff] %v9139_v49  ;;  %13347 = vst [vmem:[#allocation75_spill] sm:$0xff] %v9141_v46  ;;  %v9157_v49 = vmax.f32 %v1424_v57, 0.0  ;;  %v9173_v57 = vpop.f32.mrb[75].mxu1 }
 0x3b3   : > { %7844 = vset.pattern.permute.xlu1 %v13305_v6  ;;  %7856 = vset.pattern.permute.xlu0 %v13286_v23  ;;  %13356 = vst [vmem:[#allocation84_spill] sm:$0xff] %v9173_v57 }
 0x3b4   : > { %2420 = vperm.xlu1 %7844, %v9077_v39   ;;  %3584 = vperm.xlu0 %7856, %v9121_v10   ;;  %13350 = vst [vmem:[#allocation78_spill] sm:$0xff] %v9157_v49 }
 0x3b6   : > { %v9149_v11 = vpop.permute.xlu1 %3872  ;;  %v9151_v8 = vpop.permute.xlu0 %3048 }
 0x3b7   : > { %13348 = vst [vmem:[#allocation76_spill] sm:$0xff] %v9149_v11  ;;  %13349 = vst [vmem:[#allocation77_spill] sm:$0xff] %v9151_v8 }
 0x3b8   : > { %7846 = vset.pattern.permute.xlu1 %v13287_v45  ;;  %7858 = vset.pattern.permute.xlu0 %v13288_v17 }
 0x3b9   : > { %3060 = vperm.xlu1 %7846, %v9077_v39   ;;  %4224 = vperm.xlu0 %7858, %v9121_v10  }
 0x3bb   : > { %v9159_v56 = vpop.permute.xlu1 %2396  ;;  %v9161_v9 = vpop.permute.xlu0 %3560 }
 0x3bc   : > { %13351 = vst [vmem:[#allocation79_spill] sm:$0xff] %v9159_v56  ;;  %13352 = vst [vmem:[#allocation80_spill] sm:$0xff] %v9161_v9  ;;  %v9177_v56 = vpop.f32.mrb[76].mxu1 }
 0x3bd   : > { %7848 = vset.pattern.permute.xlu1 %v13286_v23  ;;  %7859 = vset.pattern.permute.xlu0 %v13291_v44  ;;  %13357 = vst [vmem:[#allocation85_spill] sm:$0xff] %v9177_v56  ;;  %v9181_v9 = vpop.f32.mrb[77].mxu1 }
 0x3be   : > { %3572 = vperm.xlu1 %7848, %v9077_v39   ;;  %2219 = vperm.xlu0 %7859, %v9157_v49   ;;  %13358 = vst [vmem:[#allocation86_spill] sm:$0xff] %v9181_v9 }
 0x3c0   : > { %v9169_v11 = vpop.permute.xlu1 %3036  ;;  %v9171_v8 = vpop.permute.xlu0 %4200 }
 0x3c1   : > { %13354 = vst [vmem:[#allocation82_spill] sm:$0xff] %v9169_v11  ;;  %13355 = vst [vmem:[#allocation83_spill] sm:$0xff] %v9171_v8  ;;  %v1439_v8 = vadd.f32 %v8729_v14, %v8632_v2 }
 0x3c2   : > { %7850 = vset.pattern.permute.xlu1 %v13288_v17  ;;  %7861 = vset.pattern.permute.xlu0 %v13296_v42 }
 0x3c3   : > { %4212 = vperm.xlu1 %7850, %v9077_v39   ;;  %2748 = vperm.xlu0 %7861, %v9157_v49  }
 0x3c5   : > { %v9183_v46 = vpop.permute.xlu1 %3548  ;;  %v9185_v13 = vpop.permute.xlu0 %2189 }
 0x3c6   : > { %13359 = vst [vmem:[#allocation87_spill] sm:$0xff] %v9183_v46  ;;  %13360 = vst [vmem:[#allocation88_spill] sm:$0xff] %v9185_v13  ;;  %v9201_v13 = vmax.f32 %v1439_v8, 0.0 }
 0x3c7   : > { %7851 = vset.pattern.permute.xlu1 %v13291_v44  ;;  %7863 = vset.pattern.permute.xlu0 %v13300_v50 }
 0x3c8   : > { %2224 = vperm.xlu1 %7851, %v9121_v10   ;;  %3388 = vperm.xlu0 %7863, %v9157_v49   ;;  %13362 = vst [vmem:[#allocation90_spill] sm:$0xff] %v9201_v13 }
 0x3ca   : > { %v9193_v39 = vpop.permute.xlu1 %4188  ;;  %v9195_v57 = vpop.permute.xlu0 %2724 }
 0x3cb   : > { %13361 = vst [vmem:[#allocation89_spill] sm:$0xff] %v9193_v39 }
 0x3cc   : > { %7853 = vset.pattern.permute.xlu1 %v13296_v42  ;;  %7865 = vset.pattern.permute.xlu0 %v13302_v61 }
 0x3cd   : > { %2752 = vperm.xlu1 %7853, %v9121_v10   ;;  %3900 = vperm.xlu0 %7865, %v9157_v49  }
 0x3cf   : > { %v9203_v9 = vpop.permute.xlu1 %2194  ;;  %v9205_v56 = vpop.permute.xlu0 %3364 }
 0x3d0   : > { %13363 = vst [vmem:[#allocation91_spill] sm:$0xff] %v9203_v9  ;;  %13364 = vst [vmem:[#allocation92_spill] sm:$0xff] %v9205_v56  ;;  %v1434_v9 = vadd.f32 %v8632_v2, %v8731_v15  ;;  %v9247_v15 = vpop.f32.mrb[78].mxu1 }
 0x3d1   : > { %7855 = vset.pattern.permute.xlu1 %v13300_v50  ;;  %7868 = vset.pattern.permute.xlu0 %v13305_v6  ;;  %13373 = vst [vmem:[#allocation101_spill] sm:$0xff] %v9247_v15 }
 0x3d2   : > { %3392 = vperm.xlu1 %7855, %v9121_v10   ;;  %2440 = vperm.xlu0 %7868, %v9201_v13  }
 0x3d4   : > { %v9211_v14 = vpop.permute.xlu1 %2728  ;;  %v9213_v39 = vpop.permute.xlu0 %3876 }
 0x3d5   : > { %13365 = vst [vmem:[#allocation93_spill] sm:$0xff] %v9211_v14 }
 0x3d6   : > { %7857 = vset.pattern.permute.xlu1 %v13302_v61  ;;  %7870 = vset.pattern.permute.xlu0 %v13287_v45 }
 0x3d7   : > { %3904 = vperm.xlu1 %7857, %v9121_v10   ;;  %3080 = vperm.xlu0 %7870, %v9201_v13  }
 0x3d9   : > { %v9219_v8 = vpop.permute.xlu1 %3368  ;;  %v9221_v56 = vpop.permute.xlu0 %2416 }
 0x3da   : > { %13366 = vst [vmem:[#allocation94_spill] sm:$0xff] %v9219_v8  ;;  %13367 = vst [vmem:[#allocation95_spill] sm:$0xff] %v9221_v56  ;;  %v9237_v8 = vmax.f32 %v1434_v9, 0.0  ;;  %v9253_v9 = vpop.f32.mrb[79].mxu1 }
 0x3db   : > { %7860 = vset.pattern.permute.xlu1 %v13305_v6  ;;  %7872 = vset.pattern.permute.xlu0 %v13286_v23  ;;  %13376 = vst [vmem:[#allocation104_spill] sm:$0xff] %v9253_v9 }
 0x3dc   : > { %2428 = vperm.xlu1 %7860, %v9157_v49   ;;  %3592 = vperm.xlu0 %7872, %v9201_v13   ;;  %13370 = vst [vmem:[#allocation98_spill] sm:$0xff] %v9237_v8 }
 0x3de   : > { %v9229_v14 = vpop.permute.xlu1 %3880  ;;  %v9231_v10 = vpop.permute.xlu0 %3056 }
 0x3df   : > { %13368 = vst [vmem:[#allocation96_spill] sm:$0xff] %v9229_v14  ;;  %13369 = vst [vmem:[#allocation97_spill] sm:$0xff] %v9231_v10 }
 0x3e0   : > { %7862 = vset.pattern.permute.xlu1 %v13287_v45  ;;  %7874 = vset.pattern.permute.xlu0 %v13288_v17 }
 0x3e1   : > { %3068 = vperm.xlu1 %7862, %v9157_v49   ;;  %4232 = vperm.xlu0 %7874, %v9201_v13  }
 0x3e3   : > { %v9239_v46 = vpop.permute.xlu1 %2404  ;;  %v9241_v11 = vpop.permute.xlu0 %3568 }
 0x3e4   : > { %13371 = vst [vmem:[#allocation99_spill] sm:$0xff] %v9239_v46  ;;  %13372 = vst [vmem:[#allocation100_spill] sm:$0xff] %v9241_v11  ;;  %v9257_v46 = vpop.f32.mrb[80].mxu1 }
 0x3e5   : > { %7864 = vset.pattern.permute.xlu1 %v13286_v23  ;;  %7875 = vset.pattern.permute.xlu0 %v13291_v44  ;;  %13377 = vst [vmem:[#allocation105_spill] sm:$0xff] %v9257_v46  ;;  %v9261_v11 = vpop.f32.mrb[81].mxu1 }
 0x3e6   : > { %3580 = vperm.xlu1 %7864, %v9157_v49   ;;  %2229 = vperm.xlu0 %7875, %v9237_v8   ;;  %13378 = vst [vmem:[#allocation106_spill] sm:$0xff] %v9261_v11 }
 0x3e8   : > { %v9249_v14 = vpop.permute.xlu1 %3044  ;;  %v9251_v10 = vpop.permute.xlu0 %4208 }
 0x3e9   : > { %13374 = vst [vmem:[#allocation102_spill] sm:$0xff] %v9249_v14  ;;  %13375 = vst [vmem:[#allocation103_spill] sm:$0xff] %v9251_v10 }
 0x3ea   : > { %7866 = vset.pattern.permute.xlu1 %v13288_v17  ;;  %7877 = vset.pattern.permute.xlu0 %v13296_v42 }
 0x3eb   : > { %4220 = vperm.xlu1 %7866, %v9157_v49   ;;  %2756 = vperm.xlu0 %7877, %v9237_v8   ;;  %v1449_v49 = vadd.f32 %v8733_v16, %v8632_v2 }
 0x3ed   : > { %v9263_v56 = vpop.permute.xlu1 %3556  ;;  %v9265_v15 = vpop.permute.xlu0 %2199 }
 0x3ee   : > { %13379 = vst [vmem:[#allocation107_spill] sm:$0xff] %v9263_v56  ;;  %13380 = vst [vmem:[#allocation108_spill] sm:$0xff] %v9265_v15  ;;  %v9281_v15 = vpop.f32.mrb[82].mxu1 }
 0x3ef   : > { %7867 = vset.pattern.permute.xlu1 %v13291_v44  ;;  %7879 = vset.pattern.permute.xlu0 %v13300_v50  ;;  %13382 = vst [vmem:[#allocation110_spill] sm:$0xff] %v9281_v15  ;;  %v9289_v56 = vpop.f32.mrb[83].mxu1 }
 0x3f0   : > { %2234 = vperm.xlu1 %7867, %v9201_v13   ;;  %3396 = vperm.xlu0 %7879, %v9237_v8   ;;  %13386 = vst [vmem:[#allocation114_spill] sm:$0xff] %v9289_v56  ;;  %v9293_v16 = vpop.f32.mrb[84].mxu1 }
 0x3f1   : > { %13387 = vst [vmem:[#allocation115_spill] sm:$0xff] %v9293_v16 }
 0x3f2   : > { %v9271_v10 = vpop.permute.xlu1 %4196  ;;  %v9273_v9 = vpop.permute.xlu0 %2732 }
 0x3f3   : > { %13381 = vst [vmem:[#allocation109_spill] sm:$0xff] %v9271_v10  ;;  %v9287_v10 = vmax.f32 %v1449_v49, 0.0 }
 0x3f4   : > { %7869 = vset.pattern.permute.xlu1 %v13296_v42  ;;  %7881 = vset.pattern.permute.xlu0 %v13302_v61 }
 0x3f5   : > { %2760 = vperm.xlu1 %7869, %v9201_v13   ;;  %3908 = vperm.xlu0 %7881, %v9237_v8   ;;  %13385 = vst [vmem:[#allocation113_spill] sm:$0xff] %v9287_v10 }
 0x3f7   : > { %v9283_v11 = vpop.permute.xlu1 %2204  ;;  %v9285_v46 = vpop.permute.xlu0 %3372 }
 0x3f8   : > { %13383 = vst [vmem:[#allocation111_spill] sm:$0xff] %v9283_v11  ;;  %13384 = vst [vmem:[#allocation112_spill] sm:$0xff] %v9285_v46  ;;  %v9309_v11 = vpop.f32.mrb[85].mxu1 }
 0x3f9   : > { %7871 = vset.pattern.permute.xlu1 %v13300_v50  ;;  %7884 = vset.pattern.permute.xlu0 %v13305_v6  ;;  %13390 = vst [vmem:[#allocation118_spill] sm:$0xff] %v9309_v11 }
 0x3fa   : > { %3400 = vperm.xlu1 %7871, %v9201_v13   ;;  %2448 = vperm.xlu0 %7884, %v9287_v10  }
 0x3fc   : > { %v9297_v14 = vpop.permute.xlu1 %2736  ;;  %v9299_v15 = vpop.permute.xlu0 %3884 }
 0x3fd   : > { %13388 = vst [vmem:[#allocation116_spill] sm:$0xff] %v9297_v14 }
 0x3fe   : > { %7873 = vset.pattern.permute.xlu1 %v13302_v61  ;;  %7886 = vset.pattern.permute.xlu0 %v13287_v45 }
 0x3ff   : > { %3912 = vperm.xlu1 %7873, %v9201_v13   ;;  %3088 = vperm.xlu0 %7886, %v9287_v10   ;;  %v1444_v13 = vadd.f32 %v8632_v2, %v8737_v18 }
 0x401   : > { %v9305_v49 = vpop.permute.xlu1 %3376  ;;  %v9307_v46 = vpop.permute.xlu0 %2424  ;;  %v9329_v14 = vmax.f32 %v1444_v13, 0.0 }
 0x402   : > { %13389 = vst [vmem:[#allocation117_spill] sm:$0xff] %v9305_v49 }
 0x403   : > { %7876 = vset.pattern.permute.xlu1 %v13305_v6  ;;  %7888 = vset.pattern.permute.xlu0 %v13286_v23  ;;  %13395 = vst [vmem:[#allocation123_spill] sm:$0xff] %v9329_v14 }
 0x404   : > { %2436 = vperm.xlu1 %7876, %v9237_v8   ;;  %3600 = vperm.xlu0 %7888, %v9287_v10  }
 0x406   : > { %v9315_v56 = vpop.permute.xlu1 %3888  ;;  %v9317_v16 = vpop.permute.xlu0 %3064 }
 0x407   : > { %13391 = vst [vmem:[#allocation119_spill] sm:$0xff] %v9315_v56  ;;  %13392 = vst [vmem:[#allocation120_spill] sm:$0xff] %v9317_v16 }
 0x408   : > { %7878 = vset.pattern.permute.xlu1 %v13287_v45  ;;  %7890 = vset.pattern.permute.xlu0 %v13288_v17 }
 0x409   : > { %3076 = vperm.xlu1 %7878, %v9237_v8   ;;  %4240 = vperm.xlu0 %7890, %v9287_v10  }
 0x40b   : > { %v9325_v49 = vpop.permute.xlu1 %2412  ;;  %v9327_v11 = vpop.permute.xlu0 %3576 }
 0x40c   : > { %13393 = vst [vmem:[#allocation121_spill] sm:$0xff] %v9325_v49  ;;  %13394 = vst [vmem:[#allocation122_spill] sm:$0xff] %v9327_v11 }
 0x40d   : > { %7880 = vset.pattern.permute.xlu1 %v13286_v23  ;;  %7891 = vset.pattern.permute.xlu0 %v13291_v44 }
 0x40e   : > { %3588 = vperm.xlu1 %7880, %v9237_v8   ;;  %2239 = vperm.xlu0 %7891, %v9329_v14  }
 0x410   : > { %v9335_v2 = vpop.permute.xlu1 %3052  ;;  %v9337_v18 = vpop.permute.xlu0 %4216 }
 0x411   : > { %13396 = vst [vmem:[#allocation124_spill] sm:$0xff] %v9335_v2  ;;  %13397 = vst [vmem:[#allocation125_spill] sm:$0xff] %v9337_v18 }
 0x412   : > { %7882 = vset.pattern.permute.xlu1 %v13288_v17  ;;  %7893 = vset.pattern.permute.xlu0 %v13296_v42 }
 0x413   : > { %4228 = vperm.xlu1 %7882, %v9237_v8   ;;  %2764 = vperm.xlu0 %7893, %v9329_v14   ;;  %v9358_v8 = vld [vmem:[%s13000_s6] ss:$0 sm:$0xff] }
 0x415   : > { %v9343_v13 = vpop.permute.xlu1 %3564  ;;  %v9345_v49 = vpop.permute.xlu0 %2209 }
 0x416   : > { %13398 = vst [vmem:[#allocation126_spill] sm:$0xff] %v9343_v13  ;;  %13399 = vst [vmem:[#allocation127_spill] sm:$0xff] %v9345_v49  ;;  %v1459_v49 = vadd.f32 %v9358_v8, %v8743_v19  ;;  %v9366_v13 = vpop.f32.mrb[86].mxu1 }
 0x417   : > { %7883 = vset.pattern.permute.xlu1 %v13291_v44  ;;  %7895 = vset.pattern.permute.xlu0 %v13300_v50  ;;  %13402 = vst [vmem:[#allocation130_spill] sm:$0xff] %v9366_v13  ;;  %v9374_v11 = vpop.f32.mrb[87].mxu1 }
 0x418   : > { %2244 = vperm.xlu1 %7883, %v9287_v10   ;;  %3404 = vperm.xlu0 %7895, %v9329_v14   ;;  %13406 = vst [vmem:[#allocation134_spill] sm:$0xff] %v9374_v11  ;;  %v9378_v19 = vpop.f32.mrb[88].mxu1 }
 0x419   : > { %13407 = vst [vmem:[#allocation135_spill] sm:$0xff] %v9378_v19 }
 0x41a   : > { %v9351_v18 = vpop.permute.xlu1 %4204  ;;  %v9353_v2 = vpop.permute.xlu0 %2740 }
 0x41b   : > { %13400 = vst [vmem:[#allocation128_spill] sm:$0xff] %v9351_v18  ;;  %13401 = vst [vmem:[#allocation129_spill] sm:$0xff] %v9353_v2  ;;  %v9372_v2 = vmax.f32 %v1459_v49, 0.0 }
 0x41c   : > { %7885 = vset.pattern.permute.xlu1 %v13296_v42  ;;  %7897 = vset.pattern.permute.xlu0 %v13302_v61 }
 0x41d   : > { %2768 = vperm.xlu1 %7885, %v9287_v10   ;;  %3916 = vperm.xlu0 %7897, %v9329_v14   ;;  %13405 = vst [vmem:[#allocation133_spill] sm:$0xff] %v9372_v2 }
 0x41f   : > { %v9368_v18 = vpop.permute.xlu1 %2214  ;;  %v9370_v56 = vpop.permute.xlu0 %3380 }
 0x420   : > { %13403 = vst [vmem:[#allocation131_spill] sm:$0xff] %v9368_v18  ;;  %13404 = vst [vmem:[#allocation132_spill] sm:$0xff] %v9370_v56  ;;  %v9394_v18 = vpop.f32.mrb[89].mxu1 }
 0x421   : > { %7887 = vset.pattern.permute.xlu1 %v13300_v50  ;;  %7900 = vset.pattern.permute.xlu0 %v13305_v6  ;;  %13410 = vst [vmem:[#allocation138_spill] sm:$0xff] %v9394_v18 }
 0x422   : > { %3408 = vperm.xlu1 %7887, %v9287_v10   ;;  %2456 = vperm.xlu0 %7900, %v9372_v2  }
 0x424   : > { %v9382_v16 = vpop.permute.xlu1 %2744  ;;  %v9384_v13 = vpop.permute.xlu0 %3892 }
 0x425   : > { %13408 = vst [vmem:[#allocation136_spill] sm:$0xff] %v9382_v16 }
 0x426   : > { %7889 = vset.pattern.permute.xlu1 %v13302_v61  ;;  %7902 = vset.pattern.permute.xlu0 %v13287_v45 }
 0x427   : > { %3920 = vperm.xlu1 %7889, %v9287_v10   ;;  %3096 = vperm.xlu0 %7902, %v9372_v2   ;;  %v1454_v10 = vadd.f32 %v9358_v8, %v8745_v20 }
 0x429   : > { %v9390_v49 = vpop.permute.xlu1 %3384  ;;  %v9392_v56 = vpop.permute.xlu0 %2432  ;;  %v9414_v16 = vmax.f32 %v1454_v10, 0.0 }
 0x42a   : > { %13409 = vst [vmem:[#allocation137_spill] sm:$0xff] %v9390_v49 }
 0x42b   : > { %7892 = vset.pattern.permute.xlu1 %v13305_v6  ;;  %7904 = vset.pattern.permute.xlu0 %v13286_v23  ;;  %13415 = vst [vmem:[#allocation143_spill] sm:$0xff] %v9414_v16 }
 0x42c   : > { %2444 = vperm.xlu1 %7892, %v9329_v14   ;;  %3608 = vperm.xlu0 %7904, %v9372_v2  }
 0x42e   : > { %v9400_v11 = vpop.permute.xlu1 %3896  ;;  %v9402_v19 = vpop.permute.xlu0 %3072 }
 0x42f   : > { %13411 = vst [vmem:[#allocation139_spill] sm:$0xff] %v9400_v11  ;;  %13412 = vst [vmem:[#allocation140_spill] sm:$0xff] %v9402_v19 }
 0x430   : > { %7894 = vset.pattern.permute.xlu1 %v13287_v45  ;;  %7906 = vset.pattern.permute.xlu0 %v13288_v17 }
 0x431   : > { %3084 = vperm.xlu1 %7894, %v9329_v14   ;;  %4248 = vperm.xlu0 %7906, %v9372_v2  }
 0x433   : > { %v9410_v49 = vpop.permute.xlu1 %2420  ;;  %v9412_v18 = vpop.permute.xlu0 %3584 }
 0x434   : > { %13413 = vst [vmem:[#allocation141_spill] sm:$0xff] %v9410_v49  ;;  %13414 = vst [vmem:[#allocation142_spill] sm:$0xff] %v9412_v18 }
 0x435   : > { %7896 = vset.pattern.permute.xlu1 %v13286_v23  ;;  %7907 = vset.pattern.permute.xlu0 %v13291_v44 }
 0x436   : > { %3596 = vperm.xlu1 %7896, %v9329_v14   ;;  %2249 = vperm.xlu0 %7907, %v9414_v16  }
 0x438   : > { %v9420_v20 = vpop.permute.xlu1 %3060  ;;  %v9422_v11 = vpop.permute.xlu0 %4224 }
 0x439   : > { %13416 = vst [vmem:[#allocation144_spill] sm:$0xff] %v9420_v20  ;;  %13417 = vst [vmem:[#allocation145_spill] sm:$0xff] %v9422_v11 }
 0x43a   : > { %7898 = vset.pattern.permute.xlu1 %v13288_v17  ;;  %7909 = vset.pattern.permute.xlu0 %v13296_v42 }
 0x43b   : > { %4236 = vperm.xlu1 %7898, %v9329_v14   ;;  %2772 = vperm.xlu0 %7909, %v9414_v16   ;;  %v1469_v14 = vadd.f32 %v9358_v8, %v8753_v22 }
 0x43d   : > { %v9428_v10 = vpop.permute.xlu1 %3572  ;;  %v9430_v49 = vpop.permute.xlu0 %2219 }
 0x43e   : > { %13418 = vst [vmem:[#allocation146_spill] sm:$0xff] %v9428_v10  ;;  %13419 = vst [vmem:[#allocation147_spill] sm:$0xff] %v9430_v49  ;;  %v9446_v49 = vpop.f32.mrb[90].mxu1 }
 0x43f   : > { %7899 = vset.pattern.permute.xlu1 %v13291_v44  ;;  %7911 = vset.pattern.permute.xlu0 %v13300_v50  ;;  %13422 = vst [vmem:[#allocation150_spill] sm:$0xff] %v9446_v49 }
 0x440   : > { %2254 = vperm.xlu1 %7899, %v9372_v2   ;;  %3412 = vperm.xlu0 %7911, %v9414_v16  }
 0x442   : > { %v9436_v11 = vpop.permute.xlu1 %4212  ;;  %v9438_v20 = vpop.permute.xlu0 %2748 }
 0x443   : > { %13420 = vst [vmem:[#allocation148_spill] sm:$0xff] %v9436_v11  ;;  %13421 = vst [vmem:[#allocation149_spill] sm:$0xff] %v9438_v20  ;;  %v9452_v11 = vmax.f32 %v1469_v14, 0.0  ;;  %v9454_v20 = vpop.f32.mrb[91].mxu1 }
 0x444   : > { %7901 = vset.pattern.permute.xlu1 %v13296_v42  ;;  %7913 = vset.pattern.permute.xlu0 %v13302_v61  ;;  %13426 = vst [vmem:[#allocation154_spill] sm:$0xff] %v9454_v20  ;;  %v9458_v22 = vpop.f32.mrb[92].mxu1 }
 0x445   : > { %2776 = vperm.xlu1 %7901, %v9372_v2   ;;  %3924 = vperm.xlu0 %7913, %v9414_v16   ;;  %13425 = vst [vmem:[#allocation153_spill] sm:$0xff] %v9452_v11  ;;  %13427 = vst [vmem:[#allocation155_spill] sm:$0xff] %v9458_v22 }
 0x447   : > { %v9448_v10 = vpop.permute.xlu1 %2224  ;;  %v9450_v18 = vpop.permute.xlu0 %3388 }
 0x448   : > { %13423 = vst [vmem:[#allocation151_spill] sm:$0xff] %v9448_v10  ;;  %13424 = vst [vmem:[#allocation152_spill] sm:$0xff] %v9450_v18  ;;  %v9474_v10 = vpop.f32.mrb[93].mxu1 }
 0x449   : > { %7903 = vset.pattern.permute.xlu1 %v13300_v50  ;;  %7916 = vset.pattern.permute.xlu0 %v13305_v6  ;;  %13430 = vst [vmem:[#allocation158_spill] sm:$0xff] %v9474_v10 }
 0x44a   : > { %3416 = vperm.xlu1 %7903, %v9372_v2   ;;  %2464 = vperm.xlu0 %7916, %v9452_v11  }
 0x44c   : > { %v9462_v19 = vpop.permute.xlu1 %2752  ;;  %v9464_v49 = vpop.permute.xlu0 %3900 }
 0x44d   : > { %13428 = vst [vmem:[#allocation156_spill] sm:$0xff] %v9462_v19 }
 0x44e   : > { %7905 = vset.pattern.permute.xlu1 %v13302_v61  ;;  %7918 = vset.pattern.permute.xlu0 %v13287_v45 }
 0x44f   : > { %3928 = vperm.xlu1 %7905, %v9372_v2   ;;  %3104 = vperm.xlu0 %7918, %v9452_v11   ;;  %v1464_v2 = vadd.f32 %v9358_v8, %v8757_v24 }
 0x451   : > { %v9470_v14 = vpop.permute.xlu1 %3392  ;;  %v9472_v18 = vpop.permute.xlu0 %2440  ;;  %v9494_v19 = vmax.f32 %v1464_v2, 0.0 }
 0x452   : > { %13429 = vst [vmem:[#allocation157_spill] sm:$0xff] %v9470_v14 }
 0x453   : > { %7908 = vset.pattern.permute.xlu1 %v13305_v6  ;;  %7920 = vset.pattern.permute.xlu0 %v13286_v23  ;;  %13435 = vst [vmem:[#allocation163_spill] sm:$0xff] %v9494_v19 }
 0x454   : > { %2452 = vperm.xlu1 %7908, %v9414_v16   ;;  %3616 = vperm.xlu0 %7920, %v9452_v11  }
 0x456   : > { %v9480_v20 = vpop.permute.xlu1 %3904  ;;  %v9482_v22 = vpop.permute.xlu0 %3080 }
 0x457   : > { %13431 = vst [vmem:[#allocation159_spill] sm:$0xff] %v9480_v20  ;;  %13432 = vst [vmem:[#allocation160_spill] sm:$0xff] %v9482_v22 }
 0x458   : > { %7910 = vset.pattern.permute.xlu1 %v13287_v45  ;;  %7922 = vset.pattern.permute.xlu0 %v13288_v17 }
 0x459   : > { %3092 = vperm.xlu1 %7910, %v9414_v16   ;;  %4256 = vperm.xlu0 %7922, %v9452_v11  }
 0x45b   : > { %v9490_v14 = vpop.permute.xlu1 %2428  ;;  %v9492_v10 = vpop.permute.xlu0 %3592 }
 0x45c   : > { %13433 = vst [vmem:[#allocation161_spill] sm:$0xff] %v9490_v14  ;;  %13434 = vst [vmem:[#allocation162_spill] sm:$0xff] %v9492_v10 }
 0x45d   : > { %7912 = vset.pattern.permute.xlu1 %v13286_v23  ;;  %7923 = vset.pattern.permute.xlu0 %v13291_v44 }
 0x45e   : > { %3604 = vperm.xlu1 %7912, %v9414_v16   ;;  %2259 = vperm.xlu0 %7923, %v9494_v19  }
 0x460   : > { %v9500_v24 = vpop.permute.xlu1 %3068  ;;  %v9502_v20 = vpop.permute.xlu0 %4232 }
 0x461   : > { %13436 = vst [vmem:[#allocation164_spill] sm:$0xff] %v9500_v24  ;;  %13437 = vst [vmem:[#allocation165_spill] sm:$0xff] %v9502_v20 }
 0x462   : > { %7914 = vset.pattern.permute.xlu1 %v13288_v17  ;;  %7925 = vset.pattern.permute.xlu0 %v13296_v42 }
 0x463   : > { %4244 = vperm.xlu1 %7914, %v9414_v16   ;;  %2780 = vperm.xlu0 %7925, %v9494_v19   ;;  %v1479_v16 = vadd.f32 %v9358_v8, %v8759_v26 }
 0x465   : > { %v9508_v2 = vpop.permute.xlu1 %3580  ;;  %v9510_v14 = vpop.permute.xlu0 %2229 }
 0x466   : > { %13438 = vst [vmem:[#allocation166_spill] sm:$0xff] %v9508_v2  ;;  %13439 = vst [vmem:[#allocation167_spill] sm:$0xff] %v9510_v14  ;;  %v9526_v14 = vpop.f32.mrb[94].mxu1 }
 0x467   : > { %7915 = vset.pattern.permute.xlu1 %v13291_v44  ;;  %7927 = vset.pattern.permute.xlu0 %v13300_v50  ;;  %13442 = vst [vmem:[#allocation170_spill] sm:$0xff] %v9526_v14 }
 0x468   : > { %2264 = vperm.xlu1 %7915, %v9452_v11   ;;  %3420 = vperm.xlu0 %7927, %v9494_v19  }
 0x46a   : > { %v9516_v20 = vpop.permute.xlu1 %4220  ;;  %v9518_v24 = vpop.permute.xlu0 %2756 }
 0x46b   : > { %13440 = vst [vmem:[#allocation168_spill] sm:$0xff] %v9516_v20  ;;  %13441 = vst [vmem:[#allocation169_spill] sm:$0xff] %v9518_v24  ;;  %v9532_v20 = vmax.f32 %v1479_v16, 0.0  ;;  %v9534_v24 = vpop.f32.mrb[95].mxu1 }
 0x46c   : > { %7917 = vset.pattern.permute.xlu1 %v13296_v42  ;;  %7929 = vset.pattern.permute.xlu0 %v13302_v61  ;;  %13446 = vst [vmem:[#allocation174_spill] sm:$0xff] %v9534_v24  ;;  %v9538_v26 = vpop.f32.mrb[96].mxu1 }
 0x46d   : > { %2784 = vperm.xlu1 %7917, %v9452_v11   ;;  %3932 = vperm.xlu0 %7929, %v9494_v19   ;;  %13445 = vst [vmem:[#allocation173_spill] sm:$0xff] %v9532_v20  ;;  %13447 = vst [vmem:[#allocation175_spill] sm:$0xff] %v9538_v26 }
 0x46f   : > { %v9528_v2 = vpop.permute.xlu1 %2234  ;;  %v9530_v10 = vpop.permute.xlu0 %3396 }
 0x470   : > { %13443 = vst [vmem:[#allocation171_spill] sm:$0xff] %v9528_v2  ;;  %13444 = vst [vmem:[#allocation172_spill] sm:$0xff] %v9530_v10  ;;  %v9554_v2 = vpop.f32.mrb[97].mxu1 }
 0x471   : > { %7919 = vset.pattern.permute.xlu1 %v13300_v50  ;;  %7932 = vset.pattern.permute.xlu0 %v13305_v6  ;;  %13450 = vst [vmem:[#allocation178_spill] sm:$0xff] %v9554_v2 }
 0x472   : > { %3424 = vperm.xlu1 %7919, %v9452_v11   ;;  %2472 = vperm.xlu0 %7932, %v9532_v20  }
 0x474   : > { %v9542_v22 = vpop.permute.xlu1 %2760  ;;  %v9544_v14 = vpop.permute.xlu0 %3908 }
 0x475   : > { %13448 = vst [vmem:[#allocation176_spill] sm:$0xff] %v9542_v22 }
 0x476   : > { %7921 = vset.pattern.permute.xlu1 %v13302_v61  ;;  %7934 = vset.pattern.permute.xlu0 %v13287_v45 }
 0x477   : > { %3936 = vperm.xlu1 %7921, %v9452_v11   ;;  %3112 = vperm.xlu0 %7934, %v9532_v20   ;;  %v1474_v11 = vadd.f32 %v9358_v8, %v8765_v27 }
 0x479   : > { %v9550_v16 = vpop.permute.xlu1 %3400  ;;  %v9552_v10 = vpop.permute.xlu0 %2448  ;;  %v9574_v22 = vmax.f32 %v1474_v11, 0.0 }
 0x47a   : > { %13449 = vst [vmem:[#allocation177_spill] sm:$0xff] %v9550_v16 }
 0x47b   : > { %7924 = vset.pattern.permute.xlu1 %v13305_v6  ;;  %7936 = vset.pattern.permute.xlu0 %v13286_v23  ;;  %13455 = vst [vmem:[#allocation183_spill] sm:$0xff] %v9574_v22 }
 0x47c   : > { %2460 = vperm.xlu1 %7924, %v9494_v19   ;;  %3624 = vperm.xlu0 %7936, %v9532_v20  }
 0x47e   : > { %v9560_v24 = vpop.permute.xlu1 %3912  ;;  %v9562_v26 = vpop.permute.xlu0 %3088 }
 0x47f   : > { %13451 = vst [vmem:[#allocation179_spill] sm:$0xff] %v9560_v24  ;;  %13452 = vst [vmem:[#allocation180_spill] sm:$0xff] %v9562_v26 }
 0x480   : > { %7926 = vset.pattern.permute.xlu1 %v13287_v45  ;;  %7938 = vset.pattern.permute.xlu0 %v13288_v17 }
 0x481   : > { %3100 = vperm.xlu1 %7926, %v9494_v19   ;;  %4264 = vperm.xlu0 %7938, %v9532_v20  }
 0x483   : > { %v9570_v16 = vpop.permute.xlu1 %2436  ;;  %v9572_v2 = vpop.permute.xlu0 %3600 }
 0x484   : > { %13453 = vst [vmem:[#allocation181_spill] sm:$0xff] %v9570_v16  ;;  %13454 = vst [vmem:[#allocation182_spill] sm:$0xff] %v9572_v2 }
 0x485   : > { %7928 = vset.pattern.permute.xlu1 %v13286_v23  ;;  %7939 = vset.pattern.permute.xlu0 %v13291_v44 }
 0x486   : > { %3612 = vperm.xlu1 %7928, %v9494_v19   ;;  %2269 = vperm.xlu0 %7939, %v9574_v22  }
 0x488   : > { %v9580_v27 = vpop.permute.xlu1 %3076  ;;  %v9582_v24 = vpop.permute.xlu0 %4240 }
 0x489   : > { %13456 = vst [vmem:[#allocation184_spill] sm:$0xff] %v9580_v27  ;;  %13457 = vst [vmem:[#allocation185_spill] sm:$0xff] %v9582_v24 }
 0x48a   : > { %7930 = vset.pattern.permute.xlu1 %v13288_v17  ;;  %7941 = vset.pattern.permute.xlu0 %v13296_v42 }
 0x48b   : > { %4252 = vperm.xlu1 %7930, %v9494_v19   ;;  %2788 = vperm.xlu0 %7941, %v9574_v22   ;;  %v1489_v19 = vadd.f32 %v9358_v8, %v8767_v30 }
 0x48d   : > { %v9588_v11 = vpop.permute.xlu1 %3588  ;;  %v9590_v16 = vpop.permute.xlu0 %2239 }
 0x48e   : > { %13458 = vst [vmem:[#allocation186_spill] sm:$0xff] %v9588_v11  ;;  %13459 = vst [vmem:[#allocation187_spill] sm:$0xff] %v9590_v16  ;;  %v9606_v16 = vpop.f32.mrb[98].mxu1 }
 0x48f   : > { %7931 = vset.pattern.permute.xlu1 %v13291_v44  ;;  %7943 = vset.pattern.permute.xlu0 %v13300_v50  ;;  %13462 = vst [vmem:[#allocation190_spill] sm:$0xff] %v9606_v16 }
 0x490   : > { %2274 = vperm.xlu1 %7931, %v9532_v20   ;;  %3428 = vperm.xlu0 %7943, %v9574_v22  }
 0x492   : > { %v9596_v24 = vpop.permute.xlu1 %4228  ;;  %v9598_v27 = vpop.permute.xlu0 %2764 }
 0x493   : > { %13460 = vst [vmem:[#allocation188_spill] sm:$0xff] %v9596_v24  ;;  %13461 = vst [vmem:[#allocation189_spill] sm:$0xff] %v9598_v27  ;;  %v9612_v24 = vmax.f32 %v1489_v19, 0.0  ;;  %v9614_v27 = vpop.f32.mrb[99].mxu1 }
 0x494   : > { %7933 = vset.pattern.permute.xlu1 %v13296_v42  ;;  %7945 = vset.pattern.permute.xlu0 %v13302_v61  ;;  %13466 = vst [vmem:[#allocation194_spill] sm:$0xff] %v9614_v27  ;;  %v9618_v30 = vpop.f32.mrb[100].mxu1 }
 0x495   : > { %2792 = vperm.xlu1 %7933, %v9532_v20   ;;  %3940 = vperm.xlu0 %7945, %v9574_v22   ;;  %13465 = vst [vmem:[#allocation193_spill] sm:$0xff] %v9612_v24  ;;  %13467 = vst [vmem:[#allocation195_spill] sm:$0xff] %v9618_v30 }
 0x497   : > { %v9608_v11 = vpop.permute.xlu1 %2244  ;;  %v9610_v2 = vpop.permute.xlu0 %3404 }
 0x498   : > { %13463 = vst [vmem:[#allocation191_spill] sm:$0xff] %v9608_v11  ;;  %13464 = vst [vmem:[#allocation192_spill] sm:$0xff] %v9610_v2  ;;  %v9634_v11 = vpop.f32.mrb[101].mxu1 }
 0x499   : > { %7935 = vset.pattern.permute.xlu1 %v13300_v50  ;;  %7948 = vset.pattern.permute.xlu0 %v13305_v6  ;;  %13470 = vst [vmem:[#allocation198_spill] sm:$0xff] %v9634_v11 }
 0x49a   : > { %3432 = vperm.xlu1 %7935, %v9532_v20   ;;  %2480 = vperm.xlu0 %7948, %v9612_v24  }
 0x49c   : > { %v9622_v26 = vpop.permute.xlu1 %2768  ;;  %v9624_v16 = vpop.permute.xlu0 %3916 }
 0x49d   : > { %13468 = vst [vmem:[#allocation196_spill] sm:$0xff] %v9622_v26 }
 0x49e   : > { %7937 = vset.pattern.permute.xlu1 %v13302_v61  ;;  %7950 = vset.pattern.permute.xlu0 %v13287_v45 }
 0x49f   : > { %3944 = vperm.xlu1 %7937, %v9532_v20   ;;  %3120 = vperm.xlu0 %7950, %v9612_v24   ;;  %v1484_v20 = vadd.f32 %v9358_v8, %v8769_v31 }
 0x4a1   : > { %v9630_v19 = vpop.permute.xlu1 %3408  ;;  %v9632_v2 = vpop.permute.xlu0 %2456  ;;  %v9654_v26 = vmax.f32 %v1484_v20, 0.0 }
 0x4a2   : > { %13469 = vst [vmem:[#allocation197_spill] sm:$0xff] %v9630_v19 }
 0x4a3   : > { %7940 = vset.pattern.permute.xlu1 %v13305_v6  ;;  %7952 = vset.pattern.permute.xlu0 %v13286_v23  ;;  %13475 = vst [vmem:[#allocation203_spill] sm:$0xff] %v9654_v26 }
 0x4a4   : > { %2468 = vperm.xlu1 %7940, %v9574_v22   ;;  %3632 = vperm.xlu0 %7952, %v9612_v24  }
 0x4a6   : > { %v9640_v27 = vpop.permute.xlu1 %3920  ;;  %v9642_v30 = vpop.permute.xlu0 %3096 }
 0x4a7   : > { %13471 = vst [vmem:[#allocation199_spill] sm:$0xff] %v9640_v27  ;;  %13472 = vst [vmem:[#allocation200_spill] sm:$0xff] %v9642_v30 }
 0x4a8   : > { %7942 = vset.pattern.permute.xlu1 %v13287_v45  ;;  %7954 = vset.pattern.permute.xlu0 %v13288_v17 }
 0x4a9   : > { %3108 = vperm.xlu1 %7942, %v9574_v22   ;;  %4272 = vperm.xlu0 %7954, %v9612_v24  }
 0x4ab   : > { %v9650_v19 = vpop.permute.xlu1 %2444  ;;  %v9652_v11 = vpop.permute.xlu0 %3608 }
 0x4ac   : > { %13473 = vst [vmem:[#allocation201_spill] sm:$0xff] %v9650_v19  ;;  %13474 = vst [vmem:[#allocation202_spill] sm:$0xff] %v9652_v11 }
 0x4ad   : > { %7944 = vset.pattern.permute.xlu1 %v13286_v23  ;;  %7955 = vset.pattern.permute.xlu0 %v13291_v44 }
 0x4ae   : > { %3620 = vperm.xlu1 %7944, %v9574_v22   ;;  %2279 = vperm.xlu0 %7955, %v9654_v26  }
 0x4b0   : > { %v9660_v31 = vpop.permute.xlu1 %3084  ;;  %v9662_v27 = vpop.permute.xlu0 %4248 }
 0x4b1   : > { %13476 = vst [vmem:[#allocation204_spill] sm:$0xff] %v9660_v31  ;;  %13477 = vst [vmem:[#allocation205_spill] sm:$0xff] %v9662_v27 }
 0x4b2   : > { %7946 = vset.pattern.permute.xlu1 %v13288_v17  ;;  %7957 = vset.pattern.permute.xlu0 %v13296_v42 }
 0x4b3   : > { %4260 = vperm.xlu1 %7946, %v9574_v22   ;;  %2796 = vperm.xlu0 %7957, %v9654_v26   ;;  %v1499_v22 = vadd.f32 %v9358_v8, %v8775_v25 }
 0x4b5   : > { %v9668_v20 = vpop.permute.xlu1 %3596  ;;  %v9670_v19 = vpop.permute.xlu0 %2249 }
 0x4b6   : > { %13478 = vst [vmem:[#allocation206_spill] sm:$0xff] %v9668_v20  ;;  %13479 = vst [vmem:[#allocation207_spill] sm:$0xff] %v9670_v19  ;;  %v9686_v19 = vpop.f32.mrb[102].mxu1 }
 0x4b7   : > { %7947 = vset.pattern.permute.xlu1 %v13291_v44  ;;  %7959 = vset.pattern.permute.xlu0 %v13300_v50  ;;  %13482 = vst [vmem:[#allocation210_spill] sm:$0xff] %v9686_v19 }
 0x4b8   : > { %2284 = vperm.xlu1 %7947, %v9612_v24   ;;  %3436 = vperm.xlu0 %7959, %v9654_v26  }
 0x4ba   : > { %v9676_v27 = vpop.permute.xlu1 %4236  ;;  %v9678_v31 = vpop.permute.xlu0 %2772 }
 0x4bb   : > { %13480 = vst [vmem:[#allocation208_spill] sm:$0xff] %v9676_v27  ;;  %13481 = vst [vmem:[#allocation209_spill] sm:$0xff] %v9678_v31  ;;  %v9692_v27 = vmax.f32 %v1499_v22, 0.0  ;;  %v9694_v31 = vpop.f32.mrb[103].mxu1 }
 0x4bc   : > { %7949 = vset.pattern.permute.xlu1 %v13296_v42  ;;  %7961 = vset.pattern.permute.xlu0 %v13302_v61  ;;  %13486 = vst [vmem:[#allocation214_spill] sm:$0xff] %v9694_v31  ;;  %v9698_v25 = vpop.f32.mrb[104].mxu1 }
 0x4bd   : > { %2800 = vperm.xlu1 %7949, %v9612_v24   ;;  %3948 = vperm.xlu0 %7961, %v9654_v26   ;;  %13485 = vst [vmem:[#allocation213_spill] sm:$0xff] %v9692_v27  ;;  %13487 = vst [vmem:[#allocation215_spill] sm:$0xff] %v9698_v25 }
 0x4bf   : > { %v9688_v20 = vpop.permute.xlu1 %2254  ;;  %v9690_v11 = vpop.permute.xlu0 %3412 }
 0x4c0   : > { %13483 = vst [vmem:[#allocation211_spill] sm:$0xff] %v9688_v20  ;;  %13484 = vst [vmem:[#allocation212_spill] sm:$0xff] %v9690_v11  ;;  %v9714_v20 = vpop.f32.mrb[105].mxu1 }
 0x4c1   : > { %7951 = vset.pattern.permute.xlu1 %v13300_v50  ;;  %7964 = vset.pattern.permute.xlu0 %v13305_v6  ;;  %13490 = vst [vmem:[#allocation218_spill] sm:$0xff] %v9714_v20 }
 0x4c2   : > { %3440 = vperm.xlu1 %7951, %v9612_v24   ;;  %2488 = vperm.xlu0 %7964, %v9692_v27  }
 0x4c4   : > { %v9702_v30 = vpop.permute.xlu1 %2776  ;;  %v9704_v19 = vpop.permute.xlu0 %3924 }
 0x4c5   : > { %13488 = vst [vmem:[#allocation216_spill] sm:$0xff] %v9702_v30 }
 0x4c6   : > { %7953 = vset.pattern.permute.xlu1 %v13302_v61  ;;  %7966 = vset.pattern.permute.xlu0 %v13287_v45 }
 0x4c7   : > { %3952 = vperm.xlu1 %7953, %v9612_v24   ;;  %3128 = vperm.xlu0 %7966, %v9692_v27   ;;  %v1494_v24 = vadd.f32 %v9358_v8, %v8777_v33 }
 0x4c9   : > { %v9710_v22 = vpop.permute.xlu1 %3416  ;;  %v9712_v11 = vpop.permute.xlu0 %2464  ;;  %v9734_v30 = vmax.f32 %v1494_v24, 0.0 }
 0x4ca   : > { %13489 = vst [vmem:[#allocation217_spill] sm:$0xff] %v9710_v22 }
 0x4cb   : > { %7956 = vset.pattern.permute.xlu1 %v13305_v6  ;;  %7968 = vset.pattern.permute.xlu0 %v13286_v23  ;;  %13495 = vst [vmem:[#allocation223_spill] sm:$0xff] %v9734_v30 }
 0x4cc   : > { %2476 = vperm.xlu1 %7956, %v9654_v26   ;;  %3640 = vperm.xlu0 %7968, %v9692_v27  }
 0x4ce   : > { %v9720_v31 = vpop.permute.xlu1 %3928  ;;  %v9722_v25 = vpop.permute.xlu0 %3104 }
 0x4cf   : > { %13491 = vst [vmem:[#allocation219_spill] sm:$0xff] %v9720_v31  ;;  %13492 = vst [vmem:[#allocation220_spill] sm:$0xff] %v9722_v25 }
 0x4d0   : > { %7958 = vset.pattern.permute.xlu1 %v13287_v45  ;;  %7970 = vset.pattern.permute.xlu0 %v13288_v17 }
 0x4d1   : > { %3116 = vperm.xlu1 %7958, %v9654_v26   ;;  %4280 = vperm.xlu0 %7970, %v9692_v27  }
 0x4d3   : > { %v9730_v22 = vpop.permute.xlu1 %2452  ;;  %v9732_v20 = vpop.permute.xlu0 %3616 }
 0x4d4   : > { %13493 = vst [vmem:[#allocation221_spill] sm:$0xff] %v9730_v22  ;;  %13494 = vst [vmem:[#allocation222_spill] sm:$0xff] %v9732_v20 }
 0x4d5   : > { %7960 = vset.pattern.permute.xlu1 %v13286_v23  ;;  %7971 = vset.pattern.permute.xlu0 %v13291_v44 }
 0x4d6   : > { %3628 = vperm.xlu1 %7960, %v9654_v26   ;;  %2289 = vperm.xlu0 %7971, %v9734_v30  }
 0x4d8   : > { %v9740_v33 = vpop.permute.xlu1 %3092  ;;  %v9742_v31 = vpop.permute.xlu0 %4256 }
 0x4d9   : > { %13496 = vst [vmem:[#allocation224_spill] sm:$0xff] %v9740_v33  ;;  %13497 = vst [vmem:[#allocation225_spill] sm:$0xff] %v9742_v31 }
 0x4da   : > { %7962 = vset.pattern.permute.xlu1 %v13288_v17  ;;  %7973 = vset.pattern.permute.xlu0 %v13296_v42 }
 0x4db   : > { %4268 = vperm.xlu1 %7962, %v9654_v26   ;;  %2804 = vperm.xlu0 %7973, %v9734_v30   ;;  %v1509_v26 = vadd.f32 %v9358_v8, %v8783_v63 }
 0x4dd   : > { %v9748_v24 = vpop.permute.xlu1 %3604  ;;  %v9750_v22 = vpop.permute.xlu0 %2259 }
 0x4de   : > { %13498 = vst [vmem:[#allocation226_spill] sm:$0xff] %v9748_v24  ;;  %13499 = vst [vmem:[#allocation227_spill] sm:$0xff] %v9750_v22  ;;  %v9766_v22 = vpop.f32.mrb[106].mxu1 }
 0x4df   : > { %7963 = vset.pattern.permute.xlu1 %v13291_v44  ;;  %7975 = vset.pattern.permute.xlu0 %v13300_v50  ;;  %13502 = vst [vmem:[#allocation230_spill] sm:$0xff] %v9766_v22 }
 0x4e0   : > { %2294 = vperm.xlu1 %7963, %v9692_v27   ;;  %3444 = vperm.xlu0 %7975, %v9734_v30  }
 0x4e2   : > { %v9756_v31 = vpop.permute.xlu1 %4244  ;;  %v9758_v33 = vpop.permute.xlu0 %2780 }
 0x4e3   : > { %13500 = vst [vmem:[#allocation228_spill] sm:$0xff] %v9756_v31  ;;  %13501 = vst [vmem:[#allocation229_spill] sm:$0xff] %v9758_v33  ;;  %v9772_v31 = vmax.f32 %v1509_v26, 0.0  ;;  %v9774_v33 = vpop.f32.mrb[107].mxu1 }
 0x4e4   : > { %7965 = vset.pattern.permute.xlu1 %v13296_v42  ;;  %7977 = vset.pattern.permute.xlu0 %v13302_v61  ;;  %13506 = vst [vmem:[#allocation234_spill] sm:$0xff] %v9774_v33  ;;  %v9778_v63 = vpop.f32.mrb[108].mxu1 }
 0x4e5   : > { %2808 = vperm.xlu1 %7965, %v9692_v27   ;;  %3956 = vperm.xlu0 %7977, %v9734_v30   ;;  %13505 = vst [vmem:[#allocation233_spill] sm:$0xff] %v9772_v31  ;;  %13507 = vst [vmem:[#allocation235_spill] sm:$0xff] %v9778_v63 }
 0x4e7   : > { %v9768_v24 = vpop.permute.xlu1 %2264  ;;  %v9770_v20 = vpop.permute.xlu0 %3420 }
 0x4e8   : > { %13503 = vst [vmem:[#allocation231_spill] sm:$0xff] %v9768_v24  ;;  %13504 = vst [vmem:[#allocation232_spill] sm:$0xff] %v9770_v20  ;;  %v9794_v24 = vpop.f32.mrb[109].mxu1 }
 0x4e9   : > { %7967 = vset.pattern.permute.xlu1 %v13300_v50  ;;  %7980 = vset.pattern.permute.xlu0 %v13305_v6  ;;  %13510 = vst [vmem:[#allocation238_spill] sm:$0xff] %v9794_v24 }
 0x4ea   : > { %3448 = vperm.xlu1 %7967, %v9692_v27   ;;  %2496 = vperm.xlu0 %7980, %v9772_v31  }
 0x4ec   : > { %v9782_v25 = vpop.permute.xlu1 %2784  ;;  %v9784_v22 = vpop.permute.xlu0 %3932 }
 0x4ed   : > { %13508 = vst [vmem:[#allocation236_spill] sm:$0xff] %v9782_v25 }
 0x4ee   : > { %7969 = vset.pattern.permute.xlu1 %v13302_v61  ;;  %7982 = vset.pattern.permute.xlu0 %v13287_v45 }
 0x4ef   : > { %3960 = vperm.xlu1 %7969, %v9692_v27   ;;  %3136 = vperm.xlu0 %7982, %v9772_v31   ;;  %v1504_v27 = vadd.f32 %v9358_v8, %v8785_v1 }
 0x4f1   : > { %v9790_v26 = vpop.permute.xlu1 %3424  ;;  %v9792_v20 = vpop.permute.xlu0 %2472  ;;  %v9814_v25 = vmax.f32 %v1504_v27, 0.0 }
 0x4f2   : > { %13509 = vst [vmem:[#allocation237_spill] sm:$0xff] %v9790_v26 }
 0x4f3   : > { %7972 = vset.pattern.permute.xlu1 %v13305_v6  ;;  %7984 = vset.pattern.permute.xlu0 %v13286_v23  ;;  %13512 = vst [vmem:[#allocation240_spill] sm:$0xff] %v9814_v25 }
 0x4f4   : > { %2484 = vperm.xlu1 %7972, %v9734_v30   ;;  %3648 = vperm.xlu0 %7984, %v9772_v31  }
 0x4f6   : > { %v9800_v33 = vpop.permute.xlu1 %3936  ;;  %v9802_v63 = vpop.permute.xlu0 %3112 }
 0x4f8   : > { %7974 = vset.pattern.permute.xlu1 %v13287_v45  ;;  %7986 = vset.pattern.permute.xlu0 %v13288_v17 }
 0x4f9   : > { %3124 = vperm.xlu1 %7974, %v9734_v30   ;;  %4288 = vperm.xlu0 %7986, %v9772_v31  }
 0x4fb   : > { %v9810_v26 = vpop.permute.xlu1 %2460  ;;  %v9812_v24 = vpop.permute.xlu0 %3624 }
 0x4fc   : > { %13511 = vst [vmem:[#allocation239_spill] sm:$0xff] %v9810_v26 }
 0x4fd   : > { %7976 = vset.pattern.permute.xlu1 %v13286_v23  ;;  %7987 = vset.pattern.permute.xlu0 %v13291_v44 }
 0x4fe   : > { %3636 = vperm.xlu1 %7976, %v9734_v30   ;;  %2299 = vperm.xlu0 %7987, %v9814_v25  }
 0x500   : > { %v9820_v1 = vpop.permute.xlu1 %3100  ;;  %v9822_v8 = vpop.permute.xlu0 %4264 }
 0x501   : > { %13513 = vst [vmem:[#allocation241_spill] sm:$0xff] %v9820_v1  ;;  %13514 = vst [vmem:[#allocation242_spill] sm:$0xff] %v9822_v8 }
 0x502   : > { %7978 = vset.pattern.permute.xlu1 %v13288_v17  ;;  %7989 = vset.pattern.permute.xlu0 %v13296_v42 }
 0x503   : > { %4276 = vperm.xlu1 %7978, %v9734_v30   ;;  %2812 = vperm.xlu0 %7989, %v9814_v25  }
 0x505   : > { %v9828_v27 = vpop.permute.xlu1 %3612  ;;  %v9830_v26 = vpop.permute.xlu0 %2269 }
 0x506   : > { %13515 = vst [vmem:[#allocation243_spill] sm:$0xff] %v9828_v27  ;;  %13516 = vst [vmem:[#allocation244_spill] sm:$0xff] %v9830_v26 }
 0x507   : > { %7979 = vset.pattern.permute.xlu1 %v13291_v44  ;;  %7991 = vset.pattern.permute.xlu0 %v13300_v50  ;;  %v2500_v44 = vmul.f32 %v8849_v51, %v8641_v62 }
 0x508   : > { %2304 = vperm.xlu1 %7979, %v9772_v31   ;;  %3452 = vperm.xlu0 %7991, %v9814_v25  }
 0x50a   : > { %v9836_v8 = vpop.permute.xlu1 %4252  ;;  %v9838_v1 = vpop.permute.xlu0 %2788 }
 0x50b   : > { %13517 = vst [vmem:[#allocation245_spill] sm:$0xff] %v9836_v8 }
 0x50c   : > { %7981 = vset.pattern.permute.xlu1 %v13296_v42  ;;  %7993 = vset.pattern.permute.xlu0 %v13302_v61  ;;  %v3140_v42 = vmul.f32 %v8863_v21, %v8641_v62  ;;  %v4292_v21 = vmul.f32 %v8883_v35, %v8657_v52  ;;  %v3971_v35 = vmul.f32 %v8907_v4, %v8637_v0 }
 0x50d   : > { %2816 = vperm.xlu1 %7981, %v9772_v31   ;;  %3964 = vperm.xlu0 %7993, %v9814_v25   ;;  %v3142_v4 = vmul.f32 %v8955_v41, %v8695_v5 }
 0x50f   : > { %v9846_v30 = vpop.permute.xlu1 %2274  ;;  %v9848_v26 = vpop.permute.xlu0 %3428 }
 0x510   : > { %13518 = vst [vmem:[#allocation246_spill] sm:$0xff] %v9846_v30  ;;  %13519 = vst [vmem:[#allocation247_spill] sm:$0xff] %v9848_v26  ;;  %v13549_v26 = vld [vmem:[#allocation34_spill] sm:$0xff] }
 0x511   : > { %7983 = vset.pattern.permute.xlu1 %v13300_v50  ;;  %2565 = vrot.lane.b32.xlu0 %v2500_v44, %s8087_s22  ;;  %v3652_v50 = vmul.f32 %v8871_v29, %v8657_v52 }
 0x512   : > { %3456 = vperm.xlu1 %7983, %v9772_v31  }
 0x514   : > { %v9855_v8 = vpop.permute.xlu1 %2792  ;;  %v9857_v27 = vpop.permute.xlu0 %3940 }
 0x515   : > { %13520 = vst [vmem:[#allocation248_spill] sm:$0xff] %v9855_v8  ;;  %3205 = vrot.lane.b32.xlu0 %v3140_v42, %s8088_s23  ;;  %v2819_v42 = vmul.f32 %v8891_v59, %v8635_v43  ;;  %v13643_v8 = vld [vmem:[#allocation149_spill] sm:$0xff] }
 0x516   : > { %7985 = vset.pattern.permute.xlu1 %v13302_v61 }
 0x517   : > { %3968 = vperm.xlu1 %7985, %v9772_v31   ;;  %v13538_v31 = vld [vmem:[#allocation10_spill] sm:$0xff] }
 0x519   : > { %v9864_v51 = vpop.permute.xlu1 %3432  ;;  %3717 = vrot.lane.b32.xlu0 %v3652_v50, %s8087_s22  ;;  %v9867_v44 = vpop.permute.xlu0 %2480 }
 0x51a   : > { %13521 = vst [vmem:[#allocation249_spill] sm:$0xff] %v9864_v51  ;;  %v2501_v51 = vmul.f32 %v13549_v26, %v8689_v48  ;;  %v13556_v26 = vld [vmem:[#allocation42_spill] sm:$0xff] }
 0x51b   : > { %7988 = vset.pattern.permute.xlu1 %v13305_v6 }
 0x51c   : > { %2492 = vperm.xlu1 %7988, %v9814_v25  }
 0x51d   : > { %4357 = vrot.lane.b32.xlu0 %v4292_v21, %s8088_s23 }
 0x51e   : > { %v9874_v61 = vpop.permute.xlu1 %3944  ;;  %v9876_v29 = vpop.permute.xlu0 %3120 }
 0x51f   : > { %13522 = vst [vmem:[#allocation250_spill] sm:$0xff] %v9874_v61 }
 0x520   : > { %7990 = vset.pattern.permute.xlu1 %v13287_v45  ;;  %v2502_v45 = vmul.f32 %v8945_v60, %v8695_v5 }
 0x521   : > { %3132 = vperm.xlu1 %7990, %v9814_v25   ;;  %2883 = vrot.lane.b32.xlu0 %v2819_v42, %s8089_s24 }
 0x523   : > { %v9885_v6 = vpop.permute.xlu1 %2468  ;;  %v9887_v50 = vpop.permute.xlu0 %3632 }
 0x524   : > { %13523 = vst [vmem:[#allocation251_spill] sm:$0xff] %v9885_v6  ;;  %v13625_v6 = vld [vmem:[#allocation116_spill] sm:$0xff] }
 0x525   : > { %7992 = vset.pattern.permute.xlu1 %v13286_v23  ;;  %4035 = vrot.lane.b32.xlu0 %v3971_v35, %s8089_s24  ;;  %v2820_v23 = vmul.f32 %v8865_v34, %v8641_v62  ;;  %v3654_v35 = vmul.f32 %v8965_v58, %v8707_v7  ;;  %v2821_v34 = vmul.f32 %v8979_v32, %v8689_v48 }
 0x526   : > { %3644 = vperm.xlu1 %7992, %v9814_v25   ;;  %v3973_v58 = vmul.f32 %v9023_v37, %v8691_v3  ;;  %v2504_v32 = vmul.f32 %v8981_v12, %v8803_v40  ;;  %v3651_v37 = vmul.f32 %v8921_v36, %v8637_v0  ;;  %v13540_v36 = vld [vmem:[#allocation25_spill] sm:$0xff] }
 0x528   : > { %v9894_v59 = vpop.permute.xlu1 %3108  ;;  %v9896_v21 = vpop.permute.xlu0 %4272 }
 0x529   : > { %13524 = vst [vmem:[#allocation252_spill] sm:$0xff] %v9894_v59  ;;  %13525 = vst [vmem:[#allocation253_spill] sm:$0xff] %v9896_v21  ;;  %2569 = vrot.lane.b32.xlu0 %v2502_v45, %s8087_s22  ;;  %v13620_v59 = vld [vmem:[#allocation107_spill] sm:$0xff] }
 0x52a   : > { %7994 = vset.pattern.permute.xlu1 %v13288_v17  ;;  %v3972_v17 = vmul.f32 %v8885_v53, %v8657_v52 }
 0x52b   : > { %4284 = vperm.xlu1 %7994, %v9814_v25   ;;  %v13539_v25 = vld [vmem:[#allocation40_spill] sm:$0xff] }
 0x52d   : > { %v9905_v42 = vpop.permute.xlu1 %3620  ;;  %3209 = vrot.lane.b32.xlu0 %v3142_v4, %s8088_s23  ;;  %v9908_v60 = vpop.permute.xlu0 %2279  ;;  %v2499_v4 = vmul.f32 %v8901_v55, %v8635_v43 }
 0x52e   : > { %13526 = vst [vmem:[#allocation254_spill] sm:$0xff] %v9905_v42  ;;  %13527 = vst [vmem:[#allocation255_spill] sm:$0xff] %v9908_v60 }
 0x52f   : > { %2885 = vrot.lane.b32.xlu1 %v2820_v23, %s8089_s24 }
 0x531   : > { %3721 = vrot.lane.b32.xlu0 %v3654_v35, %s8087_s22  ;;  %v3139_v35 = vmul.f32 %v8909_v38, %v8635_v43  ;;  %v13535_v38 = vld [vmem:[#allocation26_spill] sm:$0xff] }
 0x532   : > { %v9916_v41 = vpop.permute.xlu1 %4260  ;;  %v9918_v45 = vpop.permute.xlu0 %2796 }
 0x533   : > { %13528 = vst [vmem:[#allocation256_spill] sm:$0xff] %v9916_v41  ;;  %13529 = vst [vmem:[#allocation257_spill] sm:$0xff] %v9918_v45  ;;  %4037 = vrot.lane.b32.xlu1 %v3972_v17, %s8089_s24 }
 0x535   : > { %2887 = vrot.lane.b32.xlu0 %v2821_v34, %s8089_s24  ;;  %v13534_v34 = vld [vmem:[#allocation37_spill] sm:$0xff] }
 0x537   : > { %v9928_v53 = vpop.permute.xlu1 %2284  ;;  %2563 = vrot.lane.b32.xlu1 %v2499_v4, %s8087_s22  ;;  %v9931_v23 = vpop.permute.xlu0 %3436  ;;  %v3144_v4 = vmul.f32 %v13534_v34, %v8803_v40 }
 0x538   : > { %13530 = vst [vmem:[#allocation258_spill] sm:$0xff] %v9928_v53  ;;  %13531 = vst [vmem:[#allocation259_spill] sm:$0xff] %v9931_v23  ;;  %v3656_v23 = vmul.f32 %v13539_v25, %v13538_v31  ;;  %v13545_v25 = vld [vmem:[#allocation9_spill] sm:$0xff] }
 0x539   : > { %4039 = vrot.lane.b32.xlu0 %v3973_v58, %s8089_s24  ;;  %v4291_v58 = vmul.f32 %v13535_v38, %v8637_v0  ;;  %v13543_v38 = vld [vmem:[#allocation8_spill] sm:$0xff] }
 0x53a   : > { %v2823_v60 = vmul.f32 %v9035_v47, %v13543_v38  ;;  %v13550_v47 = vld [vmem:[#allocation16_spill] sm:$0xff] }
 0x53b   : > { %3203 = vrot.lane.b32.xlu1 %v3139_v35, %s8088_s23 }
 0x53c   : > { %v9939_v55 = vpop.permute.xlu1 %2800  ;;  %v9941_v17 = vpop.permute.xlu0 %3948 }
 0x53d   : > { %13532 = vst [vmem:[#allocation260_spill] sm:$0xff] %v9939_v55  ;;  %13533 = vst [vmem:[#allocation261_spill] sm:$0xff] %v9941_v17  ;;  %2573 = vrot.lane.b32.xlu0 %v2504_v32, %s8087_s22  ;;  %v2822_v32 = vmul.f32 %v13540_v36, %v8695_v5 }
 0x53f   : > { %3715 = vrot.lane.b32.xlu1 %v3651_v37, %s8087_s22 }
 0x541   : > { %v9951_v12 = vpop.permute.xlu1 %3440  ;;  %3213 = vrot.lane.b32.xlu0 %v3144_v4, %s8088_s23  ;;  %v9954_v35 = vpop.permute.xlu0 %2488  ;;  %v13544_v4 = vld [vmem:[#allocation31_spill] sm:$0xff] }
 0x542   : > { %13536 = vst [vmem:[#allocation37_spill] sm:$0xff] %v9951_v12  ;;  %13537 = vst [vmem:[#allocation26_spill] sm:$0xff] %v9954_v35  ;;  %v3974_v12 = vmul.f32 %v13544_v4, %v8707_v7 }
 0x543   : > { %4355 = vrot.lane.b32.xlu1 %v4291_v58, %s8088_s23  ;;  %v13546_v58 = vld [vmem:[#allocation53_spill] sm:$0xff] }
 0x544   : > { %v3975_v53 = vmul.f32 %v13546_v58, %v13545_v25  ;;  %v13554_v58 = vld [vmem:[#allocation36_spill] sm:$0xff] }
 0x545   : > { %3725 = vrot.lane.b32.xlu0 %v3656_v23, %s8087_s22  ;;  %v3141_v41 = vmul.f32 %v13554_v58, %v8689_v48 }
 0x546   : > { %v9962_v37 = vpop.permute.xlu1 %3952  ;;  %v9964_v34 = vpop.permute.xlu0 %3128 }
 0x547   : > { %13541 = vst [vmem:[#allocation10_spill] sm:$0xff] %v9962_v37  ;;  %13542 = vst [vmem:[#allocation40_spill] sm:$0xff] %v9964_v34  ;;  %2889 = vrot.lane.b32.xlu1 %v2822_v32, %s8089_s24  ;;  %v13551_v32 = vld [vmem:[#allocation55_spill] sm:$0xff]  ;;  %v13623_v34 = vld [vmem:[#allocation129_spill] sm:$0xff] }
 0x548   : > { %v2506_v30 = vmul.f32 %v13551_v32, %v13550_v47 }
 0x549   : > { %2891 = vrot.lane.b32.xlu0 %v2823_v60, %s8089_s24 }
 0x54b   : > { %v9974_v36 = vpop.permute.xlu1 %2476  ;;  %4041 = vrot.lane.b32.xlu1 %v3974_v12, %s8089_s24  ;;  %v9977_v23 = vpop.permute.xlu0 %3640  ;;  %v13555_v12 = vld [vmem:[#allocation57_spill] sm:$0xff] }
 0x54c   : > { %13547 = vst [vmem:[#allocation25_spill] sm:$0xff] %v9974_v36  ;;  %13548 = vst [vmem:[#allocation8_spill] sm:$0xff] %v9977_v23  ;;  %v3146_v21 = vmul.f32 %v13555_v12, %v13550_v47 }
 0x54d   : > { %4043 = vrot.lane.b32.xlu0 %v3975_v53, %s8089_s24  ;;  %v3653_v53 = vmul.f32 %v13556_v26, %v8691_v3  ;;  %v13564_v26 = vld [vmem:[#allocation13_spill] sm:$0xff] }
 0x54f   : > { %2567 = vrot.lane.b32.xlu1 %v2501_v51, %s8087_s22 }
 0x550   : > { %v9985_v60 = vpop.permute.xlu1 %3116  ;;  %v9987_v4 = vpop.permute.xlu0 %4280 }
 0x551   : > { %13552 = vst [vmem:[#allocation31_spill] sm:$0xff] %v9985_v60  ;;  %13553 = vst [vmem:[#allocation9_spill] sm:$0xff] %v9987_v4  ;;  %2577 = vrot.lane.b32.xlu0 %v2506_v30, %s8087_s22  ;;  %v13559_v4 = vld [vmem:[#allocation17_spill] sm:$0xff]  ;;  %v13560_v60 = vld [vmem:[#allocation60_spill] sm:$0xff] }
 0x552   : > { %v3658_v36 = vmul.f32 %v13560_v60, %v13559_v4  ;;  %v13561_v30 = vld [vmem:[#allocation48_spill] sm:$0xff]  ;;  %v13566_v60 = vld [vmem:[#allocation15_spill] sm:$0xff] }
 0x553   : > { %3207 = vrot.lane.b32.xlu1 %v3141_v41, %s8088_s23  ;;  %v4293_v58 = vmul.f32 %v13561_v30, %v8691_v3 }
 0x555   : > { %v9997_v32 = vpop.permute.xlu1 %3628  ;;  %3217 = vrot.lane.b32.xlu0 %v3146_v21, %s8088_s23  ;;  %v10000_v51 = vpop.permute.xlu0 %2289  ;;  %v13565_v21 = vld [vmem:[#allocation52_spill] sm:$0xff] }
 0x556   : > { %13557 = vst [vmem:[#allocation53_spill] sm:$0xff] %v9997_v32  ;;  %13558 = vst [vmem:[#allocation34_spill] sm:$0xff] %v10000_v51  ;;  %v2825_v32 = vmul.f32 %v9115_v54, %v13564_v26  ;;  %v2824_v51 = vmul.f32 %v13565_v21, %v8803_v40  ;;  %v13570_v54 = vld [vmem:[#allocation28_spill] sm:$0xff] }
 0x557   : > { %3719 = vrot.lane.b32.xlu1 %v3653_v53, %s8087_s22  ;;  %v3977_v53 = vmul.f32 %v9133_v28, %v13566_v60  ;;  %v13574_v28 = vld [vmem:[#allocation59_spill] sm:$0xff] }
 0x559   : > { %3729 = vrot.lane.b32.xlu0 %v3658_v36, %s8087_s22 }
 0x55a   : > { %v10008_v41 = vpop.permute.xlu1 %4268  ;;  %v10010_v12 = vpop.permute.xlu0 %2804 }
 0x55b   : > { %13562 = vst [vmem:[#allocation16_spill] sm:$0xff] %v10008_v41  ;;  %13563 = vst [vmem:[#allocation55_spill] sm:$0xff] %v10010_v12  ;;  %4359 = vrot.lane.b32.xlu1 %v4293_v58, %s8088_s23  ;;  %v13569_v41 = vld [vmem:[#allocation56_spill] sm:$0xff]  ;;  %v13571_v58 = vld [vmem:[#allocation75_spill] sm:$0xff] }
 0x55c   : > { %v3976_v37 = vmul.f32 %v13569_v41, %v13538_v31  ;;  %v2508_v55 = vmul.f32 %v13571_v58, %v13570_v54  ;;  %v13576_v41 = vld [vmem:[#allocation62_spill] sm:$0xff] }
 0x55d   : > { %2895 = vrot.lane.b32.xlu0 %v2825_v32, %s8089_s24 }
 0x55f   : > { %v10020_v30 = vpop.permute.xlu1 %2294  ;;  %2893 = vrot.lane.b32.xlu1 %v2824_v51, %s8089_s24  ;;  %v10023_v36 = vpop.permute.xlu0 %3444  ;;  %v13575_v51 = vld [vmem:[#allocation77_spill] sm:$0xff] }
 0x560   : > { %13567 = vst [vmem:[#allocation36_spill] sm:$0xff] %v10020_v30  ;;  %13568 = vst [vmem:[#allocation57_spill] sm:$0xff] %v10023_v36  ;;  %v2503_v30 = vmul.f32 %v13574_v28, %v13543_v38  ;;  %v3148_v36 = vmul.f32 %v13575_v51, %v13570_v54 }
 0x561   : > { %4047 = vrot.lane.b32.xlu0 %v3977_v53, %s8089_s24  ;;  %v3143_v53 = vmul.f32 %v13576_v41, %v13543_v38  ;;  %v13584_v41 = vld [vmem:[#allocation24_spill] sm:$0xff] }
 0x563   : > { %4045 = vrot.lane.b32.xlu1 %v3976_v37, %s8089_s24 }
 0x564   : > { %v10031_v32 = vpop.permute.xlu1 %2808  ;;  %v10033_v21 = vpop.permute.xlu0 %3956 }
 0x565   : > { %13572 = vst [vmem:[#allocation42_spill] sm:$0xff] %v10031_v32  ;;  %13573 = vst [vmem:[#allocation17_spill] sm:$0xff] %v10033_v21  ;;  %2581 = vrot.lane.b32.xlu0 %v2508_v55, %s8087_s22  ;;  %v13579_v32 = vld [vmem:[#allocation29_spill] sm:$0xff]  ;;  %v13580_v21 = vld [vmem:[#allocation80_spill] sm:$0xff] }
 0x566   : > { %v3660_v12 = vmul.f32 %v13580_v21, %v13579_v32  ;;  %v13581_v55 = vld [vmem:[#allocation67_spill] sm:$0xff] }
 0x567   : > { %2571 = vrot.lane.b32.xlu1 %v2503_v30, %s8087_s22  ;;  %v3655_v28 = vmul.f32 %v13581_v55, %v13545_v25  ;;  %v13586_v21 = vld [vmem:[#allocation27_spill] sm:$0xff] }
 0x569   : > { %v10043_v58 = vpop.permute.xlu1 %3448  ;;  %3221 = vrot.lane.b32.xlu0 %v3148_v36, %s8088_s23  ;;  %v10046_v37 = vpop.permute.xlu0 %2496  ;;  %v13585_v36 = vld [vmem:[#allocation73_spill] sm:$0xff] }
 0x56a   : > { %13577 = vst [vmem:[#allocation60_spill] sm:$0xff] %v10043_v58  ;;  %13578 = vst [vmem:[#allocation48_spill] sm:$0xff] %v10046_v37  ;;  %v2827_v58 = vmul.f32 %v9195_v57, %v13584_v41  ;;  %v2826_v37 = vmul.f32 %v13585_v36, %v13550_v47  ;;  %v1547_v57 = vld [vmem:[%s13001_s7 + $0x18] sm:$0xff]  ;;  %v13589_v36 = vld [vmem:[#allocation76_spill] sm:$0xff] }
 0x56b   : > { %3211 = vrot.lane.b32.xlu1 %v3143_v53, %s8088_s23  ;;  %v3979_v53 = vmul.f32 %v9213_v39, %v13586_v21 }
 0x56d   : > { %3733 = vrot.lane.b32.xlu0 %v3660_v12, %s8087_s22 }
 0x56e   : > { %v10054_v30 = vpop.permute.xlu1 %3960  ;;  %v10056_v51 = vpop.permute.xlu0 %3136 }
 0x56f   : > { %13582 = vst [vmem:[#allocation13_spill] sm:$0xff] %v10054_v30  ;;  %13583 = vst [vmem:[#allocation52_spill] sm:$0xff] %v10056_v51  ;;  %3723 = vrot.lane.b32.xlu1 %v3655_v28, %s8087_s22  ;;  %v1551_v28 = vld [vmem:[%s13001_s7 + $0x38] sm:$0xff]  ;;  %v13591_v51 = vld [vmem:[#allocation95_spill] sm:$0xff] }
 0x570   : > { %v7681_v39 = vpack.c.bf16 %v1551_v28, %v1547_v57  ;;  %v13594_v57 = vld [vmem:[#allocation79_spill] sm:$0xff] }
 0x571   : > { %2899 = vrot.lane.b32.xlu0 %v2827_v58, %s8089_s24  ;;  %v3978_v58 = vmul.f32 %v13589_v36, %v13559_v4  ;;  %v2505_v28 = vmul.f32 %v13594_v57, %v13564_v26 }
 0x572   : > { %7682 = vmatprep.subr.bf16.mxu0 %v7681_v39 }
 0x573   : > { %v10066_v55 = vpop.permute.xlu1 %2484  ;;  %2897 = vrot.lane.b32.xlu1 %v2826_v37, %s8089_s24  ;;  %v10069_v12 = vpop.permute.xlu0 %3648  ;;  %v1546_v37 = vld [vmem:[%s13001_s7 + $0x10] sm:$0xff] }
 0x574   : > { %13587 = vst [vmem:[#allocation15_spill] sm:$0xff] %v10066_v55  ;;  %13588 = vst [vmem:[#allocation56_spill] sm:$0xff] %v10069_v12  ;;  %v1550_v55 = vld [vmem:[%s13001_s7 + $0x30] sm:$0xff]  ;;  %v13590_v12 = vld [vmem:[#allocation45_spill] sm:$0xff] }
 0x575   : > { %4051 = vrot.lane.b32.xlu0 %v3979_v53, %s8089_s24  ;;  %v7683_v30 = vpack.c.bf16 %v1550_v55, %v1546_v37  ;;  %v2510_v42 = vmul.f32 %v13591_v51, %v13590_v12  ;;  %v1555_v55 = vld [vmem:[%s13001_s7 + $0x58] sm:$0x7] }
 0x576   : > { %v13595_v51 = vld [vmem:[#allocation97_spill] sm:$0xff] }
 0x577   : > { %4049 = vrot.lane.b32.xlu1 %v3978_v58, %s8089_s24  ;;  %7684 = vmatpush1.bf16.msra.mxu0 %v7683_v30  ;;  %v3150_v37 = vmul.f32 %v13595_v51, %v13590_v12  ;;  %v1554_v30 = vld [vmem:[%s13001_s7 + $0x50] sm:$0x7]  ;;  %v8022_v51 = vld [vmem:[%s8192_s28] sm:$0xff] }
 0x578   : > { %v10089_v36 = vpop.permute.xlu1 %3124  ;;  %v10091_v53 = vpop.permute.xlu0 %4288  ;;  %7369 = vmatprep.subr.msk.mxu0 %vm560_vm0, %v1555_v55  ;;  %v13600_v55 = vld [vmem:[#allocation46_spill] sm:$0xff] }
 0x579   : > { %13592 = vst [vmem:[#allocation28_spill] sm:$0xff] %v10089_v36  ;;  %13593 = vst [vmem:[#allocation75_spill] sm:$0xff] %v10091_v53  ;;  %2585 = vrot.lane.b32.xlu0 %v2510_v42, %s8087_s22  ;;  %v13596_v42 = vld [vmem:[#allocation82_spill] sm:$0xff]  ;;  %v13601_v53 = vld [vmem:[#allocation100_spill] sm:$0xff] }
 0x57a   : > { %v3145_v58 = vmul.f32 %v13596_v42, %v13564_v26  ;;  %v3662_v36 = vmul.f32 %v13601_v53, %v13600_v55 }
 0x57b   : > { %2575 = vrot.lane.b32.xlu1 %v2505_v28, %s8087_s22  ;;  %7370 = vmatpush1.msk.msra.mxu0 %vm560_vm0, %v1554_v30  ;;  %v13599_v28 = vmov 0.0   ;;  %v13602_v30 = vld [vmem:[#allocation87_spill] sm:$0xff] }
 0x57c   : > { %7371 = vmatmul.mubr.msk.f32.vlgmr.msra.gmra.mrb[50].mxu0 %vm1556_vm3, %v8022_v51  ;;  %v3657_v42 = vmul.f32 %v13602_v30, %v13566_v60  ;;  %v13605_v51 = vld [vmem:[#allocation41_spill] sm:$0xff] }
 0x57d   : > { %v10109_v39 = vpop.permute.xlu1 %3636  ;;  %3225 = vrot.lane.b32.xlu0 %v3150_v37, %s8088_s23  ;;  %v10112_v57 = vpop.permute.xlu0 %2299  ;;  %1960 = vmatprep.mubr.f32.mxu0 %v13599_v28  ;;  %v2829_v53 = vmul.f32 %v9273_v9, %v13605_v51 }
 0x57e   : > { %13597 = vst [vmem:[#allocation59_spill] sm:$0xff] %v10109_v39  ;;  %13598 = vst [vmem:[#allocation77_spill] sm:$0xff] %v10112_v57  ;;  %v8023_v39 = vld [vmem:[%s8192_s28 + $0x8] sm:$0xff] }
 0x57f   : > { %3215 = vrot.lane.b32.xlu1 %v3145_v58, %s8088_s23  ;;  %v13606_v58 = vld [vmem:[#allocation93_spill] sm:$0xff] }
 0x580   : > { %7372 = vmatmul.mubr.msk.f32.gmra.mrb[52].mxu0 %vm1556_vm3, %v8023_v39  ;;  %v2828_v30 = vmul.f32 %v13606_v58, %v13570_v54  ;;  %v13607_v39 = vld [vmem:[#allocation44_spill] sm:$0xff] }
 0x581   : > { %3737 = vrot.lane.b32.xlu0 %v3662_v36, %s8087_s22  ;;  %1966 = vmatprep.mubr.f32.mxu0 %v13599_v28  ;;  %v8024_v36 = vld [vmem:[%s8192_s28 + $0x10] sm:$0xff] }
 0x582   : > { %v10125_v37 = vpop.permute.xlu1 %4276  ;;  %v10127_v57 = vpop.permute.xlu0 %2812 }
 0x583   : > { %13603 = vst [vmem:[#allocation62_spill] sm:$0xff] %v10125_v37  ;;  %13604 = vst [vmem:[#allocation29_spill] sm:$0xff] %v10127_v57  ;;  %3727 = vrot.lane.b32.xlu1 %v3657_v42, %s8087_s22  ;;  %v3981_v37 = vmul.f32 %v9299_v15, %v13607_v39  ;;  %v13610_v42 = vld [vmem:[#allocation96_spill] sm:$0xff] }
 0x584   : > { %7373 = vmatmul.mubr.msk.f32.gmra.mrb[54].mxu0 %vm1556_vm3, %v8024_v36  ;;  %v3980_v58 = vmul.f32 %v13610_v42, %v13579_v32  ;;  %v13611_v36 = vld [vmem:[#allocation65_spill] sm:$0xff] }
 0x585   : > { %2903 = vrot.lane.b32.xlu0 %v2829_v53, %s8089_s24  ;;  %1972 = vmatprep.mubr.f32.mxu0 %v13599_v28  ;;  %v8025_v53 = vld [vmem:[%s8192_s28 + $0x18] sm:$0xff]  ;;  %v2512_v15 = vmul.f32 %v9307_v46, %v13611_v36 }
 0x587   : > { %v10141_v57 = vpop.permute.xlu1 %2304  ;;  %2901 = vrot.lane.b32.xlu1 %v2828_v30, %s8089_s24  ;;  %v10144_v9 = vpop.permute.xlu0 %3452 }
 0x588   : > { %13608 = vst [vmem:[#allocation80_spill] sm:$0xff] %v10141_v57  ;;  %13609 = vst [vmem:[#allocation67_spill] sm:$0xff] %v10144_v9  ;;  %7374 = vmatmul.mubr.msk.f32.gmra.mrb[56].mxu0 %vm1556_vm3, %v8025_v53  ;;  %v13614_v9 = vld [vmem:[#allocation99_spill] sm:$0xff]  ;;  %v13615_v53 = vld [vmem:[#allocation120_spill] sm:$0xff] }
 0x589   : > { %4055 = vrot.lane.b32.xlu0 %v3981_v37, %s8089_s24  ;;  %1978 = vmatprep.mubr.f32.mxu0 %v13599_v28  ;;  %v2507_v42 = vmul.f32 %v13614_v9, %v13584_v41  ;;  %v8026_v37 = vld [vmem:[%s8192_s28 + $0x20] sm:$0xff]  ;;  %v3152_v46 = vmul.f32 %v13615_v53, %v13611_v36  ;;  %v8027_v9 = vld [vmem:[%s8192_s28 + $0x28] sm:$0xff] }
 0x58b   : > { %4053 = vrot.lane.b32.xlu1 %v3980_v58, %s8089_s24 }
 0x58c   : > { %v10155_v57 = vpop.permute.xlu1 %2816  ;;  %v10157_v30 = vpop.permute.xlu0 %3964  ;;  %7375 = vmatmul.mubr.msk.f32.gmra.mrb[58].mxu0 %vm1556_vm3, %v8026_v37  ;;  %v13619_v37 = vld [vmem:[#allocation122_spill] sm:$0xff] }
 0x58d   : > { %13612 = vst [vmem:[#allocation24_spill] sm:$0xff] %v10155_v57  ;;  %13613 = vst [vmem:[#allocation73_spill] sm:$0xff] %v10157_v30  ;;  %2589 = vrot.lane.b32.xlu0 %v2512_v15, %s8087_s22  ;;  %1984 = vmatprep.mubr.f32.mxu0 %v13599_v28  ;;  %v13616_v57 = vld [vmem:[#allocation102_spill] sm:$0xff] }
 0x58e   : > { %v3147_v30 = vmul.f32 %v13616_v57, %v13584_v41  ;;  %v13618_v15 = vld [vmem:[#allocation66_spill] sm:$0xff]  ;;  %v3659_v57 = vmul.f32 %v13620_v59, %v13586_v21  ;;  %v2830_v59 = vmul.f32 %v13625_v6, %v13590_v12 }
 0x58f   : > { %2579 = vrot.lane.b32.xlu1 %v2507_v42, %s8087_s22  ;;  %v3664_v53 = vmul.f32 %v13619_v37, %v13618_v15 }
 0x590   : > { %v10168_v58 = vpop.permute.xlu0 %2565  ;;  %7376 = vmatmul.mubr.msk.f32.gmra.mrb[60].mxu0 %vm1556_vm3, %v8027_v9  ;;  %v13622_v9 = vld [vmem:[#allocation61_spill] sm:$0xff] }
 0x591   : > { %v10172_v23 = vpop.permute.xlu1 %3456  ;;  %3229 = vrot.lane.b32.xlu0 %v3152_v46, %s8088_s23  ;;  %1990 = vmatprep.mubr.f32.mxu0 %v13599_v28  ;;  %v2831_v37 = vmul.f32 %v13623_v34, %v13622_v9 }
 0x592   : > { %13617 = vst [vmem:[#allocation27_spill] sm:$0xff] %v10172_v23  ;;  %v8028_v23 = vld [vmem:[%s8192_s28 + $0x30] sm:$0xff] }
 0x593   : > { %3219 = vrot.lane.b32.xlu1 %v3147_v30, %s8088_s23 }
 0x594   : > { %v10181_v42 = vpop.permute.xlu0 %3205  ;;  %7377 = vmatmul.mubr.msk.f32.gmra.mrb[62].mxu0 %vm1556_vm3, %v8028_v23  ;;  %v13626_v23 = vld [vmem:[#allocation64_spill] sm:$0xff] }
 0x595   : > { %3741 = vrot.lane.b32.xlu0 %v3664_v53, %s8087_s22  ;;  %1996 = vmatprep.mubr.f32.mxu0 %v13599_v28  ;;  %v8029_v53 = vld [vmem:[%s8192_s28 + $0x38] sm:$0xff] }
 0x596   : > { %v10188_v46 = vpop.permute.xlu1 %3968 }
 0x597   : > { %13621 = vst [vmem:[#allocation76_spill] sm:$0xff] %v10188_v46  ;;  %3731 = vrot.lane.b32.xlu1 %v3659_v57, %s8087_s22  ;;  %v3983_v46 = vmul.f32 %v9384_v13, %v13626_v23  ;;  %v13629_v57 = vld [vmem:[#allocation119_spill] sm:$0xff] }
 0x598   : > { %v10194_v30 = vpop.permute.xlu0 %3717  ;;  %7378 = vmatmul.mubr.msk.f32.gmra.mrb[64].mxu0 %vm1556_vm3, %v8029_v53  ;;  %v3982_v6 = vmul.f32 %v13629_v57, %v13600_v55  ;;  %v13630_v53 = vld [vmem:[#allocation85_spill] sm:$0xff] }
 0x599   : > { %13624 = vst [vmem:[#allocation45_spill] sm:$0xff] %v10194_v30  ;;  %2907 = vrot.lane.b32.xlu0 %v2831_v37, %s8089_s24  ;;  %2002 = vmatprep.mubr.f32.mxu0 %v13599_v28  ;;  %v8030_v37 = vld [vmem:[%s8192_s28 + $0x40] sm:$0xff]  ;;  %v2514_v13 = vmul.f32 %v9392_v56, %v13630_v53 }
 0x59b   : > { %v10204_v35 = vpop.permute.xlu1 %2492  ;;  %2905 = vrot.lane.b32.xlu1 %v2830_v59, %s8089_s24 }
 0x59c   : > { %13627 = vst [vmem:[#allocation95_spill] sm:$0xff] %v10204_v35  ;;  %v10207_v34 = vpop.permute.xlu0 %4357  ;;  %7379 = vmatmul.mubr.msk.f32.gmra.mrb[66].mxu0 %vm1556_vm3, %v8030_v37  ;;  %v13633_v37 = vld [vmem:[#allocation140_spill] sm:$0xff] }
 0x59d   : > { %13628 = vst [vmem:[#allocation79_spill] sm:$0xff] %v10207_v34  ;;  %4059 = vrot.lane.b32.xlu0 %v3983_v46, %s8089_s24  ;;  %2008 = vmatprep.mubr.f32.mxu0 %v13599_v28  ;;  %v13632_v34 = vld [vmem:[#allocation121_spill] sm:$0xff]  ;;  %v8031_v46 = vld [vmem:[%s8192_s28 + $0x48] sm:$0xff]  ;;  %v3154_v56 = vmul.f32 %v13633_v37, %v13630_v53  ;;  %v13639_v37 = vld [vmem:[#allocation126_spill] sm:$0xff] }
 0x59e   : > { %v2509_v57 = vmul.f32 %v13632_v34, %v13605_v51  ;;  %v8032_v34 = vld [vmem:[%s8192_s28 + $0x50] sm:$0xff] }
 0x59f   : > { %4057 = vrot.lane.b32.xlu1 %v3982_v6, %s8089_s24 }
 0x5a0   : > { %v10218_v30 = vpop.permute.xlu1 %3132  ;;  %v10220_v59 = vpop.permute.xlu0 %2883  ;;  %7380 = vmatmul.mubr.msk.f32.gmra.mrb[68].mxu0 %vm1556_vm3, %v8031_v46  ;;  %v13638_v46 = vld [vmem:[#allocation142_spill] sm:$0xff] }
 0x5a1   : > { %13631 = vst [vmem:[#allocation97_spill] sm:$0xff] %v10218_v30  ;;  %2593 = vrot.lane.b32.xlu0 %v2514_v13, %s8087_s22  ;;  %2014 = vmatprep.mubr.f32.mxu0 %v13599_v28  ;;  %v13635_v30 = vld [vmem:[#allocation124_spill] sm:$0xff]  ;;  %v13637_v13 = vld [vmem:[#allocation86_spill] sm:$0xff] }
 0x5a2   : > { %v3149_v35 = vmul.f32 %v13635_v30, %v13605_v51  ;;  %v3666_v17 = vmul.f32 %v13638_v46, %v13637_v13  ;;  %v3661_v30 = vmul.f32 %v13639_v37, %v13607_v39  ;;  %v13644_v37 = vld [vmem:[#allocation136_spill] sm:$0xff] }
 0x5a3   : > { %2583 = vrot.lane.b32.xlu1 %v2509_v57, %s8087_s22 }
 0x5a4   : > { %v10231_v6 = vpop.permute.xlu0 %4035  ;;  %7381 = vmatmul.mubr.msk.f32.gmra.mrb[70].mxu0 %vm1556_vm3, %v8032_v34  ;;  %v13641_v34 = vld [vmem:[#allocation14_spill] sm:$0xff] }
 0x5a5   : > { %13634 = vst [vmem:[#allocation82_spill] sm:$0xff] %v10231_v6  ;;  %v10235_v61 = vpop.permute.xlu1 %3644  ;;  %3233 = vrot.lane.b32.xlu0 %v3154_v56, %s8088_s23  ;;  %2020 = vmatprep.mubr.f32.mxu0 %v13599_v28  ;;  %v8033_v6 = vld [vmem:[%s8192_s28 + $0x58] sm:$0xff]  ;;  %v2308_v46 = vmul.f32 %v13641_v34, %v8641_v62  ;;  %v13645_v62 = vld [vmem:[#allocation84_spill] sm:$0xff] }
 0x5a6   : > { %13636 = vst [vmem:[#allocation46_spill] sm:$0xff] %v10235_v61  ;;  %v13642_v61 = vld [vmem:[#allocation81_spill] sm:$0xff] }
 0x5a7   : > { %3223 = vrot.lane.b32.xlu1 %v3149_v35, %s8088_s23  ;;  %v2833_v35 = vmul.f32 %v13643_v8, %v13642_v61  ;;  %v3985_v8 = vmul.f32 %v9464_v49, %v13645_v62 }
 0x5a8   : > { %v10244_v57 = vpop.permute.xlu0 %2569  ;;  %7382 = vmatmul.mubr.msk.f32.gmra.mrb[72].mxu0 %vm1556_vm3, %v8033_v6  ;;  %v2660_v6 = vadd.f32 %v10168_v58, %v2308_v46  ;;  %v13648_v46 = vld [vmem:[#allocation139_spill] sm:$0xff] }
 0x5a9   : > { %3745 = vrot.lane.b32.xlu0 %v3666_v17, %s8087_s22  ;;  %2026 = vmatprep.mubr.f32.mxu0 %v13599_v28  ;;  %v2832_v17 = vmul.f32 %v13644_v37, %v13611_v36  ;;  %v13647_v37 = vld [vmem:[#allocation18_spill] sm:$0xff]  ;;  %v8035_v36 = vld [vmem:[%s8192_s28 + $0x68] sm:$0xff] }
 0x5aa   : > { %v10251_v56 = vpop.permute.xlu1 %4284  ;;  %v3460_v58 = vmul.f32 %v13647_v37, %v8657_v52  ;;  %v8036_v37 = vld [vmem:[%s8192_s28 + $0x70] sm:$0xff] }
 0x5ab   : > { %13640 = vst [vmem:[#allocation100_spill] sm:$0xff] %v10251_v56  ;;  %3735 = vrot.lane.b32.xlu1 %v3661_v30, %s8087_s22  ;;  %v8034_v56 = vld [vmem:[%s8192_s28 + $0x60] sm:$0xff] }
 0x5ac   : > { %v10259_v45 = vpop.permute.xlu0 %3209  ;;  %7383 = vmatmul.mubr.msk.f32.gmra.mrb[74].mxu0 %vm1556_vm3, %v8034_v56 }
 0x5ad   : > { %2911 = vrot.lane.b32.xlu0 %v2833_v35, %s8089_s24  ;;  %2032 = vmatprep.mubr.f32.mxu0 %v13599_v28  ;;  %v3984_v35 = vmul.f32 %v13648_v46, %v13618_v15 }
 0x5ae   : > { %v2886_v39 = vpop.permute.xlu1 %2885 }
 0x5af   : > { %v2980_v30 = vadd.f32 %v2886_v39, %v2660_v6  ;;  %2909 = vrot.lane.b32.xlu1 %v2832_v17, %s8089_s24  ;;  %v13650_v39 = vld [vmem:[#allocation105_spill] sm:$0xff] }
 0x5b0   : > { %v10271_v34 = vpop.permute.xlu0 %3721  ;;  %7384 = vmatmul.mubr.msk.f32.gmra.mrb[76].mxu0 %vm1556_vm3, %v8035_v36  ;;  %v2516_v17 = vmul.f32 %v9472_v18, %v13650_v39  ;;  %v13654_v18 = vld [vmem:[#allocation160_spill] sm:$0xff] }
 0x5b1   : > { %13646 = vst [vmem:[#allocation87_spill] sm:$0xff] %v10271_v34  ;;  %v3300_v56 = vadd.f32 %v10181_v42, %v2980_v30  ;;  %4063 = vrot.lane.b32.xlu0 %v3985_v8, %s8089_s24  ;;  %2038 = vmatprep.mubr.f32.mxu0 %v13599_v28  ;;  %v13652_v42 = vld [vmem:[#allocation20_spill] sm:$0xff]  ;;  %v13653_v30 = vld [vmem:[#allocation141_spill] sm:$0xff] }
 0x5b2   : > { %v10281_v49 = vpop.permute.xlu1 %4037  ;;  %v2307_v8 = vmul.f32 %v13652_v42, %v8635_v43  ;;  %v2511_v36 = vmul.f32 %v13653_v30, %v13622_v9  ;;  %v13656_v43 = vld [vmem:[#allocation144_spill] sm:$0xff]  ;;  %v8037_v30 = vld [vmem:[%s8192_s28 + $0x78] sm:$0xff] }
 0x5b3   : > { %13649 = vst [vmem:[#allocation41_spill] sm:$0xff] %v10281_v49  ;;  %v10286_v6 = vadd.f32 %v3460_v58, %v3300_v56  ;;  %4061 = vrot.lane.b32.xlu1 %v3984_v35, %s8089_s24  ;;  %v3156_v58 = vmul.f32 %v13654_v18, %v13650_v39  ;;  %v3151_v42 = vmul.f32 %v13656_v43, %v13622_v9  ;;  %v13659_v18 = vld [vmem:[#allocation162_spill] sm:$0xff] }
 0x5b4   : > { %v10289_v52 = vpop.permute.xlu0 %2887  ;;  %7385 = vmatmul.mubr.msk.f32.gmra.mrb[78].mxu0 %vm1556_vm3, %v8036_v37 }
 0x5b5   : > { %13651 = vst [vmem:[#allocation93_spill] sm:$0xff] %v10286_v6  ;;  %2597 = vrot.lane.b32.xlu0 %v2516_v17, %s8087_s22  ;;  %2044 = vmatprep.mubr.f32.mxu0 %v13599_v28 }
 0x5b6   : > { %v2564_v46 = vpop.permute.xlu1 %2563 }
 0x5b7   : > { %v2659_v35 = vadd.f32 %v2564_v46, %v2307_v8  ;;  %2587 = vrot.lane.b32.xlu1 %v2511_v36, %s8087_s22  ;;  %v13657_v8 = vld [vmem:[#allocation21_spill] sm:$0xff]  ;;  %v13658_v36 = vld [vmem:[#allocation106_spill] sm:$0xff] }
 0x5b8   : > { %v10302_v56 = vpop.permute.xlu0 %4039  ;;  %7386 = vmatmul.mubr.msk.f32.gmra.mrb[80].mxu0 %vm1556_vm3, %v8037_v30  ;;  %v3459_v46 = vmul.f32 %v13657_v8, %v8637_v0  ;;  %v3668_v34 = vmul.f32 %v13659_v18, %v13658_v36  ;;  %v8038_v30 = vld [vmem:[%s8192_s28 + $0x80] sm:$0xff]  ;;  %v13663_v8 = vld [vmem:[#allocation101_spill] sm:$0xff]  ;;  %v13665_v18 = vld [vmem:[#allocation156_spill] sm:$0xff] }
 0x5b9   : > { %13655 = vst [vmem:[#allocation96_spill] sm:$0xff] %v10302_v56  ;;  %3237 = vrot.lane.b32.xlu0 %v3156_v58, %s8088_s23  ;;  %v2979_v17 = vadd.f32 %v10220_v59, %v2659_v35  ;;  %2050 = vmatprep.mubr.f32.mxu0 %v13599_v28  ;;  %v13660_v59 = vld [vmem:[#allocation146_spill] sm:$0xff] }
 0x5ba   : > { %v3204_v37 = vpop.permute.xlu1 %3203  ;;  %v3663_v58 = vmul.f32 %v13660_v59, %v13626_v23  ;;  %v13667_v59 = vld [vmem:[#allocation23_spill] sm:$0xff] }
 0x5bb   : > { %v3299_v56 = vadd.f32 %v3204_v37, %v2979_v17  ;;  %3227 = vrot.lane.b32.xlu1 %v3151_v42, %s8088_s23  ;;  %v13664_v17 = vld [vmem:[#allocation169_spill] sm:$0xff] }
 0x5bc   : > { %v10316_v43 = vpop.permute.xlu0 %2573  ;;  %7387 = vmatmul.mubr.msk.f32.gmra.mrb[82].mxu0 %vm1556_vm3, %v8038_v30  ;;  %v2835_v37 = vmul.f32 %v13664_v17, %v13663_v8  ;;  %v2310_v30 = vmul.f32 %v13667_v59, %v8695_v5  ;;  %v13668_v17 = vld [vmem:[#allocation104_spill] sm:$0xff]  ;;  %v13671_v5 = vld [vmem:[#allocation115_spill] sm:$0xff] }
 0x5bd   : > { %3749 = vrot.lane.b32.xlu0 %v3668_v34, %s8087_s22  ;;  %v10321_v35 = vadd.f32 %v3459_v46, %v3299_v56  ;;  %2056 = vmatprep.mubr.f32.mxu0 %v13599_v28  ;;  %v2834_v34 = vmul.f32 %v13665_v18, %v13630_v53  ;;  %v8039_v56 = vld [vmem:[%s8192_s28 + $0x88] sm:$0xff] }
 0x5be   : > { %v10325_v0 = vpop.permute.xlu1 %3715  ;;  %v13670_v18 = vld [vmem:[#allocation159_spill] sm:$0xff] }
 0x5bf   : > { %13661 = vst [vmem:[#allocation99_spill] sm:$0xff] %v10321_v35  ;;  %13662 = vst [vmem:[#allocation120_spill] sm:$0xff] %v10325_v0  ;;  %3739 = vrot.lane.b32.xlu1 %v3663_v58, %s8087_s22  ;;  %v3987_v58 = vmul.f32 %v9544_v14, %v13668_v17  ;;  %v2518_v14 = vmul.f32 %v9552_v10, %v13671_v5 }
 0x5c0   : > { %v10331_v42 = vpop.permute.xlu0 %3213  ;;  %7388 = vmatmul.mubr.msk.f32.gmra.mrb[84].mxu0 %vm1556_vm3, %v8039_v56  ;;  %v2662_v56 = vadd.f32 %v10244_v57, %v2310_v30  ;;  %v13673_v30 = vld [vmem:[#allocation161_spill] sm:$0xff] }
 0x5c1   : > { %2915 = vrot.lane.b32.xlu0 %v2835_v37, %s8089_s24  ;;  %2062 = vmatprep.mubr.f32.mxu0 %v13599_v28  ;;  %v3986_v37 = vmul.f32 %v13670_v18, %v13637_v13  ;;  %v13672_v18 = vld [vmem:[#allocation30_spill] sm:$0xff] }
 0x5c2   : > { %v10338_v46 = vpop.permute.xlu1 %4355  ;;  %v3462_v57 = vmul.f32 %v13672_v18, %v8707_v7 }
 0x5c3   : > { %13666 = vst [vmem:[#allocation102_spill] sm:$0xff] %v10338_v46  ;;  %2913 = vrot.lane.b32.xlu1 %v2834_v34, %s8089_s24  ;;  %v8040_v46 = vld [vmem:[%s8192_s28 + $0x90] sm:$0xff] }
 0x5c4   : > { %v10346_v0 = vpop.permute.xlu0 %3725  ;;  %7389 = vmatmul.mubr.msk.f32.gmra.mrb[86].mxu0 %vm1556_vm3, %v8040_v46 }
 0x5c5   : > { %13669 = vst [vmem:[#allocation66_spill] sm:$0xff] %v10346_v0  ;;  %4067 = vrot.lane.b32.xlu0 %v3987_v58, %s8089_s24  ;;  %2068 = vmatprep.mubr.f32.mxu0 %v13599_v28  ;;  %v2513_v58 = vmul.f32 %v13673_v30, %v13642_v61  ;;  %v8041_v0 = vld [vmem:[%s8192_s28 + $0x98] sm:$0xff]  ;;  %v8042_v30 = vld [vmem:[%s8192_s28 + $0xa0] sm:$0xff] }
 0x5c6   : > { %v2890_v35 = vpop.permute.xlu1 %2889 }
 0x5c7   : > { %v2982_v34 = vadd.f32 %v2890_v35, %v2662_v56  ;;  %4065 = vrot.lane.b32.xlu1 %v3986_v37, %s8089_s24  ;;  %v13675_v35 = vld [vmem:[#allocation180_spill] sm:$0xff] }
 0x5c8   : > { %v10358_v59 = vpop.permute.xlu0 %2891  ;;  %7390 = vmatmul.mubr.msk.f32.gmra.mrb[88].mxu0 %vm1556_vm3, %v8041_v0  ;;  %v3158_v37 = vmul.f32 %v13675_v35, %v13671_v5 }
 0x5c9   : > { %v3302_v46 = vadd.f32 %v10259_v45, %v2982_v34  ;;  %2601 = vrot.lane.b32.xlu0 %v2518_v14, %s8087_s22  ;;  %2074 = vmatprep.mubr.f32.mxu0 %v13599_v28  ;;  %v13678_v45 = vld [vmem:[#allocation33_spill] sm:$0xff]  ;;  %v13679_v34 = vld [vmem:[#allocation164_spill] sm:$0xff] }
 0x5ca   : > { %v10368_v10 = vpop.permute.xlu1 %4041  ;;  %v2309_v14 = vmul.f32 %v13678_v45, %v8689_v48  ;;  %v3153_v0 = vmul.f32 %v13679_v34, %v13642_v61  ;;  %v13682_v48 = vld [vmem:[#allocation166_spill] sm:$0xff]  ;;  %v8043_v34 = vld [vmem:[%s8192_s28 + $0xa8] sm:$0xff] }
 0x5cb   : > { %13674 = vst [vmem:[#allocation122_spill] sm:$0xff] %v10368_v10  ;;  %v10373_v56 = vadd.f32 %v3462_v57, %v3302_v46  ;;  %2591 = vrot.lane.b32.xlu1 %v2513_v58, %s8087_s22  ;;  %v13680_v57 = vld [vmem:[#allocation118_spill] sm:$0xff]  ;;  %v3665_v45 = vmul.f32 %v13682_v48, %v13645_v62 }
 0x5cc   : > { %v10376_v18 = vpop.permute.xlu0 %4043  ;;  %7391 = vmatmul.mubr.msk.f32.gmra.mrb[90].mxu0 %vm1556_vm3, %v8042_v30  ;;  %v13681_v46 = vld [vmem:[#allocation182_spill] sm:$0xff] }
 0x5cd   : > { %13676 = vst [vmem:[#allocation107_spill] sm:$0xff] %v10373_v56  ;;  %13677 = vst [vmem:[#allocation61_spill] sm:$0xff] %v10376_v18  ;;  %3241 = vrot.lane.b32.xlu0 %v3158_v37, %s8088_s23  ;;  %2080 = vmatprep.mubr.f32.mxu0 %v13599_v28  ;;  %v3670_v58 = vmul.f32 %v13681_v46, %v13680_v57  ;;  %v13685_v46 = vld [vmem:[#allocation189_spill] sm:$0xff] }
 0x5ce   : > { %v2568_v10 = vpop.permute.xlu1 %2567 }
 0x5cf   : > { %v2661_v35 = vadd.f32 %v2568_v10, %v2309_v14  ;;  %3231 = vrot.lane.b32.xlu1 %v3153_v0, %s8088_s23  ;;  %v13683_v10 = vld [vmem:[#allocation39_spill] sm:$0xff]  ;;  %v13684_v0 = vld [vmem:[#allocation110_spill] sm:$0xff] }
 0x5d0   : > { %v10389_v56 = vpop.permute.xlu0 %2577  ;;  %7392 = vmatmul.mubr.msk.f32.gmra.mrb[92].mxu0 %vm1556_vm3, %v8043_v34  ;;  %v3461_v14 = vmul.f32 %v13683_v10, %v8691_v3  ;;  %v2837_v18 = vmul.f32 %v13685_v46, %v13684_v0  ;;  %v8044_v34 = vld [vmem:[%s8192_s28 + $0xb0] sm:$0xff]  ;;  %v13689_v10 = vld [vmem:[#allocation114_spill] sm:$0xff] }
 0x5d1   : > { %3753 = vrot.lane.b32.xlu0 %v3670_v58, %s8087_s22  ;;  %v2981_v37 = vadd.f32 %v10289_v52, %v2661_v35  ;;  %2086 = vmatprep.mubr.f32.mxu0 %v13599_v28  ;;  %v13686_v52 = vld [vmem:[#allocation176_spill] sm:$0xff]  ;;  %v13693_v46 = vld [vmem:[#allocation50_spill] sm:$0xff] }
 0x5d2   : > { %v3208_v30 = vpop.permute.xlu1 %3207  ;;  %v2836_v58 = vmul.f32 %v13686_v52, %v13650_v39  ;;  %v13694_v52 = vld [vmem:[#allocation135_spill] sm:$0xff] }
 0x5d3   : > { %v3301_v49 = vadd.f32 %v3208_v30, %v2981_v37  ;;  %3743 = vrot.lane.b32.xlu1 %v3665_v45, %s8087_s22  ;;  %v3989_v37 = vmul.f32 %v9624_v16, %v13689_v10  ;;  %v13691_v30 = vld [vmem:[#allocation179_spill] sm:$0xff]  ;;  %v2312_v16 = vmul.f32 %v13693_v46, %v8803_v40  ;;  %v13696_v40 = vld [vmem:[#allocation200_spill] sm:$0xff] }
 0x5d4   : > { %v10403_v48 = vpop.permute.xlu0 %3217  ;;  %7393 = vmatmul.mubr.msk.f32.gmra.mrb[94].mxu0 %vm1556_vm3, %v8044_v34 }
 0x5d5   : > { %2919 = vrot.lane.b32.xlu0 %v2837_v18, %s8089_s24  ;;  %v10408_v35 = vadd.f32 %v3461_v14, %v3301_v49  ;;  %2092 = vmatprep.mubr.f32.mxu0 %v13599_v28  ;;  %v3988_v18 = vmul.f32 %v13691_v30, %v13658_v36  ;;  %v8045_v49 = vld [vmem:[%s8192_s28 + $0xb8] sm:$0xff] }
 0x5d6   : > { %v10412_v3 = vpop.permute.xlu1 %3719  ;;  %v13695_v30 = vld [vmem:[#allocation181_spill] sm:$0xff] }
 0x5d7   : > { %13687 = vst [vmem:[#allocation129_spill] sm:$0xff] %v10408_v35  ;;  %13688 = vst [vmem:[#allocation116_spill] sm:$0xff] %v10412_v3  ;;  %2917 = vrot.lane.b32.xlu1 %v2836_v58, %s8089_s24  ;;  %v2520_v58 = vmul.f32 %v9632_v2, %v13694_v52  ;;  %v3160_v2 = vmul.f32 %v13696_v40, %v13694_v52  ;;  %v8047_v3 = vld [vmem:[%s8192_s28 + $0xc8] sm:$0xff] }
 0x5d8   : > { %v10418_v45 = vpop.permute.xlu0 %3729  ;;  %7394 = vmatmul.mubr.msk.f32.gmra.mrb[96].mxu0 %vm1556_vm3, %v8045_v49  ;;  %v2664_v49 = vadd.f32 %v10316_v43, %v2312_v16  ;;  %v13699_v16 = vld [vmem:[#allocation184_spill] sm:$0xff] }
 0x5d9   : > { %13690 = vst [vmem:[#allocation64_spill] sm:$0xff] %v10418_v45  ;;  %4071 = vrot.lane.b32.xlu0 %v3989_v37, %s8089_s24  ;;  %2098 = vmatprep.mubr.f32.mxu0 %v13599_v28  ;;  %v2515_v37 = vmul.f32 %v13695_v30, %v13663_v8  ;;  %v8046_v45 = vld [vmem:[%s8192_s28 + $0xc0] sm:$0xff] }
 0x5da   : > { %v10425_v14 = vpop.permute.xlu1 %4359  ;;  %v13698_v30 = vld [vmem:[#allocation54_spill] sm:$0xff] }
 0x5db   : > { %13692 = vst [vmem:[#allocation119_spill] sm:$0xff] %v10425_v14  ;;  %4069 = vrot.lane.b32.xlu1 %v3988_v18, %s8089_s24  ;;  %v3464_v43 = vmul.f32 %v13698_v30, %v13538_v31 }
 0x5dc   : > { %v10433_v34 = vpop.permute.xlu0 %2895  ;;  %7395 = vmatmul.mubr.msk.f32.gmra.mrb[98].mxu0 %vm1556_vm3, %v8046_v45 }
 0x5dd   : > { %2605 = vrot.lane.b32.xlu0 %v2520_v58, %s8087_s22  ;;  %2104 = vmatprep.mubr.f32.mxu0 %v13599_v28  ;;  %v3155_v58 = vmul.f32 %v13699_v16, %v13663_v8  ;;  %v8048_v16 = vld [vmem:[%s8192_s28 + $0xd0] sm:$0xff] }
 0x5de   : > { %v2894_v14 = vpop.permute.xlu1 %2893 }
 0x5df   : > { %v2984_v18 = vadd.f32 %v2894_v14, %v2664_v49  ;;  %2595 = vrot.lane.b32.xlu1 %v2515_v37, %s8087_s22  ;;  %v13701_v14 = vld [vmem:[#allocation138_spill] sm:$0xff] }
 0x5e0   : > { %v10445_v46 = vpop.permute.xlu0 %4047  ;;  %7396 = vmatmul.mubr.msk.f32.gmra.mrb[100].mxu0 %vm1556_vm3, %v8047_v3  ;;  %v13702_v37 = vld [vmem:[#allocation202_spill] sm:$0xff]  ;;  %v13705_v3 = vld [vmem:[#allocation47_spill] sm:$0xff] }
 0x5e1   : > { %13697 = vst [vmem:[#allocation85_spill] sm:$0xff] %v10445_v46  ;;  %v3304_v45 = vadd.f32 %v10331_v42, %v2984_v18  ;;  %3245 = vrot.lane.b32.xlu0 %v3160_v2, %s8088_s23  ;;  %2110 = vmatprep.mubr.f32.mxu0 %v13599_v28  ;;  %v3672_v49 = vmul.f32 %v13702_v37, %v13701_v14  ;;  %v13704_v42 = vld [vmem:[#allocation186_spill] sm:$0xff] }
 0x5e2   : > { %v10455_v40 = vpop.permute.xlu1 %4045  ;;  %v3667_v2 = vmul.f32 %v13704_v42, %v13668_v17  ;;  %v2311_v18 = vmul.f32 %v13705_v3, %v13543_v38  ;;  %v13708_v42 = vld [vmem:[#allocation196_spill] sm:$0xff]  ;;  %v8049_v3 = vld [vmem:[%s8192_s28 + $0xd8] sm:$0xff] }
 0x5e3   : > { %13700 = vst [vmem:[#allocation121_spill] sm:$0xff] %v10455_v40  ;;  %v10460_v35 = vadd.f32 %v3464_v43, %v3304_v45  ;;  %3235 = vrot.lane.b32.xlu1 %v3155_v58, %s8088_s23  ;;  %v13706_v43 = vld [vmem:[#allocation130_spill] sm:$0xff]  ;;  %v13707_v45 = vld [vmem:[#allocation209_spill] sm:$0xff] }
 0x5e4   : > { %v10463_v30 = vpop.permute.xlu0 %2581  ;;  %7397 = vmatmul.mubr.msk.f32.gmra.mrb[102].mxu0 %vm1556_vm3, %v8048_v16  ;;  %v2839_v58 = vmul.f32 %v13707_v45, %v13706_v43 }
 0x5e5   : > { %13703 = vst [vmem:[#allocation140_spill] sm:$0xff] %v10460_v35  ;;  %3757 = vrot.lane.b32.xlu0 %v3672_v49, %s8087_s22  ;;  %2116 = vmatprep.mubr.f32.mxu0 %v13599_v28  ;;  %v2838_v49 = vmul.f32 %v13708_v42, %v13671_v5 }
 0x5e6   : > { %v2572_v40 = vpop.permute.xlu1 %2571 }
 0x5e7   : > { %v2663_v37 = vadd.f32 %v2572_v40, %v2311_v18  ;;  %3747 = vrot.lane.b32.xlu1 %v3667_v2, %s8087_s22  ;;  %v13709_v40 = vld [vmem:[#allocation51_spill] sm:$0xff]  ;;  %v13710_v2 = vld [vmem:[#allocation134_spill] sm:$0xff] }
 0x5e8   : > { %v10476_v35 = vpop.permute.xlu0 %3221  ;;  %7398 = vmatmul.mubr.msk.f32.gmra.mrb[104].mxu0 %vm1556_vm3, %v8049_v3  ;;  %v3463_v18 = vmul.f32 %v13709_v40, %v13545_v25  ;;  %v3991_v45 = vmul.f32 %v9704_v19, %v13710_v2  ;;  %v8050_v3 = vld [vmem:[%s8192_s28 + $0xe0] sm:$0xff]  ;;  %v13715_v19 = vld [vmem:[#allocation71_spill] sm:$0xff] }
 0x5e9   : > { %2923 = vrot.lane.b32.xlu0 %v2839_v58, %s8089_s24  ;;  %v2983_v38 = vadd.f32 %v10358_v59, %v2663_v37  ;;  %2122 = vmatprep.mubr.f32.mxu0 %v13599_v28  ;;  %v13712_v59 = vld [vmem:[#allocation199_spill] sm:$0xff] }
 0x5ea   : > { %v3212_v16 = vpop.permute.xlu1 %3211  ;;  %v3990_v58 = vmul.f32 %v13712_v59, %v13680_v57 }
 0x5eb   : > { %v3303_v46 = vadd.f32 %v3212_v16, %v2983_v38  ;;  %2921 = vrot.lane.b32.xlu1 %v2838_v49, %s8089_s24  ;;  %v2314_v49 = vmul.f32 %v13715_v19, %v13550_v47  ;;  %v13716_v38 = vld [vmem:[#allocation155_spill] sm:$0xff] }
 0x5ec   : > { %v10490_v42 = vpop.permute.xlu0 %3733  ;;  %7399 = vmatmul.mubr.msk.f32.gmra.mrb[106].mxu0 %vm1556_vm3, %v8050_v3  ;;  %v2522_v16 = vmul.f32 %v9712_v11, %v13716_v38  ;;  %v8051_v3 = vld [vmem:[%s8192_s28 + $0xe8] sm:$0xff]  ;;  %v13718_v11 = vld [vmem:[#allocation220_spill] sm:$0xff] }
 0x5ed   : > { %13711 = vst [vmem:[#allocation124_spill] sm:$0xff] %v10490_v42  ;;  %4075 = vrot.lane.b32.xlu0 %v3991_v45, %s8089_s24  ;;  %v10495_v37 = vadd.f32 %v3463_v18, %v3303_v46  ;;  %2128 = vmatprep.mubr.f32.mxu0 %v13599_v28  ;;  %v13717_v46 = vld [vmem:[#allocation201_spill] sm:$0xff]  ;;  %v2666_v45 = vadd.f32 %v10389_v56, %v2314_v49  ;;  %v13721_v49 = vld [vmem:[#allocation204_spill] sm:$0xff] }
 0x5ee   : > { %v10499_v40 = vpop.permute.xlu1 %3723  ;;  %v2517_v18 = vmul.f32 %v13717_v46, %v13684_v0  ;;  %v3162_v47 = vmul.f32 %v13718_v11, %v13716_v38  ;;  %v13720_v46 = vld [vmem:[#allocation74_spill] sm:$0xff] }
 0x5ef   : > { %13713 = vst [vmem:[#allocation86_spill] sm:$0xff] %v10495_v37  ;;  %13714 = vst [vmem:[#allocation142_spill] sm:$0xff] %v10499_v40  ;;  %4073 = vrot.lane.b32.xlu1 %v3990_v58, %s8089_s24  ;;  %v3466_v56 = vmul.f32 %v13720_v46, %v13559_v4  ;;  %v8052_v40 = vld [vmem:[%s8192_s28 + $0xf0] sm:$0xff]  ;;  %v13732_v37 = vld [vmem:[#allocation154_spill] sm:$0xff] }
 0x5f0   : > { %v10507_v59 = vpop.permute.xlu0 %2899  ;;  %7400 = vmatmul.mubr.msk.f32.gmra.mrb[108].mxu0 %vm1556_vm3, %v8051_v3  ;;  %v3993_v6 = vmul.f32 %v9784_v22, %v13732_v37 }
 0x5f1   : > { %2609 = vrot.lane.b32.xlu0 %v2522_v16, %s8087_s22  ;;  %2134 = vmatprep.mubr.f32.mxu0 %v13599_v28  ;;  %v3157_v16 = vmul.f32 %v13721_v49, %v13684_v0  ;;  %v8053_v49 = vld [vmem:[%s8192_s28 + $0xf8] sm:$0xff]  ;;  %s422_s28 = scalar_lea.vmem %s13005_s11, %s7410_s16 }
 0x5f2   : > { %v2898_v42 = vpop.permute.xlu1 %2897 }
 0x5f3   : > { %v2986_v58 = vadd.f32 %v2898_v42, %v2666_v45  ;;  %2599 = vrot.lane.b32.xlu1 %v2517_v18, %s8087_s22  ;;  %v13723_v42 = vld [vmem:[#allocation158_spill] sm:$0xff] }
 0x5f4   : > { %v10519_v19 = vpop.permute.xlu0 %4051  ;;  %7401 = vmatmul.mubr.msk.f32.gmra.mrb[110].mxu0 %vm1556_vm3, %v8052_v40  ;;  %v13724_v18 = vld [vmem:[#allocation222_spill] sm:$0xff]  ;;  %v13727_v40 = vld [vmem:[#allocation68_spill] sm:$0xff] }
 0x5f5   : > { %13719 = vst [vmem:[#allocation126_spill] sm:$0xff] %v10519_v19  ;;  %v3306_v3 = vadd.f32 %v10403_v48, %v2986_v58  ;;  %3249 = vrot.lane.b32.xlu0 %v3162_v47, %s8088_s23  ;;  %2140 = vmatprep.mubr.f32.mxu0 %v13599_v28  ;;  %v3674_v45 = vmul.f32 %v13724_v18, %v13723_v42  ;;  %v13726_v48 = vld [vmem:[#allocation206_spill] sm:$0xff]  ;;  %v13729_v18 = vld [vmem:[#allocation229_spill] sm:$0xff] }
 0x5f6   : > { %v10529_v11 = vpop.permute.xlu1 %4049  ;;  %v3669_v58 = vmul.f32 %v13726_v48, %v13689_v10  ;;  %v2313_v47 = vmul.f32 %v13727_v40, %v13564_v26  ;;  %v13731_v40 = vld [vmem:[#allocation72_spill] sm:$0xff] }
 0x5f7   : > { %13722 = vst [vmem:[#allocation14_spill] sm:$0xff] %v10529_v11  ;;  %v10534_v19 = vadd.f32 %v3466_v56, %v3306_v3  ;;  %3239 = vrot.lane.b32.xlu1 %v3157_v16, %s8088_s23  ;;  %v13728_v11 = vld [vmem:[#allocation150_spill] sm:$0xff] }
 0x5f8   : > { %v10537_v46 = vpop.permute.xlu0 %2585  ;;  %7402 = vmatmul.mubr.msk.f32.gmra.mrb[112].mxu0 %vm1556_vm3, %v8053_v49  ;;  %v2841_v56 = vmul.f32 %v13729_v18, %v13728_v11  ;;  %v3465_v49 = vmul.f32 %v13731_v40, %v13566_v60  ;;  %v13738_v40 = vld [vmem:[#allocation175_spill] sm:$0xff] }
 0x5f9   : > { %13725 = vst [vmem:[#allocation81_spill] sm:$0xff] %v10534_v19  ;;  %3761 = vrot.lane.b32.xlu0 %v3674_v45, %s8087_s22  ;;  %v13730_v19 = vld [vmem:[#allocation216_spill] sm:$0xff]  ;;  %v2524_v22 = vmul.f32 %v9792_v20, %v13738_v40  ;;  %v13741_v20 = vld [vmem:[#allocation94_spill] sm:$0xff] }
 0x5fa   : > { %v2576_v28 = vpop.permute.xlu1 %2575  ;;  %v2840_v48 = vmul.f32 %v13730_v19, %v13694_v52 }
 0x5fb   : > { %v2665_v3 = vadd.f32 %v2576_v28, %v2313_v47  ;;  %3751 = vrot.lane.b32.xlu1 %v3669_v58, %s8087_s22  ;;  %v13734_v47 = vld [vmem:[#allocation219_spill] sm:$0xff] }
 0x5fc   : > { %v10549_v16 = vpop.permute.xlu0 %3225  ;;  %v3992_v28 = vmul.f32 %v13734_v47, %v13701_v14 }
 0x5fd   : > { %2927 = vrot.lane.b32.xlu0 %v2841_v56, %s8089_s24  ;;  %v2985_v45 = vadd.f32 %v10433_v34, %v2665_v3  ;;  %v13737_v56 = vld [vmem:[#allocation91_spill] sm:$0xff] }
 0x5fe   : > { %v3216_v26 = vpop.permute.xlu1 %3215  ;;  %v2316_v3 = vmul.f32 %v13737_v56, %v13570_v54  ;;  %v13742_v56 = vld [vmem:[#allocation224_spill] sm:$0xff] }
 0x5ff   : > { %v3305_v18 = vadd.f32 %v3216_v26, %v2985_v45  ;;  %2925 = vrot.lane.b32.xlu1 %v2840_v48, %s8089_s24  ;;  %v13739_v45 = vld [vmem:[#allocation221_spill] sm:$0xff] }
 0x600   : > { %v10560_v58 = vpop.permute.xlu0 %3737  ;;  %v2519_v26 = vmul.f32 %v13739_v45, %v13706_v43  ;;  %v2668_v47 = vadd.f32 %v10463_v30, %v2316_v3  ;;  %v13744_v3 = vld [vmem:[#allocation178_spill] sm:$0xff] }
 0x601   : > { %13733 = vst [vmem:[#allocation149_spill] sm:$0xff] %v10560_v58  ;;  %4079 = vrot.lane.b32.xlu0 %v3993_v6, %s8089_s24  ;;  %v10565_v19 = vadd.f32 %v3465_v49, %v3305_v18  ;;  %v3164_v49 = vmul.f32 %v9802_v63, %v13738_v40  ;;  %v3159_v58 = vmul.f32 %v13742_v56, %v13706_v43 }
 0x602   : > { %v10567_v34 = vpop.permute.xlu1 %3727  ;;  %v3676_v63 = vmul.f32 %v9812_v24, %v13744_v3 }
 0x603   : > { %13735 = vst [vmem:[#allocation136_spill] sm:$0xff] %v10565_v19  ;;  %13736 = vst [vmem:[#allocation84_spill] sm:$0xff] %v10567_v34  ;;  %4077 = vrot.lane.b32.xlu1 %v3992_v28, %s8089_s24  ;;  %v3468_v28 = vmul.f32 %v13741_v20, %v13579_v32  ;;  %v13748_v20 = vld [vmem:[#allocation170_spill] sm:$0xff]  ;;  %v13804_v19 = vld [vmem:[#allocation48_spill] sm:$0xff] }
 0x604   : > { %v10574_v48 = vpop.permute.xlu0 %2903  ;;  %v2843_v56 = vmul.f32 %v9838_v1, %v13748_v20  ;;  %v13751_v1 = vld [vmem:[#allocation174_spill] sm:$0xff] }
 0x605   : > { %2613 = vrot.lane.b32.xlu0 %v2524_v22, %s8087_s22 }
 0x606   : > { %v2902_v6 = vpop.permute.xlu1 %2901 }
 0x607   : > { %v2988_v18 = vadd.f32 %v2902_v6, %v2668_v47  ;;  %2603 = vrot.lane.b32.xlu1 %v2519_v26, %s8087_s22  ;;  %v13746_v47 = vld [vmem:[#allocation226_spill] sm:$0xff] }
 0x608   : > { %v10583_v54 = vpop.permute.xlu0 %4055  ;;  %v3671_v6 = vmul.f32 %v13746_v47, %v13710_v2  ;;  %v13750_v47 = vld [vmem:[#allocation92_spill] sm:$0xff] }
 0x609   : > { %13740 = vst [vmem:[#allocation18_spill] sm:$0xff] %v10583_v54  ;;  %v3308_v45 = vadd.f32 %v10476_v35, %v2988_v18  ;;  %3253 = vrot.lane.b32.xlu0 %v3164_v49, %s8088_s23  ;;  %v13747_v35 = vld [vmem:[#allocation88_spill] sm:$0xff] }
 0x60a   : > { %v10591_v30 = vpop.permute.xlu1 %4053  ;;  %v2315_v18 = vmul.f32 %v13747_v35, %v13584_v41  ;;  %v3467_v35 = vmul.f32 %v13750_v47, %v13586_v21  ;;  %v13756_v47 = vld [vmem:[#allocation195_spill] sm:$0xff] }
 0x60b   : > { %13743 = vst [vmem:[#allocation139_spill] sm:$0xff] %v10591_v30  ;;  %v10595_v22 = vadd.f32 %v3468_v28, %v3308_v45  ;;  %3243 = vrot.lane.b32.xlu1 %v3159_v58, %s8088_s23  ;;  %v8090_v58 = vmov 8   ;;  %v13749_v28 = vld [vmem:[#allocation236_spill] sm:$0xff] }
 0x60c   : > { %v10598_v26 = vpop.permute.xlu0 %2589  ;;  %7996 = vset.pattern.permute.xlu0 %v8090_v58  ;;  %7995 = vset.pattern.permute.xlu1 %v8090_v58  ;;  %v2842_v45 = vmul.f32 %v13749_v28, %v13716_v38  ;;  %v3994_v58 = vmul.f32 %v9800_v33, %v13723_v42 }
 0x60d   : > { %13745 = vst [vmem:[#allocation105_spill] sm:$0xff] %v10595_v22  ;;  %3765 = vrot.lane.b32.xlu0 %v3676_v63, %s8087_s22 }
 0x60e   : > { %v2580_v49 = vpop.permute.xlu1 %2579 }
 0x60f   : > { %v2667_v30 = vadd.f32 %v2580_v49, %v2315_v18  ;;  %3755 = vrot.lane.b32.xlu1 %v3671_v6, %s8087_s22  ;;  %v3995_v18 = vmul.f32 %v9857_v27, %v13751_v1  ;;  %v2526_v27 = vmul.f32 %v9867_v44, %v13756_v47  ;;  %v13759_v44 = vld [vmem:[#allocation117_spill] sm:$0xff] }
 0x610   : > { %v10608_v24 = vpop.permute.xlu0 %3229 }
 0x611   : > { %2931 = vrot.lane.b32.xlu0 %v2843_v56, %s8089_s24  ;;  %v2987_v63 = vadd.f32 %v10507_v59, %v2667_v30  ;;  %v13755_v30 = vld [vmem:[#allocation111_spill] sm:$0xff] }
 0x612   : > { %v3220_v41 = vpop.permute.xlu1 %3219  ;;  %v2318_v28 = vmul.f32 %v13755_v30, %v13590_v12  ;;  %v13760_v30 = vld [vmem:[#allocation241_spill] sm:$0xff] }
 0x613   : > { %v3307_v6 = vadd.f32 %v3220_v41, %v2987_v63  ;;  %2929 = vrot.lane.b32.xlu1 %v2842_v45, %s8089_s24  ;;  %v13757_v63 = vld [vmem:[#allocation239_spill] sm:$0xff] }
 0x614   : > { %v10619_v49 = vpop.permute.xlu0 %3741  ;;  %v2521_v41 = vmul.f32 %v13757_v63, %v13728_v11  ;;  %v2670_v33 = vadd.f32 %v10537_v46, %v2318_v28  ;;  %v13762_v28 = vld [vmem:[#allocation198_spill] sm:$0xff] }
 0x615   : > { %13752 = vst [vmem:[#allocation20_spill] sm:$0xff] %v10619_v49  ;;  %4083 = vrot.lane.b32.xlu0 %v3995_v18, %s8089_s24  ;;  %v10624_v56 = vadd.f32 %v3467_v35, %v3307_v6  ;;  %v3166_v18 = vmul.f32 %v9876_v29, %v13756_v47  ;;  %v3161_v49 = vmul.f32 %v13760_v30, %v13728_v11  ;;  %v13767_v30 = vld [vmem:[#allocation257_spill] sm:$0xff] }
 0x616   : > { %v10626_v59 = vpop.permute.xlu1 %3731  ;;  %v3678_v29 = vmul.f32 %v9887_v50, %v13762_v28 }
 0x617   : > { %13753 = vst [vmem:[#allocation141_spill] sm:$0xff] %v10624_v56  ;;  %13754 = vst [vmem:[#allocation160_spill] sm:$0xff] %v10626_v59  ;;  %4081 = vrot.lane.b32.xlu1 %v3994_v58, %s8089_s24  ;;  %v3470_v58 = vmul.f32 %v13759_v44, %v13600_v55  ;;  %v13766_v44 = vld [vmem:[#allocation190_spill] sm:$0xff]  ;;  %v13779_v59 = vld [vmem:[#allocation215_spill] sm:$0xff] }
 0x618   : > { %v10633_v45 = vpop.permute.xlu0 %2907  ;;  %v13780_v56 = vld [vmem:[#allocation26_spill] sm:$0xff] }
 0x619   : > { %2617 = vrot.lane.b32.xlu0 %v2526_v27, %s8087_s22 }
 0x61a   : > { %v2906_v35 = vpop.permute.xlu1 %2905 }
 0x61b   : > { %v2990_v6 = vadd.f32 %v2906_v35, %v2670_v33  ;;  %2607 = vrot.lane.b32.xlu1 %v2521_v41, %s8087_s22  ;;  %v13764_v33 = vld [vmem:[#allocation243_spill] sm:$0xff] }
 0x61c   : > { %v10642_v12 = vpop.permute.xlu0 %4059  ;;  %v3673_v35 = vmul.f32 %v13764_v33, %v13732_v37  ;;  %v13769_v33 = vld [vmem:[#allocation44_spill] sm:$0xff] }
 0x61d   : > { %13758 = vst [vmem:[#allocation144_spill] sm:$0xff] %v10642_v12  ;;  %v3310_v63 = vadd.f32 %v10549_v16, %v2990_v6  ;;  %3257 = vrot.lane.b32.xlu0 %v3166_v18, %s8088_s23  ;;  %v13765_v16 = vld [vmem:[#allocation108_spill] sm:$0xff]  ;;  %v13772_v12 = vld [vmem:[#allocation261_spill] sm:$0xff] }
 0x61e   : > { %v10650_v46 = vpop.permute.xlu1 %4057  ;;  %v2317_v6 = vmul.f32 %v13765_v16, %v13605_v51  ;;  %v13771_v16 = vld [vmem:[#allocation194_spill] sm:$0xff] }
 0x61f   : > { %13761 = vst [vmem:[#allocation21_spill] sm:$0xff] %v10650_v46  ;;  %v10654_v27 = vadd.f32 %v3470_v58, %v3310_v63  ;;  %3247 = vrot.lane.b32.xlu1 %v3161_v49, %s8088_s23  ;;  %v2845_v46 = vmul.f32 %v13767_v30, %v13766_v44  ;;  %v13768_v49 = vld [vmem:[#allocation248_spill] sm:$0xff]  ;;  %v3997_v54 = vmul.f32 %v13772_v12, %v13771_v16 }
 0x620   : > { %v10657_v41 = vpop.permute.xlu0 %2593  ;;  %v2844_v58 = vmul.f32 %v13768_v49, %v13738_v40  ;;  %v13778_v49 = vld [vmem:[#allocation131_spill] sm:$0xff]  ;;  %v2528_v12 = vmul.f32 %v13780_v56, %v13779_v59  ;;  %v13784_v56 = vld [vmem:[#allocation137_spill] sm:$0xff] }
 0x621   : > { %13763 = vst [vmem:[#allocation106_spill] sm:$0xff] %v10654_v27  ;;  %3769 = vrot.lane.b32.xlu0 %v3678_v29, %s8087_s22  ;;  %v13770_v27 = vld [vmem:[#allocation112_spill] sm:$0xff] }
 0x622   : > { %v2584_v18 = vpop.permute.xlu1 %2583  ;;  %v3469_v51 = vmul.f32 %v13770_v27, %v13769_v33 }
 0x623   : > { %v2669_v22 = vadd.f32 %v2584_v18, %v2317_v6  ;;  %3759 = vrot.lane.b32.xlu1 %v3673_v35, %s8087_s22  ;;  %v13774_v6 = vld [vmem:[#allocation250_spill] sm:$0xff] }
 0x624   : > { %v10667_v50 = vpop.permute.xlu0 %3233  ;;  %v3996_v18 = vmul.f32 %v13774_v6, %v13744_v3 }
 0x625   : > { %2935 = vrot.lane.b32.xlu0 %v2845_v46, %s8089_s24  ;;  %v2989_v63 = vadd.f32 %v10574_v48, %v2669_v22  ;;  %v13777_v22 = vld [vmem:[#allocation65_spill] sm:$0xff] }
 0x626   : > { %v3224_v29 = vpop.permute.xlu1 %3223  ;;  %v2320_v27 = vmul.f32 %v13778_v49, %v13777_v22  ;;  %v13785_v49 = vld [vmem:[#allocation252_spill] sm:$0xff] }
 0x627   : > { %v3309_v30 = vadd.f32 %v3224_v29, %v2989_v63  ;;  %2933 = vrot.lane.b32.xlu1 %v2844_v58, %s8089_s24  ;;  %v13781_v63 = vld [vmem:[#allocation251_spill] sm:$0xff] }
 0x628   : > { %v10678_v35 = vpop.permute.xlu0 %3745  ;;  %v2523_v29 = vmul.f32 %v13781_v63, %v13748_v20  ;;  %v2672_v6 = vadd.f32 %v10598_v26, %v2320_v27  ;;  %v13787_v27 = vld [vmem:[#allocation218_spill] sm:$0xff] }
 0x629   : > { %13773 = vst [vmem:[#allocation162_spill] sm:$0xff] %v10678_v35  ;;  %4087 = vrot.lane.b32.xlu0 %v3997_v54, %s8089_s24  ;;  %v10683_v46 = vadd.f32 %v3469_v51, %v3309_v30  ;;  %v13782_v51 = vld [vmem:[#allocation40_spill] sm:$0xff] }
 0x62a   : > { %v10685_v48 = vpop.permute.xlu1 %3735  ;;  %v3168_v30 = vmul.f32 %v13782_v51, %v13779_v59 }
 0x62b   : > { %13775 = vst [vmem:[#allocation146_spill] sm:$0xff] %v10683_v46  ;;  %13776 = vst [vmem:[#allocation101_spill] sm:$0xff] %v10685_v48  ;;  %4085 = vrot.lane.b32.xlu1 %v3996_v18, %s8089_s24  ;;  %v3472_v18 = vmul.f32 %v13784_v56, %v13618_v15  ;;  %v3163_v48 = vmul.f32 %v13785_v49, %v13748_v20  ;;  %v13792_v49 = vld [vmem:[#allocation210_spill] sm:$0xff] }
 0x62c   : > { %v10692_v58 = vpop.permute.xlu0 %2911 }
 0x62d   : > { %2621 = vrot.lane.b32.xlu0 %v2528_v12, %s8087_s22  ;;  %v13788_v12 = vld [vmem:[#allocation8_spill] sm:$0xff] }
 0x62e   : > { %v2910_v54 = vpop.permute.xlu1 %2909  ;;  %v3680_v51 = vmul.f32 %v13788_v12, %v13787_v27 }
 0x62f   : > { %v2992_v35 = vadd.f32 %v2910_v54, %v2672_v6  ;;  %2611 = vrot.lane.b32.xlu1 %v2523_v29, %s8087_s22  ;;  %v13790_v54 = vld [vmem:[#allocation254_spill] sm:$0xff] }
 0x630   : > { %v10701_v22 = vpop.permute.xlu0 %4063  ;;  %v3675_v56 = vmul.f32 %v13790_v54, %v13751_v1  ;;  %v13795_v54 = vld [vmem:[#allocation132_spill] sm:$0xff] }
 0x631   : > { %13783 = vst [vmem:[#allocation169_spill] sm:$0xff] %v10701_v22  ;;  %v3312_v63 = vadd.f32 %v10608_v24, %v2992_v35  ;;  %3261 = vrot.lane.b32.xlu0 %v3168_v30, %s8088_s23  ;;  %v13791_v24 = vld [vmem:[#allocation127_spill] sm:$0xff] }
 0x632   : > { %v10709_v26 = vpop.permute.xlu1 %4061  ;;  %v2319_v35 = vmul.f32 %v13791_v24, %v13622_v9  ;;  %v3471_v9 = vmul.f32 %v13795_v54, %v13626_v23  ;;  %v13796_v24 = vld [vmem:[#allocation214_spill] sm:$0xff]  ;;  %v13803_v54 = vld [vmem:[#allocation235_spill] sm:$0xff] }
 0x633   : > { %13786 = vst [vmem:[#allocation156_spill] sm:$0xff] %v10709_v26  ;;  %v10713_v6 = vadd.f32 %v3472_v18, %v3312_v63  ;;  %3251 = vrot.lane.b32.xlu1 %v3163_v48, %s8088_s23  ;;  %v13793_v26 = vld [vmem:[#allocation55_spill] sm:$0xff]  ;;  %v13794_v48 = vld [vmem:[#allocation260_spill] sm:$0xff] }
 0x634   : > { %v10716_v29 = vpop.permute.xlu0 %2597  ;;  %v2847_v22 = vmul.f32 %v13793_v26, %v13792_v49  ;;  %v2846_v63 = vmul.f32 %v13794_v48, %v13756_v47 }
 0x635   : > { %13789 = vst [vmem:[#allocation23_spill] sm:$0xff] %v10713_v6  ;;  %3773 = vrot.lane.b32.xlu0 %v3680_v51, %s8087_s22  ;;  %v13797_v6 = vld [vmem:[#allocation17_spill] sm:$0xff] }
 0x636   : > { %v2588_v30 = vpop.permute.xlu1 %2587  ;;  %v3999_v34 = vmul.f32 %v13797_v6, %v13796_v24  ;;  %v2530_v6 = vmul.f32 %v13804_v19, %v13803_v54  ;;  %v13808_v19 = vld [vmem:[#allocation157_spill] sm:$0xff] }
 0x637   : > { %v2671_v46 = vadd.f32 %v2588_v30, %v2319_v35  ;;  %3763 = vrot.lane.b32.xlu1 %v3675_v56, %s8087_s22  ;;  %v13799_v35 = vld [vmem:[#allocation10_spill] sm:$0xff] }
 0x638   : > { %v10726_v18 = vpop.permute.xlu0 %3237  ;;  %v3998_v30 = vmul.f32 %v13799_v35, %v13762_v28 }
 0x639   : > { %2939 = vrot.lane.b32.xlu0 %v2847_v22, %s8089_s24  ;;  %v2991_v12 = vadd.f32 %v10633_v45, %v2671_v46  ;;  %v13802_v46 = vld [vmem:[#allocation151_spill] sm:$0xff] }
 0x63a   : > { %v3228_v51 = vpop.permute.xlu1 %3227  ;;  %v2322_v48 = vmul.f32 %v13802_v46, %v13630_v53  ;;  %v13809_v46 = vld [vmem:[#allocation31_spill] sm:$0xff] }
 0x63b   : > { %v3311_v26 = vadd.f32 %v3228_v51, %v2991_v12  ;;  %2937 = vrot.lane.b32.xlu1 %v2846_v63, %s8089_s24  ;;  %v13805_v12 = vld [vmem:[#allocation25_spill] sm:$0xff] }
 0x63c   : > { %v10737_v56 = vpop.permute.xlu0 %3749  ;;  %v2525_v51 = vmul.f32 %v13805_v12, %v13766_v44  ;;  %v2674_v35 = vadd.f32 %v10657_v41, %v2322_v48  ;;  %v13811_v48 = vld [vmem:[#allocation238_spill] sm:$0xff] }
 0x63d   : > { %13798 = vst [vmem:[#allocation104_spill] sm:$0xff] %v10737_v56  ;;  %4091 = vrot.lane.b32.xlu0 %v3999_v34, %s8089_s24  ;;  %v10742_v22 = vadd.f32 %v3471_v9, %v3311_v26  ;;  %v13806_v9 = vld [vmem:[#allocation52_spill] sm:$0xff] }
 0x63e   : > { %v10744_v45 = vpop.permute.xlu1 %3739  ;;  %v3170_v26 = vmul.f32 %v13806_v9, %v13803_v54 }
 0x63f   : > { %13800 = vst [vmem:[#allocation159_spill] sm:$0xff] %v10742_v22  ;;  %13801 = vst [vmem:[#allocation115_spill] sm:$0xff] %v10744_v45  ;;  %4089 = vrot.lane.b32.xlu1 %v3998_v30, %s8089_s24  ;;  %v3474_v30 = vmul.f32 %v13808_v19, %v13637_v13  ;;  %v3165_v45 = vmul.f32 %v13809_v46, %v13766_v44  ;;  %v13816_v46 = vld [vmem:[#allocation230_spill] sm:$0xff] }
 0x640   : > { %v10751_v63 = vpop.permute.xlu0 %2915 }
 0x641   : > { %2625 = vrot.lane.b32.xlu0 %v2530_v6, %s8087_s22  ;;  %v13812_v6 = vld [vmem:[#allocation56_spill] sm:$0xff] }
 0x642   : > { %v2914_v34 = vpop.permute.xlu1 %2913  ;;  %v3682_v9 = vmul.f32 %v13812_v6, %v13811_v48 }
 0x643   : > { %v2994_v56 = vadd.f32 %v2914_v34, %v2674_v35  ;;  %2615 = vrot.lane.b32.xlu1 %v2525_v51, %s8087_s22  ;;  %v13814_v34 = vld [vmem:[#allocation53_spill] sm:$0xff] }
 0x644   : > { %v10760_v53 = vpop.permute.xlu0 %4067  ;;  %v3677_v19 = vmul.f32 %v13814_v34, %v13771_v16  ;;  %v13819_v34 = vld [vmem:[#allocation152_spill] sm:$0xff] }
 0x645   : > { %13807 = vst [vmem:[#allocation30_spill] sm:$0xff] %v10760_v53  ;;  %v3314_v12 = vadd.f32 %v10667_v50, %v2994_v56  ;;  %3265 = vrot.lane.b32.xlu0 %v3170_v26, %s8088_s23  ;;  %v13815_v50 = vld [vmem:[#allocation147_spill] sm:$0xff] }
 0x646   : > { %v10768_v41 = vpop.permute.xlu1 %4065  ;;  %v2321_v56 = vmul.f32 %v13815_v50, %v13642_v61  ;;  %v3473_v61 = vmul.f32 %v13819_v34, %v13645_v62  ;;  %v13820_v50 = vld [vmem:[#allocation234_spill] sm:$0xff]  ;;  %v13825_v34 = vld [vmem:[#allocation171_spill] sm:$0xff] }
 0x647   : > { %13810 = vst [vmem:[#allocation161_spill] sm:$0xff] %v10768_v41  ;;  %v10772_v35 = vadd.f32 %v3474_v30, %v3314_v12  ;;  %3255 = vrot.lane.b32.xlu1 %v3165_v45, %s8088_s23  ;;  %v13817_v41 = vld [vmem:[#allocation29_spill] sm:$0xff]  ;;  %v13818_v45 = vld [vmem:[#allocation42_spill] sm:$0xff] }
 0x648   : > { %v10775_v51 = vpop.permute.xlu0 %2601  ;;  %v2849_v53 = vmul.f32 %v13817_v41, %v13816_v46  ;;  %v2848_v12 = vmul.f32 %v13818_v45, %v13779_v59 }
 0x649   : > { %13813 = vst [vmem:[#allocation180_spill] sm:$0xff] %v10772_v35  ;;  %3777 = vrot.lane.b32.xlu0 %v3682_v9, %s8087_s22  ;;  %v13821_v35 = vld [vmem:[#allocation73_spill] sm:$0xff] }
 0x64a   : > { %v2592_v26 = vpop.permute.xlu1 %2591  ;;  %v4001_v44 = vmul.f32 %v13821_v35, %v13820_v50  ;;  %v2324_v35 = vmul.f32 %v13825_v34, %v13650_v39  ;;  %v13829_v39 = vld [vmem:[#allocation177_spill] sm:$0xff] }
 0x64b   : > { %v2673_v22 = vadd.f32 %v2592_v26, %v2321_v56  ;;  %3767 = vrot.lane.b32.xlu1 %v3677_v19, %s8087_s22  ;;  %v13823_v56 = vld [vmem:[#allocation13_spill] sm:$0xff] }
 0x64c   : > { %v10785_v30 = vpop.permute.xlu0 %3241  ;;  %v4000_v26 = vmul.f32 %v13823_v56, %v13787_v27  ;;  %v2676_v56 = vadd.f32 %v10716_v29, %v2324_v35 }
 0x64d   : > { %2943 = vrot.lane.b32.xlu0 %v2849_v53, %s8089_s24  ;;  %v2993_v6 = vadd.f32 %v10692_v58, %v2673_v22  ;;  %v13824_v22 = vld [vmem:[#allocation35_spill] sm:$0xff] }
 0x64e   : > { %v3232_v9 = vpop.permute.xlu1 %3231  ;;  %v4294_v45 = vmul.f32 %v13824_v22, %v8707_v7  ;;  %v13830_v22 = vld [vmem:[#allocation28_spill] sm:$0xff] }
 0x64f   : > { %v3313_v41 = vadd.f32 %v3232_v9, %v2993_v6  ;;  %2941 = vrot.lane.b32.xlu1 %v2848_v12, %s8089_s24  ;;  %v13826_v6 = vld [vmem:[#allocation15_spill] sm:$0xff]  ;;  %v3167_v34 = vmul.f32 %v13830_v22, %v13792_v49 }
 0x650   : > { %v10796_v19 = vpop.permute.xlu0 %3753  ;;  %v2527_v9 = vmul.f32 %v13826_v6, %v13792_v49 }
 0x651   : > { %13822 = vst [vmem:[#allocation33_spill] sm:$0xff] %v10796_v19  ;;  %4095 = vrot.lane.b32.xlu0 %v4001_v44, %s8089_s24  ;;  %v10801_v53 = vadd.f32 %v3473_v61, %v3313_v41  ;;  %v13827_v61 = vld [vmem:[#allocation43_spill] sm:$0xff] }
 0x652   : > { %v10803_v58 = vpop.permute.xlu1 %3743  ;;  %v4296_v41 = vmul.f32 %v13827_v61, %v13538_v31 }
 0x653   : > { %4093 = vrot.lane.b32.xlu1 %v4000_v26, %s8089_s24  ;;  %v3476_v26 = vmul.f32 %v13829_v39, %v13658_v36 }
 0x654   : > { %v10810_v12 = vpop.permute.xlu0 %2919 }
 0x655   : > { %4361 = vrot.lane.b32.xlu0 %v4294_v45, %s8088_s23  ;;  %v13832_v45 = vld [vmem:[#allocation63_spill] sm:$0xff] }
 0x656   : > { %v2918_v44 = vpop.permute.xlu1 %2917  ;;  %v4298_v31 = vmul.f32 %v13832_v45, %v13559_v4 }
 0x657   : > { %v2996_v19 = vadd.f32 %v2918_v44, %v2676_v56  ;;  %2619 = vrot.lane.b32.xlu1 %v2527_v9, %s8087_s22  ;;  %v13834_v56 = vld [vmem:[#allocation59_spill] sm:$0xff] }
 0x658   : > { %v10819_v7 = vpop.permute.xlu0 %4071  ;;  %v3679_v44 = vmul.f32 %v13834_v56, %v13796_v24  ;;  %v13839_v56 = vld [vmem:[#allocation172_spill] sm:$0xff] }
 0x659   : > { %13828 = vst [vmem:[#allocation164_spill] sm:$0xff] %v10819_v7  ;;  %v3316_v6 = vadd.f32 %v10726_v18, %v2996_v19  ;;  %4365 = vrot.lane.b32.xlu0 %v4296_v41, %s8088_s23  ;;  %v13835_v18 = vld [vmem:[#allocation167_spill] sm:$0xff]  ;;  %v13990_v7 = vld [vmem:[#allocation240_spill] sm:$0xff] }
 0x65a   : > { %v10827_v29 = vpop.permute.xlu1 %4069  ;;  %v2323_v19 = vmul.f32 %v13835_v18, %v13663_v8  ;;  %v13836_v41 = vld [vmem:[#allocation83_spill] sm:$0xff]  ;;  %v3475_v18 = vmul.f32 %v13839_v56, %v13668_v17  ;;  %v13845_v56 = vld [vmem:[#allocation145_spill] sm:$0xff] }
 0x65b   : > { %13831 = vst [vmem:[#allocation118_spill] sm:$0xff] %v10827_v29  ;;  %v10831_v35 = vadd.f32 %v3476_v26, %v3316_v6  ;;  %3259 = vrot.lane.b32.xlu1 %v3167_v34, %s8088_s23  ;;  %v4300_v39 = vmul.f32 %v13836_v41, %v13579_v32  ;;  %v13837_v26 = vld [vmem:[#allocation24_spill] sm:$0xff] }
 0x65c   : > { %v10834_v9 = vpop.permute.xlu0 %2605  ;;  %v2850_v34 = vmul.f32 %v13837_v26, %v13803_v54 }
 0x65d   : > { %13833 = vst [vmem:[#allocation182_spill] sm:$0xff] %v10831_v35  ;;  %4369 = vrot.lane.b32.xlu0 %v4298_v31, %s8088_s23  ;;  %v13838_v31 = vld [vmem:[#allocation103_spill] sm:$0xff] }
 0x65e   : > { %v2596_v61 = vpop.permute.xlu1 %2595  ;;  %v4302_v8 = vmul.f32 %v13838_v31, %v13600_v55 }
 0x65f   : > { %v2675_v22 = vadd.f32 %v2596_v61, %v2323_v19  ;;  %3771 = vrot.lane.b32.xlu1 %v3679_v44, %s8087_s22  ;;  %v13841_v19 = vld [vmem:[#allocation76_spill] sm:$0xff] }
 0x660   : > { %v10844_v4 = vpop.permute.xlu0 %3245  ;;  %v4002_v61 = vmul.f32 %v13841_v19, %v13811_v48 }
 0x661   : > { %4373 = vrot.lane.b32.xlu0 %v4300_v39, %s8088_s23  ;;  %v2995_v6 = vadd.f32 %v10751_v63, %v2675_v22  ;;  %v13842_v39 = vld [vmem:[#allocation125_spill] sm:$0xff]  ;;  %v13843_v22 = vld [vmem:[#allocation191_spill] sm:$0xff] }
 0x662   : > { %v3236_v45 = vpop.permute.xlu1 %3235  ;;  %v4304_v55 = vmul.f32 %v13842_v39, %v13618_v15  ;;  %v2326_v26 = vmul.f32 %v13843_v22, %v13671_v5  ;;  %v13847_v5 = vld [vmem:[#allocation197_spill] sm:$0xff] }
 0x663   : > { %v3315_v32 = vadd.f32 %v3236_v45, %v2995_v6  ;;  %2945 = vrot.lane.b32.xlu1 %v2850_v34, %s8089_s24  ;;  %v13844_v6 = vld [vmem:[#allocation95_spill] sm:$0xff]  ;;  %v3478_v19 = vmul.f32 %v13847_v5, %v13680_v57 }
 0x664   : > { %v10855_v44 = vpop.permute.xlu0 %3757  ;;  %v2529_v45 = vmul.f32 %v13844_v6, %v13816_v46  ;;  %v2678_v31 = vadd.f32 %v10775_v51, %v2326_v26 }
 0x665   : > { %13840 = vst [vmem:[#allocation166_spill] sm:$0xff] %v10855_v44  ;;  %4377 = vrot.lane.b32.xlu0 %v4302_v8, %s8088_s23  ;;  %v10860_v41 = vadd.f32 %v3475_v18, %v3315_v32  ;;  %v4306_v18 = vmul.f32 %v13845_v56, %v13637_v13 }
 0x666   : > { %v10862_v63 = vpop.permute.xlu1 %3747 }
 0x667   : > { %4097 = vrot.lane.b32.xlu1 %v4002_v61, %s8089_s24  ;;  %v13848_v61 = vld [vmem:[#allocation97_spill] sm:$0xff] }
 0x668   : > { %v10869_v34 = vpop.permute.xlu0 %2923  ;;  %v3169_v39 = vmul.f32 %v13848_v61, %v13816_v46 }
 0x669   : > { %4381 = vrot.lane.b32.xlu0 %v4304_v55, %s8088_s23  ;;  %v13850_v55 = vld [vmem:[#allocation165_spill] sm:$0xff] }
 0x66a   : > { %v2922_v8 = vpop.permute.xlu1 %2921  ;;  %v4308_v13 = vmul.f32 %v13850_v55, %v13658_v36 }
 0x66b   : > { %v2998_v32 = vadd.f32 %v2922_v8, %v2678_v31  ;;  %2623 = vrot.lane.b32.xlu1 %v2529_v45, %s8087_s22  ;;  %v13852_v45 = vld [vmem:[#allocation187_spill] sm:$0xff]  ;;  %v13853_v8 = vld [vmem:[#allocation46_spill] sm:$0xff] }
 0x66c   : > { %v10878_v15 = vpop.permute.xlu0 %4075  ;;  %v2325_v31 = vmul.f32 %v13852_v45, %v13684_v0  ;;  %v3681_v56 = vmul.f32 %v13853_v8, %v13820_v50  ;;  %v13859_v8 = vld [vmem:[#allocation89_spill] sm:$0xff] }
 0x66d   : > { %13846 = vst [vmem:[#allocation39_spill] sm:$0xff] %v10878_v15  ;;  %v3318_v22 = vadd.f32 %v10785_v30, %v2998_v32  ;;  %4385 = vrot.lane.b32.xlu0 %v4306_v18, %s8088_s23  ;;  %v13854_v18 = vld [vmem:[#allocation185_spill] sm:$0xff] }
 0x66e   : > { %v10886_v51 = vpop.permute.xlu1 %4073  ;;  %v4310_v32 = vmul.f32 %v13854_v18, %v13680_v57 }
 0x66f   : > { %13849 = vst [vmem:[#allocation110_spill] sm:$0xff] %v10886_v51  ;;  %v10890_v26 = vadd.f32 %v3478_v19, %v3318_v22  ;;  %3263 = vrot.lane.b32.xlu1 %v3169_v39, %s8088_s23  ;;  %v13855_v19 = vld [vmem:[#allocation69_spill] sm:$0xff]  ;;  %v13856_v22 = vld [vmem:[#allocation192_spill] sm:$0xff] }
 0x670   : > { %v10893_v6 = vpop.permute.xlu0 %2609  ;;  %v4295_v61 = vmul.f32 %v13855_v19, %v13545_v25  ;;  %v3477_v55 = vmul.f32 %v13856_v22, %v13689_v10  ;;  %v13863_v22 = vld [vmem:[#allocation242_spill] sm:$0xff] }
 0x671   : > { %13851 = vst [vmem:[#allocation189_spill] sm:$0xff] %v10890_v26  ;;  %4389 = vrot.lane.b32.xlu0 %v4308_v13, %s8088_s23  ;;  %v13857_v13 = vld [vmem:[#allocation205_spill] sm:$0xff] }
 0x672   : > { %v2600_v30 = vpop.permute.xlu1 %2599  ;;  %v4312_v45 = vmul.f32 %v13857_v13, %v13701_v14 }
 0x673   : > { %v2677_v5 = vadd.f32 %v2600_v30, %v2325_v31  ;;  %3775 = vrot.lane.b32.xlu1 %v3681_v56, %s8087_s22  ;;  %v4297_v56 = vmul.f32 %v13859_v8, %v13566_v60  ;;  %v13860_v30 = vld [vmem:[#allocation211_spill] sm:$0xff]  ;;  %v13866_v8 = vld [vmem:[#allocation217_spill] sm:$0xff] }
 0x674   : > { %v10903_v36 = vpop.permute.xlu0 %3249  ;;  %v2328_v18 = vmul.f32 %v13860_v30, %v13694_v52  ;;  %v13868_v30 = vld [vmem:[#allocation253_spill] sm:$0xff] }
 0x675   : > { %4393 = vrot.lane.b32.xlu0 %v4310_v32, %s8088_s23  ;;  %v2997_v0 = vadd.f32 %v10810_v12, %v2677_v5  ;;  %v13861_v32 = vld [vmem:[#allocation225_spill] sm:$0xff] }
 0x676   : > { %v3240_v39 = vpop.permute.xlu1 %3239  ;;  %v4314_v5 = vmul.f32 %v13861_v32, %v13723_v42  ;;  %v2680_v60 = vadd.f32 %v10834_v9, %v2328_v18  ;;  %v4318_v18 = vmul.f32 %v13868_v30, %v13762_v28 }
 0x677   : > { %v3317_v57 = vadd.f32 %v3240_v39, %v2997_v0  ;;  %4363 = vrot.lane.b32.xlu1 %v4295_v61, %s8088_s23  ;;  %v13862_v61 = vld [vmem:[#allocation109_spill] sm:$0xff] }
 0x678   : > { %v10914_v31 = vpop.permute.xlu0 %3761  ;;  %v4299_v0 = vmul.f32 %v13862_v61, %v13586_v21 }
 0x679   : > { %13858 = vst [vmem:[#allocation176_spill] sm:$0xff] %v10914_v31  ;;  %4397 = vrot.lane.b32.xlu0 %v4312_v45, %s8088_s23  ;;  %v10919_v25 = vadd.f32 %v3477_v55, %v3317_v57  ;;  %v4316_v55 = vmul.f32 %v13863_v22, %v13744_v3  ;;  %v13865_v45 = vld [vmem:[#allocation128_spill] sm:$0xff] }
 0x67a   : > { %v10921_v12 = vpop.permute.xlu1 %3751  ;;  %v4301_v57 = vmul.f32 %v13865_v45, %v13769_v33  ;;  %v13870_v33 = vld [vmem:[#allocation148_spill] sm:$0xff] }
 0x67b   : > { %4367 = vrot.lane.b32.xlu1 %v4297_v56, %s8088_s23  ;;  %v3480_v56 = vmul.f32 %v13866_v8, %v13701_v14  ;;  %v4303_v61 = vmul.f32 %v13870_v33, %v13626_v23  ;;  %v13871_v14 = vld [vmem:[#allocation207_spill] sm:$0xff] }
 0x67c   : > { %v10928_v19 = vpop.permute.xlu0 %2927 }
 0x67d   : > { %4401 = vrot.lane.b32.xlu0 %v4314_v5, %s8088_s23 }
 0x67e   : > { %v2926_v39 = vpop.permute.xlu1 %2925 }
 0x67f   : > { %v3000_v13 = vadd.f32 %v2926_v39, %v2680_v60  ;;  %4371 = vrot.lane.b32.xlu1 %v4299_v0, %s8088_s23  ;;  %v2327_v0 = vmul.f32 %v13871_v14, %v13706_v43  ;;  %v13872_v60 = vld [vmem:[#allocation9_spill] sm:$0xff]  ;;  %v13874_v43 = vld [vmem:[#allocation212_spill] sm:$0xff] }
 0x680   : > { %v10937_v52 = vpop.permute.xlu0 %4079  ;;  %v4320_v39 = vmul.f32 %v13872_v60, %v13787_v27  ;;  %v3479_v8 = vmul.f32 %v13874_v43, %v13710_v2  ;;  %v13882_v60 = vld [vmem:[#allocation231_spill] sm:$0xff]  ;;  %v13886_v43 = vld [vmem:[#allocation2_spill] sm:$0xff] }
 0x681   : > { %13864 = vst [vmem:[#allocation114_spill] sm:$0xff] %v10937_v52  ;;  %v3320_v21 = vadd.f32 %v10844_v4, %v3000_v13  ;;  %4405 = vrot.lane.b32.xlu0 %v4316_v55, %s8088_s23  ;;  %v13873_v13 = vld [vmem:[#allocation168_spill] sm:$0xff]  ;;  %v13949_v52 = vld [vmem:[#allocation143_spill] sm:$0xff] }
 0x682   : > { %v10945_v9 = vpop.permute.xlu1 %4077  ;;  %v4305_v45 = vmul.f32 %v13873_v13, %v13645_v62  ;;  %v13878_v62 = vld [vmem:[#allocation188_spill] sm:$0xff] }
 0x683   : > { %13867 = vst [vmem:[#allocation179_spill] sm:$0xff] %v10945_v9  ;;  %v10949_v32 = vadd.f32 %v3480_v56, %v3320_v21  ;;  %4375 = vrot.lane.b32.xlu1 %v4301_v57, %s8088_s23  ;;  %v13875_v56 = vld [vmem:[#allocation75_spill] sm:$0xff] }
 0x684   : > { %v10952_v5 = vpop.permute.xlu0 %2613  ;;  %v4322_v21 = vmul.f32 %v13875_v56, %v13811_v48 }
 0x685   : > { %13869 = vst [vmem:[#allocation50_spill] sm:$0xff] %v10949_v32  ;;  %4409 = vrot.lane.b32.xlu0 %v4318_v18, %s8088_s23  ;;  %v10973_v18 = vpop.f32.mrb[50].mxu0  ;;  %v13912_v32 = vld [vmem:[#allocation16_spill] sm:$0xff] }
 0x686   : > { %v2604_v4 = vpop.permute.xlu1 %2603  ;;  %13876 = vst [vmem:[#allocation135_spill] sm:$0xff] %v10973_v18  ;;  %v10982_v14 = vpop.f32.mrb[51].mxu0 }
 0x687   : > { %v2679_v22 = vadd.f32 %v2604_v4, %v2327_v0  ;;  %4379 = vrot.lane.b32.xlu1 %v4303_v61, %s8088_s23  ;;  %v4307_v61 = vmul.f32 %v13878_v62, %v13668_v17  ;;  %13879 = vst [vmem:[#allocation200_spill] sm:$0xff] %v10982_v14  ;;  %v10986_v4 = vpop.f32.mrb[52].mxu0 }
 0x688   : > { %v10962_v55 = vpop.permute.xlu0 %3253  ;;  %13881 = vst [vmem:[#allocation184_spill] sm:$0xff] %v10986_v4 }
 0x689   : > { %4413 = vrot.lane.b32.xlu0 %v4320_v39, %s8088_s23  ;;  %v2999_v23 = vadd.f32 %v10869_v34, %v2679_v22  ;;  %v2330_v39 = vmul.f32 %v13882_v60, %v13716_v38  ;;  %v10991_v22 = vpop.f32.mrb[53].mxu0 }
 0x68a   : > { %v3244_v57 = vpop.permute.xlu1 %3243  ;;  %13883 = vst [vmem:[#allocation138_spill] sm:$0xff] %v10991_v22  ;;  %v10995_v17 = vpop.f32.mrb[54].mxu0 }
 0x68b   : > { %v3319_v30 = vadd.f32 %v3244_v57, %v2999_v23  ;;  %4383 = vrot.lane.b32.xlu1 %v4305_v45, %s8088_s23  ;;  %13884 = vst [vmem:[#allocation202_spill] sm:$0xff] %v10995_v17  ;;  %v13885_v45 = vld [vmem:[#allocation208_spill] sm:$0xff]  ;;  %v2682_v57 = vadd.f32 %v10893_v6, %v2330_v39  ;;  %v13892_v6 = vld [vmem:[#allocation237_spill] sm:$0xff] }
 0x68c   : > { %v10975_v33 = vpop.permute.xlu0 %3765  ;;  %v4309_v23 = vmul.f32 %v13885_v45, %v13689_v10  ;;  %v13891_v10 = vld [vmem:[#allocation228_spill] sm:$0xff]  ;;  %v3482_v39 = vmul.f32 %v13892_v6, %v13723_v42  ;;  %v13899_v42 = vld [vmem:[#allocation227_spill] sm:$0xff] }
 0x68d   : > { %13877 = vst [vmem:[#allocation181_spill] sm:$0xff] %v10975_v33  ;;  %4417 = vrot.lane.b32.xlu0 %v4322_v21, %s8088_s23  ;;  %v10980_v34 = vadd.f32 %v3479_v8, %v3319_v30  ;;  %v11001_v8 = vpop.f32.mrb[55].mxu0  ;;  %v4311_v60 = vmul.f32 %v13891_v10, %v13710_v2 }
 0x68e   : > { %v10984_v0 = vpop.permute.xlu1 %3755  ;;  %13887 = vst [vmem:[#allocation186_spill] sm:$0xff] %v11001_v8  ;;  %v11003_v21 = vpop.f32.mrb[56].mxu0  ;;  %v13893_v8 = vld [vmem:[#allocation7_spill] sm:$0xff] }
 0x68f   : > { %13880 = vst [vmem:[#allocation54_spill] sm:$0xff] %v10984_v0  ;;  %4387 = vrot.lane.b32.xlu1 %v4307_v61, %s8088_s23  ;;  %13888 = vst [vmem:[#allocation47_spill] sm:$0xff] %v11003_v21  ;;  %v11006_v30 = vpop.f32.mrb[57].mxu0  ;;  %v13992_v0 = vld [vmem:[#allocation49_spill] sm:$0xff] }
 0x690   : > { %v10993_v13 = vpop.permute.xlu0 %2931  ;;  %13889 = vst [vmem:[#allocation130_spill] sm:$0xff] %v11006_v30  ;;  %v11010_v61 = vpop.f32.mrb[58].mxu0 }
 0x691   : > { %4488 = vperm.xlu0 %7996, %v13886_v43   ;;  %v11018_v22 = vpop.f32.mrb[59].mxu0 }
 0x692   : > { %v2930_v56 = vpop.permute.xlu1 %2929  ;;  %13894 = vst [vmem:[#allocation196_spill] sm:$0xff] %v11018_v22  ;;  %v13901_v22 = vld [vmem:[#allocation12_spill] sm:$0xff] }
 0x693   : > { %v3002_v38 = vadd.f32 %v2930_v56, %v2682_v57  ;;  %4391 = vrot.lane.b32.xlu1 %v4309_v23, %s8088_s23  ;;  %v11022_v23 = vpop.f32.mrb[60].mxu0 }
 0x694   : > { %v11008_v62 = vpop.permute.xlu0 %4083  ;;  %13896 = vst [vmem:[#allocation134_spill] sm:$0xff] %v11022_v23  ;;  %v11027_v30 = vpop.f32.mrb[61].mxu0  ;;  %v13945_v23 = vld [vmem:[#allocation5_spill] sm:$0xff] }
 0x695   : > { %13890 = vst [vmem:[#allocation209_spill] sm:$0xff] %v11008_v62  ;;  %v3322_v45 = vadd.f32 %v10903_v36, %v3002_v38  ;;  %4500 = vperm.xlu0 %7996, %v13893_v8   ;;  %13898 = vst [vmem:[#allocation71_spill] sm:$0xff] %v11027_v30  ;;  %v11031_v10 = vpop.f32.mrb[62].mxu0  ;;  %v2329_v36 = vmul.f32 %v13899_v42, %v13728_v11  ;;  %v13900_v38 = vld [vmem:[#allocation245_spill] sm:$0xff]  ;;  %v13905_v11 = vld [vmem:[#allocation256_spill] sm:$0xff] }
 0x696   : > { %v11020_v57 = vpop.permute.xlu1 %4081  ;;  %v4313_v6 = vmul.f32 %v13900_v38, %v13732_v37  ;;  %v11038_v14 = vpop.f32.mrb[63].mxu0  ;;  %v4315_v42 = vmul.f32 %v13905_v11, %v13751_v1  ;;  %v13906_v38 = vld [vmem:[#allocation22_spill] sm:$0xff] }
 0x697   : > { %13895 = vst [vmem:[#allocation51_spill] sm:$0xff] %v11020_v57  ;;  %v11024_v56 = vadd.f32 %v3482_v39, %v3322_v45  ;;  %4395 = vrot.lane.b32.xlu1 %v4311_v60, %s8088_s23  ;;  %13902 = vst [vmem:[#allocation155_spill] sm:$0xff] %v11038_v14  ;;  %v11040_v45 = vpop.f32.mrb[64].mxu0 }
 0x698   : > { %v11029_v2 = vpop.permute.xlu0 %2617  ;;  %13903 = vst [vmem:[#allocation201_spill] sm:$0xff] %v11040_v45  ;;  %v11043_v30 = vpop.f32.mrb[65].mxu0 }
 0x699   : > { %13897 = vst [vmem:[#allocation199_spill] sm:$0xff] %v11024_v56  ;;  %4508 = vperm.xlu0 %7996, %v13901_v22   ;;  %13904 = vst [vmem:[#allocation220_spill] sm:$0xff] %v11043_v30  ;;  %v11047_v57 = vpop.f32.mrb[66].mxu0 }
 0x69a   : > { %v2608_v39 = vpop.permute.xlu1 %2607  ;;  %v11053_v14 = vpop.f32.mrb[67].mxu0 }
 0x69b   : > { %v2681_v60 = vadd.f32 %v2608_v39, %v2329_v36  ;;  %4399 = vrot.lane.b32.xlu1 %v4313_v6, %s8088_s23  ;;  %13907 = vst [vmem:[#allocation74_spill] sm:$0xff] %v11053_v14  ;;  %v11055_v9 = vpop.f32.mrb[68].mxu0  ;;  %v13909_v36 = vld [vmem:[#allocation232_spill] sm:$0xff] }
 0x69c   : > { %v11045_v33 = vpop.permute.xlu0 %3257  ;;  %13908 = vst [vmem:[#allocation204_spill] sm:$0xff] %v11055_v9  ;;  %v3481_v6 = vmul.f32 %v13909_v36, %v13732_v37  ;;  %v11060_v30 = vpop.f32.mrb[69].mxu0  ;;  %v13928_v9 = vld [vmem:[#allocation78_spill] sm:$0xff] }
 0x69d   : > { %4516 = vperm.xlu0 %7996, %v13906_v38   ;;  %v3001_v31 = vadd.f32 %v10928_v19, %v2681_v60  ;;  %13910 = vst [vmem:[#allocation158_spill] sm:$0xff] %v11060_v30  ;;  %v11064_v11 = vpop.f32.mrb[70].mxu0  ;;  %v4317_v19 = vmul.f32 %v13912_v32, %v13771_v16  ;;  %v13913_v60 = vld [vmem:[#allocation38_spill] sm:$0xff] }
 0x69e   : > { %v3248_v56 = vpop.permute.xlu1 %3247  ;;  %v11071_v51 = vpop.f32.mrb[71].mxu0 }
 0x69f   : > { %v3321_v39 = vadd.f32 %v3248_v56, %v3001_v31  ;;  %4403 = vrot.lane.b32.xlu1 %v4315_v42, %s8088_s23  ;;  %13915 = vst [vmem:[#allocation68_spill] sm:$0xff] %v11071_v51  ;;  %v11075_v37 = vpop.f32.mrb[72].mxu0  ;;  %v13918_v31 = vld [vmem:[#allocation246_spill] sm:$0xff] }
 0x6a0   : > { %v11062_v44 = vpop.permute.xlu0 %3769  ;;  %13917 = vst [vmem:[#allocation229_spill] sm:$0xff] %v11075_v37  ;;  %v2332_v56 = vmul.f32 %v13918_v31, %v13738_v40  ;;  %v11080_v42 = vpop.f32.mrb[73].mxu0  ;;  %v13921_v51 = vld [vmem:[#allocation58_spill] sm:$0xff] }
 0x6a1   : > { %13911 = vst [vmem:[#allocation222_spill] sm:$0xff] %v11062_v44  ;;  %4524 = vperm.xlu0 %7996, %v13913_v60   ;;  %v11069_v14 = vadd.f32 %v3481_v6, %v3321_v39  ;;  %13919 = vst [vmem:[#allocation216_spill] sm:$0xff] %v11080_v42  ;;  %v11084_v32 = vpop.f32.mrb[74].mxu0  ;;  %v13920_v6 = vld [vmem:[#allocation62_spill] sm:$0xff] }
 0x6a2   : > { %v11073_v26 = vpop.permute.xlu1 %3759  ;;  %v4319_v39 = vmul.f32 %v13920_v6, %v13796_v24  ;;  %v2684_v30 = vadd.f32 %v10952_v5, %v2332_v56  ;;  %v11090_v44 = vpop.f32.mrb[75].mxu0  ;;  %v13926_v6 = vld [vmem:[#allocation249_spill] sm:$0xff]  ;;  %v13927_v5 = vld [vmem:[#allocation100_spill] sm:$0xff] }
 0x6a3   : > { %13914 = vst [vmem:[#allocation206_spill] sm:$0xff] %v11069_v14  ;;  %13916 = vst [vmem:[#allocation150_spill] sm:$0xff] %v11073_v26  ;;  %4407 = vrot.lane.b32.xlu1 %v4317_v19, %s8088_s23  ;;  %v11092_v35 = vpop.f32.mrb[76].mxu0  ;;  %v3484_v37 = vmul.f32 %v13926_v6, %v13744_v3  ;;  %v4321_v56 = vmul.f32 %v13927_v5, %v13820_v50  ;;  %v13935_v5 = vld [vmem:[#allocation98_spill] sm:$0xff]  ;;  %v13982_v14 = vld [vmem:[#allocation223_spill] sm:$0xff] }
 0x6a4   : > { %v11082_v36 = vpop.permute.xlu0 %2935  ;;  %13922 = vst [vmem:[#allocation72_spill] sm:$0xff] %v11090_v44  ;;  %13923 = vst [vmem:[#allocation154_spill] sm:$0xff] %v11092_v35  ;;  %v11095_v19 = vpop.f32.mrb[77].mxu0 }
 0x6a5   : > { %4532 = vperm.xlu0 %7996, %v13921_v51   ;;  %13924 = vst [vmem:[#allocation219_spill] sm:$0xff] %v11095_v19  ;;  %v11099_v42 = vpop.f32.mrb[78].mxu0 }
 0x6a6   : > { %v2934_v29 = vpop.permute.xlu1 %2933  ;;  %v11107_v35 = vpop.f32.mrb[79].mxu0 }
 0x6a7   : > { %v3004_v40 = vadd.f32 %v2934_v29, %v2684_v30  ;;  %4411 = vrot.lane.b32.xlu1 %v4319_v39, %s8088_s23  ;;  %13929 = vst [vmem:[#allocation175_spill] sm:$0xff] %v11107_v35  ;;  %v11111_v30 = vpop.f32.mrb[80].mxu0 }
 0x6a8   : > { %v11097_v31 = vpop.permute.xlu0 %4087  ;;  %13931 = vst [vmem:[#allocation94_spill] sm:$0xff] %v11111_v30  ;;  %v11116_v19 = vpop.f32.mrb[81].mxu0  ;;  %v13941_v30 = vld [vmem:[#allocation123_spill] sm:$0xff] }
 0x6a9   : > { %13925 = vst [vmem:[#allocation91_spill] sm:$0xff] %v11097_v31  ;;  %v3324_v44 = vadd.f32 %v10962_v55, %v3004_v40  ;;  %4540 = vperm.xlu0 %7996, %v13928_v9   ;;  %13933 = vst [vmem:[#allocation178_spill] sm:$0xff] %v11116_v19  ;;  %v11120_v6 = vpop.f32.mrb[82].mxu0  ;;  %v13934_v55 = vld [vmem:[#allocation244_spill] sm:$0xff] }
 0x6aa   : > { %v11109_v29 = vpop.permute.xlu1 %4085  ;;  %v2331_v40 = vmul.f32 %v13934_v55, %v13748_v20  ;;  %v11125_v35 = vpop.f32.mrb[83].mxu0 }
 0x6ab   : > { %13930 = vst [vmem:[#allocation221_spill] sm:$0xff] %v11109_v29  ;;  %v11113_v39 = vadd.f32 %v3484_v37, %v3324_v44  ;;  %4415 = vrot.lane.b32.xlu1 %v4321_v56, %s8088_s23  ;;  %13936 = vst [vmem:[#allocation226_spill] sm:$0xff] %v11125_v35  ;;  %v11127_v45 = vpop.f32.mrb[84].mxu0  ;;  %v13938_v37 = vld [vmem:[#allocation3_spill] sm:$0xff] }
 0x6ac   : > { %v11118_v3 = vpop.permute.xlu0 %2621  ;;  %13937 = vst [vmem:[#allocation88_spill] sm:$0xff] %v11127_v45  ;;  %v11130_v56 = vpop.f32.mrb[85].mxu0  ;;  %v13944_v45 = vld [vmem:[#allocation247_spill] sm:$0xff] }
 0x6ad   : > { %13932 = vst [vmem:[#allocation224_spill] sm:$0xff] %v11113_v39  ;;  %4548 = vperm.xlu0 %7996, %v13935_v5   ;;  %13939 = vst [vmem:[#allocation170_spill] sm:$0xff] %v11130_v56  ;;  %v11134_v39 = vpop.f32.mrb[86].mxu0 }
 0x6ae   : > { %v2612_v29 = vpop.permute.xlu1 %2611  ;;  %13940 = vst [vmem:[#allocation236_spill] sm:$0xff] %v11134_v39  ;;  %v11138_v55 = vpop.f32.mrb[87].mxu0 }
 0x6af   : > { %v2683_v44 = vadd.f32 %v2612_v29, %v2331_v40  ;;  %4484 = vperm.xlu1 %7995, %v13938_v37   ;;  %13942 = vst [vmem:[#allocation92_spill] sm:$0xff] %v11138_v55  ;;  %v11140_v35 = vpop.f32.mrb[88].mxu0  ;;  %v3483_v29 = vmul.f32 %v13944_v45, %v13751_v1  ;;  %v13954_v1 = vld [vmem:[#allocation258_spill] sm:$0xff] }
 0x6b0   : > { %v11132_v19 = vpop.permute.xlu0 %3261  ;;  %13943 = vst [vmem:[#allocation174_spill] sm:$0xff] %v11140_v35  ;;  %v11145_v56 = vpop.f32.mrb[89].mxu0  ;;  %v2334_v45 = vmul.f32 %v13954_v1, %v13756_v47 }
 0x6b1   : > { %4556 = vperm.xlu0 %7996, %v13941_v30   ;;  %v3003_v20 = vadd.f32 %v10993_v13, %v2683_v44  ;;  %13946 = vst [vmem:[#allocation111_spill] sm:$0xff] %v11145_v56  ;;  %v11149_v21 = vpop.f32.mrb[90].mxu0 }
 0x6b2   : > { %v3252_v31 = vpop.permute.xlu1 %3251  ;;  %13948 = vst [vmem:[#allocation239_spill] sm:$0xff] %v11149_v21  ;;  %v11154_v44 = vpop.f32.mrb[91].mxu0  ;;  %v13961_v21 = vld [vmem:[#allocation6_spill] sm:$0xff] }
 0x6b3   : > { %v3323_v40 = vadd.f32 %v3252_v31, %v3003_v20  ;;  %4492 = vperm.xlu1 %7995, %v13945_v23   ;;  %13951 = vst [vmem:[#allocation241_spill] sm:$0xff] %v11154_v44  ;;  %v11158_v35 = vpop.f32.mrb[92].mxu0  ;;  %v13955_v31 = vld [vmem:[#allocation4_spill] sm:$0xff] }
 0x6b4   : > { %v11147_v62 = vpop.permute.xlu0 %3773  ;;  %13953 = vst [vmem:[#allocation243_spill] sm:$0xff] %v11158_v35  ;;  %v11163_v20 = vpop.f32.mrb[93].mxu0 }
 0x6b5   : > { %13947 = vst [vmem:[#allocation195_spill] sm:$0xff] %v11147_v62  ;;  %4564 = vperm.xlu0 %7996, %v13949_v52   ;;  %v11152_v13 = vadd.f32 %v3483_v29, %v3323_v40  ;;  %13956 = vst [vmem:[#allocation108_spill] sm:$0xff] %v11163_v20  ;;  %v11167_v62 = vpop.f32.mrb[94].mxu0  ;;  %v2686_v29 = vadd.f32 %v11029_v2, %v2334_v45  ;;  %v13958_v40 = vld [vmem:[#allocation163_spill] sm:$0xff] }
 0x6b6   : > { %v11156_v55 = vpop.permute.xlu1 %3763  ;;  %13957 = vst [vmem:[#allocation257_spill] sm:$0xff] %v11167_v62  ;;  %v11171_v44 = vpop.f32.mrb[95].mxu0  ;;  %v13965_v62 = vld [vmem:[#allocation37_spill] sm:$0xff]  ;;  %v13966_v45 = vld [vmem:[#allocation183_spill] sm:$0xff] }
 0x6b7   : > { %13950 = vst [vmem:[#allocation117_spill] sm:$0xff] %v11152_v13  ;;  %13952 = vst [vmem:[#allocation198_spill] sm:$0xff] %v11156_v55  ;;  %4496 = vperm.xlu1 %7995, %v13955_v31   ;;  %v11173_v13 = vpop.f32.mrb[96].mxu0  ;;  %v3486_v17 = vmul.f32 %v13965_v62, %v13762_v28  ;;  %v13974_v28 = vld [vmem:[#allocation190_spill] sm:$0xff]  ;;  %v13976_v62 = vld [vmem:[#allocation203_spill] sm:$0xff] }
 0x6b8   : > { %v11165_v56 = vpop.permute.xlu0 %2939  ;;  %13959 = vst [vmem:[#allocation248_spill] sm:$0xff] %v11171_v44  ;;  %13960 = vst [vmem:[#allocation44_spill] sm:$0xff] %v11173_v13  ;;  %v11176_v47 = vpop.f32.mrb[97].mxu0 }
 0x6b9   : > { %4572 = vperm.xlu0 %7996, %v13958_v40   ;;  %13962 = vst [vmem:[#allocation112_spill] sm:$0xff] %v11176_v47  ;;  %v11180_v20 = vpop.f32.mrb[98].mxu0  ;;  %v13971_v47 = vld [vmem:[#allocation11_spill] sm:$0xff] }
 0x6ba   : > { %v2938_v55 = vpop.permute.xlu1 %2937  ;;  %13964 = vst [vmem:[#allocation261_spill] sm:$0xff] %v11180_v20  ;;  %v11186_v44 = vpop.f32.mrb[99].mxu0 }
 0x6bb   : > { %v3006_v35 = vadd.f32 %v2938_v55, %v2686_v29  ;;  %4504 = vperm.xlu1 %7995, %v13961_v21   ;;  %13967 = vst [vmem:[#allocation250_spill] sm:$0xff] %v11186_v44  ;;  %v11190_v55 = vpop.f32.mrb[100].mxu0 }
 0x6bc   : > { %v11178_v1 = vpop.permute.xlu0 %4091  ;;  %13969 = vst [vmem:[#allocation131_spill] sm:$0xff] %v11190_v55  ;;  %v11195_v13 = vpop.f32.mrb[101].mxu0 }
 0x6bd   : > { %13963 = vst [vmem:[#allocation194_spill] sm:$0xff] %v11178_v1  ;;  %v3326_v2 = vadd.f32 %v11045_v33, %v3006_v35  ;;  %4580 = vperm.xlu0 %7996, %v13966_v45   ;;  %13972 = vst [vmem:[#allocation26_spill] sm:$0xff] %v11195_v13  ;;  %v11199_v20 = vpop.f32.mrb[102].mxu0  ;;  %v13975_v35 = vld [vmem:[#allocation255_spill] sm:$0xff] }
 0x6be   : > { %v11188_v15 = vpop.permute.xlu1 %4089  ;;  %13973 = vst [vmem:[#allocation251_spill] sm:$0xff] %v11199_v20  ;;  %v2333_v33 = vmul.f32 %v13975_v35, %v13974_v28  ;;  %v11204_v44 = vpop.f32.mrb[103].mxu0 }
 0x6bf   : > { %13968 = vst [vmem:[#allocation65_spill] sm:$0xff] %v11188_v15  ;;  %v11192_v29 = vadd.f32 %v3486_v17, %v3326_v2  ;;  %4512 = vperm.xlu1 %7995, %v13971_v47   ;;  %13977 = vst [vmem:[#allocation40_spill] sm:$0xff] %v11204_v44  ;;  %v11206_v26 = vpop.f32.mrb[104].mxu0  ;;  %v13979_v2 = vld [vmem:[#allocation19_spill] sm:$0xff] }
 0x6c0   : > { %v11197_v1 = vpop.permute.xlu0 %2625  ;;  %13978 = vst [vmem:[#allocation137_spill] sm:$0xff] %v11206_v26  ;;  %v11209_v55 = vpop.f32.mrb[105].mxu0  ;;  %v13985_v44 = vld [vmem:[#allocation259_spill] sm:$0xff] }
 0x6c1   : > { %13970 = vst [vmem:[#allocation215_spill] sm:$0xff] %v11192_v29  ;;  %4588 = vperm.xlu0 %7996, %v13976_v62   ;;  %13980 = vst [vmem:[#allocation252_spill] sm:$0xff] %v11209_v55  ;;  %v11211_v29 = vpop.f32.mrb[106].mxu0  ;;  %v3485_v26 = vmul.f32 %v13985_v44, %v13771_v16 }
 0x6c2   : > { %v2616_v15 = vpop.permute.xlu1 %2615  ;;  %13981 = vst [vmem:[#allocation218_spill] sm:$0xff] %v11211_v29  ;;  %v11215_v28 = vpop.f32.mrb[107].mxu0 }
 0x6c3   : > { %v2685_v17 = vadd.f32 %v2616_v15, %v2333_v33  ;;  %4520 = vperm.xlu1 %7995, %v13979_v2   ;;  %13983 = vst [vmem:[#allocation8_spill] sm:$0xff] %v11215_v28  ;;  %v11217_v39 = vpop.f32.mrb[108].mxu0  ;;  %v13986_v33 = vld [vmem:[#allocation32_spill] sm:$0xff] }
 0x6c4   : > { %v3266_v13 = vpop.permute.xlu0 %3265  ;;  %13984 = vst [vmem:[#allocation254_spill] sm:$0xff] %v11217_v39  ;;  %v11222_v18 = vpop.f32.mrb[109].mxu0  ;;  %v13991_v28 = vld [vmem:[#allocation36_spill] sm:$0xff] }
 0x6c5   : > { %4596 = vperm.xlu0 %7996, %v13982_v14   ;;  %v3005_v20 = vadd.f32 %v11082_v36, %v2685_v17  ;;  %13987 = vst [vmem:[#allocation127_spill] sm:$0xff] %v11222_v18  ;;  %v2336_v39 = vmul.f32 %v13991_v28, %v13779_v59 }
 0x6c6   : > { %v3256_v35 = vpop.permute.xlu1 %3255 }
 0x6c7   : > { %v3325_v15 = vadd.f32 %v3256_v35, %v3005_v20  ;;  %4528 = vperm.xlu1 %7995, %v13986_v33   ;;  %v11226_v29 = vpop.f32.mrb[110].mxu0  ;;  %v2688_v44 = vadd.f32 %v11118_v3, %v2336_v39  ;;  %v13199_v20 = vmov 9   ;;  %v13998_v3 = vld [vmem:[#allocation90_spill] sm:$0xff] }
 0x6c8   : > { %v11224_v55 = vpop.permute.xlu0 %3777  ;;  %13989 = vst [vmem:[#allocation55_spill] sm:$0xff] %v11226_v29 }
 0x6c9   : > { %13988 = vst [vmem:[#allocation210_spill] sm:$0xff] %v11224_v55  ;;  %4604 = vperm.xlu0 %7996, %v13990_v7   ;;  %v11229_v36 = vadd.f32 %v3485_v26, %v3325_v15  ;;  %v13993_v55 = vld [vmem:[#allocation70_spill] sm:$0xff]  ;;  %v13995_v15 = vld [vmem:[#allocation60_spill] sm:$0xff] }
 0x6ca   : > { %v11231_v17 = vpop.permute.xlu1 %3767  ;;  %v3488_v29 = vmul.f32 %v13995_v15, %v13787_v27  ;;  %v14000_v27 = vld [vmem:[#allocation113_spill] sm:$0xff] }
 0x6cb   : > { %4536 = vperm.xlu1 %7995, %v13992_v0  }
 0x6cc   : > { %v2944_v16 = vpop.permute.xlu0 %2943 }
 0x6cd   : > { %7997 = vset.pattern.permute.xlu0 %v13199_v20 }
 0x6ce   : > { %v2942_v35 = vpop.permute.xlu1 %2941  ;;  %4676 = vperm.xlu0 %7997, %v13938_v37  }
 0x6cf   : > { %v3008_v18 = vadd.f32 %v2942_v35, %v2688_v44  ;;  %4544 = vperm.xlu1 %7995, %v13993_v55   ;;  %v13999_v44 = vld [vmem:[#allocation34_spill] sm:$0xff] }
 0x6d0   : > { %v11240_v26 = vpop.permute.xlu0 %4095  ;;  %v2335_v35 = vmul.f32 %v13999_v44, %v13792_v49 }
 0x6d1   : > { %13994 = vst [vmem:[#allocation260_spill] sm:$0xff] %v11240_v26  ;;  %v3328_v59 = vadd.f32 %v11132_v19, %v3008_v18 }
 0x6d2   : > { %v11245_v28 = vpop.permute.xlu1 %4093  ;;  %4688 = vperm.xlu0 %7997, %v13955_v31  }
 0x6d3   : > { %13996 = vst [vmem:[#allocation132_spill] sm:$0xff] %v11245_v28  ;;  %v11248_v39 = vadd.f32 %v3488_v29, %v3328_v59  ;;  %4552 = vperm.xlu1 %7995, %v13998_v3   ;;  %v14001_v29 = vld [vmem:[#allocation57_spill] sm:$0xff] }
 0x6d4   : > { %v11251_v20 = vpop.permute.xlu0 %4361  ;;  %v3487_v59 = vmul.f32 %v14001_v29, %v13796_v24  ;;  %v14002_v28 = vld [vmem:[#allocation133_spill] sm:$0xff] }
 0x6d5   : > { %13997 = vst [vmem:[#allocation214_spill] sm:$0xff] %v11248_v39  ;;  %v14005_v29 = vld [vmem:[#allocation173_spill] sm:$0xff] }
 0x6d6   : > { %v2620_v37 = vpop.permute.xlu1 %2619  ;;  %4696 = vperm.xlu0 %7997, %v13961_v21  }
 0x6d7   : > { %v2687_v26 = vadd.f32 %v2620_v37, %v2335_v35  ;;  %4560 = vperm.xlu1 %7995, %v14000_v27   ;;  %v14003_v35 = vld [vmem:[#allocation80_spill] sm:$0xff] }
 0x6d8   : > { %v11257_v18 = vpop.permute.xlu0 %4365 }
 0x6d9   : > { %v3007_v19 = vadd.f32 %v11165_v56, %v2687_v26  ;;  %v2338_v56 = vmul.f32 %v14003_v35, %v13803_v54  ;;  %v14004_v26 = vld [vmem:[#allocation153_spill] sm:$0xff] }
 0x6da   : > { %v3260_v15 = vpop.permute.xlu1 %3259  ;;  %4704 = vperm.xlu0 %7997, %v13971_v47   ;;  %v14010_v35 = vld [vmem:[#allocation193_spill] sm:$0xff] }
 0x6db   : > { %v3327_v31 = vadd.f32 %v3260_v15, %v3007_v19  ;;  %4568 = vperm.xlu1 %7995, %v14002_v28   ;;  %v2690_v24 = vadd.f32 %v11197_v1, %v2338_v56  ;;  %v14011_v56 = vld [vmem:[#allocation77_spill] sm:$0xff] }
 0x6dc   : > { %v11264_v49 = vpop.permute.xlu0 %4369 }
 0x6dd   : > { %v11266_v44 = vadd.f32 %v3487_v59, %v3327_v31  ;;  %v14007_v59 = vld [vmem:[#allocation27_spill] sm:$0xff] }
 0x6de   : > { %v11268_v37 = vpop.permute.xlu1 %3771  ;;  %4712 = vperm.xlu0 %7997, %v13979_v2   ;;  %v3490_v2 = vmul.f32 %v14007_v59, %v13811_v48  ;;  %v11295_v48 = vpop.f32.mrb[111].mxu0  ;;  %v14015_v59 = vld [vmem:[#allocation67_spill] sm:$0xff] }
 0x6df   : > { %4576 = vperm.xlu1 %7995, %v14004_v26   ;;  %14013 = vst [vmem:[#allocation235_spill] sm:$0xff] %v11295_v48 }
 0x6e0   : > { %v11274_v47 = vpop.permute.xlu0 %4373 }
 0x6e2   : > { %v2946_v19 = vpop.permute.xlu1 %2945  ;;  %4720 = vperm.xlu0 %7997, %v13986_v33  }
 0x6e3   : > { %v3010_v15 = vadd.f32 %v2946_v19, %v2690_v24  ;;  %4584 = vperm.xlu1 %7995, %v14005_v29   ;;  %v2337_v24 = vmul.f32 %v14011_v56, %v13816_v46  ;;  %v14016_v56 = vld [vmem:[#allocation233_spill] sm:$0xff] }
 0x6e4   : > { %v11279_v31 = vpop.permute.xlu0 %4377 }
 0x6e5   : > { %14006 = vst [vmem:[#allocation17_spill] sm:$0xff] %v11279_v31  ;;  %v3330_v21 = vadd.f32 %v3266_v13, %v3010_v15  ;;  %v14012_v31 = vld [vmem:[#allocation213_spill] sm:$0xff] }
 0x6e6   : > { %v11283_v39 = vpop.permute.xlu1 %4097  ;;  %4728 = vperm.xlu0 %7997, %v13992_v0   ;;  %v3489_v0 = vmul.f32 %v14015_v59, %v13820_v50 }
 0x6e7   : > { %14008 = vst [vmem:[#allocation10_spill] sm:$0xff] %v11283_v39  ;;  %v11286_v54 = vadd.f32 %v3490_v2, %v3330_v21  ;;  %4592 = vperm.xlu1 %7995, %v14010_v35   ;;  %v11300_v2 = vpop.f32.mrb[112].mxu0  ;;  %v14028_v39 = vld [vmem:[#allocation79_spill] sm:$0xff] }
 0x6e8   : > { %v11289_v1 = vpop.permute.xlu0 %4381  ;;  %14014 = vst [vmem:[#allocation48_spill] sm:$0xff] %v11300_v2 }
 0x6e9   : > { %14009 = vst [vmem:[#allocation151_spill] sm:$0xff] %v11286_v54 }
 0x6ea   : > { %v2624_v19 = vpop.permute.xlu1 %2623  ;;  %4736 = vperm.xlu0 %7997, %v13993_v55  }
 0x6eb   : > { %v2689_v33 = vadd.f32 %v2624_v19, %v2337_v24  ;;  %4600 = vperm.xlu1 %7995, %v14012_v31  }
 0x6ec   : > { %v11297_v13 = vpop.permute.xlu0 %4385 }
 0x6ed   : > { %v3009_v15 = vadd.f32 %v2944_v16, %v2689_v33  ;;  %v14017_v33 = vmov 9  }
 0x6ee   : > { %v3264_v21 = vpop.permute.xlu1 %3263  ;;  %4744 = vperm.xlu0 %7997, %v13998_v3  }
 0x6ef   : > { %v3329_v46 = vadd.f32 %v3264_v21, %v3009_v15  ;;  %4608 = vperm.xlu1 %7995, %v14016_v56  }
 0x6f0   : > { %v11305_v55 = vpop.permute.xlu0 %4389 }
 0x6f1   : > { %v11307_v24 = vadd.f32 %v3489_v0, %v3329_v46 }
 0x6f2   : > { %v11309_v19 = vpop.permute.xlu1 %3775  ;;  %4752 = vperm.xlu0 %7997, %v14000_v27   ;;  %v14022_v27 = vld [vmem:[#allocation93_spill] sm:$0xff] }
 0x6f3   : > { %7998 = vset.pattern.permute.xlu1 %v14017_v33 }
 0x6f4   : > { %4680 = vperm.xlu1 %7998, %v13886_v43   ;;  %v11314_v16 = vpop.permute.xlu0 %4393  ;;  %v14026_v43 = vld [vmem:[#allocation86_spill] sm:$0xff] }
 0x6f6   : > { %v4364_v48 = vpop.permute.xlu1 %4363  ;;  %4760 = vperm.xlu0 %7997, %v14002_v28  }
 0x6f8   : > { %4684 = vperm.xlu1 %7998, %v13945_v23   ;;  %v11318_v50 = vpop.permute.xlu0 %4397 }
 0x6fa   : > { %v4368_v15 = vpop.permute.xlu1 %4367  ;;  %4768 = vperm.xlu0 %7997, %v14004_v26  }
 0x6fc   : > { %4692 = vperm.xlu1 %7998, %v13893_v8   ;;  %v11322_v0 = vpop.permute.xlu0 %4401 }
 0x6fd   : > { %14018 = vst [vmem:[#allocation25_spill] sm:$0xff] %v11322_v0 }
 0x6fe   : > { %v4372_v21 = vpop.permute.xlu1 %4371  ;;  %4776 = vperm.xlu0 %7997, %v14005_v29   ;;  %v14023_v29 = vld [vmem:[#allocation45_spill] sm:$0xff] }
 0x6ff   : > { %v3812_v3 = vadd.f32 %v14023_v29, %v14022_v27 }
 0x700   : > { %4700 = vperm.xlu1 %7998, %v13901_v22   ;;  %v11326_v59 = vpop.permute.xlu0 %4405 }
 0x701   : > { %14019 = vst [vmem:[#allocation52_spill] sm:$0xff] %v11326_v59 }
 0x702   : > { %v4376_v46 = vpop.permute.xlu1 %4375  ;;  %4784 = vperm.xlu0 %7997, %v14010_v35  }
 0x704   : > { %4708 = vperm.xlu1 %7998, %v13906_v38   ;;  %v11330_v33 = vpop.permute.xlu0 %4409  ;;  %v14025_v38 = vld [vmem:[#allocation41_spill] sm:$0xff] }
 0x705   : > { %14020 = vst [vmem:[#allocation157_spill] sm:$0xff] %v11330_v33  ;;  %v4132_v8 = vadd.f32 %v14025_v38, %v3812_v3 }
 0x706   : > { %v4380_v28 = vpop.permute.xlu1 %4379  ;;  %4792 = vperm.xlu0 %7997, %v14012_v31   ;;  %v14027_v31 = vld [vmem:[#allocation142_spill] sm:$0xff] }
 0x707   : > { %v3815_v2 = vadd.f32 %v14027_v31, %v14026_v43 }
 0x708   : > { %4716 = vperm.xlu1 %7998, %v13913_v60   ;;  %v11334_v26 = vpop.permute.xlu0 %4413 }
 0x709   : > { %14021 = vst [vmem:[#allocation31_spill] sm:$0xff] %v11334_v26  ;;  %v4452_v26 = vadd.f32 %v14028_v39, %v4132_v8  ;;  %v14033_v8 = vld [vmem:[#allocation141_spill] sm:$0xff]  ;;  %v14034_v39 = vld [vmem:[#allocation160_spill] sm:$0xff] }
 0x70a   : > { %v4384_v22 = vpop.permute.xlu1 %4383  ;;  %4800 = vperm.xlu0 %7997, %v14016_v56   ;;  %v14029_v56 = vld [vmem:[#allocation136_spill] sm:$0xff] }
 0x70c   : > { %4724 = vperm.xlu1 %7998, %v13921_v51   ;;  %v11340_v35 = vpop.permute.xlu0 %4417  ;;  %v14030_v51 = vld [vmem:[#allocation84_spill] sm:$0xff] }
 0x70d   : > { %14024 = vst [vmem:[#allocation238_spill] sm:$0xff] %v11340_v35  ;;  %v3817_v54 = vadd.f32 %v14030_v51, %v14029_v56  ;;  %v14031_v35 = vld [vmem:[#allocation61_spill] sm:$0xff] }
 0x70e   : > { %v11343_v23 = vpop.permute.xlu1 %4387  ;;  %v4135_v33 = vadd.f32 %v14031_v35, %v3815_v2  ;;  %v14038_v56 = vld [vmem:[#allocation101_spill] sm:$0xff] }
 0x710   : > { %4732 = vperm.xlu1 %7998, %v13928_v9   ;;  %v4489_v60 = vpop.permute.xlu0 %4488  ;;  %v4455_v43 = vadd.f32 %v4364_v48, %v4135_v33  ;;  %v14037_v48 = vld [vmem:[#allocation146_spill] sm:$0xff] }
 0x711   : > { %v4612_v27 = vmul.f32 %v4489_v60, %v10986_v4  ;;  %v3819_v60 = vadd.f32 %v14034_v39, %v14033_v8  ;;  %v14035_v4 = vld [vmem:[#allocation85_spill] sm:$0xff]  ;;  %v3821_v33 = vadd.f32 %v14038_v56, %v14037_v48  ;;  %v14043_v39 = vld [vmem:[#allocation18_spill] sm:$0xff]  ;;  %v14045_v56 = vld [vmem:[#allocation144_spill] sm:$0xff] }
 0x712   : > { %v11350_v29 = vpop.permute.xlu1 %4391  ;;  %v4137_v59 = vadd.f32 %v14035_v4, %v3817_v54 }
 0x713   : > { %v11355_v38 = vadd.f32 %v4612_v27, %v4452_v26  ;;  %v14039_v27 = vld [vmem:[#allocation126_spill] sm:$0xff] }
 0x714   : > { %4740 = vperm.xlu1 %7998, %v13935_v5   ;;  %v4501_v3 = vpop.permute.xlu0 %4500  ;;  %v4457_v26 = vadd.f32 %v4368_v15, %v4137_v59  ;;  %v14041_v15 = vld [vmem:[#allocation159_spill] sm:$0xff] }
 0x715   : > { %14032 = vst [vmem:[#allocation56_spill] sm:$0xff] %v11355_v38  ;;  %v4615_v31 = vmul.f32 %v4501_v3, %v11010_v61  ;;  %v4139_v3 = vadd.f32 %v14039_v27, %v3819_v60  ;;  %v14042_v59 = vld [vmem:[#allocation115_spill] sm:$0xff] }
 0x716   : > { %v11359_v9 = vpop.permute.xlu1 %4395  ;;  %v3823_v8 = vadd.f32 %v14042_v59, %v14041_v15  ;;  %v14048_v15 = vld [vmem:[#allocation120_spill] sm:$0xff] }
 0x717   : > { %v11364_v0 = vadd.f32 %v4615_v31, %v4455_v43  ;;  %v4459_v54 = vadd.f32 %v4372_v21, %v4139_v3  ;;  %v3825_v21 = vadd.f32 %v10803_v58, %v10801_v53 }
 0x718   : > { %4748 = vperm.xlu1 %7998, %v13941_v30   ;;  %v4509_v51 = vpop.permute.xlu0 %4508  ;;  %v4143_v27 = vadd.f32 %v14045_v56, %v3823_v8  ;;  %v14052_v56 = vld [vmem:[#allocation129_spill] sm:$0xff] }
 0x719   : > { %14036 = vst [vmem:[#allocation53_spill] sm:$0xff] %v11364_v0  ;;  %v4617_v35 = vmul.f32 %v4509_v51, %v11031_v10  ;;  %v4141_v51 = vadd.f32 %v14043_v39, %v3821_v33  ;;  %v3827_v39 = vadd.f32 %v10862_v63, %v10860_v41  ;;  %v3829_v41 = vadd.f32 %v10921_v12, %v10919_v25  ;;  %v14054_v63 = vld [vmem:[#allocation30_spill] sm:$0xff]  ;;  %v14059_v25 = vld [vmem:[#allocation164_spill] sm:$0xff] }
 0x71a   : > { %v11368_v2 = vpop.permute.xlu1 %4399 }
 0x71b   : > { %v11373_v38 = vadd.f32 %v4617_v35, %v4457_v26  ;;  %v4461_v26 = vadd.f32 %v4376_v46, %v4141_v51  ;;  %v14049_v51 = vld [vmem:[#allocation169_spill] sm:$0xff]  ;;  %v4149_v12 = vadd.f32 %v14059_v25, %v3829_v41  ;;  %v11436_v25 = vpop.f32.mrb[113].mxu0 }
 0x71c   : > { %4756 = vperm.xlu1 %7998, %v13949_v52   ;;  %v4517_v4 = vpop.permute.xlu0 %4516  ;;  %v4145_v53 = vadd.f32 %v14049_v51, %v3825_v21  ;;  %v4147_v21 = vadd.f32 %v14054_v63, %v3827_v39  ;;  %v14060_v39 = vld [vmem:[#allocation135_spill] sm:$0xff]  ;;  %14068 = vst [vmem:[#allocation13_spill] sm:$0xff] %v11436_v25 }
 0x71d   : > { %14040 = vst [vmem:[#allocation147_spill] sm:$0xff] %v11373_v38  ;;  %v4619_v43 = vmul.f32 %v4517_v4, %v11047_v57  ;;  %v4463_v4 = vadd.f32 %v4380_v28, %v4143_v27  ;;  %v14053_v27 = vld [vmem:[#allocation116_spill] sm:$0xff]  ;;  %v14080_v38 = vld [vmem:[#allocation198_spill] sm:$0xff] }
 0x71e   : > { %v11377_v31 = vpop.permute.xlu1 %4403 }
 0x71f   : > { %v11382_v0 = vadd.f32 %v4619_v43, %v4459_v54  ;;  %v14047_v43 = vld [vmem:[#allocation99_spill] sm:$0xff] }
 0x720   : > { %4764 = vperm.xlu1 %7998, %v13958_v40   ;;  %v4525_v60 = vpop.permute.xlu0 %4524  ;;  %v3811_v46 = vadd.f32 %v14048_v15, %v14047_v43 }
 0x721   : > { %14044 = vst [vmem:[#allocation230_spill] sm:$0xff] %v11382_v0  ;;  %v4621_v35 = vmul.f32 %v4525_v60, %v11064_v11  ;;  %v4465_v60 = vadd.f32 %v4384_v22, %v4145_v53  ;;  %v4467_v22 = vadd.f32 %v11343_v23, %v4147_v21  ;;  %v14057_v53 = vld [vmem:[#allocation96_spill] sm:$0xff]  ;;  %v14062_v23 = vld [vmem:[#allocation107_spill] sm:$0xff]  ;;  %v8092_v0 = vmov 10  }
 0x722   : > { %v11386_v48 = vpop.permute.xlu1 %4407  ;;  %v14063_v21 = vld [vmem:[#allocation87_spill] sm:$0xff]  ;;  %8000 = vset.pattern.permute.xlu0 %v8092_v0 }
 0x723   : > { %v11391_v3 = vadd.f32 %v4621_v35, %v4461_v26  ;;  %v14051_v26 = vld [vmem:[#allocation82_spill] sm:$0xff] }
 0x724   : > { %4772 = vperm.xlu1 %7998, %v13966_v45   ;;  %v4533_v33 = vpop.permute.xlu0 %4532  ;;  %v4131_v35 = vadd.f32 %v14051_v26, %v3811_v46  ;;  %v14056_v46 = vld [vmem:[#allocation102_spill] sm:$0xff] }
 0x725   : > { %14046 = vst [vmem:[#allocation29_spill] sm:$0xff] %v11391_v3  ;;  %v4623_v54 = vmul.f32 %v4533_v33, %v11084_v32  ;;  %v3813_v33 = vadd.f32 %v14053_v27, %v14052_v56  ;;  %v14058_v56 = vld [vmem:[#allocation54_spill] sm:$0xff] }
 0x726   : > { %v11397_v59 = vpop.permute.xlu1 %4411  ;;  %v4451_v51 = vadd.f32 %v14056_v46, %v4131_v35  ;;  %v3831_v27 = vadd.f32 %v14058_v56, %v10980_v34  ;;  %v4469_v35 = vadd.f32 %v11350_v29, %v4149_v12  ;;  %v14064_v46 = vld [vmem:[#allocation236_spill] sm:$0xff]  ;;  %v14067_v34 = vld [vmem:[#allocation150_spill] sm:$0xff] }
 0x727   : > { %v11402_v58 = vadd.f32 %v4623_v54, %v4463_v4  ;;  %v14073_v29 = vld [vmem:[#allocation140_spill] sm:$0xff]  ;;  %v14074_v12 = vld [vmem:[#allocation66_spill] sm:$0xff] }
 0x728   : > { %4780 = vperm.xlu1 %7998, %v13976_v62   ;;  %v4541_v8 = vpop.permute.xlu0 %4540 }
 0x729   : > { %14050 = vst [vmem:[#allocation42_spill] sm:$0xff] %v11402_v58  ;;  %v4625_v28 = vmul.f32 %v4541_v8, %v11099_v42  ;;  %v4133_v8 = vadd.f32 %v14057_v53, %v3813_v33  ;;  %v14071_v58 = vld [vmem:[#allocation202_spill] sm:$0xff] }
 0x72a   : > { %v11409_v43 = vpop.permute.xlu1 %4415 }
 0x72b   : > { %v11414_v4 = vadd.f32 %v4625_v28, %v4465_v60 }
 0x72c   : > { %4788 = vperm.xlu1 %7998, %v13982_v14   ;;  %v4549_v54 = vpop.permute.xlu0 %4548 }
 0x72d   : > { %14055 = vst [vmem:[#allocation152_spill] sm:$0xff] %v11414_v4  ;;  %v4627_v15 = vmul.f32 %v4549_v54, %v11120_v6  ;;  %v3814_v54 = vadd.f32 %v14063_v21, %v14062_v23  ;;  %v14066_v4 = vld [vmem:[#allocation206_spill] sm:$0xff] }
 0x72e   : > { %v4485_v26 = vpop.permute.xlu1 %4484  ;;  %v3833_v56 = vadd.f32 %v14067_v34, %v14066_v4  ;;  %v14076_v34 = vld [vmem:[#allocation239_spill] sm:$0xff] }
 0x72f   : > { %v4611_v60 = vmul.f32 %v4485_v26, %v14060_v39  ;;  %v11425_v28 = vadd.f32 %v4627_v15, %v4467_v22  ;;  %v14069_v22 = vld [vmem:[#allocation119_spill] sm:$0xff] }
 0x730   : > { %4796 = vperm.xlu1 %7998, %v13990_v7   ;;  %v4557_v63 = vpop.permute.xlu0 %4556  ;;  %v4453_v15 = vadd.f32 %v14069_v22, %v4133_v8  ;;  %v14070_v26 = vld [vmem:[#allocation39_spill] sm:$0xff] }
 0x731   : > { %14061 = vst [vmem:[#allocation234_spill] sm:$0xff] %v11425_v28  ;;  %v4629_v33 = vmul.f32 %v4557_v63, %v14064_v46  ;;  %v11432_v53 = vadd.f32 %v4611_v60, %v4451_v51  ;;  %v4151_v28 = vadd.f32 %v14070_v26, %v3831_v27  ;;  %v3816_v51 = vadd.f32 %v14074_v12, %v14073_v29  ;;  %v14075_v63 = vld [vmem:[#allocation122_spill] sm:$0xff]  ;;  %v14079_v26 = vld [vmem:[#allocation117_spill] sm:$0xff] }
 0x732   : > { %v4493_v41 = vpop.permute.xlu1 %4492  ;;  %v4134_v4 = vadd.f32 %v14075_v63, %v3814_v54  ;;  %v14078_v27 = vld [vmem:[#allocation114_spill] sm:$0xff] }
 0x733   : > { %14065 = vst [vmem:[#allocation73_spill] sm:$0xff] %v11432_v53  ;;  %v4613_v3 = vmul.f32 %v4493_v41, %v14071_v58  ;;  %v11441_v23 = vadd.f32 %v4629_v33, %v4469_v35  ;;  %v4471_v21 = vadd.f32 %v11359_v9, %v4151_v28  ;;  %v4153_v22 = vadd.f32 %v14078_v27, %v3833_v56  ;;  %v14084_v9 = vld [vmem:[#allocation81_spill] sm:$0xff]  ;;  %v14085_v28 = vld [vmem:[#allocation64_spill] sm:$0xff] }
 0x734   : > { %v4565_v60 = vpop.permute.xlu0 %4564  ;;  %7999 = vset.pattern.permute.xlu1 %v8092_v0  ;;  %v3835_v35 = vadd.f32 %v14080_v38, %v14079_v26  ;;  %v4454_v33 = vadd.f32 %v11251_v20, %v4134_v4  ;;  %v14083_v0 = vld [vmem:[#allocation121_spill] sm:$0xff]  ;;  %v3837_v38 = vadd.f32 %v11231_v17, %v11229_v36  ;;  %v14096_v17 = vld [vmem:[#allocation91_spill] sm:$0xff] }
 0x735   : > { %14072 = vst [vmem:[#allocation35_spill] sm:$0xff] %v11441_v23  ;;  %v4631_v25 = vmul.f32 %v4565_v60, %v14076_v34  ;;  %v11448_v8 = vadd.f32 %v4613_v3, %v4453_v15  ;;  %v14081_v23 = vld [vmem:[#allocation47_spill] sm:$0xff]  ;;  %v4136_v54 = vadd.f32 %v14083_v0, %v3816_v51  ;;  %v3818_v60 = vadd.f32 %v14085_v28, %v14084_v9  ;;  %v14086_v15 = vld [vmem:[#allocation257_spill] sm:$0xff]  ;;  %v14092_v9 = vld [vmem:[#allocation124_spill] sm:$0xff] }
 0x736   : > { %v4497_v41 = vpop.permute.xlu1 %4496  ;;  %v4473_v3 = vadd.f32 %v11368_v2, %v4153_v22  ;;  %v14091_v0 = vld [vmem:[#allocation105_spill] sm:$0xff]  ;;  %v14093_v22 = vld [vmem:[#allocation14_spill] sm:$0xff] }
 0x737   : > { %14077 = vst [vmem:[#allocation171_spill] sm:$0xff] %v11448_v8  ;;  %v4614_v29 = vmul.f32 %v4497_v41, %v14081_v23  ;;  %v11455_v12 = vadd.f32 %v4631_v25, %v4471_v21  ;;  %v4456_v4 = vadd.f32 %v11257_v18, %v4136_v54  ;;  %v14088_v25 = vld [vmem:[#allocation209_spill] sm:$0xff]  ;;  %v14089_v41 = vld [vmem:[#allocation134_spill] sm:$0xff]  ;;  %v3820_v28 = vadd.f32 %v14092_v9, %v14091_v0  ;;  %v14099_v0 = vld [vmem:[#allocation139_spill] sm:$0xff] }
 0x738   : > { %v4573_v63 = vpop.permute.xlu0 %4572  ;;  %v4155_v21 = vadd.f32 %v14088_v25, %v3835_v35  ;;  %v4157_v18 = vadd.f32 %v14096_v17, %v3837_v38 }
 0x739   : > { %14082 = vst [vmem:[#allocation15_spill] sm:$0xff] %v11455_v12  ;;  %v4633_v56 = vmul.f32 %v4573_v63, %v14086_v15  ;;  %v11462_v27 = vadd.f32 %v4614_v29, %v4454_v33  ;;  %v4138_v63 = vadd.f32 %v14093_v22, %v3818_v60  ;;  %v14094_v29 = vld [vmem:[#allocation261_spill] sm:$0xff]  ;;  %v4140_v60 = vadd.f32 %v14099_v0, %v3820_v28  ;;  %v14108_v0 = vld [vmem:[#allocation20_spill] sm:$0xff] }
 0x73a   : > { %v4505_v20 = vpop.permute.xlu1 %4504  ;;  %v4475_v33 = vadd.f32 %v11377_v31, %v4155_v21  ;;  %v14100_v31 = vld [vmem:[#allocation106_spill] sm:$0xff]  ;;  %v14101_v21 = vld [vmem:[#allocation149_spill] sm:$0xff] }
 0x73b   : > { %14087 = vst [vmem:[#allocation43_spill] sm:$0xff] %v11462_v27  ;;  %v4616_v51 = vmul.f32 %v4505_v20, %v14089_v41  ;;  %v11469_v26 = vadd.f32 %v4633_v56, %v4473_v3  ;;  %v4458_v35 = vadd.f32 %v11264_v49, %v4138_v63  ;;  %v3839_v3 = vadd.f32 %v11268_v37, %v11266_v44  ;;  %v14097_v56 = vld [vmem:[#allocation201_spill] sm:$0xff]  ;;  %v14104_v37 = vld [vmem:[#allocation194_spill] sm:$0xff]  ;;  %v14170_v27 = vld [vmem:[#allocation48_spill] sm:$0xff] }
 0x73c   : > { %v4581_v2 = vpop.permute.xlu0 %4580  ;;  %v4460_v49 = vadd.f32 %v11274_v47, %v4140_v60  ;;  %v3841_v44 = vadd.f32 %v11309_v19, %v11307_v24  ;;  %v14112_v24 = vld [vmem:[#allocation17_spill] sm:$0xff] }
 0x73d   : > { %14090 = vst [vmem:[#allocation177_spill] sm:$0xff] %v11469_v26  ;;  %v4635_v12 = vmul.f32 %v4581_v2, %v14094_v29  ;;  %v11476_v36 = vadd.f32 %v4616_v51, %v4456_v4  ;;  %v3822_v2 = vadd.f32 %v14101_v21, %v14100_v31  ;;  %v4477_v4 = vadd.f32 %v11386_v48, %v4157_v18  ;;  %v14102_v51 = vld [vmem:[#allocation251_spill] sm:$0xff]  ;;  %v14109_v18 = vld [vmem:[#allocation21_spill] sm:$0xff] }
 0x73e   : > { %v4513_v54 = vpop.permute.xlu1 %4512 }
 0x73f   : > { %14095 = vst [vmem:[#allocation28_spill] sm:$0xff] %v11476_v36  ;;  %v4618_v20 = vmul.f32 %v4513_v54, %v14097_v56  ;;  %v11483_v25 = vadd.f32 %v4635_v12, %v4475_v33  ;;  %v4159_v12 = vadd.f32 %v14104_v37, %v3839_v3  ;;  %v14105_v33 = vld [vmem:[#allocation204_spill] sm:$0xff]  ;;  %v14107_v54 = vld [vmem:[#allocation23_spill] sm:$0xff] }
 0x740   : > { %v4589_v9 = vpop.permute.xlu0 %4588  ;;  %v3824_v31 = vadd.f32 %v14108_v0, %v14107_v54  ;;  %v14113_v3 = vld [vmem:[#allocation260_spill] sm:$0xff] }
 0x741   : > { %14098 = vst [vmem:[#allocation63_spill] sm:$0xff] %v11483_v25  ;;  %v4637_v38 = vmul.f32 %v4589_v9, %v14102_v51  ;;  %v11490_v22 = vadd.f32 %v4618_v20, %v4458_v35  ;;  %v4142_v9 = vadd.f32 %v14109_v18, %v3822_v2  ;;  %v4479_v35 = vadd.f32 %v11397_v59, %v4159_v12  ;;  %v14110_v20 = vld [vmem:[#allocation218_spill] sm:$0xff]  ;;  %v14117_v25 = vld [vmem:[#allocation180_spill] sm:$0xff]  ;;  %v14119_v12 = vld [vmem:[#allocation55_spill] sm:$0xff] }
 0x742   : > { %v4521_v63 = vpop.permute.xlu1 %4520  ;;  %v4161_v37 = vadd.f32 %v14113_v3, %v3841_v44  ;;  %v14118_v2 = vld [vmem:[#allocation162_spill] sm:$0xff] }
 0x743   : > { %14103 = vst [vmem:[#allocation59_spill] sm:$0xff] %v11490_v22  ;;  %v4620_v28 = vmul.f32 %v4521_v63, %v14105_v33  ;;  %v11497_v17 = vadd.f32 %v4637_v38, %v4477_v4  ;;  %v4462_v19 = vadd.f32 %v14112_v24, %v4142_v9  ;;  %v14114_v63 = vld [vmem:[#allocation229_spill] sm:$0xff]  ;;  %v3826_v18 = vadd.f32 %v14118_v2, %v14117_v25  ;;  %v14121_v44 = vld [vmem:[#allocation154_spill] sm:$0xff] }
 0x744   : > { %v4597_v48 = vpop.permute.xlu0 %4596  ;;  %v4481_v59 = vadd.f32 %v11409_v43, %v4161_v37  ;;  %v14129_v2 = vld [vmem:[#allocation189_spill] sm:$0xff] }
 0x745   : > { %14106 = vst [vmem:[#allocation167_spill] sm:$0xff] %v11497_v17  ;;  %v4639_v47 = vmul.f32 %v4597_v48, %v14110_v20  ;;  %v11504_v60 = vadd.f32 %v4620_v28, %v4460_v49  ;;  %v14116_v17 = vld [vmem:[#allocation156_spill] sm:$0xff]  ;;  %v14160_v22 = vld [vmem:[#allocation137_spill] sm:$0xff] }
 0x746   : > { %v4529_v21 = vpop.permute.xlu1 %4528  ;;  %v4144_v54 = vadd.f32 %v14116_v17, %v3824_v31  ;;  %v14124_v17 = vld [vmem:[#allocation182_spill] sm:$0xff]  ;;  %v14125_v31 = vld [vmem:[#allocation104_spill] sm:$0xff] }
 0x747   : > { %14111 = vst [vmem:[#allocation83_spill] sm:$0xff] %v11504_v60  ;;  %v4622_v4 = vmul.f32 %v4529_v21, %v14114_v63  ;;  %v11509_v38 = vadd.f32 %v4639_v47, %v4479_v35  ;;  %v14123_v35 = vld [vmem:[#allocation161_spill] sm:$0xff]  ;;  %v3828_v3 = vadd.f32 %v14125_v31, %v14124_v17  ;;  %v14134_v31 = vld [vmem:[#allocation50_spill] sm:$0xff] }
 0x748   : > { %v4605_v0 = vpop.permute.xlu0 %4604  ;;  %v4464_v9 = vadd.f32 %v11289_v1, %v4144_v54  ;;  %v4146_v47 = vadd.f32 %v14123_v35, %v3826_v18  ;;  %v14128_v1 = vld [vmem:[#allocation118_spill] sm:$0xff] }
 0x749   : > { %14115 = vst [vmem:[#allocation24_spill] sm:$0xff] %v11509_v38  ;;  %v4641_v49 = vmul.f32 %v4605_v0, %v14119_v12  ;;  %v11516_v28 = vadd.f32 %v4622_v4, %v4462_v19  ;;  %v14127_v4 = vld [vmem:[#allocation94_spill] sm:$0xff]  ;;  %v4148_v54 = vadd.f32 %v14128_v1, %v3828_v3 }
 0x74a   : > { %v4537_v48 = vpop.permute.xlu1 %4536  ;;  %v4466_v19 = vadd.f32 %v11297_v13, %v4146_v47  ;;  %v14135_v13 = vld [vmem:[#allocation166_spill] sm:$0xff] }
 0x74b   : > { %14120 = vst [vmem:[#allocation103_spill] sm:$0xff] %v11516_v28  ;;  %v4624_v24 = vmul.f32 %v4537_v48, %v14121_v44  ;;  %v11520_v21 = vadd.f32 %v4641_v49, %v4481_v59  ;;  %v14130_v59 = vld [vmem:[#allocation33_spill] sm:$0xff]  ;;  %v3832_v47 = vadd.f32 %v14135_v13, %v14134_v31  ;;  %v14137_v1 = vld [vmem:[#allocation174_spill] sm:$0xff]  ;;  %v14144_v13 = vld [vmem:[#allocation224_spill] sm:$0xff] }
 0x74c   : > { %v3830_v18 = vadd.f32 %v14130_v59, %v14129_v2  ;;  %v14138_v2 = vld [vmem:[#allocation179_spill] sm:$0xff]  ;;  %v14140_v59 = vld [vmem:[#allocation176_spill] sm:$0xff] }
 0x74d   : > { %14122 = vst [vmem:[#allocation172_spill] sm:$0xff] %v11520_v21  ;;  %v4677_v38 = vpop.permute.xlu0 %4676  ;;  %v11525_v25 = vadd.f32 %v4624_v24, %v4464_v9  ;;  %v4468_v9 = vadd.f32 %v11305_v55, %v4148_v54  ;;  %v14132_v24 = vld [vmem:[#allocation88_spill] sm:$0xff]  ;;  %v14154_v28 = vld [vmem:[#allocation131_spill] sm:$0xff] }
 0x74e   : > { %v4803_v43 = vmul.f32 %v4677_v38, %v14060_v39  ;;  %v4545_v37 = vpop.permute.xlu1 %4544  ;;  %v14133_v38 = vld [vmem:[#allocation110_spill] sm:$0xff] }
 0x74f   : > { %14126 = vst [vmem:[#allocation76_spill] sm:$0xff] %v11525_v25  ;;  %v4626_v0 = vmul.f32 %v4545_v37, %v14127_v4  ;;  %v4150_v17 = vadd.f32 %v14133_v38, %v3830_v18  ;;  %v14142_v38 = vld [vmem:[#allocation243_spill] sm:$0xff]  ;;  %v14151_v25 = vld [vmem:[#allocation222_spill] sm:$0xff] }
 0x750   : > { %4867 = vrot.lane.b32.xlu1 %v4803_v43, %s8087_s22 }
 0x751   : > { %v11534_v49 = vadd.f32 %v4626_v0, %v4466_v19  ;;  %v4470_v3 = vadd.f32 %v11314_v16, %v4150_v17  ;;  %v4152_v19 = vadd.f32 %v14138_v2, %v3832_v47  ;;  %v14139_v0 = vld [vmem:[#allocation199_spill] sm:$0xff]  ;;  %v4689_v55 = vpop.permute.xlu0 %4688  ;;  %v14147_v47 = vld [vmem:[#allocation25_spill] sm:$0xff] }
 0x752   : > { %v4553_v48 = vpop.permute.xlu1 %4552  ;;  %v3834_v26 = vadd.f32 %v14140_v59, %v14139_v0  ;;  %v14148_v0 = vld [vmem:[#allocation44_spill] sm:$0xff] }
 0x753   : > { %14131 = vst [vmem:[#allocation125_spill] sm:$0xff] %v11534_v49  ;;  %v4628_v35 = vmul.f32 %v4553_v48, %v14132_v24  ;;  %v4472_v18 = vadd.f32 %v11318_v50, %v4152_v19 }
 0x755   : > { %v11541_v37 = vadd.f32 %v4628_v35, %v4468_v9  ;;  %v14143_v9 = vld [vmem:[#allocation51_spill] sm:$0xff]  ;;  %v4697_v49 = vpop.permute.xlu0 %4696 }
 0x756   : > { %v4561_v43 = vpop.permute.xlu1 %4560  ;;  %v4154_v35 = vadd.f32 %v14143_v9, %v3834_v26  ;;  %v14153_v26 = vld [vmem:[#allocation52_spill] sm:$0xff] }
 0x757   : > { %14136 = vst [vmem:[#allocation191_spill] sm:$0xff] %v11541_v37  ;;  %v4630_v21 = vmul.f32 %v4561_v43, %v14137_v1  ;;  %v14145_v37 = vld [vmem:[#allocation181_spill] sm:$0xff] }
 0x758   : > { %v3836_v16 = vadd.f32 %v14145_v37, %v14144_v13  ;;  %v4474_v2 = vadd.f32 %v14147_v47, %v4154_v35  ;;  %v14156_v13 = vld [vmem:[#allocation214_spill] sm:$0xff] }
 0x759   : > { %v11548_v54 = vadd.f32 %v4630_v21, %v4470_v3  ;;  %v14149_v21 = vld [vmem:[#allocation221_spill] sm:$0xff]  ;;  %v4705_v47 = vpop.permute.xlu0 %4704 }
 0x75a   : > { %v4569_v48 = vpop.permute.xlu1 %4568  ;;  %v4156_v3 = vadd.f32 %v14149_v21, %v3836_v16  ;;  %v14159_v16 = vld [vmem:[#allocation157_spill] sm:$0xff] }
 0x75b   : > { %14141 = vst [vmem:[#allocation95_spill] sm:$0xff] %v11548_v54  ;;  %v4632_v31 = vmul.f32 %v4569_v48, %v14142_v38  ;;  %v14150_v54 = vld [vmem:[#allocation215_spill] sm:$0xff] }
 0x75c   : > { %v3838_v50 = vadd.f32 %v14151_v25, %v14150_v54  ;;  %v4476_v9 = vadd.f32 %v14153_v26, %v4156_v3  ;;  %v14161_v54 = vld [vmem:[#allocation132_spill] sm:$0xff] }
 0x75d   : > { %v11555_v17 = vadd.f32 %v4632_v31, %v4472_v18  ;;  %v14155_v18 = vld [vmem:[#allocation65_spill] sm:$0xff]  ;;  %v4713_v36 = vpop.permute.xlu0 %4712 }
 0x75e   : > { %v4577_v43 = vpop.permute.xlu1 %4576  ;;  %v4158_v31 = vadd.f32 %v14155_v18, %v3838_v50  ;;  %v14165_v50 = vld [vmem:[#allocation31_spill] sm:$0xff] }
 0x75f   : > { %14146 = vst [vmem:[#allocation145_spill] sm:$0xff] %v11555_v17  ;;  %v4634_v59 = vmul.f32 %v4577_v43, %v14148_v0  ;;  %v14157_v17 = vld [vmem:[#allocation195_spill] sm:$0xff] }
 0x760   : > { %v3840_v35 = vadd.f32 %v14157_v17, %v14156_v13  ;;  %v4478_v21 = vadd.f32 %v14159_v16, %v4158_v31  ;;  %v14166_v17 = vld [vmem:[#allocation254_spill] sm:$0xff] }
 0x761   : > { %v11562_v19 = vadd.f32 %v4634_v59, %v4474_v2  ;;  %v14162_v59 = vld [vmem:[#allocation151_spill] sm:$0xff]  ;;  %v14169_v16 = vld [vmem:[#allocation238_spill] sm:$0xff] }
 0x762   : > { %v4585_v48 = vpop.permute.xlu1 %4584  ;;  %v4160_v2 = vadd.f32 %v14161_v54, %v3840_v35  ;;  %v4721_v54 = vpop.permute.xlu0 %4720 }
 0x763   : > { %14152 = vst [vmem:[#allocation197_spill] sm:$0xff] %v11562_v19  ;;  %v4636_v37 = vmul.f32 %v4585_v48, %v14154_v28  ;;  %v14163_v19 = vld [vmem:[#allocation210_spill] sm:$0xff] }
 0x764   : > { %v3842_v3 = vadd.f32 %v14163_v19, %v14162_v59  ;;  %v4480_v18 = vadd.f32 %v14165_v50, %v4160_v2 }
 0x765   : > { %v11569_v60 = vadd.f32 %v4636_v37, %v4476_v9  ;;  %v14167_v9 = vld [vmem:[#allocation10_spill] sm:$0xff] }
 0x766   : > { %v4593_v43 = vpop.permute.xlu1 %4592  ;;  %v4162_v37 = vadd.f32 %v14167_v9, %v3842_v3  ;;  %v4729_v2 = vpop.permute.xlu0 %4728 }
 0x767   : > { %14158 = vst [vmem:[#allocation97_spill] sm:$0xff] %v11569_v60  ;;  %v4638_v25 = vmul.f32 %v4593_v43, %v14160_v22 }
 0x768   : > { %v4482_v43 = vadd.f32 %v14169_v16, %v4162_v37 }
 0x769   : > { %v11576_v26 = vadd.f32 %v4638_v25, %v4478_v21  ;;  %v14172_v21 = vld [vmem:[#allocation184_spill] sm:$0xff] }
 0x76a   : > { %v4601_v48 = vpop.permute.xlu1 %4600  ;;  %v4737_v9 = vpop.permute.xlu0 %4736 }
 0x76b   : > { %14164 = vst [vmem:[#allocation165_spill] sm:$0xff] %v11576_v26  ;;  %v4640_v13 = vmul.f32 %v4601_v48, %v14166_v17  ;;  %v4806_v48 = vmul.f32 %v4689_v55, %v14081_v23  ;;  %v14195_v26 = vld [vmem:[#allocation173_spill] sm:$0xff] }
 0x76d   : > { %v11581_v60 = vadd.f32 %v4640_v13, %v4480_v18  ;;  %v4808_v18 = vmul.f32 %v4697_v49, %v14089_v41  ;;  %v4812_v49 = vmul.f32 %v4713_v36, %v14105_v33 }
 0x76e   : > { %v4609_v31 = vpop.permute.xlu1 %4608  ;;  %v4745_v16 = vpop.permute.xlu0 %4744 }
 0x76f   : > { %14168 = vst [vmem:[#allocation187_spill] sm:$0xff] %v11581_v60  ;;  %v4642_v35 = vmul.f32 %v4609_v31, %v14170_v27  ;;  %v4810_v31 = vmul.f32 %v4705_v47, %v14097_v56 }
 0x771   : > { %v11585_v8 = vadd.f32 %v4642_v35, %v4482_v43 }
 0x773   : > { %14171 = vst [vmem:[#allocation46_spill] sm:$0xff] %v11585_v8  ;;  %v4681_v19 = vpop.permute.xlu1 %4680 }
 0x774   : > { %v4804_v25 = vmul.f32 %v4681_v19, %v14172_v21 }
 0x776   : > { %4869 = vrot.lane.b32.xlu0 %v4804_v25, %s8087_s22  ;;  %v4814_v25 = vmul.f32 %v4721_v54, %v14114_v63  ;;  %v4818_v54 = vmul.f32 %v4737_v9, %v14127_v4 }
 0x777   : > { %v4685_v59 = vpop.permute.xlu1 %4684 }
 0x778   : > { %v4805_v3 = vmul.f32 %v4685_v59, %v14071_v58  ;;  %v4753_v59 = vpop.permute.xlu0 %4752 }
 0x77a   : > { %4871 = vrot.lane.b32.xlu1 %v4805_v3, %s8087_s22  ;;  %4873 = vrot.lane.b32.xlu0 %v4806_v48, %s8087_s22  ;;  %v4816_v3 = vmul.f32 %v4729_v2, %v14121_v44 }
 0x77b   : > { %v4693_v50 = vpop.permute.xlu1 %4692 }
 0x77c   : > { %v4807_v13 = vmul.f32 %v4693_v50, %v11010_v61  ;;  %v4761_v50 = vpop.permute.xlu0 %4760 }
 0x77e   : > { %4875 = vrot.lane.b32.xlu1 %v4807_v13, %s8087_s22  ;;  %4877 = vrot.lane.b32.xlu0 %v4808_v18, %s8087_s22 }
 0x77f   : > { %v4701_v37 = vpop.permute.xlu1 %4700 }
 0x780   : > { %v4809_v55 = vmul.f32 %v4701_v37, %v11031_v10 }
 0x782   : > { %4879 = vrot.lane.b32.xlu1 %v4809_v55, %s8087_s22  ;;  %4881 = vrot.lane.b32.xlu0 %v4810_v31, %s8087_s22  ;;  %v4820_v31 = vmul.f32 %v4745_v16, %v14132_v24  ;;  %v4769_v55 = vpop.permute.xlu0 %4768  ;;  %v4824_v16 = vmul.f32 %v4761_v50, %v14142_v38 }
 0x783   : > { %v4709_v43 = vpop.permute.xlu1 %4708 }
 0x784   : > { %v4811_v35 = vmul.f32 %v4709_v43, %v11047_v57 }
 0x786   : > { %4883 = vrot.lane.b32.xlu1 %v4811_v35, %s8087_s22  ;;  %4885 = vrot.lane.b32.xlu0 %v4812_v49, %s8087_s22  ;;  %v4822_v49 = vmul.f32 %v4753_v59, %v14137_v1  ;;  %v4777_v35 = vpop.permute.xlu0 %4776 }
 0x787   : > { %v4717_v19 = vpop.permute.xlu1 %4716 }
 0x788   : > { %v4813_v47 = vmul.f32 %v4717_v19, %v11064_v11 }
 0x78a   : > { %4887 = vrot.lane.b32.xlu1 %v4813_v47, %s8087_s22  ;;  %4889 = vrot.lane.b32.xlu0 %v4814_v25, %s8087_s22 }
 0x78b   : > { %v4725_v48 = vpop.permute.xlu1 %4724 }
 0x78c   : > { %v4815_v36 = vmul.f32 %v4725_v48, %v11084_v32  ;;  %v4826_v48 = vmul.f32 %v4769_v55, %v14148_v0 }
 0x78e   : > { %4891 = vrot.lane.b32.xlu1 %v4815_v36, %s8087_s22  ;;  %4893 = vrot.lane.b32.xlu0 %v4816_v3, %s8087_s22  ;;  %v4785_v3 = vpop.permute.xlu0 %4784 }
 0x78f   : > { %v4733_v18 = vpop.permute.xlu1 %4732 }
 0x790   : > { %v4817_v13 = vmul.f32 %v4733_v18, %v11099_v42  ;;  %v4828_v18 = vmul.f32 %v4777_v35, %v14154_v28 }
 0x792   : > { %4895 = vrot.lane.b32.xlu1 %v4817_v13, %s8087_s22  ;;  %4897 = vrot.lane.b32.xlu0 %v4818_v54, %s8087_s22  ;;  %v4793_v54 = vpop.permute.xlu0 %4792 }
 0x793   : > { %v4741_v37 = vpop.permute.xlu1 %4740  ;;  %v4832_v55 = vmul.f32 %v4793_v54, %v14166_v17  ;;  %v14182_v54 = vld [vmem:[#allocation38_spill] sm:$0xff] }
 0x794   : > { %v4819_v2 = vmul.f32 %v4741_v37, %v11120_v6  ;;  %v4830_v37 = vmul.f32 %v4785_v3, %v14160_v22  ;;  %v14178_v3 = vld [vmem:[#allocation12_spill] sm:$0xff] }
 0x796   : > { %4899 = vrot.lane.b32.xlu1 %v4819_v2, %s8087_s22  ;;  %4901 = vrot.lane.b32.xlu0 %v4820_v31, %s8087_s22 }
 0x797   : > { %v4749_v43 = vpop.permute.xlu1 %4748 }
 0x798   : > { %v4821_v9 = vmul.f32 %v4749_v43, %v14064_v46 }
 0x79a   : > { %4903 = vrot.lane.b32.xlu1 %v4821_v9, %s8087_s22  ;;  %4905 = vrot.lane.b32.xlu0 %v4822_v49, %s8087_s22  ;;  %v4801_v49 = vpop.permute.xlu0 %4800 }
 0x79b   : > { %v4757_v19 = vpop.permute.xlu1 %4756  ;;  %v4834_v35 = vmul.f32 %v4801_v49, %v14170_v27  ;;  %v14189_v49 = vld [vmem:[#allocation90_spill] sm:$0xff] }
 0x79c   : > { %v4823_v25 = vmul.f32 %v4757_v19, %v14076_v34 }
 0x79e   : > { %4907 = vrot.lane.b32.xlu1 %v4823_v25, %s8087_s22  ;;  %4909 = vrot.lane.b32.xlu0 %v4824_v16, %s8087_s22  ;;  %v14173_v16 = vld [vmem:[#allocation3_spill] sm:$0xff]  ;;  %v14174_v25 = vld [vmem:[#allocation2_spill] sm:$0xff] }
 0x79f   : > { %v4765_v47 = vpop.permute.xlu1 %4764 }
 0x7a0   : > { %v4825_v59 = vmul.f32 %v4765_v47, %v14086_v15  ;;  %v14175_v47 = vld [vmem:[#allocation5_spill] sm:$0xff] }
 0x7a2   : > { %4911 = vrot.lane.b32.xlu1 %v4825_v59, %s8087_s22  ;;  %4913 = vrot.lane.b32.xlu0 %v4826_v48, %s8087_s22  ;;  %v14176_v48 = vld [vmem:[#allocation7_spill] sm:$0xff]  ;;  %v14177_v59 = vld [vmem:[#allocation4_spill] sm:$0xff] }
 0x7a3   : > { %v4773_v36 = vpop.permute.xlu1 %4772 }
 0x7a4   : > { %v4827_v50 = vmul.f32 %v4773_v36, %v14094_v29  ;;  %v14179_v36 = vld [vmem:[#allocation6_spill] sm:$0xff] }
 0x7a6   : > { %4915 = vrot.lane.b32.xlu1 %v4827_v50, %s8087_s22  ;;  %4917 = vrot.lane.b32.xlu0 %v4828_v18, %s8087_s22  ;;  %v14180_v18 = vld [vmem:[#allocation22_spill] sm:$0xff]  ;;  %v14181_v50 = vld [vmem:[#allocation11_spill] sm:$0xff] }
 0x7a7   : > { %v4781_v13 = vpop.permute.xlu1 %4780 }
 0x7a8   : > { %v4829_v31 = vmul.f32 %v4781_v13, %v14102_v51  ;;  %v14183_v13 = vld [vmem:[#allocation19_spill] sm:$0xff] }
 0x7aa   : > { %4919 = vrot.lane.b32.xlu1 %v4829_v31, %s8087_s22  ;;  %4921 = vrot.lane.b32.xlu0 %v4830_v37, %s8087_s22  ;;  %v14184_v37 = vld [vmem:[#allocation58_spill] sm:$0xff]  ;;  %v14185_v31 = vld [vmem:[#allocation32_spill] sm:$0xff] }
 0x7ab   : > { %v4789_v2 = vpop.permute.xlu1 %4788 }
 0x7ac   : > { %v4831_v43 = vmul.f32 %v4789_v2, %v14110_v20  ;;  %v14186_v2 = vld [vmem:[#allocation78_spill] sm:$0xff] }
 0x7ae   : > { %4923 = vrot.lane.b32.xlu1 %v4831_v43, %s8087_s22  ;;  %4925 = vrot.lane.b32.xlu0 %v4832_v55, %s8087_s22  ;;  %v14187_v55 = vld [vmem:[#allocation49_spill] sm:$0xff]  ;;  %v14188_v43 = vld [vmem:[#allocation70_spill] sm:$0xff] }
 0x7af   : > { %v4797_v9 = vpop.permute.xlu1 %4796 }
 0x7b0   : > { %v4833_v19 = vmul.f32 %v4797_v9, %v14119_v12  ;;  %v14190_v9 = vld [vmem:[#allocation113_spill] sm:$0xff] }
 0x7b2   : > { %4927 = vrot.lane.b32.xlu1 %v4833_v19, %s8087_s22  ;;  %4929 = vrot.lane.b32.xlu0 %v4834_v35, %s8087_s22  ;;  %v14191_v35 = vld [vmem:[#allocation133_spill] sm:$0xff] }
 0x7b3   : > { %v14192_v19 = vld [vmem:[#allocation153_spill] sm:$0xff] }
 0x7b6   : > { %4996 = vperm.xlu1 %7999, %v14173_v16   ;;  %5000 = vperm.xlu0 %8000, %v14174_v25  }
 0x7ba   : > { %5004 = vperm.xlu1 %7999, %v14175_v47   ;;  %5012 = vperm.xlu0 %8000, %v14176_v48  }
 0x7be   : > { %5008 = vperm.xlu1 %7999, %v14177_v59   ;;  %5020 = vperm.xlu0 %8000, %v14178_v3  }
 0x7c2   : > { %5016 = vperm.xlu1 %7999, %v14179_v36   ;;  %5028 = vperm.xlu0 %8000, %v14180_v18   ;;  %v11675_v8 = vpop.permute.xlu1 %4867 }
 0x7c3   : > { %14193 = vst [vmem:[#allocation185_spill] sm:$0xff] %v11675_v8 }
 0x7c6   : > { %5024 = vperm.xlu1 %7999, %v14181_v50   ;;  %5036 = vperm.xlu0 %8000, %v14182_v54  }
 0x7ca   : > { %5032 = vperm.xlu1 %7999, %v14183_v13   ;;  %5044 = vperm.xlu0 %8000, %v14184_v37  }
 0x7ce   : > { %5040 = vperm.xlu1 %7999, %v14185_v31   ;;  %5052 = vperm.xlu0 %8000, %v14186_v2  }
 0x7d2   : > { %5048 = vperm.xlu1 %7999, %v14187_v55   ;;  %5060 = vperm.xlu0 %8000, %v13935_v5  }
 0x7d6   : > { %5056 = vperm.xlu1 %7999, %v14188_v43   ;;  %5068 = vperm.xlu0 %8000, %v13941_v30  }
 0x7da   : > { %5064 = vperm.xlu1 %7999, %v14189_v49   ;;  %5076 = vperm.xlu0 %8000, %v13949_v52  }
 0x7de   : > { %5072 = vperm.xlu1 %7999, %v14190_v9   ;;  %5084 = vperm.xlu0 %8000, %v13958_v40   ;;  %v14198_v40 = vld [vmem:[#allocation193_spill] sm:$0xff] }
 0x7e2   : > { %5080 = vperm.xlu1 %7999, %v14191_v35   ;;  %5092 = vperm.xlu0 %8000, %v13966_v45  }
 0x7e6   : > { %5088 = vperm.xlu1 %7999, %v14192_v19   ;;  %5100 = vperm.xlu0 %8000, %v13976_v62   ;;  %v14201_v62 = vld [vmem:[#allocation213_spill] sm:$0xff] }
 0x7e8   : > { %v11677_v60 = vpop.permute.xlu0 %4869 }
 0x7e9   : > { %14194 = vst [vmem:[#allocation69_spill] sm:$0xff] %v11677_v60 }
 0x7ea   : > { %5096 = vperm.xlu1 %7999, %v14195_v26   ;;  %5108 = vperm.xlu0 %8000, %v13982_v14   ;;  %v14204_v26 = vld [vmem:[#allocation233_spill] sm:$0xff]  ;;  %v8093_v14 = vmov 11  }
 0x7ec   : > { %v11681_v53 = vpop.permute.xlu1 %4871  ;;  %v11683_v52 = vpop.permute.xlu0 %4873 }
 0x7ed   : > { %14196 = vst [vmem:[#allocation192_spill] sm:$0xff] %v11681_v53  ;;  %14197 = vst [vmem:[#allocation205_spill] sm:$0xff] %v11683_v52 }
 0x7ee   : > { %5104 = vperm.xlu1 %7999, %v14198_v40   ;;  %5116 = vperm.xlu0 %8000, %v13990_v7  }
 0x7f0   : > { %v11687_v45 = vpop.permute.xlu1 %4875  ;;  %v11689_v19 = vpop.permute.xlu0 %4877 }
 0x7f1   : > { %14199 = vst [vmem:[#allocation89_spill] sm:$0xff] %v11687_v45  ;;  %14200 = vst [vmem:[#allocation211_spill] sm:$0xff] %v11689_v19 }
 0x7f2   : > { %5112 = vperm.xlu1 %7999, %v14201_v62   ;;  %8001 = vset.pattern.permute.xlu0 %v8093_v14 }
 0x7f4   : > { %v11692_v8 = vpop.permute.xlu1 %4879  ;;  %v11694_v60 = vpop.permute.xlu0 %4881 }
 0x7f5   : > { %14202 = vst [vmem:[#allocation225_spill] sm:$0xff] %v11692_v8  ;;  %14203 = vst [vmem:[#allocation109_spill] sm:$0xff] %v11694_v60 }
 0x7f6   : > { %5120 = vperm.xlu1 %7999, %v14204_v26  }
 0x7f8   : > { %v11697_v53 = vpop.permute.xlu1 %4883  ;;  %v11699_v52 = vpop.permute.xlu0 %4885 }
 0x7f9   : > { %14205 = vst [vmem:[#allocation242_spill] sm:$0xff] %v11697_v53  ;;  %14206 = vst [vmem:[#allocation128_spill] sm:$0xff] %v11699_v52 }
 0x7fa   : > { %8002 = vset.pattern.permute.xlu1 %v8093_v14 }
 0x7fc   : > { %v11701_v7 = vpop.permute.xlu1 %4887  ;;  %v11703_v45 = vpop.permute.xlu0 %4889 }
 0x7fd   : > { %14207 = vst [vmem:[#allocation217_spill] sm:$0xff] %v11701_v7  ;;  %14208 = vst [vmem:[#allocation253_spill] sm:$0xff] %v11703_v45 }
 0x800   : > { %v11705_v19 = vpop.permute.xlu1 %4891  ;;  %v11707_v62 = vpop.permute.xlu0 %4893 }
 0x801   : > { %14209 = vst [vmem:[#allocation148_spill] sm:$0xff] %v11705_v19  ;;  %14210 = vst [vmem:[#allocation207_spill] sm:$0xff] %v11707_v62 }
 0x804   : > { %v11709_v8 = vpop.permute.xlu1 %4895  ;;  %v11711_v60 = vpop.permute.xlu0 %4897 }
 0x805   : > { %14211 = vst [vmem:[#allocation9_spill] sm:$0xff] %v11709_v8  ;;  %14212 = vst [vmem:[#allocation168_spill] sm:$0xff] %v11711_v60 }
 0x808   : > { %v11713_v26 = vpop.permute.xlu1 %4899  ;;  %v11715_v40 = vpop.permute.xlu0 %4901 }
 0x809   : > { %14213 = vst [vmem:[#allocation212_spill] sm:$0xff] %v11713_v26  ;;  %14214 = vst [vmem:[#allocation75_spill] sm:$0xff] %v11715_v40 }
 0x80c   : > { %v11717_v53 = vpop.permute.xlu1 %4903  ;;  %v11719_v52 = vpop.permute.xlu0 %4905 }
 0x80d   : > { %14215 = vst [vmem:[#allocation188_spill] sm:$0xff] %v11717_v53  ;;  %14216 = vst [vmem:[#allocation231_spill] sm:$0xff] %v11719_v52 }
 0x810   : > { %v11721_v14 = vpop.permute.xlu1 %4907  ;;  %v11723_v7 = vpop.permute.xlu0 %4909 }
 0x811   : > { %14217 = vst [vmem:[#allocation208_spill] sm:$0xff] %v11721_v14  ;;  %14218 = vst [vmem:[#allocation228_spill] sm:$0xff] %v11723_v7 }
 0x814   : > { %v11725_v45 = vpop.permute.xlu1 %4911  ;;  %v11727_v19 = vpop.permute.xlu0 %4913 }
 0x815   : > { %14219 = vst [vmem:[#allocation237_spill] sm:$0xff] %v11725_v45  ;;  %14220 = vst [vmem:[#allocation227_spill] sm:$0xff] %v11727_v19 }
 0x818   : > { %v11729_v62 = vpop.permute.xlu1 %4915  ;;  %v11731_v8 = vpop.permute.xlu0 %4917 }
 0x819   : > { %14221 = vst [vmem:[#allocation245_spill] sm:$0xff] %v11729_v62  ;;  %14222 = vst [vmem:[#allocation256_spill] sm:$0xff] %v11731_v8 }
 0x81c   : > { %v11733_v60 = vpop.permute.xlu1 %4919  ;;  %v11735_v26 = vpop.permute.xlu0 %4921 }
 0x81d   : > { %14223 = vst [vmem:[#allocation232_spill] sm:$0xff] %v11733_v60  ;;  %14224 = vst [vmem:[#allocation16_spill] sm:$0xff] %v11735_v26 }
 0x820   : > { %v11737_v40 = vpop.permute.xlu1 %4923  ;;  %v11739_v53 = vpop.permute.xlu0 %4925 }
 0x821   : > { %14225 = vst [vmem:[#allocation246_spill] sm:$0xff] %v11737_v40  ;;  %14226 = vst [vmem:[#allocation62_spill] sm:$0xff] %v11739_v53 }
 0x824   : > { %v11741_v52 = vpop.permute.xlu1 %4927  ;;  %v11743_v14 = vpop.permute.xlu0 %4929 }
 0x825   : > { %14227 = vst [vmem:[#allocation249_spill] sm:$0xff] %v11741_v52  ;;  %14228 = vst [vmem:[#allocation100_spill] sm:$0xff] %v11743_v14 }
 0x835   : > { %v4997_v7 = vpop.permute.xlu1 %4996  ;;  %v5001_v45 = vpop.permute.xlu0 %5000 }
 0x836   : > { %v5123_v19 = vmul.f32 %v4997_v7, %v14060_v39  ;;  %v5124_v62 = vmul.f32 %v5001_v45, %v14172_v21 }
 0x838   : > { %5187 = vrot.lane.b32.xlu0 %v5123_v19, %s8089_s24  ;;  %5189 = vrot.lane.b32.xlu1 %v5124_v62, %s8089_s24 }
 0x839   : > { %v5005_v8 = vpop.permute.xlu1 %5004  ;;  %v5013_v26 = vpop.permute.xlu0 %5012 }
 0x83a   : > { %v5125_v40 = vmul.f32 %v5005_v8, %v14071_v58  ;;  %v5127_v14 = vmul.f32 %v5013_v26, %v11010_v61 }
 0x83c   : > { %5191 = vrot.lane.b32.xlu0 %v5125_v40, %s8089_s24 }
 0x83d   : > { %v5009_v53 = vpop.permute.xlu1 %5008  ;;  %v5021_v52 = vpop.permute.xlu0 %5020 }
 0x83e   : > { %v5126_v60 = vmul.f32 %v5009_v53, %v14081_v23  ;;  %v5129_v62 = vmul.f32 %v5021_v52, %v11031_v10 }
 0x840   : > { %5193 = vrot.lane.b32.xlu1 %v5126_v60, %s8089_s24  ;;  %5195 = vrot.lane.b32.xlu0 %v5127_v14, %s8089_s24 }
 0x841   : > { %v5017_v7 = vpop.permute.xlu1 %5016  ;;  %v5029_v45 = vpop.permute.xlu0 %5028 }
 0x842   : > { %v5128_v19 = vmul.f32 %v5017_v7, %v14089_v41  ;;  %v5131_v26 = vmul.f32 %v5029_v45, %v11047_v57 }
 0x844   : > { %5197 = vrot.lane.b32.xlu1 %v5128_v19, %s8089_s24  ;;  %5199 = vrot.lane.b32.xlu0 %v5129_v62, %s8089_s24 }
 0x845   : > { %v5025_v40 = vpop.permute.xlu1 %5024  ;;  %v5037_v8 = vpop.permute.xlu0 %5036 }
 0x846   : > { %v5130_v53 = vmul.f32 %v5025_v40, %v14097_v56  ;;  %v5133_v52 = vmul.f32 %v5037_v8, %v11064_v11 }
 0x848   : > { %5201 = vrot.lane.b32.xlu1 %v5130_v53, %s8089_s24  ;;  %5203 = vrot.lane.b32.xlu0 %v5131_v26, %s8089_s24 }
 0x849   : > { %v5033_v60 = vpop.permute.xlu1 %5032  ;;  %v5045_v14 = vpop.permute.xlu0 %5044 }
 0x84a   : > { %v5132_v7 = vmul.f32 %v5033_v60, %v14105_v33  ;;  %v5135_v45 = vmul.f32 %v5045_v14, %v11084_v32 }
 0x84c   : > { %5205 = vrot.lane.b32.xlu1 %v5132_v7, %s8089_s24  ;;  %5207 = vrot.lane.b32.xlu0 %v5133_v52, %s8089_s24 }
 0x84d   : > { %v5041_v62 = vpop.permute.xlu1 %5040  ;;  %v5053_v19 = vpop.permute.xlu0 %5052 }
 0x84e   : > { %v5134_v40 = vmul.f32 %v5041_v62, %v14114_v63  ;;  %v5137_v8 = vmul.f32 %v5053_v19, %v11099_v42 }
 0x850   : > { %5209 = vrot.lane.b32.xlu1 %v5134_v40, %s8089_s24  ;;  %5211 = vrot.lane.b32.xlu0 %v5135_v45, %s8089_s24 }
 0x851   : > { %v5049_v26 = vpop.permute.xlu1 %5048  ;;  %v5061_v53 = vpop.permute.xlu0 %5060 }
 0x852   : > { %v5136_v60 = vmul.f32 %v5049_v26, %v14121_v44  ;;  %v5139_v14 = vmul.f32 %v5061_v53, %v11120_v6 }
 0x854   : > { %5213 = vrot.lane.b32.xlu1 %v5136_v60, %s8089_s24  ;;  %5215 = vrot.lane.b32.xlu0 %v5137_v8, %s8089_s24 }
 0x855   : > { %v5057_v52 = vpop.permute.xlu1 %5056  ;;  %v5069_v7 = vpop.permute.xlu0 %5068 }
 0x856   : > { %v5138_v62 = vmul.f32 %v5057_v52, %v14127_v4  ;;  %v5141_v19 = vmul.f32 %v5069_v7, %v14064_v46 }
 0x858   : > { %5217 = vrot.lane.b32.xlu1 %v5138_v62, %s8089_s24  ;;  %5219 = vrot.lane.b32.xlu0 %v5139_v14, %s8089_s24 }
 0x859   : > { %v5065_v45 = vpop.permute.xlu1 %5064  ;;  %v5077_v40 = vpop.permute.xlu0 %5076 }
 0x85a   : > { %v5140_v26 = vmul.f32 %v5065_v45, %v14132_v24  ;;  %v5143_v53 = vmul.f32 %v5077_v40, %v14076_v34 }
 0x85c   : > { %5221 = vrot.lane.b32.xlu1 %v5140_v26, %s8089_s24  ;;  %5223 = vrot.lane.b32.xlu0 %v5141_v19, %s8089_s24 }
 0x85d   : > { %v5073_v8 = vpop.permute.xlu1 %5072  ;;  %v5085_v60 = vpop.permute.xlu0 %5084 }
 0x85e   : > { %v5142_v52 = vmul.f32 %v5073_v8, %v14137_v1  ;;  %v5145_v7 = vmul.f32 %v5085_v60, %v14086_v15 }
 0x860   : > { %5225 = vrot.lane.b32.xlu1 %v5142_v52, %s8089_s24  ;;  %5227 = vrot.lane.b32.xlu0 %v5143_v53, %s8089_s24 }
 0x861   : > { %v5081_v14 = vpop.permute.xlu1 %5080  ;;  %v5093_v62 = vpop.permute.xlu0 %5092 }
 0x862   : > { %v5144_v45 = vmul.f32 %v5081_v14, %v14142_v38  ;;  %v5147_v40 = vmul.f32 %v5093_v62, %v14094_v29 }
 0x864   : > { %5229 = vrot.lane.b32.xlu1 %v5144_v45, %s8089_s24  ;;  %5231 = vrot.lane.b32.xlu0 %v5145_v7, %s8089_s24 }
 0x865   : > { %v5089_v19 = vpop.permute.xlu1 %5088  ;;  %v5101_v26 = vpop.permute.xlu0 %5100 }
 0x866   : > { %v5146_v8 = vmul.f32 %v5089_v19, %v14148_v0  ;;  %v5149_v60 = vmul.f32 %v5101_v26, %v14102_v51 }
 0x868   : > { %5233 = vrot.lane.b32.xlu1 %v5146_v8, %s8089_s24  ;;  %5235 = vrot.lane.b32.xlu0 %v5147_v40, %s8089_s24 }
 0x869   : > { %v5097_v53 = vpop.permute.xlu1 %5096  ;;  %v5109_v52 = vpop.permute.xlu0 %5108 }
 0x86a   : > { %v5148_v14 = vmul.f32 %v5097_v53, %v14154_v28  ;;  %v5151_v45 = vmul.f32 %v5109_v52, %v14110_v20  ;;  %v14229_v52 = vld [vmem:[#allocation143_spill] sm:$0xff] }
 0x86c   : > { %5237 = vrot.lane.b32.xlu1 %v5148_v14, %s8089_s24  ;;  %5239 = vrot.lane.b32.xlu0 %v5149_v60, %s8089_s24  ;;  %v14230_v14 = vld [vmem:[#allocation153_spill] sm:$0xff] }
 0x86d   : > { %v5105_v7 = vpop.permute.xlu1 %5104  ;;  %v5117_v19 = vpop.permute.xlu0 %5116 }
 0x86e   : > { %v5150_v62 = vmul.f32 %v5105_v7, %v14160_v22  ;;  %v5153_v8 = vmul.f32 %v5117_v19, %v14119_v12  ;;  %v14231_v7 = vld [vmem:[#allocation163_spill] sm:$0xff] }
 0x86f   : > { %v14234_v19 = vld [vmem:[#allocation183_spill] sm:$0xff] }
 0x870   : > { %5241 = vrot.lane.b32.xlu1 %v5150_v62, %s8089_s24  ;;  %5243 = vrot.lane.b32.xlu0 %v5151_v45, %s8089_s24  ;;  %v14232_v45 = vld [vmem:[#allocation173_spill] sm:$0xff] }
 0x871   : > { %v5113_v40 = vpop.permute.xlu1 %5112 }
 0x872   : > { %v5152_v26 = vmul.f32 %v5113_v40, %v14166_v17  ;;  %v14235_v40 = vld [vmem:[#allocation193_spill] sm:$0xff] }
 0x874   : > { %5245 = vrot.lane.b32.xlu1 %v5152_v26, %s8089_s24  ;;  %5247 = vrot.lane.b32.xlu0 %v5153_v8, %s8089_s24 }
 0x875   : > { %v5121_v53 = vpop.permute.xlu1 %5120 }
 0x876   : > { %v5154_v60 = vmul.f32 %v5121_v53, %v14170_v27  ;;  %v14238_v53 = vld [vmem:[#allocation203_spill] sm:$0xff] }
 0x878   : > { %5249 = vrot.lane.b32.xlu1 %v5154_v60, %s8089_s24  ;;  %5316 = vperm.xlu0 %8001, %v14173_v16   ;;  %v14239_v60 = vld [vmem:[#allocation213_spill] sm:$0xff] }
 0x87c   : > { %5320 = vperm.xlu1 %8002, %v14174_v25   ;;  %5328 = vperm.xlu0 %8001, %v14177_v59  }
 0x880   : > { %5324 = vperm.xlu1 %8002, %v14175_v47   ;;  %5336 = vperm.xlu0 %8001, %v14179_v36  }
 0x884   : > { %5332 = vperm.xlu1 %8002, %v14176_v48   ;;  %5344 = vperm.xlu0 %8001, %v14181_v50  }
 0x888   : > { %5340 = vperm.xlu1 %8002, %v14178_v3   ;;  %5352 = vperm.xlu0 %8001, %v14183_v13  }
 0x88c   : > { %5348 = vperm.xlu1 %8002, %v14180_v18   ;;  %5360 = vperm.xlu0 %8001, %v14185_v31  }
 0x890   : > { %5356 = vperm.xlu1 %8002, %v14182_v54   ;;  %5368 = vperm.xlu0 %8001, %v14187_v55  }
 0x894   : > { %5364 = vperm.xlu1 %8002, %v14184_v37   ;;  %5376 = vperm.xlu0 %8001, %v14188_v43  }
 0x898   : > { %5372 = vperm.xlu1 %8002, %v14186_v2   ;;  %5384 = vperm.xlu0 %8001, %v14189_v49  }
 0x89c   : > { %5380 = vperm.xlu1 %8002, %v13935_v5   ;;  %5392 = vperm.xlu0 %8001, %v14190_v9  }
 0x8a0   : > { %5388 = vperm.xlu1 %8002, %v13941_v30   ;;  %5400 = vperm.xlu0 %8001, %v14191_v35  }
 0x8a4   : > { %5396 = vperm.xlu1 %8002, %v14229_v52   ;;  %5408 = vperm.xlu0 %8001, %v14230_v14  }
 0x8a8   : > { %5404 = vperm.xlu1 %8002, %v14231_v7   ;;  %5416 = vperm.xlu0 %8001, %v14232_v45   ;;  %v14242_v7 = vld [vmem:[#allocation223_spill] sm:$0xff]  ;;  %v14243_v45 = vld [vmem:[#allocation233_spill] sm:$0xff] }
 0x8aa   : > { %v11834_v62 = vpop.permute.xlu0 %5187  ;;  %v11838_v8 = vpop.permute.xlu1 %5189 }
 0x8ab   : > { %14233 = vst [vmem:[#allocation244_spill] sm:$0xff] %v11834_v62  ;;  %14236 = vst [vmem:[#allocation123_spill] sm:$0xff] %v11838_v8 }
 0x8ac   : > { %5412 = vperm.xlu1 %8002, %v14234_v19   ;;  %5424 = vperm.xlu0 %8001, %v14235_v40   ;;  %v14246_v40 = vld [vmem:[#allocation240_spill] sm:$0xff] }
 0x8ae   : > { %v11840_v26 = vpop.permute.xlu0 %5191 }
 0x8af   : > { %14237 = vst [vmem:[#allocation247_spill] sm:$0xff] %v11840_v26 }
 0x8b0   : > { %5420 = vperm.xlu1 %8002, %v14238_v53   ;;  %5432 = vperm.xlu0 %8001, %v14239_v60   ;;  %v8094_v53 = vmov 12  }
 0x8b2   : > { %v11844_v35 = vpop.permute.xlu1 %5193  ;;  %v11846_v14 = vpop.permute.xlu0 %5195 }
 0x8b3   : > { %14240 = vst [vmem:[#allocation258_spill] sm:$0xff] %v11844_v35  ;;  %14241 = vst [vmem:[#allocation37_spill] sm:$0xff] %v11846_v14 }
 0x8b4   : > { %5428 = vperm.xlu1 %8002, %v14242_v7   ;;  %5440 = vperm.xlu0 %8001, %v14243_v45  }
 0x8b6   : > { %v11850_v62 = vpop.permute.xlu1 %5197  ;;  %v11852_v19 = vpop.permute.xlu0 %5199 }
 0x8b7   : > { %14244 = vst [vmem:[#allocation190_spill] sm:$0xff] %v11850_v62  ;;  %14245 = vst [vmem:[#allocation255_spill] sm:$0xff] %v11852_v19 }
 0x8b8   : > { %5436 = vperm.xlu1 %8002, %v14246_v40   ;;  %8004 = vset.pattern.permute.xlu0 %v8094_v53 }
 0x8ba   : > { %v11855_v8 = vpop.permute.xlu1 %5201  ;;  %v11857_v26 = vpop.permute.xlu0 %5203 }
 0x8bb   : > { %14247 = vst [vmem:[#allocation259_spill] sm:$0xff] %v11855_v8  ;;  %14248 = vst [vmem:[#allocation36_spill] sm:$0xff] %v11857_v26 }
 0x8bc   : > { %8003 = vset.pattern.permute.xlu1 %v8094_v53 }
 0x8be   : > { %v11859_v35 = vpop.permute.xlu1 %5205  ;;  %v11861_v14 = vpop.permute.xlu0 %5207 }
 0x8bf   : > { %14249 = vst [vmem:[#allocation60_spill] sm:$0xff] %v11859_v35  ;;  %14250 = vst [vmem:[#allocation34_spill] sm:$0xff] %v11861_v14 }
 0x8c2   : > { %v11863_v60 = vpop.permute.xlu1 %5209  ;;  %v11865_v45 = vpop.permute.xlu0 %5211 }
 0x8c3   : > { %14251 = vst [vmem:[#allocation57_spill] sm:$0xff] %v11863_v60  ;;  %14252 = vst [vmem:[#allocation80_spill] sm:$0xff] %v11865_v45 }
 0x8c6   : > { %v11867_v62 = vpop.permute.xlu1 %5213  ;;  %v11869_v19 = vpop.permute.xlu0 %5215 }
 0x8c7   : > { %14253 = vst [vmem:[#allocation27_spill] sm:$0xff] %v11867_v62  ;;  %14254 = vst [vmem:[#allocation77_spill] sm:$0xff] %v11869_v19 }
 0x8ca   : > { %v11871_v40 = vpop.permute.xlu1 %5217  ;;  %v11873_v8 = vpop.permute.xlu0 %5219 }
 0x8cb   : > { %14255 = vst [vmem:[#allocation67_spill] sm:$0xff] %v11871_v40  ;;  %14256 = vst [vmem:[#allocation93_spill] sm:$0xff] %v11873_v8 }
 0x8ce   : > { %v11875_v26 = vpop.permute.xlu1 %5221  ;;  %v11877_v7 = vpop.permute.xlu0 %5223 }
 0x8cf   : > { %14257 = vst [vmem:[#allocation45_spill] sm:$0xff] %v11875_v26  ;;  %14258 = vst [vmem:[#allocation41_spill] sm:$0xff] %v11877_v7 }
 0x8d2   : > { %v11879_v53 = vpop.permute.xlu1 %5225  ;;  %v11881_v35 = vpop.permute.xlu0 %5227 }
 0x8d3   : > { %14259 = vst [vmem:[#allocation86_spill] sm:$0xff] %v11879_v53  ;;  %14260 = vst [vmem:[#allocation142_spill] sm:$0xff] %v11881_v35 }
 0x8d6   : > { %v11883_v14 = vpop.permute.xlu1 %5229  ;;  %v11885_v60 = vpop.permute.xlu0 %5231 }
 0x8d7   : > { %14261 = vst [vmem:[#allocation79_spill] sm:$0xff] %v11883_v14  ;;  %14262 = vst [vmem:[#allocation136_spill] sm:$0xff] %v11885_v60 }
 0x8da   : > { %v11887_v45 = vpop.permute.xlu1 %5233  ;;  %v11889_v62 = vpop.permute.xlu0 %5235 }
 0x8db   : > { %14263 = vst [vmem:[#allocation84_spill] sm:$0xff] %v11887_v45  ;;  %14264 = vst [vmem:[#allocation61_spill] sm:$0xff] %v11889_v62 }
 0x8de   : > { %v11891_v19 = vpop.permute.xlu1 %5237  ;;  %v11893_v40 = vpop.permute.xlu0 %5239 }
 0x8df   : > { %14265 = vst [vmem:[#allocation141_spill] sm:$0xff] %v11891_v19  ;;  %14266 = vst [vmem:[#allocation160_spill] sm:$0xff] %v11893_v40 }
 0x8e2   : > { %v11895_v8 = vpop.permute.xlu1 %5241  ;;  %v11897_v26 = vpop.permute.xlu0 %5243 }
 0x8e3   : > { %14267 = vst [vmem:[#allocation85_spill] sm:$0xff] %v11895_v8  ;;  %14268 = vst [vmem:[#allocation146_spill] sm:$0xff] %v11897_v26 }
 0x8e6   : > { %v11899_v7 = vpop.permute.xlu1 %5245  ;;  %v11901_v53 = vpop.permute.xlu0 %5247 }
 0x8e7   : > { %14269 = vst [vmem:[#allocation101_spill] sm:$0xff] %v11899_v7 }
 0x8ea   : > { %v11903_v35 = vpop.permute.xlu1 %5249 }
 0x8eb   : > { %14270 = vst [vmem:[#allocation126_spill] sm:$0xff] %v11903_v35 }
 0x8f7   : > { %v5317_v14 = vpop.permute.xlu0 %5316 }
 0x8f8   : > { %v5443_v60 = vmul.f32 %v5317_v14, %v14060_v39 }
 0x8fa   : > { %5507 = vrot.lane.b32.xlu1 %v5443_v60, %s8088_s23 }
 0x8fb   : > { %v5321_v45 = vpop.permute.xlu1 %5320  ;;  %v5329_v62 = vpop.permute.xlu0 %5328 }
 0x8fc   : > { %v5444_v19 = vmul.f32 %v5321_v45, %v14172_v21  ;;  %v5446_v26 = vmul.f32 %v5329_v62, %v14081_v23 }
 0x8fe   : > { %5509 = vrot.lane.b32.xlu0 %v5444_v19, %s8088_s23 }
 0x8ff   : > { %v5325_v8 = vpop.permute.xlu1 %5324  ;;  %v5337_v40 = vpop.permute.xlu0 %5336 }
 0x900   : > { %v5445_v7 = vmul.f32 %v5325_v8, %v14071_v58  ;;  %v5448_v14 = vmul.f32 %v5337_v40, %v14089_v41 }
 0x902   : > { %5511 = vrot.lane.b32.xlu1 %v5445_v7, %s8088_s23  ;;  %5513 = vrot.lane.b32.xlu0 %v5446_v26, %s8088_s23 }
 0x903   : > { %v5333_v35 = vpop.permute.xlu1 %5332  ;;  %v5345_v39 = vpop.permute.xlu0 %5344 }
 0x904   : > { %v5447_v60 = vmul.f32 %v5333_v35, %v11010_v61  ;;  %v5450_v23 = vmul.f32 %v5345_v39, %v14097_v56 }
 0x906   : > { %5515 = vrot.lane.b32.xlu1 %v5447_v60, %s8088_s23  ;;  %5517 = vrot.lane.b32.xlu0 %v5448_v14, %s8088_s23 }
 0x907   : > { %v5341_v21 = vpop.permute.xlu1 %5340  ;;  %v5353_v45 = vpop.permute.xlu0 %5352 }
 0x908   : > { %v5449_v58 = vmul.f32 %v5341_v21, %v11031_v10  ;;  %v5452_v41 = vmul.f32 %v5353_v45, %v14105_v33 }
 0x90a   : > { %5519 = vrot.lane.b32.xlu1 %v5449_v58, %s8088_s23  ;;  %5521 = vrot.lane.b32.xlu0 %v5450_v23, %s8088_s23 }
 0x90b   : > { %v5349_v7 = vpop.permute.xlu1 %5348  ;;  %v5361_v62 = vpop.permute.xlu0 %5360 }
 0x90c   : > { %v5451_v61 = vmul.f32 %v5349_v7, %v11047_v57  ;;  %v5454_v56 = vmul.f32 %v5361_v62, %v14114_v63 }
 0x90e   : > { %5523 = vrot.lane.b32.xlu1 %v5451_v61, %s8088_s23  ;;  %5525 = vrot.lane.b32.xlu0 %v5452_v41, %s8088_s23 }
 0x90f   : > { %v5357_v35 = vpop.permute.xlu1 %5356  ;;  %v5369_v19 = vpop.permute.xlu0 %5368 }
 0x910   : > { %v5453_v10 = vmul.f32 %v5357_v35, %v11064_v11  ;;  %v5456_v33 = vmul.f32 %v5369_v19, %v14121_v44 }
 0x912   : > { %5527 = vrot.lane.b32.xlu1 %v5453_v10, %s8088_s23  ;;  %5529 = vrot.lane.b32.xlu0 %v5454_v56, %s8088_s23 }
 0x913   : > { %v5365_v40 = vpop.permute.xlu1 %5364  ;;  %v5377_v8 = vpop.permute.xlu0 %5376 }
 0x914   : > { %v5455_v57 = vmul.f32 %v5365_v40, %v11084_v32  ;;  %v5458_v63 = vmul.f32 %v5377_v8, %v14127_v4 }
 0x916   : > { %5531 = vrot.lane.b32.xlu1 %v5455_v57, %s8088_s23  ;;  %5533 = vrot.lane.b32.xlu0 %v5456_v33, %s8088_s23 }
 0x917   : > { %v5373_v26 = vpop.permute.xlu1 %5372  ;;  %v5385_v39 = vpop.permute.xlu0 %5384 }
 0x918   : > { %v5457_v11 = vmul.f32 %v5373_v26, %v11099_v42  ;;  %v5460_v44 = vmul.f32 %v5385_v39, %v14132_v24  ;;  %v14276_v26 = vld [vmem:[#allocation173_spill] sm:$0xff]  ;;  %v14277_v39 = vld [vmem:[#allocation223_spill] sm:$0xff] }
 0x91a   : > { %5535 = vrot.lane.b32.xlu1 %v5457_v11, %s8088_s23  ;;  %5537 = vrot.lane.b32.xlu0 %v5458_v63, %s8088_s23 }
 0x91b   : > { %v5381_v14 = vpop.permute.xlu1 %5380  ;;  %v5393_v60 = vpop.permute.xlu0 %5392 }
 0x91c   : > { %v5459_v32 = vmul.f32 %v5381_v14, %v11120_v6  ;;  %v5462_v4 = vmul.f32 %v5393_v60, %v14137_v1  ;;  %v14278_v14 = vld [vmem:[#allocation193_spill] sm:$0xff]  ;;  %v14279_v60 = vld [vmem:[#allocation240_spill] sm:$0xff] }
 0x91e   : > { %5539 = vrot.lane.b32.xlu1 %v5459_v32, %s8088_s23  ;;  %5541 = vrot.lane.b32.xlu0 %v5460_v44, %s8088_s23 }
 0x91f   : > { %v5389_v21 = vpop.permute.xlu1 %5388  ;;  %v5401_v45 = vpop.permute.xlu0 %5400 }
 0x920   : > { %v5461_v42 = vmul.f32 %v5389_v21, %v14064_v46  ;;  %v5464_v24 = vmul.f32 %v5401_v45, %v14142_v38  ;;  %v14280_v21 = vld [vmem:[#allocation213_spill] sm:$0xff]  ;;  %v8095_v45 = vmov 13  }
 0x922   : > { %5543 = vrot.lane.b32.xlu1 %v5461_v42, %s8088_s23  ;;  %5545 = vrot.lane.b32.xlu0 %v5462_v4, %s8088_s23 }
 0x923   : > { %v5397_v23 = vpop.permute.xlu1 %5396  ;;  %v5409_v58 = vpop.permute.xlu0 %5408 }
 0x924   : > { %v5463_v6 = vmul.f32 %v5397_v23, %v14076_v34  ;;  %v5466_v1 = vmul.f32 %v5409_v58, %v14148_v0  ;;  %v14281_v23 = vld [vmem:[#allocation233_spill] sm:$0xff] }
 0x926   : > { %5547 = vrot.lane.b32.xlu1 %v5463_v6, %s8088_s23  ;;  %5549 = vrot.lane.b32.xlu0 %v5464_v24, %s8088_s23 }
 0x927   : > { %v5405_v7 = vpop.permute.xlu1 %5404  ;;  %v5417_v62 = vpop.permute.xlu0 %5416 }
 0x928   : > { %v5465_v46 = vmul.f32 %v5405_v7, %v14086_v15  ;;  %v5468_v38 = vmul.f32 %v5417_v62, %v14154_v28 }
 0x92a   : > { %5551 = vrot.lane.b32.xlu1 %v5465_v46, %s8088_s23  ;;  %5553 = vrot.lane.b32.xlu0 %v5466_v1, %s8088_s23 }
 0x92b   : > { %v5413_v41 = vpop.permute.xlu1 %5412  ;;  %v5425_v61 = vpop.permute.xlu0 %5424 }
 0x92c   : > { %v5467_v34 = vmul.f32 %v5413_v41, %v14094_v29  ;;  %v5470_v0 = vmul.f32 %v5425_v61, %v14160_v22 }
 0x92e   : > { %5555 = vrot.lane.b32.xlu1 %v5467_v34, %s8088_s23  ;;  %5557 = vrot.lane.b32.xlu0 %v5468_v38, %s8088_s23 }
 0x92f   : > { %v5421_v35 = vpop.permute.xlu1 %5420  ;;  %v5433_v19 = vpop.permute.xlu0 %5432 }
 0x930   : > { %v5469_v15 = vmul.f32 %v5421_v35, %v14102_v51  ;;  %v5472_v10 = vmul.f32 %v5433_v19, %v14166_v17  ;;  %v14272_v51 = vld [vmem:[#allocation133_spill] sm:$0xff]  ;;  %v14275_v17 = vld [vmem:[#allocation203_spill] sm:$0xff] }
 0x932   : > { %5559 = vrot.lane.b32.xlu1 %v5469_v15, %s8088_s23  ;;  %5561 = vrot.lane.b32.xlu0 %v5470_v0, %s8088_s23 }
 0x933   : > { %v5429_v56 = vpop.permute.xlu1 %5428  ;;  %v5441_v29 = vpop.permute.xlu0 %5440 }
 0x934   : > { %v5471_v28 = vmul.f32 %v5429_v56, %v14110_v20  ;;  %v5474_v8 = vmul.f32 %v5441_v29, %v14170_v27  ;;  %v14271_v27 = vld [vmem:[#allocation163_spill] sm:$0xff] }
 0x935   : > { %v14273_v20 = vld [vmem:[#allocation183_spill] sm:$0xff] }
 0x936   : > { %5563 = vrot.lane.b32.xlu1 %v5471_v28, %s8088_s23  ;;  %5565 = vrot.lane.b32.xlu0 %v5472_v10, %s8088_s23 }
 0x937   : > { %v5437_v40 = vpop.permute.xlu1 %5436 }
 0x938   : > { %v5473_v22 = vmul.f32 %v5437_v40, %v14119_v12  ;;  %v14274_v12 = vld [vmem:[#allocation153_spill] sm:$0xff] }
 0x93a   : > { %5567 = vrot.lane.b32.xlu1 %v5473_v22, %s8088_s23  ;;  %5569 = vrot.lane.b32.xlu0 %v5474_v8, %s8088_s23 }
 0x93e   : > { %5636 = vperm.xlu1 %8003, %v14173_v16   ;;  %5640 = vperm.xlu0 %8004, %v14174_v25  }
 0x942   : > { %5644 = vperm.xlu1 %8003, %v14175_v47   ;;  %5652 = vperm.xlu0 %8004, %v14176_v48  }
 0x946   : > { %5648 = vperm.xlu1 %8003, %v14177_v59   ;;  %5660 = vperm.xlu0 %8004, %v14178_v3  }
 0x94a   : > { %5656 = vperm.xlu1 %8003, %v14179_v36   ;;  %5668 = vperm.xlu0 %8004, %v14180_v18  }
 0x94e   : > { %5664 = vperm.xlu1 %8003, %v14181_v50   ;;  %5676 = vperm.xlu0 %8004, %v14182_v54  }
 0x952   : > { %5672 = vperm.xlu1 %8003, %v14183_v13   ;;  %5684 = vperm.xlu0 %8004, %v14184_v37  }
 0x956   : > { %5680 = vperm.xlu1 %8003, %v14185_v31   ;;  %5692 = vperm.xlu0 %8004, %v14186_v2  }
 0x95a   : > { %5688 = vperm.xlu1 %8003, %v14187_v55   ;;  %5700 = vperm.xlu0 %8004, %v13935_v5  }
 0x95e   : > { %5696 = vperm.xlu1 %8003, %v14188_v43   ;;  %5708 = vperm.xlu0 %8004, %v13941_v30  }
 0x962   : > { %5704 = vperm.xlu1 %8003, %v14189_v49   ;;  %5716 = vperm.xlu0 %8004, %v14229_v52  }
 0x966   : > { %5712 = vperm.xlu1 %8003, %v14190_v9   ;;  %5724 = vperm.xlu0 %8004, %v14271_v27  }
 0x96a   : > { %5720 = vperm.xlu1 %8003, %v14272_v51   ;;  %5732 = vperm.xlu0 %8004, %v14273_v20  }
 0x96c   : > { %v11995_v33 = vpop.permute.xlu1 %5507 }
 0x96e   : > { %5728 = vperm.xlu1 %8003, %v14274_v12   ;;  %5740 = vperm.xlu0 %8004, %v14275_v17  }
 0x970   : > { %v11997_v57 = vpop.permute.xlu0 %5509 }
 0x972   : > { %5736 = vperm.xlu1 %8003, %v14276_v26   ;;  %5748 = vperm.xlu0 %8004, %v14277_v39  }
 0x974   : > { %v12001_v63 = vpop.permute.xlu1 %5511  ;;  %v12003_v11 = vpop.permute.xlu0 %5513 }
 0x976   : > { %5744 = vperm.xlu1 %8003, %v14278_v14   ;;  %5756 = vperm.xlu0 %8004, %v14279_v60  }
 0x978   : > { %v12007_v44 = vpop.permute.xlu1 %5515  ;;  %v12009_v32 = vpop.permute.xlu0 %5517 }
 0x97a   : > { %5752 = vperm.xlu1 %8003, %v14280_v21   ;;  %8005 = vset.pattern.permute.xlu0 %v8095_v45 }
 0x97b   : > { %5828 = vperm.xlu0 %8005, %v14173_v16  }
 0x97c   : > { %v12013_v4 = vpop.permute.xlu1 %5519  ;;  %v12015_v42 = vpop.permute.xlu0 %5521 }
 0x97e   : > { %5760 = vperm.xlu1 %8003, %v14281_v23  }
 0x97f   : > { %5840 = vperm.xlu0 %8005, %v14177_v59  }
 0x980   : > { %v12019_v58 = vpop.permute.xlu1 %5523  ;;  %v12021_v24 = vpop.permute.xlu0 %5525 }
 0x982   : > { %8006 = vset.pattern.permute.xlu1 %v8095_v45 }
 0x983   : > { %5832 = vperm.xlu1 %8006, %v14174_v25   ;;  %5848 = vperm.xlu0 %8005, %v14179_v36   ;;  %v14302_v25 = vld [vmem:[#allocation186_spill] sm:$0xff] }
 0x984   : > { %v12025_v6 = vpop.permute.xlu1 %5527  ;;  %v12027_v7 = vpop.permute.xlu0 %5529 }
 0x987   : > { %5836 = vperm.xlu1 %8006, %v14175_v47   ;;  %5856 = vperm.xlu0 %8005, %v14181_v50   ;;  %v14293_v50 = vld [vmem:[#allocation138_spill] sm:$0xff] }
 0x988   : > { %v12031_v62 = vpop.permute.xlu1 %5531  ;;  %v12033_v1 = vpop.permute.xlu0 %5533 }
 0x98b   : > { %5844 = vperm.xlu1 %8006, %v14176_v48   ;;  %5864 = vperm.xlu0 %8005, %v14183_v13  }
 0x98c   : > { %v12037_v46 = vpop.permute.xlu1 %5535  ;;  %v12039_v41 = vpop.permute.xlu0 %5537 }
 0x98f   : > { %5852 = vperm.xlu1 %8006, %v14178_v3   ;;  %5872 = vperm.xlu0 %8005, %v14185_v31   ;;  %v14290_v31 = vld [vmem:[#allocation53_spill] sm:$0xff] }
 0x990   : > { %v12043_v61 = vpop.permute.xlu1 %5539  ;;  %v12045_v38 = vpop.permute.xlu0 %5541 }
 0x993   : > { %5860 = vperm.xlu1 %8006, %v14180_v18   ;;  %5880 = vperm.xlu0 %8005, %v14187_v55   ;;  %v14289_v18 = vld [vmem:[#allocation192_spill] sm:$0xff] }
 0x994   : > { %v12049_v34 = vpop.permute.xlu1 %5543  ;;  %v12051_v35 = vpop.permute.xlu0 %5545 }
 0x997   : > { %5868 = vperm.xlu1 %8006, %v14182_v54   ;;  %5888 = vperm.xlu0 %8005, %v14188_v43  }
 0x998   : > { %v12055_v19 = vpop.permute.xlu1 %5547  ;;  %v12057_v0 = vpop.permute.xlu0 %5549 }
 0x99b   : > { %5876 = vperm.xlu1 %8006, %v14184_v37   ;;  %5896 = vperm.xlu0 %8005, %v14189_v49   ;;  %v14282_v37 = vld [vmem:[#allocation73_spill] sm:$0xff] }
 0x99c   : > { %v12063_v15 = vpop.permute.xlu1 %5551  ;;  %v12065_v56 = vpop.permute.xlu0 %5553 }
 0x99f   : > { %5884 = vperm.xlu1 %8006, %v14186_v2   ;;  %5904 = vperm.xlu0 %8005, %v14190_v9  }
 0x9a0   : > { %v12069_v10 = vpop.permute.xlu1 %5555  ;;  %v12071_v28 = vpop.permute.xlu0 %5557 }
 0x9a3   : > { %5892 = vperm.xlu1 %8006, %v13935_v5   ;;  %5912 = vperm.xlu0 %8005, %v14272_v51   ;;  %v13257_v5 = vmov 14  }
 0x9a4   : > { %v12077_v29 = vpop.permute.xlu1 %5559  ;;  %v12079_v40 = vpop.permute.xlu0 %5561 }
 0x9a7   : > { %5900 = vperm.xlu1 %8006, %v13941_v30   ;;  %5920 = vperm.xlu0 %8005, %v14274_v12   ;;  %v14285_v12 = vld [vmem:[#allocation69_spill] sm:$0xff] }
 0x9a8   : > { %v12083_v8 = vpop.permute.xlu1 %5563  ;;  %v12085_v22 = vpop.permute.xlu0 %5565 }
 0x9ab   : > { %5908 = vperm.xlu1 %8006, %v14229_v52   ;;  %5928 = vperm.xlu0 %8005, %v14276_v26   ;;  %v14283_v26 = vld [vmem:[#allocation185_spill] sm:$0xff] }
 0x9ac   : > { %v12091_v45 = vpop.permute.xlu1 %5567  ;;  %v12093_v2 = vpop.permute.xlu0 %5569  ;;  %v4963_v54 = vadd.f32 %v14283_v26, %v14282_v37 }
 0x9af   : > { %5916 = vperm.xlu1 %8006, %v14271_v27   ;;  %5936 = vperm.xlu0 %8005, %v14278_v14   ;;  %v14284_v14 = vld [vmem:[#allocation56_spill] sm:$0xff]  ;;  %v14291_v27 = vld [vmem:[#allocation89_spill] sm:$0xff] }
 0x9b0   : > { %v4964_v49 = vadd.f32 %v14285_v12, %v14284_v14  ;;  %v4967_v51 = vadd.f32 %v14291_v27, %v14290_v31  ;;  %v14292_v14 = vld [vmem:[#allocation200_spill] sm:$0xff]  ;;  %v14298_v31 = vld [vmem:[#allocation43_spill] sm:$0xff]  ;;  %v14299_v27 = vld [vmem:[#allocation205_spill] sm:$0xff] }
 0x9b1   : > { %v4966_v52 = vadd.f32 %v14299_v27, %v14298_v31 }
 0x9b3   : > { %5924 = vperm.xlu1 %8006, %v14273_v20   ;;  %5944 = vperm.xlu0 %8005, %v14280_v21   ;;  %v14286_v21 = vld [vmem:[#allocation123_spill] sm:$0xff] }
 0x9b4   : > { %v5284_v20 = vadd.f32 %v14286_v21, %v4964_v49  ;;  %v14294_v49 = vld [vmem:[#allocation247_spill] sm:$0xff] }
 0x9b6   : > { %v5604_v12 = vadd.f32 %v11997_v57, %v5284_v20 }
 0x9b7   : > { %5932 = vperm.xlu1 %8006, %v14275_v17   ;;  %5952 = vperm.xlu0 %8005, %v14281_v23   ;;  %v14287_v17 = vld [vmem:[#allocation244_spill] sm:$0xff]  ;;  %v14288_v23 = vld [vmem:[#allocation171_spill] sm:$0xff] }
 0x9b8   : > { %v5283_v43 = vadd.f32 %v14287_v17, %v4963_v54  ;;  %v4965_v55 = vadd.f32 %v14289_v18, %v14288_v23  ;;  %v14295_v17 = vld [vmem:[#allocation37_spill] sm:$0xff] }
 0x9b9   : > { %v5287_v21 = vadd.f32 %v14295_v17, %v4967_v51 }
 0x9ba   : > { %v5603_v26 = vadd.f32 %v11995_v33, %v5283_v43  ;;  %v5285_v54 = vadd.f32 %v14294_v49, %v4965_v55  ;;  %v14300_v43 = vld [vmem:[#allocation147_spill] sm:$0xff]  ;;  %v14301_v33 = vld [vmem:[#allocation225_spill] sm:$0xff]  ;;  %v14303_v49 = vld [vmem:[#allocation196_spill] sm:$0xff] }
 0x9bb   : > { %5940 = vperm.xlu1 %8006, %v14277_v39   ;;  %8008 = vset.pattern.permute.xlu0 %v13257_v5  ;;  %v4969_v20 = vadd.f32 %v14301_v33, %v14300_v43  ;;  %v14309_v43 = vld [vmem:[#allocation28_spill] sm:$0xff]  ;;  %v14310_v33 = vld [vmem:[#allocation211_spill] sm:$0xff] }
 0x9bd   : > { %v5637_v13 = vpop.permute.xlu1 %5636  ;;  %v5641_v37 = vpop.permute.xlu0 %5640 }
 0x9be   : > { %v5763_v39 = vmul.f32 %v5637_v13, %v14292_v14  ;;  %v5764_v5 = vmul.f32 %v5641_v37, %v14293_v50  ;;  %v5605_v37 = vadd.f32 %v12001_v63, %v5285_v54  ;;  %v14311_v63 = vld [vmem:[#allocation230_spill] sm:$0xff] }
 0x9bf   : > { %5948 = vperm.xlu1 %8006, %v14279_v60   ;;  %v5607_v60 = vadd.f32 %v12007_v44, %v5287_v21  ;;  %v14312_v54 = vld [vmem:[#allocation242_spill] sm:$0xff] }
 0x9c0   : > { %v12114_v18 = vadd.f32 %v5763_v39, %v5603_v26  ;;  %v12116_v23 = vadd.f32 %v5764_v5, %v5604_v12  ;;  %v14304_v39 = vmov 14   ;;  %v14305_v5 = vld [vmem:[#allocation258_spill] sm:$0xff]  ;;  %v14306_v12 = vld [vmem:[#allocation255_spill] sm:$0xff]  ;;  %v4971_v44 = vadd.f32 %v14312_v54, %v14311_v63  ;;  %v14320_v63 = vld [vmem:[#allocation109_spill] sm:$0xff] }
 0x9c1   : > { %v5645_v57 = vpop.permute.xlu1 %5644  ;;  %v5653_v13 = vpop.permute.xlu0 %5652  ;;  %v5286_v26 = vadd.f32 %v14305_v5, %v4966_v52  ;;  %v5289_v17 = vadd.f32 %v14306_v12, %v4969_v20  ;;  %v14314_v5 = vld [vmem:[#allocation155_spill] sm:$0xff] }
 0x9c2   : > { %14296 = vst [vmem:[#allocation159_spill] sm:$0xff] %v12114_v18  ;;  %14297 = vst [vmem:[#allocation115_spill] sm:$0xff] %v12116_v23  ;;  %v5765_v55 = vmul.f32 %v5645_v57, %v14302_v25  ;;  %v5767_v51 = vmul.f32 %v5653_v13, %v14303_v49  ;;  %v4968_v18 = vadd.f32 %v14310_v33, %v14309_v43  ;;  %v14319_v33 = vld [vmem:[#allocation59_spill] sm:$0xff] }
 0x9c3   : > { %8007 = vset.pattern.permute.xlu1 %v14304_v39  ;;  %v5606_v13 = vadd.f32 %v12003_v11, %v5286_v26  ;;  %v5609_v23 = vadd.f32 %v12013_v4, %v5289_v17  ;;  %v14313_v39 = vld [vmem:[#allocation130_spill] sm:$0xff]  ;;  %v4970_v54 = vadd.f32 %v14320_v63, %v14319_v33  ;;  %v14329_v63 = vld [vmem:[#allocation83_spill] sm:$0xff] }
 0x9c4   : > { %v12129_v31 = vadd.f32 %v5765_v55, %v5605_v37  ;;  %v12131_v27 = vadd.f32 %v5767_v51, %v5607_v60  ;;  %v14315_v37 = vld [vmem:[#allocation190_spill] sm:$0xff]  ;;  %v14316_v60 = vld [vmem:[#allocation36_spill] sm:$0xff] }
 0x9c5   : > { %v5649_v21 = vpop.permute.xlu1 %5648  ;;  %v5661_v57 = vpop.permute.xlu0 %5660  ;;  %v5288_v55 = vadd.f32 %v14315_v37, %v4968_v18  ;;  %v5291_v51 = vadd.f32 %v14316_v60, %v4971_v44  ;;  %v14324_v37 = vld [vmem:[#allocation74_spill] sm:$0xff] }
 0x9c6   : > { %14307 = vst [vmem:[#allocation18_spill] sm:$0xff] %v12129_v31  ;;  %14308 = vst [vmem:[#allocation144_spill] sm:$0xff] %v12131_v27  ;;  %v5766_v52 = vmul.f32 %v5649_v21, %v14313_v39  ;;  %v5769_v20 = vmul.f32 %v5661_v57, %v14314_v5  ;;  %v14321_v27 = vld [vmem:[#allocation29_spill] sm:$0xff]  ;;  %v14323_v57 = vld [vmem:[#allocation71_spill] sm:$0xff] }
 0x9c7   : > { %v14322_v31 = vld [vmem:[#allocation217_spill] sm:$0xff]  ;;  %v5608_v17 = vadd.f32 %v12009_v32, %v5288_v55  ;;  %v5611_v21 = vadd.f32 %v12019_v58, %v5291_v51 }
 0x9c8   : > { %v12143_v12 = vadd.f32 %v5766_v52, %v5606_v13  ;;  %v12145_v43 = vadd.f32 %v5769_v20, %v5609_v23  ;;  %v4973_v11 = vadd.f32 %v14322_v31, %v14321_v27  ;;  %v14325_v13 = vld [vmem:[#allocation259_spill] sm:$0xff]  ;;  %v14326_v23 = vld [vmem:[#allocation34_spill] sm:$0xff]  ;;  %v14330_v31 = vld [vmem:[#allocation128_spill] sm:$0xff] }
 0x9c9   : > { %v5657_v26 = vpop.permute.xlu1 %5656  ;;  %v5669_v4 = vpop.permute.xlu0 %5668  ;;  %v5290_v52 = vadd.f32 %v14325_v13, %v4970_v54  ;;  %v4972_v27 = vadd.f32 %v14330_v31, %v14329_v63  ;;  %v14334_v13 = vld [vmem:[#allocation68_spill] sm:$0xff]  ;;  %v14339_v31 = vld [vmem:[#allocation103_spill] sm:$0xff] }
 0x9ca   : > { %14317 = vst [vmem:[#allocation99_spill] sm:$0xff] %v12143_v12  ;;  %14318 = vst [vmem:[#allocation120_spill] sm:$0xff] %v12145_v43  ;;  %v5768_v18 = vmul.f32 %v5657_v26, %v14323_v57  ;;  %v5771_v44 = vmul.f32 %v5669_v4, %v14324_v37  ;;  %v5293_v20 = vadd.f32 %v14326_v23, %v4973_v11  ;;  %v14331_v43 = vld [vmem:[#allocation42_spill] sm:$0xff]  ;;  %v14332_v12 = vld [vmem:[#allocation148_spill] sm:$0xff] }
 0x9cb   : > { %v4975_v32 = vadd.f32 %v14332_v12, %v14331_v43  ;;  %v5610_v51 = vadd.f32 %v12015_v42, %v5290_v52  ;;  %v14333_v4 = vld [vmem:[#allocation220_spill] sm:$0xff]  ;;  %v14340_v12 = vld [vmem:[#allocation253_spill] sm:$0xff] }
 0x9cc   : > { %v12157_v60 = vadd.f32 %v5768_v18, %v5608_v17  ;;  %v12159_v33 = vadd.f32 %v5771_v44, %v5611_v21  ;;  %v5613_v26 = vadd.f32 %v12025_v6, %v5293_v20  ;;  %v14335_v17 = vld [vmem:[#allocation60_spill] sm:$0xff]  ;;  %v4974_v43 = vadd.f32 %v14340_v12, %v14339_v31 }
 0x9cd   : > { %v5665_v55 = vpop.permute.xlu1 %5664  ;;  %v5677_v58 = vpop.permute.xlu0 %5676  ;;  %v5292_v18 = vadd.f32 %v14335_v17, %v4972_v27  ;;  %v14336_v21 = vld [vmem:[#allocation80_spill] sm:$0xff] }
 0x9ce   : > { %14327 = vst [vmem:[#allocation169_spill] sm:$0xff] %v12157_v60  ;;  %14328 = vst [vmem:[#allocation82_spill] sm:$0xff] %v12159_v33  ;;  %v5770_v54 = vmul.f32 %v5665_v55, %v14333_v4  ;;  %v5773_v11 = vmul.f32 %v5677_v58, %v14334_v13  ;;  %v5295_v44 = vadd.f32 %v14336_v21, %v4975_v32  ;;  %v14341_v33 = vld [vmem:[#allocation152_spill] sm:$0xff]  ;;  %v14342_v60 = vld [vmem:[#allocation9_spill] sm:$0xff] }
 0x9cf   : > { %v4977_v42 = vadd.f32 %v14342_v60, %v14341_v33  ;;  %v5612_v20 = vadd.f32 %v12021_v24, %v5292_v18  ;;  %v14343_v58 = vld [vmem:[#allocation158_spill] sm:$0xff]  ;;  %v14344_v17 = vld [vmem:[#allocation72_spill] sm:$0xff]  ;;  %v14350_v60 = vld [vmem:[#allocation207_spill] sm:$0xff] }
 0x9d0   : > { %v12171_v23 = vadd.f32 %v5770_v54, %v5610_v51  ;;  %v12173_v63 = vadd.f32 %v5773_v11, %v5613_v26  ;;  %v5615_v55 = vadd.f32 %v12031_v62, %v5295_v44  ;;  %v14345_v51 = vld [vmem:[#allocation57_spill] sm:$0xff]  ;;  %v14349_v12 = vld [vmem:[#allocation76_spill] sm:$0xff] }
 0x9d1   : > { %v5673_v52 = vpop.permute.xlu1 %5672  ;;  %v5685_v6 = vpop.permute.xlu0 %5684  ;;  %v5294_v54 = vadd.f32 %v14345_v51, %v4974_v43  ;;  %v14346_v26 = vld [vmem:[#allocation77_spill] sm:$0xff]  ;;  %v4976_v33 = vadd.f32 %v14350_v60, %v14349_v12  ;;  %v14354_v51 = vld [vmem:[#allocation175_spill] sm:$0xff] }
 0x9d2   : > { %14337 = vst [vmem:[#allocation129_spill] sm:$0xff] %v12171_v23  ;;  %14338 = vst [vmem:[#allocation116_spill] sm:$0xff] %v12173_v63  ;;  %v5772_v27 = vmul.f32 %v5673_v52, %v14343_v58  ;;  %v5775_v32 = vmul.f32 %v5685_v6, %v14344_v17  ;;  %v5297_v11 = vadd.f32 %v14346_v26, %v4977_v42  ;;  %v14351_v63 = vld [vmem:[#allocation234_spill] sm:$0xff]  ;;  %v14352_v23 = vld [vmem:[#allocation212_spill] sm:$0xff] }
 0x9d3   : > { %v4979_v24 = vadd.f32 %v14352_v23, %v14351_v63  ;;  %v5614_v44 = vadd.f32 %v12027_v7, %v5294_v54  ;;  %v14353_v6 = vld [vmem:[#allocation216_spill] sm:$0xff]  ;;  %v14359_v60 = vld [vmem:[#allocation125_spill] sm:$0xff] }
 0x9d4   : > { %v12185_v21 = vadd.f32 %v5772_v27, %v5612_v20  ;;  %v12187_v31 = vadd.f32 %v5775_v32, %v5615_v55  ;;  %v5617_v52 = vadd.f32 %v12037_v46, %v5297_v11  ;;  %v14355_v20 = vld [vmem:[#allocation27_spill] sm:$0xff]  ;;  %v14356_v55 = vld [vmem:[#allocation93_spill] sm:$0xff]  ;;  %v14360_v23 = vld [vmem:[#allocation168_spill] sm:$0xff] }
 0x9d5   : > { %v5681_v18 = vpop.permute.xlu1 %5680  ;;  %v5693_v62 = vpop.permute.xlu0 %5692  ;;  %v5296_v27 = vadd.f32 %v14355_v20, %v4976_v33  ;;  %v5299_v32 = vadd.f32 %v14356_v55, %v4979_v24  ;;  %v4978_v63 = vadd.f32 %v14360_v23, %v14359_v60  ;;  %v14364_v20 = vld [vmem:[#allocation226_spill] sm:$0xff]  ;;  %v14369_v23 = vld [vmem:[#allocation191_spill] sm:$0xff] }
 0x9d6   : > { %14347 = vst [vmem:[#allocation30_spill] sm:$0xff] %v12185_v21  ;;  %14348 = vst [vmem:[#allocation102_spill] sm:$0xff] %v12187_v31  ;;  %v5774_v43 = vmul.f32 %v5681_v18, %v14353_v6  ;;  %v5777_v42 = vmul.f32 %v5693_v62, %v14354_v51  ;;  %v14361_v31 = vld [vmem:[#allocation35_spill] sm:$0xff]  ;;  %v14362_v21 = vld [vmem:[#allocation188_spill] sm:$0xff] }
 0x9d7   : > { %v4981_v7 = vadd.f32 %v14362_v21, %v14361_v31  ;;  %v5616_v11 = vadd.f32 %v12033_v1, %v5296_v27  ;;  %v5619_v18 = vadd.f32 %v12043_v61, %v5299_v32  ;;  %v14363_v62 = vld [vmem:[#allocation219_spill] sm:$0xff] }
 0x9d8   : > { %v12199_v26 = vadd.f32 %v5774_v43, %v5614_v44  ;;  %v12201_v12 = vadd.f32 %v5777_v42, %v5617_v52  ;;  %v14365_v44 = vld [vmem:[#allocation67_spill] sm:$0xff]  ;;  %v14366_v52 = vld [vmem:[#allocation41_spill] sm:$0xff] }
 0x9d9   : > { %v5689_v54 = vpop.permute.xlu1 %5688  ;;  %v5701_v46 = vpop.permute.xlu0 %5700  ;;  %v5298_v43 = vadd.f32 %v14365_v44, %v4978_v63  ;;  %v5301_v42 = vadd.f32 %v14366_v52, %v4981_v7  ;;  %v14370_v21 = vld [vmem:[#allocation75_spill] sm:$0xff]  ;;  %v14374_v44 = vld [vmem:[#allocation92_spill] sm:$0xff] }
 0x9da   : > { %14357 = vst [vmem:[#allocation96_spill] sm:$0xff] %v12199_v26  ;;  %14358 = vst [vmem:[#allocation54_spill] sm:$0xff] %v12201_v12  ;;  %v5776_v33 = vmul.f32 %v5689_v54, %v14363_v62  ;;  %v5779_v24 = vmul.f32 %v5701_v46, %v14364_v20  ;;  %v4980_v31 = vadd.f32 %v14370_v21, %v14369_v23  ;;  %v14371_v12 = vld [vmem:[#allocation15_spill] sm:$0xff]  ;;  %v14372_v26 = vld [vmem:[#allocation208_spill] sm:$0xff] }
 0x9db   : > { %v4983_v1 = vadd.f32 %v14372_v26, %v14371_v12  ;;  %v5618_v32 = vadd.f32 %v12039_v41, %v5298_v43  ;;  %v5621_v54 = vadd.f32 %v12049_v34, %v5301_v42  ;;  %v14373_v46 = vld [vmem:[#allocation178_spill] sm:$0xff]  ;;  %v14379_v21 = vld [vmem:[#allocation95_spill] sm:$0xff] }
 0x9dc   : > { %v12213_v55 = vadd.f32 %v5776_v33, %v5616_v11  ;;  %v12215_v60 = vadd.f32 %v5779_v24, %v5619_v18  ;;  %v14375_v11 = vld [vmem:[#allocation45_spill] sm:$0xff]  ;;  %v14376_v18 = vld [vmem:[#allocation142_spill] sm:$0xff]  ;;  %v14380_v26 = vld [vmem:[#allocation231_spill] sm:$0xff] }
 0x9dd   : > { %v5697_v27 = vpop.permute.xlu1 %5696  ;;  %v5709_v61 = vpop.permute.xlu0 %5708  ;;  %v5300_v33 = vadd.f32 %v14375_v11, %v4980_v31  ;;  %v5303_v24 = vadd.f32 %v14376_v18, %v4983_v1  ;;  %v4982_v12 = vadd.f32 %v14380_v26, %v14379_v21  ;;  %v14384_v11 = vld [vmem:[#allocation241_spill] sm:$0xff] }
 0x9de   : > { %14367 = vst [vmem:[#allocation164_spill] sm:$0xff] %v12213_v55  ;;  %14368 = vst [vmem:[#allocation135_spill] sm:$0xff] %v12215_v60  ;;  %v5778_v63 = vmul.f32 %v5697_v27, %v14373_v46  ;;  %v5781_v7 = vmul.f32 %v5709_v61, %v14374_v44  ;;  %v14381_v55 = vld [vmem:[#allocation177_spill] sm:$0xff]  ;;  %v14383_v61 = vld [vmem:[#allocation170_spill] sm:$0xff] }
 0x9df   : > { %v14382_v60 = vld [vmem:[#allocation237_spill] sm:$0xff]  ;;  %v5620_v42 = vadd.f32 %v12045_v38, %v5300_v33  ;;  %v5623_v27 = vadd.f32 %v12055_v19, %v5303_v24 }
 0x9e0   : > { %v12227_v52 = vadd.f32 %v5778_v63, %v5618_v32  ;;  %v12229_v23 = vadd.f32 %v5781_v7, %v5621_v54  ;;  %v4985_v41 = vadd.f32 %v14382_v60, %v14381_v55  ;;  %v14385_v32 = vld [vmem:[#allocation86_spill] sm:$0xff]  ;;  %v14386_v54 = vld [vmem:[#allocation136_spill] sm:$0xff]  ;;  %v14389_v26 = vld [vmem:[#allocation145_spill] sm:$0xff] }
 0x9e1   : > { %v5705_v43 = vpop.permute.xlu1 %5704  ;;  %v5717_v34 = vpop.permute.xlu0 %5716  ;;  %v5302_v63 = vadd.f32 %v14385_v32, %v4982_v12  ;;  %v14390_v55 = vld [vmem:[#allocation228_spill] sm:$0xff] }
 0x9e2   : > { %14377 = vst [vmem:[#allocation107_spill] sm:$0xff] %v12227_v52  ;;  %14378 = vst [vmem:[#allocation87_spill] sm:$0xff] %v12229_v23  ;;  %v5780_v31 = vmul.f32 %v5705_v43, %v14383_v61  ;;  %v5783_v1 = vmul.f32 %v5717_v34, %v14384_v11  ;;  %v5305_v7 = vadd.f32 %v14386_v54, %v4985_v41  ;;  %v14391_v52 = vld [vmem:[#allocation63_spill] sm:$0xff]  ;;  %v14392_v23 = vld [vmem:[#allocation245_spill] sm:$0xff] }
 0x9e3   : > { %v4984_v60 = vadd.f32 %v14390_v55, %v14389_v26  ;;  %v4987_v38 = vadd.f32 %v14392_v23, %v14391_v52  ;;  %v5622_v24 = vadd.f32 %v12051_v35, %v5302_v63  ;;  %v14393_v34 = vld [vmem:[#allocation111_spill] sm:$0xff]  ;;  %v14394_v32 = vld [vmem:[#allocation248_spill] sm:$0xff]  ;;  %v14399_v55 = vld [vmem:[#allocation197_spill] sm:$0xff] }
 0x9e4   : > { %v12241_v18 = vadd.f32 %v5780_v31, %v5620_v42  ;;  %v12243_v21 = vadd.f32 %v5783_v1, %v5623_v27  ;;  %v5625_v43 = vadd.f32 %v12063_v15, %v5305_v7  ;;  %v14395_v42 = vld [vmem:[#allocation79_spill] sm:$0xff]  ;;  %v14396_v27 = vld [vmem:[#allocation61_spill] sm:$0xff] }
 0x9e5   : > { %v5713_v33 = vpop.permute.xlu1 %5712  ;;  %v5725_v19 = vpop.permute.xlu0 %5724  ;;  %v5304_v31 = vadd.f32 %v14395_v42, %v4984_v60  ;;  %v5307_v1 = vadd.f32 %v14396_v27, %v4987_v38  ;;  %v14400_v52 = vld [vmem:[#allocation227_spill] sm:$0xff]  ;;  %v14404_v42 = vld [vmem:[#allocation250_spill] sm:$0xff] }
 0x9e6   : > { %14387 = vst [vmem:[#allocation236_spill] sm:$0xff] %v12241_v18  ;;  %14388 = vst [vmem:[#allocation206_spill] sm:$0xff] %v12243_v21  ;;  %v5782_v12 = vmul.f32 %v5713_v33, %v14393_v34  ;;  %v5785_v41 = vmul.f32 %v5725_v19, %v14394_v32  ;;  %v4986_v23 = vadd.f32 %v14400_v52, %v14399_v55  ;;  %v14401_v21 = vld [vmem:[#allocation167_spill] sm:$0xff]  ;;  %v14402_v18 = vld [vmem:[#allocation232_spill] sm:$0xff] }
 0x9e7   : > { %v4989_v35 = vadd.f32 %v14402_v18, %v14401_v21  ;;  %v5624_v7 = vadd.f32 %v12057_v0, %v5304_v31  ;;  %v5627_v33 = vadd.f32 %v12069_v10, %v5307_v1  ;;  %v14403_v19 = vld [vmem:[#allocation108_spill] sm:$0xff]  ;;  %v14409_v52 = vld [vmem:[#allocation97_spill] sm:$0xff] }
 0x9e8   : > { %v12255_v54 = vadd.f32 %v5782_v12, %v5622_v24  ;;  %v12257_v26 = vadd.f32 %v5785_v41, %v5625_v43  ;;  %v14405_v24 = vld [vmem:[#allocation84_spill] sm:$0xff] }
 0x9e9   : > { %v5721_v63 = vpop.permute.xlu1 %5720  ;;  %v5733_v15 = vpop.permute.xlu0 %5732  ;;  %v5306_v12 = vadd.f32 %v14405_v24, %v4986_v23  ;;  %v14406_v43 = vld [vmem:[#allocation160_spill] sm:$0xff] }
 0x9ea   : > { %14397 = vst [vmem:[#allocation150_spill] sm:$0xff] %v12255_v54  ;;  %14398 = vst [vmem:[#allocation119_spill] sm:$0xff] %v12257_v26  ;;  %v5784_v60 = vmul.f32 %v5721_v63, %v14403_v19  ;;  %v5787_v38 = vmul.f32 %v5733_v15, %v14404_v42  ;;  %v5309_v41 = vadd.f32 %v14406_v43, %v4989_v35  ;;  %v14410_v18 = vld [vmem:[#allocation256_spill] sm:$0xff]  ;;  %v14412_v54 = vld [vmem:[#allocation246_spill] sm:$0xff] }
 0x9eb   : > { %v4988_v21 = vadd.f32 %v14410_v18, %v14409_v52  ;;  %v14411_v26 = vld [vmem:[#allocation24_spill] sm:$0xff]  ;;  %v5626_v1 = vadd.f32 %v12065_v56, %v5306_v12  ;;  %v14419_v18 = vld [vmem:[#allocation165_spill] sm:$0xff] }
 0x9ec   : > { %v12269_v27 = vadd.f32 %v5784_v60, %v5624_v7  ;;  %v12271_v55 = vadd.f32 %v5787_v38, %v5627_v33  ;;  %v4991_v0 = vadd.f32 %v14412_v54, %v14411_v26  ;;  %v5629_v63 = vadd.f32 %v12077_v29, %v5309_v41  ;;  %v14413_v15 = vld [vmem:[#allocation112_spill] sm:$0xff]  ;;  %v14415_v7 = vld [vmem:[#allocation141_spill] sm:$0xff]  ;;  %v14416_v33 = vld [vmem:[#allocation146_spill] sm:$0xff] }
 0x9ed   : > { %v5729_v31 = vpop.permute.xlu1 %5728  ;;  %v5741_v10 = vpop.permute.xlu0 %5740  ;;  %v14414_v24 = vld [vmem:[#allocation40_spill] sm:$0xff]  ;;  %v5308_v60 = vadd.f32 %v14415_v7, %v4988_v21 }
 0x9ee   : > { %14407 = vst [vmem:[#allocation39_spill] sm:$0xff] %v12269_v27  ;;  %14408 = vst [vmem:[#allocation202_spill] sm:$0xff] %v12271_v55  ;;  %v5786_v23 = vmul.f32 %v5729_v31, %v14413_v15  ;;  %v5789_v35 = vmul.f32 %v5741_v10, %v14414_v24  ;;  %v5311_v38 = vadd.f32 %v14416_v33, %v4991_v0  ;;  %v14420_v54 = vld [vmem:[#allocation16_spill] sm:$0xff]  ;;  %v14422_v27 = vld [vmem:[#allocation249_spill] sm:$0xff] }
 0x9ef   : > { %v4990_v26 = vadd.f32 %v14420_v54, %v14419_v18  ;;  %v14421_v55 = vld [vmem:[#allocation172_spill] sm:$0xff]  ;;  %v5628_v41 = vadd.f32 %v12071_v28, %v5308_v60  ;;  %v14423_v10 = vld [vmem:[#allocation26_spill] sm:$0xff]  ;;  %v14428_v18 = vld [vmem:[#allocation187_spill] sm:$0xff] }
 0x9f0   : > { %v12283_v43 = vadd.f32 %v5786_v23, %v5626_v1  ;;  %v12285_v52 = vadd.f32 %v5789_v35, %v5629_v63  ;;  %v4993_v56 = vadd.f32 %v14422_v27, %v14421_v55  ;;  %v5631_v31 = vadd.f32 %v12083_v8, %v5311_v38  ;;  %v14424_v7 = vld [vmem:[#allocation8_spill] sm:$0xff]  ;;  %v14425_v1 = vld [vmem:[#allocation85_spill] sm:$0xff]  ;;  %v14429_v27 = vld [vmem:[#allocation62_spill] sm:$0xff] }
 0x9f1   : > { %v5737_v12 = vpop.permute.xlu1 %5736  ;;  %v5749_v29 = vpop.permute.xlu0 %5748  ;;  %v5310_v23 = vadd.f32 %v14425_v1, %v4990_v26  ;;  %v4992_v55 = vadd.f32 %v14429_v27, %v14428_v18  ;;  %v14430_v60 = vld [vmem:[#allocation252_spill] sm:$0xff]  ;;  %v14432_v26 = vld [vmem:[#allocation101_spill] sm:$0xff]  ;;  %v14437_v27 = vld [vmem:[#allocation127_spill] sm:$0xff] }
 0x9f2   : > { %14417 = vst [vmem:[#allocation140_spill] sm:$0xff] %v12283_v43  ;;  %14418 = vst [vmem:[#allocation66_spill] sm:$0xff] %v12285_v52  ;;  %v5788_v21 = vmul.f32 %v5737_v12, %v14423_v10  ;;  %v5791_v0 = vmul.f32 %v5749_v29, %v14424_v7  ;;  %v5313_v63 = vadd.f32 %v11901_v53, %v4993_v56  ;;  %v14431_v12 = vld [vmem:[#allocation235_spill] sm:$0xff] }
 0x9f3   : > { %v5630_v28 = vadd.f32 %v12079_v40, %v5310_v23  ;;  %v5312_v1 = vadd.f32 %v14432_v26, %v4992_v55 }
 0x9f4   : > { %v12297_v35 = vadd.f32 %v5788_v21, %v5628_v41  ;;  %v12299_v33 = vadd.f32 %v5791_v0, %v5631_v31  ;;  %v5633_v8 = vadd.f32 %v12091_v45, %v5313_v63  ;;  %v14435_v31 = vld [vmem:[#allocation46_spill] sm:$0xff]  ;;  %v14436_v21 = vld [vmem:[#allocation100_spill] sm:$0xff] }
 0x9f5   : > { %v5745_v54 = vpop.permute.xlu1 %5744  ;;  %v5757_v52 = vpop.permute.xlu0 %5756  ;;  %v4994_v0 = vadd.f32 %v14436_v21, %v14435_v31  ;;  %v5632_v18 = vadd.f32 %v12085_v22, %v5312_v1  ;;  %v14438_v63 = vld [vmem:[#allocation126_spill] sm:$0xff] }
 0x9f6   : > { %14426 = vst [vmem:[#allocation122_spill] sm:$0xff] %v12297_v35  ;;  %14427 = vst [vmem:[#allocation239_spill] sm:$0xff] %v12299_v33  ;;  %v5790_v38 = vmul.f32 %v5745_v54, %v14430_v60  ;;  %v5793_v29 = vmul.f32 %v5757_v52, %v14431_v12  ;;  %v14460_v35 = vmov 15  }
 0x9f7   : > { %v5314_v54 = vadd.f32 %v14438_v63, %v4994_v0 }
 0x9f8   : > { %v12308_v53 = vadd.f32 %v5790_v38, %v5630_v28  ;;  %v12310_v56 = vadd.f32 %v5793_v29, %v5633_v8  ;;  %v14440_v8 = vld [vmem:[#allocation13_spill] sm:$0xff] }
 0x9f9   : > { %v5753_v41 = vpop.permute.xlu1 %5752  ;;  %v5634_v28 = vadd.f32 %v12093_v2, %v5314_v54 }
 0x9fa   : > { %14433 = vst [vmem:[#allocation114_spill] sm:$0xff] %v12308_v53  ;;  %14434 = vst [vmem:[#allocation117_spill] sm:$0xff] %v12310_v56  ;;  %v5792_v40 = vmul.f32 %v5753_v41, %v14437_v27  ;;  %v5829_v23 = vpop.permute.xlu0 %5828 }
 0x9fb   : > { %v5955_v45 = vmul.f32 %v5829_v23, %v14292_v14 }
 0x9fc   : > { %v12318_v52 = vadd.f32 %v5792_v40, %v5632_v18 }
 0x9fd   : > { %v5761_v55 = vpop.permute.xlu1 %5760  ;;  %6019 = vrot.lane.b32.xlu1 %v5955_v45, %s8087_s22 }
 0x9fe   : > { %14439 = vst [vmem:[#allocation198_spill] sm:$0xff] %v12318_v52  ;;  %v5794_v38 = vmul.f32 %v5761_v55, %v14440_v8  ;;  %v5841_v29 = vpop.permute.xlu0 %5840 }
 0x9ff   : > { %v5958_v0 = vmul.f32 %v5841_v29, %v14313_v39 }
 0xa00   : > { %v12323_v26 = vadd.f32 %v5794_v38, %v5634_v28 }
 0xa02   : > { %14441 = vst [vmem:[#allocation47_spill] sm:$0xff] %v12323_v26  ;;  %v5833_v22 = vpop.permute.xlu1 %5832  ;;  %v5849_v1 = vpop.permute.xlu0 %5848  ;;  %v14456_v26 = vld [vmem:[#allocation153_spill] sm:$0xff] }
 0xa03   : > { %v5956_v41 = vmul.f32 %v5833_v22, %v14293_v50  ;;  %v5960_v23 = vmul.f32 %v5849_v1, %v14323_v57 }
 0xa05   : > { %6021 = vrot.lane.b32.xlu0 %v5956_v41, %s8087_s22 }
 0xa06   : > { %v5837_v31 = vpop.permute.xlu1 %5836  ;;  %v5857_v21 = vpop.permute.xlu0 %5856 }
 0xa07   : > { %v5957_v18 = vmul.f32 %v5837_v31, %v14302_v25  ;;  %v5962_v55 = vmul.f32 %v5857_v21, %v14333_v4 }
 0xa09   : > { %6023 = vrot.lane.b32.xlu1 %v5957_v18, %s8087_s22  ;;  %6025 = vrot.lane.b32.xlu0 %v5958_v0, %s8087_s22 }
 0xa0a   : > { %v5845_v2 = vpop.permute.xlu1 %5844  ;;  %v5865_v40 = vpop.permute.xlu0 %5864 }
 0xa0b   : > { %v5959_v45 = vmul.f32 %v5845_v2, %v14303_v49  ;;  %v5964_v22 = vmul.f32 %v5865_v40, %v14343_v58 }
 0xa0d   : > { %6027 = vrot.lane.b32.xlu1 %v5959_v45, %s8087_s22  ;;  %6029 = vrot.lane.b32.xlu0 %v5960_v23, %s8087_s22 }
 0xa0e   : > { %v5853_v63 = vpop.permute.xlu1 %5852  ;;  %v5873_v54 = vpop.permute.xlu0 %5872 }
 0xa0f   : > { %v5961_v28 = vmul.f32 %v5853_v63, %v14314_v5  ;;  %v5966_v31 = vmul.f32 %v5873_v54, %v14353_v6 }
 0xa11   : > { %6031 = vrot.lane.b32.xlu1 %v5961_v28, %s8087_s22  ;;  %6033 = vrot.lane.b32.xlu0 %v5962_v55, %s8087_s22 }
 0xa12   : > { %v5861_v38 = vpop.permute.xlu1 %5860  ;;  %v5881_v29 = vpop.permute.xlu0 %5880 }
 0xa13   : > { %v5963_v1 = vmul.f32 %v5861_v38, %v14324_v37  ;;  %v5968_v2 = vmul.f32 %v5881_v29, %v14363_v62 }
 0xa15   : > { %6035 = vrot.lane.b32.xlu1 %v5963_v1, %s8087_s22  ;;  %6037 = vrot.lane.b32.xlu0 %v5964_v22, %s8087_s22 }
 0xa16   : > { %v5869_v41 = vpop.permute.xlu1 %5868  ;;  %v5889_v0 = vpop.permute.xlu0 %5888 }
 0xa17   : > { %v5965_v21 = vmul.f32 %v5869_v41, %v14334_v13  ;;  %v5970_v63 = vmul.f32 %v5889_v0, %v14373_v46  ;;  %v14444_v0 = vld [vmem:[#allocation11_spill] sm:$0xff] }
 0xa19   : > { %6039 = vrot.lane.b32.xlu1 %v5965_v21, %s8087_s22  ;;  %6041 = vrot.lane.b32.xlu0 %v5966_v31, %s8087_s22  ;;  %v14442_v31 = vld [vmem:[#allocation2_spill] sm:$0xff]  ;;  %v14443_v21 = vld [vmem:[#allocation143_spill] sm:$0xff] }
 0xa1a   : > { %v5877_v18 = vpop.permute.xlu1 %5876  ;;  %v5897_v23 = vpop.permute.xlu0 %5896 }
 0xa1b   : > { %v5967_v40 = vmul.f32 %v5877_v18, %v14344_v17  ;;  %v5972_v28 = vmul.f32 %v5897_v23, %v14383_v61  ;;  %v14445_v18 = vld [vmem:[#allocation19_spill] sm:$0xff]  ;;  %v13262_v23 = vmov 15  }
 0xa1d   : > { %6043 = vrot.lane.b32.xlu1 %v5967_v40, %s8087_s22  ;;  %6045 = vrot.lane.b32.xlu0 %v5968_v2, %s8087_s22  ;;  %v14446_v2 = vld [vmem:[#allocation133_spill] sm:$0xff]  ;;  %v14447_v40 = vld [vmem:[#allocation163_spill] sm:$0xff] }
 0xa1e   : > { %v5885_v45 = vpop.permute.xlu1 %5884  ;;  %v5905_v29 = vpop.permute.xlu0 %5904 }
 0xa1f   : > { %v5969_v54 = vmul.f32 %v5885_v45, %v14354_v51  ;;  %v5974_v1 = vmul.f32 %v5905_v29, %v14393_v34  ;;  %v14448_v45 = vld [vmem:[#allocation32_spill] sm:$0xff]  ;;  %v14458_v51 = vld [vmem:[#allocation183_spill] sm:$0xff] }
 0xa21   : > { %6047 = vrot.lane.b32.xlu1 %v5969_v54, %s8087_s22  ;;  %6049 = vrot.lane.b32.xlu0 %v5970_v63, %s8087_s22  ;;  %v14449_v63 = vld [vmem:[#allocation49_spill] sm:$0xff]  ;;  %v14450_v54 = vmov 14  }
 0xa22   : > { %v5893_v55 = vpop.permute.xlu1 %5892  ;;  %v5913_v29 = vpop.permute.xlu0 %5912 }
 0xa23   : > { %v5971_v38 = vmul.f32 %v5893_v55, %v14364_v20  ;;  %v14451_v55 = vld [vmem:[#allocation22_spill] sm:$0xff] }
 0xa25   : > { %6051 = vrot.lane.b32.xlu1 %v5971_v38, %s8087_s22  ;;  %6053 = vrot.lane.b32.xlu0 %v5972_v28, %s8087_s22  ;;  %v14452_v28 = vld [vmem:[#allocation70_spill] sm:$0xff] }
 0xa26   : > { %v5901_v22 = vpop.permute.xlu1 %5900  ;;  %v14453_v38 = vld [vmem:[#allocation98_spill] sm:$0xff] }
 0xa27   : > { %v5973_v41 = vmul.f32 %v5901_v22, %v14374_v44 }
 0xa29   : > { %6055 = vrot.lane.b32.xlu1 %v5973_v41, %s8087_s22  ;;  %6057 = vrot.lane.b32.xlu0 %v5974_v1, %s8087_s22  ;;  %v14454_v1 = vld [vmem:[#allocation233_spill] sm:$0xff]  ;;  %v14455_v41 = vld [vmem:[#allocation90_spill] sm:$0xff] }
 0xa2a   : > { %v12385_v22 = vpop.permute.xlu1 %5908 }
 0xa2d   : > { %6156 = vperm.xlu1 %8007, %v14175_v47   ;;  %6160 = vperm.xlu0 %8008, %v14177_v59  }
 0xa2e   : > { %v12393_v56 = vpop.permute.xlu1 %5916 }
 0xa31   : > { %6164 = vperm.xlu1 %8007, %v14176_v48   ;;  %6220 = vperm.xlu0 %8008, %v13941_v30  }
 0xa32   : > { %v12401_v52 = vpop.permute.xlu1 %5924 }
 0xa35   : > { %6168 = vperm.xlu1 %8007, %v14179_v36   ;;  %6148 = vperm.xlu0 %8008, %v14173_v16  }
 0xa36   : > { %v12408_v53 = vpop.permute.xlu1 %5932 }
 0xa39   : > { %6224 = vperm.xlu1 %8007, %v14190_v9   ;;  %6172 = vperm.xlu0 %8008, %v14178_v3  }
 0xa3d   : > { %6152 = vperm.xlu1 %8007, %v14442_v31   ;;  %6228 = vperm.xlu0 %8008, %v14443_v21  }
 0xa41   : > { %6176 = vperm.xlu1 %8007, %v14444_v0   ;;  %6184 = vperm.xlu0 %8008, %v14445_v18  }
 0xa45   : > { %6232 = vperm.xlu1 %8007, %v14446_v2   ;;  %6236 = vperm.xlu0 %8008, %v14447_v40  }
 0xa49   : > { %8009 = vset.pattern.permute.xlu1 %v13262_v23  ;;  %6192 = vperm.xlu0 %8008, %v14448_v45  }
 0xa4a   : > { %6480 = vperm.xlu1 %8009, %v14177_v59   ;;  %v12391_v59 = vpop.permute.xlu0 %5920 }
 0xa4d   : > { %6200 = vperm.xlu0 %8008, %v14449_v63  }
 0xa4e   : > { %8010 = vset.pattern.permute.xlu1 %v14450_v54  ;;  %v12399_v33 = vpop.permute.xlu0 %5928 }
 0xa4f   : > { %6180 = vperm.xlu1 %8010, %v14451_v55  }
 0xa51   : > { %6208 = vperm.xlu0 %8008, %v14452_v28  }
 0xa53   : > { %6212 = vperm.xlu1 %8010, %v14453_v38  }
 0xa55   : > { %6272 = vperm.xlu0 %8008, %v14454_v1  }
 0xa57   : > { %6216 = vperm.xlu1 %8010, %v14455_v41  }
 0xa59   : > { %8019 = vset.pattern.permute.xlu0 %v13262_v23 }
 0xa5a   : > { %6476 = vperm.xlu0 %8019, %v14175_v47   ;;  %v12406_v47 = vpop.permute.xlu0 %5936 }
 0xa5b   : > { %6240 = vperm.xlu1 %8010, %v14456_v26  }
 0xa5e   : > { %6484 = vperm.xlu0 %8019, %v14176_v48   ;;  %v14457_v48 = vld [vmem:[#allocation38_spill] sm:$0xff] }
 0xa5f   : > { %8011 = vset.pattern.permute.xlu1 %v13262_v23  ;;  %v12415_v23 = vpop.permute.xlu1 %5940 }
 0xa60   : > { %6488 = vperm.xlu1 %8011, %v14179_v36   ;;  %v12413_v36 = vpop.permute.xlu0 %5944 }
 0xa62   : > { %6544 = vperm.xlu0 %8019, %v14190_v9  }
 0xa63   : > { %v12423_v9 = vpop.permute.xlu1 %5948 }
 0xa64   : > { %6540 = vperm.xlu1 %8011, %v13941_v30   ;;  %v14459_v30 = vld [vmem:[#allocation173_spill] sm:$0xff] }
 0xa66   : > { %6468 = vperm.xlu0 %8019, %v14173_v16   ;;  %v12421_v16 = vpop.permute.xlu0 %5952 }
 0xa68   : > { %8012 = vset.pattern.permute.xlu1 %v14450_v54 }
 0xa69   : > { %6188 = vperm.xlu1 %8012, %v14457_v48  }
 0xa6a   : > { %6496 = vperm.xlu0 %8019, %v14444_v0  }
 0xa6d   : > { %6244 = vperm.xlu1 %8012, %v14458_v51  }
 0xa6e   : > { %6552 = vperm.xlu0 %8019, %v14446_v2  }
 0xa6f   : > { %v12428_v0 = vpop.permute.xlu1 %6019 }
 0xa70   : > { %14461 = vst [vmem:[#allocation121_spill] sm:$0xff] %v12428_v0  ;;  %v14466_v0 = vld [vmem:[#allocation203_spill] sm:$0xff] }
 0xa71   : > { %6248 = vperm.xlu1 %8012, %v14459_v30  }
 0xa72   : > { %6500 = vperm.xlu0 %8019, %v14451_v55  }
 0xa75   : > { %8013 = vset.pattern.permute.xlu1 %v14460_v35 }
 0xa76   : > { %6472 = vperm.xlu1 %8013, %v14442_v31   ;;  %6536 = vperm.xlu0 %8019, %v14455_v41   ;;  %v14464_v41 = vld [vmem:[#allocation58_spill] sm:$0xff] }
 0xa77   : > { %v12430_v17 = vpop.permute.xlu0 %6021 }
 0xa7a   : > { %6492 = vperm.xlu1 %8013, %v14178_v3   ;;  %6560 = vperm.xlu0 %8019, %v14456_v26  }
 0xa7b   : > { %v12434_v2 = vpop.permute.xlu1 %6023  ;;  %v12436_v55 = vpop.permute.xlu0 %6025 }
 0xa7c   : > { %14462 = vst [vmem:[#allocation81_spill] sm:$0xff] %v12434_v2  ;;  %v14470_v2 = vld [vmem:[#allocation213_spill] sm:$0xff] }
 0xa7e   : > { %6548 = vperm.xlu1 %8013, %v14443_v21   ;;  %6508 = vperm.xlu0 %8019, %v14457_v48  }
 0xa7f   : > { %v12440_v43 = vpop.permute.xlu1 %6027  ;;  %v12442_v31 = vpop.permute.xlu0 %6029 }
 0xa80   : > { %14463 = vst [vmem:[#allocation64_spill] sm:$0xff] %v12440_v43  ;;  %v14469_v43 = vld [vmem:[#allocation193_spill] sm:$0xff] }
 0xa82   : > { %8014 = vset.pattern.permute.xlu1 %v14450_v54  ;;  %6568 = vperm.xlu0 %8019, %v14459_v30  }
 0xa83   : > { %6196 = vperm.xlu1 %8014, %v14464_v41   ;;  %v12447_v3 = vpop.permute.xlu1 %6031  ;;  %v12449_v26 = vpop.permute.xlu0 %6033 }
 0xa84   : > { %14465 = vst [vmem:[#allocation257_spill] sm:$0xff] %v12447_v3 }
 0xa86   : > { %6572 = vperm.xlu0 %8019, %v14466_v0  }
 0xa87   : > { %6252 = vperm.xlu1 %8014, %v14466_v0   ;;  %v12453_v21 = vpop.permute.xlu1 %6035  ;;  %v12455_v48 = vpop.permute.xlu0 %6037  ;;  %v5976_v0 = vmul.f32 %v5913_v29, %v14403_v19 }
 0xa88   : > { %14467 = vst [vmem:[#allocation209_spill] sm:$0xff] %v12453_v21  ;;  %14468 = vst [vmem:[#allocation134_spill] sm:$0xff] %v12455_v48 }
 0xa8a   : > { %6528 = vperm.xlu0 %8019, %v14452_v28  }
 0xa8b   : > { %6256 = vperm.xlu1 %8014, %v14469_v43   ;;  %v12461_v30 = vpop.permute.xlu1 %6039  ;;  %v12463_v3 = vpop.permute.xlu0 %6041 }
 0xa8c   : > { %14471 = vst [vmem:[#allocation105_spill] sm:$0xff] %v12461_v30  ;;  %14472 = vst [vmem:[#allocation124_spill] sm:$0xff] %v12463_v3  ;;  %v14481_v3 = vld [vmem:[#allocation240_spill] sm:$0xff] }
 0xa8e   : > { %6584 = vperm.xlu0 %8019, %v14470_v2  }
 0xa8f   : > { %8015 = vset.pattern.permute.xlu1 %v14460_v35  ;;  %v12469_v21 = vpop.permute.xlu1 %6043  ;;  %v12471_v28 = vpop.permute.xlu0 %6045 }
 0xa90   : > { %6504 = vperm.xlu1 %8015, %v14445_v18   ;;  %14473 = vst [vmem:[#allocation14_spill] sm:$0xff] %v12469_v21  ;;  %14474 = vst [vmem:[#allocation261_spill] sm:$0xff] %v12471_v28  ;;  %v14477_v18 = vld [vmem:[#allocation78_spill] sm:$0xff] }
 0xa92   : > { %6592 = vperm.xlu0 %8019, %v14454_v1   ;;  %v14478_v1 = vld [vmem:[#allocation223_spill] sm:$0xff] }
 0xa93   : > { %v12475_v48 = vpop.permute.xlu1 %6047  ;;  %v12477_v30 = vpop.permute.xlu0 %6049 }
 0xa94   : > { %6532 = vperm.xlu1 %8015, %v14453_v38   ;;  %14475 = vst [vmem:[#allocation91_spill] sm:$0xff] %v12475_v48  ;;  %14476 = vst [vmem:[#allocation201_spill] sm:$0xff] %v12477_v30 }
 0xa96   : > { %6061 = vrot.lane.b32.xlu0 %v5976_v0, %s8087_s22 }
 0xa97   : > { %v12482_v29 = vpop.permute.xlu1 %6051  ;;  %v12484_v38 = vpop.permute.xlu0 %6053 }
 0xa98   : > { %6556 = vperm.xlu1 %8015, %v14447_v40   ;;  %14479 = vst [vmem:[#allocation139_spill] sm:$0xff] %v12482_v29 }
 0xa9b   : > { %v12487_v21 = vpop.permute.xlu1 %6055  ;;  %v12489_v0 = vpop.permute.xlu0 %6057 }
 0xa9c   : > { %8016 = vset.pattern.permute.xlu1 %v14450_v54  ;;  %14480 = vst [vmem:[#allocation106_spill] sm:$0xff] %v12487_v21 }
 0xa9d   : > { %6204 = vperm.xlu1 %8016, %v14477_v18  }
 0xaa1   : > { %6260 = vperm.xlu1 %8016, %v14478_v1  }
 0xaa5   : > { %6264 = vperm.xlu1 %8016, %v14470_v2   ;;  %v5978_v2 = vmul.f32 %v12391_v59, %v14413_v15 }
 0xaa9   : > { %8017 = vset.pattern.permute.xlu1 %v14460_v35 }
 0xaaa   : > { %6512 = vperm.xlu1 %8017, %v14448_v45  }
 0xaac   : > { %v6157_v40 = vpop.permute.xlu1 %6156  ;;  %v6161_v48 = vpop.permute.xlu0 %6160 }
 0xaad   : > { %v6278_v30 = vmul.f32 %v6161_v48, %v14313_v39 }
 0xaae   : > { %6564 = vperm.xlu1 %8017, %v14458_v51  }
 0xaaf   : > { %6345 = vrot.lane.b32.xlu0 %v6278_v30, %s8089_s24 }
 0xab0   : > { %v6165_v28 = vpop.permute.xlu1 %6164  ;;  %v6221_v29 = vpop.permute.xlu0 %6220 }
 0xab2   : > { %8018 = vset.pattern.permute.xlu1 %v14450_v54 }
 0xab3   : > { %6268 = vperm.xlu1 %8018, %v14481_v3   ;;  %6065 = vrot.lane.b32.xlu0 %v5978_v2, %s8087_s22 }
 0xab4   : > { %v6169_v45 = vpop.permute.xlu1 %6168  ;;  %v12501_v21 = vpop.permute.xlu0 %6148 }
 0xab5   : > { %v6280_v48 = vmul.f32 %v6169_v45, %v14323_v57  ;;  %v5980_v45 = vmul.f32 %v12399_v33, %v14423_v10 }
 0xab7   : > { %8020 = vset.pattern.permute.xlu1 %v14460_v35  ;;  %6349 = vrot.lane.b32.xlu0 %v6280_v48, %s8089_s24 }
 0xab8   : > { %6516 = vperm.xlu1 %8020, %v14464_v41   ;;  %v6225_v51 = vpop.permute.xlu1 %6224  ;;  %v12507_v30 = vpop.permute.xlu0 %6172 }
 0xab9   : > { %v6294_v54 = vmul.f32 %v6225_v51, %v14393_v34 }
 0xabb   : > { %6377 = vrot.lane.b32.xlu0 %v6294_v54, %s8089_s24 }
 0xabc   : > { %6520 = vperm.xlu1 %8020, %v14449_v63   ;;  %v6153_v59 = vpop.permute.xlu1 %6152  ;;  %v12512_v2 = vpop.permute.xlu0 %6228 }
 0xabd   : > { %v6276_v48 = vmul.f32 %v6153_v59, %v14293_v50 }
 0xabf   : > { %6069 = vrot.lane.b32.xlu0 %v5980_v45, %s8087_s22 }
 0xac0   : > { %6576 = vperm.xlu1 %8020, %v14469_v43   ;;  %v6177_v35 = vpop.permute.xlu1 %6176  ;;  %v6185_v41 = vpop.permute.xlu0 %6184 }
 0xac1   : > { %v6282_v54 = vmul.f32 %v6177_v35, %v14333_v4 }
 0xac3   : > { %6341 = vrot.lane.b32.xlu0 %v6276_v48, %s8089_s24  ;;  %v5975_v48 = vmul.f32 %v12385_v22, %v14384_v11  ;;  %v6284_v22 = vmul.f32 %v6185_v41, %v14343_v58 }
 0xac4   : > { %6524 = vperm.xlu1 %8020, %v14477_v18   ;;  %v6233_v51 = vpop.permute.xlu1 %6232  ;;  %v12521_v63 = vpop.permute.xlu0 %6236 }
 0xac5   : > { %v6296_v43 = vmul.f32 %v6233_v51, %v14403_v19  ;;  %v5982_v51 = vmul.f32 %v12406_v47, %v14430_v60 }
 0xac7   : > { %6353 = vrot.lane.b32.xlu0 %v6282_v54, %s8089_s24 }
 0xac8   : > { %6580 = vperm.xlu1 %8020, %v14478_v1   ;;  %v6193_v33 = vpop.permute.xlu0 %6192 }
 0xac9   : > { %v6481_v45 = vpop.permute.xlu1 %6480 }
 0xaca   : > { %v6598_v18 = vmul.f32 %v6481_v45, %v14313_v39 }
 0xacb   : > { %6381 = vrot.lane.b32.xlu0 %v6296_v43, %s8089_s24  ;;  %v5977_v43 = vmul.f32 %v12393_v56, %v14394_v32  ;;  %v6293_v56 = vmul.f32 %v6221_v29, %v14374_v44  ;;  %v6275_v29 = vmul.f32 %v12501_v21, %v14292_v14  ;;  %v6286_v21 = vmul.f32 %v6193_v33, %v14353_v6 }
 0xacc   : > { %6588 = vperm.xlu1 %8020, %v14481_v3   ;;  %v12529_v59 = vpop.permute.xlu0 %6200  ;;  %v6277_v3 = vmul.f32 %v6157_v40, %v14302_v25 }
 0xace   : > { %v12534_v35 = vpop.permute.xlu1 %6180 }
 0xacf   : > { %6665 = vrot.lane.b32.xlu0 %v6598_v18, %s8088_s23  ;;  %v6279_v18 = vmul.f32 %v6165_v28, %v14303_v49  ;;  %v5979_v28 = vmul.f32 %v12401_v52, %v14404_v42  ;;  %v5984_v52 = vmul.f32 %v12413_v36, %v14437_v27 }
 0xad0   : > { %6059 = vrot.lane.b32.xlu1 %v5975_v48, %s8087_s22  ;;  %v12538_v1 = vpop.permute.xlu0 %6208 }
 0xad2   : > { %v12543_v54 = vpop.permute.xlu1 %6212 }
 0xad3   : > { %6073 = vrot.lane.b32.xlu0 %v5982_v51, %s8087_s22 }
 0xad4   : > { %6343 = vrot.lane.b32.xlu1 %v6277_v3, %s8089_s24  ;;  %v12547_v39 = vpop.permute.xlu0 %6272 }
 0xad6   : > { %v6217_v45 = vpop.permute.xlu1 %6216 }
 0xad7   : > { %6357 = vrot.lane.b32.xlu0 %v6284_v22, %s8089_s24  ;;  %v6292_v47 = vmul.f32 %v6217_v45, %v14383_v61 }
 0xad8   : > { %6063 = vrot.lane.b32.xlu1 %v5977_v43, %s8087_s22 }
 0xad9   : > { %v6477_v40 = vpop.permute.xlu0 %6476 }
 0xada   : > { %v6241_v48 = vpop.permute.xlu1 %6240 }
 0xadb   : > { %6373 = vrot.lane.b32.xlu0 %v6292_v47, %s8089_s24  ;;  %v6298_v41 = vmul.f32 %v6241_v48, %v14413_v15 }
 0xadc   : > { %6347 = vrot.lane.b32.xlu1 %v6279_v18, %s8089_s24 }
 0xadd   : > { %v6485_v51 = vpop.permute.xlu0 %6484 }
 0xadf   : > { %v6489_v3 = vpop.permute.xlu1 %6488  ;;  %6385 = vrot.lane.b32.xlu0 %v6298_v41, %s8089_s24  ;;  %v6281_v41 = vmul.f32 %v12507_v30, %v14314_v5 }
 0xae0   : > { %v6600_v22 = vmul.f32 %v6489_v3, %v14323_v57  ;;  %6375 = vrot.lane.b32.xlu1 %v6293_v56, %s8089_s24  ;;  %v6295_v3 = vmul.f32 %v12512_v2, %v14384_v11  ;;  %v5981_v2 = vmul.f32 %v12408_v53, %v14414_v24 }
 0xae1   : > { %v6545_v43 = vpop.permute.xlu0 %6544 }
 0xae2   : > { %v6614_v47 = vmul.f32 %v6545_v43, %v14393_v34  ;;  %v6597_v43 = vmul.f32 %v6477_v40, %v14302_v25  ;;  %v6283_v25 = vmul.f32 %v12534_v35, %v14324_v37  ;;  %v6297_v35 = vmul.f32 %v12521_v63, %v14394_v32  ;;  %v6956_v63 = vld [vmem:[%s13003_s9 + $0x8] sm:$0xff] }
 0xae3   : > { %v6541_v45 = vpop.permute.xlu1 %6540  ;;  %6669 = vrot.lane.b32.xlu0 %v6600_v22, %s8088_s23 }
 0xae4   : > { %6067 = vrot.lane.b32.xlu1 %v5979_v28, %s8087_s22 }
 0xae5   : > { %v12568_v18 = vpop.permute.xlu0 %6468 }
 0xae7   : > { %6697 = vrot.lane.b32.xlu0 %v6614_v47, %s8088_s23 }
 0xae8   : > { %v12573_v57 = vpop.permute.xlu1 %6188  ;;  %6339 = vrot.lane.b32.xlu1 %v6275_v29, %s8089_s24 }
 0xae9   : > { %v6497_v48 = vpop.permute.xlu0 %6496 }
 0xaea   : > { %v6602_v40 = vmul.f32 %v6497_v48, %v14333_v4  ;;  %v5986_v4 = vmul.f32 %v12421_v16, %v14440_v8  ;;  %v6955_v16 = vld [vmem:[%s13003_s9] sm:$0xff] }
 0xaeb   : > { %6077 = vrot.lane.b32.xlu0 %v5984_v52, %s8087_s22 }
 0xaec   : > { %v12581_v34 = vpop.permute.xlu1 %6244  ;;  %6351 = vrot.lane.b32.xlu1 %v6281_v41, %s8089_s24 }
 0xaed   : > { %v6553_v56 = vpop.permute.xlu0 %6552 }
 0xaee   : > { %v6616_v53 = vmul.f32 %v6553_v56, %v14403_v19  ;;  %v6288_v19 = vmul.f32 %v12529_v59, %v14363_v62  ;;  %v6599_v56 = vmul.f32 %v6485_v51, %v14303_v49  ;;  %v6613_v59 = vmul.f32 %v6541_v45, %v14374_v44 }
 0xaef   : > { %6361 = vrot.lane.b32.xlu0 %v6286_v21, %s8089_s24  ;;  %v6285_v45 = vmul.f32 %v12573_v57, %v14334_v13  ;;  %v6595_v57 = vmul.f32 %v12568_v18, %v14292_v14 }
 0xaf0   : > { %v6249_v22 = vpop.permute.xlu1 %6248  ;;  %6379 = vrot.lane.b32.xlu1 %v6295_v3, %s8089_s24 }
 0xaf1   : > { %v6300_v36 = vmul.f32 %v6249_v22, %v14423_v10  ;;  %v12590_v30 = vpop.permute.xlu0 %6500 }
 0xaf3   : > { %6389 = vrot.lane.b32.xlu0 %v6300_v36, %s8089_s24  ;;  %v7685_v36 = vpack.c.bf16 %v6956_v63, %v6955_v16 }
 0xaf4   : > { %6663 = vrot.lane.b32.xlu1 %v6597_v43, %s8088_s23 }
 0xaf5   : > { %v6473_v33 = vpop.permute.xlu1 %6472  ;;  %v6537_v28 = vpop.permute.xlu0 %6536  ;;  %7686 = vmatprep.subr.bf16.mxu1 %v7685_v36 }
 0xaf6   : > { %v6596_v47 = vmul.f32 %v6473_v33, %v14293_v50  ;;  %v6291_v50 = vmul.f32 %v12543_v54, %v14364_v20  ;;  %7688 = vmatpush3.bf16.msra.mxu1 %v7685_v36 }
 0xaf8   : > { %6071 = vrot.lane.b32.xlu1 %v5981_v2, %s8087_s22  ;;  %6661 = vrot.lane.b32.xlu0 %v6596_v47, %s8088_s23  ;;  %v5983_v2 = vmul.f32 %v12415_v23, %v14424_v7  ;;  %v6299_v23 = vmul.f32 %v12581_v34, %v14404_v42 }
 0xaf9   : > { %v6493_v29 = vpop.permute.xlu1 %6492  ;;  %v6561_v52 = vpop.permute.xlu0 %6560 }
 0xafa   : > { %v6601_v34 = vmul.f32 %v6493_v29, %v14314_v5  ;;  %v5985_v5 = vmul.f32 %v12423_v9, %v14431_v12  ;;  %v14484_v29 = vld [vmem:[#allocation140_spill] sm:$0xff] }
 0xafc   : > { %6355 = vrot.lane.b32.xlu1 %v6283_v25, %s8089_s24  ;;  %6673 = vrot.lane.b32.xlu0 %v6602_v40, %s8088_s23 }
 0xafd   : > { %v6549_v41 = vpop.permute.xlu1 %6548  ;;  %v12605_v21 = vpop.permute.xlu0 %6508 }
 0xafe   : > { %v6615_v14 = vmul.f32 %v6549_v41, %v14384_v11 }
 0xb00   : > { %6371 = vrot.lane.b32.xlu1 %v6291_v50, %s8089_s24  ;;  %6701 = vrot.lane.b32.xlu0 %v6616_v53, %s8088_s23  ;;  %v6612_v50 = vmul.f32 %v6537_v28, %v14383_v61  ;;  %v6290_v61 = vmul.f32 %v12538_v1, %v14373_v46 }
 0xb01   : > { %v12612_v3 = vpop.permute.xlu0 %6568 }
 0xb02   : > { %v6197_v48 = vpop.permute.xlu1 %6196 }
 0xb04   : > { %6383 = vrot.lane.b32.xlu1 %v6297_v35, %s8089_s24  ;;  %6081 = vrot.lane.b32.xlu0 %v5986_v4, %s8087_s22  ;;  %v14482_v4 = vld [vmem:[#allocation39_spill] sm:$0xff] }
 0xb05   : > { %v12620_v54 = vpop.permute.xlu0 %6572 }
 0xb06   : > { %v12625_v22 = vpop.permute.xlu1 %6252 }
 0xb08   : > { %6667 = vrot.lane.b32.xlu1 %v6599_v56, %s8088_s23  ;;  %6365 = vrot.lane.b32.xlu0 %v6288_v19, %s8089_s24  ;;  %v6618_v19 = vmul.f32 %v6561_v52, %v14413_v15  ;;  %v14483_v56 = vld [vmem:[#allocation99_spill] sm:$0xff] }
 0xb09   : > { %v12635_v43 = vpop.permute.xlu0 %6528  ;;  %v6118_v15 = vadd.f32 %v12436_v55, %v14483_v56  ;;  %v14485_v55 = vld [vmem:[#allocation169_spill] sm:$0xff] }
 0xb0a   : > { %v6257_v49 = vpop.permute.xlu1 %6256 }
 0xb0b   : > { %v6302_v51 = vmul.f32 %v6257_v49, %v14430_v60  ;;  %v6120_v49 = vadd.f32 %v12442_v31, %v14485_v55  ;;  %v6620_v31 = vmul.f32 %v12612_v3, %v14423_v10  ;;  %v14489_v3 = vld [vmem:[#allocation115_spill] sm:$0xff]  ;;  %v6605_v55 = vmul.f32 %v12605_v21, %v14334_v13  ;;  %v6957_v21 = vld [vmem:[%s13003_s9 + $0x10] sm:$0xff] }
 0xb0c   : > { %6695 = vrot.lane.b32.xlu1 %v6613_v59, %s8088_s23 }
 0xb0d   : > { %6393 = vrot.lane.b32.xlu0 %v6302_v51, %s8089_s24  ;;  %v12641_v33 = vpop.permute.xlu0 %6584  ;;  %v14486_v51 = vld [vmem:[#allocation72_spill] sm:$0xff] }
 0xb0f   : > { %v6505_v47 = vpop.permute.xlu1 %6504 }
 0xb10   : > { %v6604_v25 = vmul.f32 %v6505_v47, %v14343_v58  ;;  %6075 = vrot.lane.b32.xlu1 %v5983_v2, %s8087_s22  ;;  %v6287_v2 = vmul.f32 %v6197_v48, %v14486_v51 }
 0xb11   : > { %v12647_v44 = vpop.permute.xlu0 %6592 }
 0xb12   : > { %6677 = vrot.lane.b32.xlu0 %v6604_v25, %s8088_s23 }
 0xb13   : > { %v6533_v40 = vpop.permute.xlu1 %6532 }
 0xb14   : > { %6359 = vrot.lane.b32.xlu1 %v6285_v45, %s8089_s24  ;;  %v14487_v45 = vld [vmem:[#allocation150_spill] sm:$0xff] }
 0xb15   : > { %v6062_v53 = vpop.permute.xlu0 %6061  ;;  %v6134_v9 = vadd.f32 %v12489_v0, %v14487_v45  ;;  %v6306_v0 = vmul.f32 %v12547_v39, %v14440_v8  ;;  %v6958_v45 = vld [vmem:[%s13003_s9 + $0x18] sm:$0xff] }
 0xb16   : > { %v12657_v58 = vadd.f32 %v6062_v53, %v14482_v4  ;;  %6693 = vrot.lane.b32.xlu0 %v6612_v50, %s8088_s23  ;;  %v6603_v4 = vmul.f32 %v12590_v30, %v14324_v37 }
 0xb17   : > { %v6557_v35 = vpop.permute.xlu1 %6556 }
 0xb18   : > { %6387 = vrot.lane.b32.xlu1 %v6299_v23, %s8089_s24  ;;  %v6301_v23 = vmul.f32 %v12625_v22, %v14414_v24  ;;  %v6116_v22 = vadd.f32 %v12430_v17, %v14489_v3 }
 0xb1a   : > { %6705 = vrot.lane.b32.xlu0 %v6618_v19, %s8088_s23  ;;  %v14488_v19 = vld [vmem:[#allocation122_spill] sm:$0xff] }
 0xb1c   : > { %v6205_v28 = vpop.permute.xlu1 %6204  ;;  %6659 = vrot.lane.b32.xlu1 %v6595_v57, %s8088_s23 }
 0xb1e   : > { %6369 = vrot.lane.b32.xlu0 %v6290_v61, %s8089_s24 }
 0xb20   : > { %v6261_v52 = vpop.permute.xlu1 %6260  ;;  %6671 = vrot.lane.b32.xlu1 %v6601_v34, %s8088_s23  ;;  %v6611_v34 = vmul.f32 %v6533_v40, %v14364_v20  ;;  %v14491_v20 = vld [vmem:[#allocation175_spill] sm:$0xff] }
 0xb21   : > { %v6346_v16 = vpop.permute.xlu0 %6345  ;;  %v6289_v40 = vmul.f32 %v6205_v28, %v14491_v20  ;;  %v6610_v28 = vmul.f32 %v12635_v43, %v14373_v46 }
 0xb22   : > { %v6438_v18 = vadd.f32 %v6346_v16, %v6118_v15  ;;  %v14490_v15 = vld [vmem:[#allocation129_spill] sm:$0xff]  ;;  %v6617_v16 = vmul.f32 %v6557_v35, %v14394_v32  ;;  %v6303_v35 = vmul.f32 %v6261_v52, %v14424_v7 }
 0xb23   : > { %v6122_v37 = vadd.f32 %v12449_v26, %v14490_v15 }
 0xb24   : > { %v6265_v63 = vpop.permute.xlu1 %6264  ;;  %6699 = vrot.lane.b32.xlu1 %v6615_v14, %s8088_s23 }
 0xb25   : > { %v6304_v1 = vmul.f32 %v6265_v63, %v14437_v27  ;;  %v6066_v36 = vpop.permute.xlu0 %6065 }
 0xb26   : > { %v12679_v59 = vadd.f32 %v6066_v36, %v14484_v29 }
 0xb27   : > { %6397 = vrot.lane.b32.xlu0 %v6304_v1, %s8089_s24 }
 0xb28   : > { %6079 = vrot.lane.b32.xlu1 %v5985_v5, %s8087_s22 }
 0xb29   : > { %v6513_v11 = vpop.permute.xlu1 %6512  ;;  %v6350_v41 = vpop.permute.xlu0 %6349 }
 0xb2a   : > { %v6606_v47 = vmul.f32 %v6513_v11, %v14353_v6  ;;  %v12687_v25 = vadd.f32 %v6350_v41, %v6120_v49  ;;  %v14494_v11 = vld [vmem:[#allocation134_spill] sm:$0xff] }
 0xb2c   : > { %6363 = vrot.lane.b32.xlu1 %v6287_v2, %s8089_s24  ;;  %6681 = vrot.lane.b32.xlu0 %v6606_v47, %s8088_s23  ;;  %v6624_v2 = vmul.f32 %v12641_v33, %v14437_v27  ;;  %v6626_v33 = vmul.f32 %v12647_v44, %v14440_v8  ;;  %v14498_v8 = vld [vmem:[#allocation81_spill] sm:$0xff] }
 0xb2d   : > { %v6565_v50 = vpop.permute.xlu1 %6564  ;;  %v6378_v53 = vpop.permute.xlu0 %6377 }
 0xb2e   : > { %v12697_v48 = vadd.f32 %v6378_v53, %v6134_v9  ;;  %v6619_v43 = vmul.f32 %v6565_v50, %v14404_v42  ;;  %v14495_v9 = vld [vmem:[#allocation236_spill] sm:$0xff]  ;;  %v7689_v42 = vpack.c.bf16 %v6958_v45, %v6957_v21 }
 0xb2f   : > { %v6132_v27 = vadd.f32 %v12484_v38, %v14495_v9 }
 0xb30   : > { %6391 = vrot.lane.b32.xlu1 %v6301_v23, %s8089_s24  ;;  %6709 = vrot.lane.b32.xlu0 %v6620_v31, %s8088_s23 }
 0xb31   : > { %v6070_v6 = vpop.permute.xlu0 %6069  ;;  %7690 = vmatprep.subr.bf16.mxu1 %v7689_v42 }
 0xb32   : > { %v12706_v57 = vadd.f32 %v6070_v6, %v14488_v19  ;;  %v6269_v10 = vpop.permute.xlu1 %6268  ;;  %7692 = vmatpush3.bf16.msra.mxu1 %v7689_v42  ;;  %v14496_v6 = vld [vmem:[#allocation206_spill] sm:$0xff]  ;;  %v14511_v42 = vld [vmem:[#allocation257_spill] sm:$0xff] }
 0xb33   : > { %v6305_v53 = vmul.f32 %v6269_v10, %v14431_v12 }
 0xb34   : > { %6675 = vrot.lane.b32.xlu1 %v6603_v4, %s8088_s23  ;;  %6401 = vrot.lane.b32.xlu0 %v6306_v0, %s8089_s24  ;;  %v14497_v4 = vld [vmem:[#allocation18_spill] sm:$0xff] }
 0xb35   : > { %v6342_v61 = vpop.permute.xlu0 %6341  ;;  %v6117_v44 = vadd.f32 %v14498_v8, %v14497_v4 }
 0xb36   : > { %v12713_v56 = vadd.f32 %v6342_v61, %v6116_v22 }
 0xb37   : > { %v6517_v39 = vpop.permute.xlu1 %6516 }
 0xb38   : > { %6691 = vrot.lane.b32.xlu1 %v6611_v34, %s8088_s23  ;;  %v6607_v19 = vmul.f32 %v6517_v39, %v14486_v51  ;;  %v6621_v34 = vmul.f32 %v12620_v54, %v14414_v24  ;;  %v14500_v51 = vld [vmem:[#allocation144_spill] sm:$0xff]  ;;  %v14502_v54 = vld [vmem:[#allocation87_spill] sm:$0xff] }
 0xb39   : > { %v6354_v30 = vpop.permute.xlu0 %6353  ;;  %v14501_v39 = vld [vmem:[#allocation64_spill] sm:$0xff] }
 0xb3a   : > { %v12719_v14 = vadd.f32 %v6354_v30, %v6122_v37  ;;  %v14499_v30 = vld [vmem:[#allocation119_spill] sm:$0xff] }
 0xb3b   : > { %v6521_v17 = vpop.permute.xlu1 %6520 }
 0xb3c   : > { %v6608_v63 = vmul.f32 %v6521_v17, %v14363_v62  ;;  %6703 = vrot.lane.b32.xlu1 %v6617_v16, %s8088_s23 }
 0xb3d   : > { %v6382_v1 = vpop.permute.xlu0 %6381 }
 0xb3e   : > { %v12725_v36 = vadd.f32 %v6382_v1, %v12657_v58  ;;  %6685 = vrot.lane.b32.xlu0 %v6608_v63, %s8088_s23 }
 0xb3f   : > { %v6577_v26 = vpop.permute.xlu1 %6576 }
 0xb40   : > { %v6622_v5 = vmul.f32 %v6577_v26, %v14430_v60  ;;  %6367 = vrot.lane.b32.xlu1 %v6289_v40, %s8089_s24  ;;  %v14492_v60 = vld [vmem:[#allocation114_spill] sm:$0xff] }
 0xb41   : > { %v6666_v32 = vpop.permute.xlu0 %6665 }
 0xb42   : > { %v12731_v29 = vadd.f32 %v6666_v32, %v6438_v18  ;;  %6713 = vrot.lane.b32.xlu0 %v6622_v5, %s8088_s23  ;;  %v14493_v18 = vld [vmem:[#allocation30_spill] sm:$0xff] }
 0xb43   : > { %v6525_v62 = vpop.permute.xlu1 %6524  ;;  %v6124_v41 = vadd.f32 %v14494_v11, %v14493_v18 }
 0xb44   : > { %6395 = vrot.lane.b32.xlu1 %v6303_v35, %s8089_s24  ;;  %v6609_v63 = vmul.f32 %v6525_v62, %v14491_v20  ;;  %v14504_v35 = vld [vmem:[#allocation198_spill] sm:$0xff]  ;;  %v6798_v4 = vsel %vm6787_vm4, %v12731_v29, 0.0 }
 0xb45   : > { %v6074_v58 = vpop.permute.xlu0 %6073 }
 0xb46   : > { %v12740_v49 = vadd.f32 %v6074_v58, %v14492_v60  ;;  %6689 = vrot.lane.b32.xlu0 %v6610_v28, %s8088_s23  ;;  %v14506_v60 = vld [vmem:[#allocation124_spill] sm:$0xff] }
 0xb47   : > { %v6581_v52 = vpop.permute.xlu1 %6580 }
 0xb48   : > { %6679 = vrot.lane.b32.xlu1 %v6605_v55, %s8088_s23  ;;  %v6623_v32 = vmul.f32 %v6581_v52, %v14424_v7  ;;  %v14505_v55 = vld [vmem:[#allocation96_spill] sm:$0xff]  ;;  %v14508_v52 = vld [vmem:[#allocation159_spill] sm:$0xff] }
 0xb49   : > { %v6358_v46 = vpop.permute.xlu0 %6357  ;;  %v6126_v18 = vadd.f32 %v14506_v60, %v14505_v55 }
 0xb4a   : > { %v12749_v47 = vadd.f32 %v6358_v46, %v6124_v41  ;;  %6717 = vrot.lane.b32.xlu0 %v6624_v2, %s8088_s23  ;;  %v14507_v2 = vld [vmem:[#allocation202_spill] sm:$0xff] }
 0xb4b   : > { %v6589_v13 = vpop.permute.xlu1 %6588 }
 0xb4c   : > { %6707 = vrot.lane.b32.xlu1 %v6619_v43, %s8088_s23  ;;  %v6625_v62 = vmul.f32 %v6589_v13, %v14431_v12  ;;  %v14509_v43 = vld [vmem:[#allocation121_spill] sm:$0xff] }
 0xb4d   : > { %v6374_v50 = vpop.permute.xlu0 %6373  ;;  %v6115_v21 = vadd.f32 %v14509_v43, %v14508_v52  ;;  %v14518_v43 = vld [vmem:[#allocation116_spill] sm:$0xff] }
 0xb4e   : > { %v12764_v31 = vadd.f32 %v6374_v50, %v6132_v27  ;;  %6721 = vrot.lane.b32.xlu0 %v6626_v33, %s8088_s23  ;;  %v14510_v33 = vld [vmem:[#allocation120_spill] sm:$0xff] }
 0xb4f   : > { %v6060_v23 = vpop.permute.xlu1 %6059  ;;  %v6121_v50 = vadd.f32 %v14511_v42, %v14510_v33 }
 0xb50   : > { %v6135_v0 = vadd.f32 %v6060_v23, %v14496_v6  ;;  %6399 = vrot.lane.b32.xlu1 %v6305_v53, %s8089_s24 }
 0xb51   : > { %v6386_v38 = vpop.permute.xlu0 %6385 }
 0xb52   : > { %v12773_v3 = vadd.f32 %v6386_v38, %v12679_v59  ;;  %v6119_v59 = vadd.f32 %v14501_v39, %v14500_v51  ;;  %v14515_v39 = vld [vmem:[#allocation135_spill] sm:$0xff] }
 0xb53   : > { %v6344_v10 = vpop.permute.xlu1 %6343 }
 0xb54   : > { %v6437_v22 = vadd.f32 %v6344_v10, %v6117_v44  ;;  %6683 = vrot.lane.b32.xlu1 %v6607_v19, %s8088_s23  ;;  %v14512_v10 = vld [vmem:[#allocation66_spill] sm:$0xff] }
 0xb55   : > { %v6670_v61 = vpop.permute.xlu0 %6669 }
 0xb56   : > { %v6760_v15 = vadd.f32 %v6670_v61, %v12687_v25  ;;  %v14503_v25 = vld [vmem:[#allocation106_spill] sm:$0xff] }
 0xb57   : > { %v6064_v37 = vpop.permute.xlu1 %6063  ;;  %v6133_v5 = vadd.f32 %v14503_v25, %v14502_v54 }
 0xb58   : > { %v6137_v16 = vadd.f32 %v6064_v37, %v14499_v30  ;;  %6711 = vrot.lane.b32.xlu1 %v6621_v34, %s8088_s23  ;;  %v14513_v34 = vld [vmem:[#allocation82_spill] sm:$0xff]  ;;  %v14514_v37 = vld [vmem:[#allocation209_spill] sm:$0xff] }
 0xb59   : > { %v6698_v17 = vpop.permute.xlu0 %6697  ;;  %v6123_v30 = vadd.f32 %v14514_v37, %v14513_v34 }
 0xb5a   : > { %v6774_v1 = vadd.f32 %v6698_v17, %v12697_v48 }
 0xb5b   : > { %v6348_v40 = vpop.permute.xlu1 %6347 }
 0xb5c   : > { %v6439_v26 = vadd.f32 %v6348_v40, %v6119_v59  ;;  %6687 = vrot.lane.b32.xlu1 %v6609_v63, %s8088_s23 }
 0xb5d   : > { %v6078_v24 = vpop.permute.xlu0 %6077 }
 0xb5e   : > { %v12790_v28 = vadd.f32 %v6078_v24, %v14504_v35  ;;  %v6807_v35 = vsel %vm6787_vm4, %v6760_v15, 0.0  ;;  %v14519_v15 = vld [vmem:[#allocation105_spill] sm:$0xff] }
 0xb5f   : > { %v6376_v58 = vpop.permute.xlu1 %6375 }
 0xb60   : > { %v6453_v20 = vadd.f32 %v6376_v58, %v6133_v5  ;;  %6715 = vrot.lane.b32.xlu1 %v6623_v32, %s8088_s23 }
 0xb61   : > { %v6362_v48 = vpop.permute.xlu0 %6361 }
 0xb62   : > { %v12796_v11 = vadd.f32 %v6362_v48, %v6126_v18  ;;  %v6870_v48 = vsel %vm6787_vm4, %v6774_v1, 0.0 }
 0xb63   : > { %v6068_v41 = vpop.permute.xlu1 %6067 }
 0xb64   : > { %v6139_v46 = vadd.f32 %v6068_v41, %v14507_v2  ;;  %6719 = vrot.lane.b32.xlu1 %v6625_v62, %s8088_s23 }
 0xb65   : > { %v6390_v7 = vpop.permute.xlu0 %6389 }
 0xb66   : > { %v12803_v45 = vadd.f32 %v6390_v7, %v12706_v57  ;;  %v14517_v7 = vld [vmem:[#allocation239_spill] sm:$0xff] }
 0xb67   : > { %v6340_v9 = vpop.permute.xlu1 %6339 }
 0xb68   : > { %v6435_v27 = vadd.f32 %v6340_v9, %v6115_v21  ;;  %v6125_v21 = vadd.f32 %v14519_v15, %v14518_v43 }
 0xb6a   : > { %v6662_v57 = vpop.permute.xlu0 %6661 }
 0xb6b   : > { %v6352_v12 = vpop.permute.xlu1 %6351 }
 0xb6c   : > { %v6441_v13 = vadd.f32 %v6352_v12, %v6121_v50 }
 0xb6e   : > { %v6674_v51 = vpop.permute.xlu0 %6673 }
 0xb6f   : > { %v6380_v53 = vpop.permute.xlu1 %6379 }
 0xb70   : > { %v12807_v23 = vadd.f32 %v6380_v53, %v6135_v0 }
 0xb72   : > { %v6702_v40 = vpop.permute.xlu0 %6701 }
 0xb73   : > { %v6664_v6 = vpop.permute.xlu1 %6663 }
 0xb74   : > { %v6757_v38 = vadd.f32 %v6664_v6, %v6437_v22  ;;  %v14516_v22 = vld [vmem:[#allocation139_spill] sm:$0xff] }
 0xb75   : > { %v6131_v59 = vadd.f32 %v14516_v22, %v14515_v39 }
 0xb76   : > { %v6797_v8 = vsel %vm6787_vm4, %v6757_v38, 0.0  ;;  %v12825_v32 = vpop.permute.xlu0 %6081  ;;  %v6756_v38 = vadd.f32 %v6662_v57, %v12713_v56  ;;  %v6776_v57 = vadd.f32 %v6702_v40, %v12725_v36 }
 0xb77   : > { %v6799_v44 = vadd.f32 %v6798_v4, %v6797_v8  ;;  %v6072_v19 = vpop.permute.xlu1 %6071 }
 0xb78   : > { %v12813_v61 = vadd.f32 %v6072_v19, %v14512_v10  ;;  %v6789_v37 = vsel %vm6787_vm4, %v6756_v38, 0.0 }
 0xb79   : > { %v6800_v52 = vrot.slane %v6799_v44, 4 }
 0xb7a   : > { %v12831_v41 = vpop.permute.xlu0 %6365 }
 0xb7b   : > { %v6356_v17 = vpop.permute.xlu1 %6355 }
 0xb7c   : > { %v12817_v0 = vadd.f32 %v6356_v17, %v6123_v30  ;;  %v6762_v30 = vadd.f32 %v6674_v51, %v12719_v14 }
 0xb7e   : > { %v6816_v56 = vsel %vm6787_vm4, %v6762_v30, 0.0 }
 0xb7f   : > { %v6372_v63 = vpop.permute.xlu1 %6371  ;;  %v12842_v1 = vpop.permute.xlu0 %6393 }
 0xb80   : > { %v12821_v29 = vadd.f32 %v6372_v63, %v6131_v59 }
 0xb83   : > { %v6384_v24 = vpop.permute.xlu1 %6383 }
 0xb84   : > { %v12823_v54 = vadd.f32 %v6384_v24, %v6137_v16  ;;  %v6678_v8 = vpop.permute.xlu0 %6677 }
 0xb87   : > { %v6668_v25 = vpop.permute.xlu1 %6667 }
 0xb88   : > { %v6759_v5 = vadd.f32 %v6668_v25, %v6439_v26  ;;  %v6694_v63 = vpop.permute.xlu0 %6693 }
 0xb8a   : > { %v6806_v58 = vsel %vm6787_vm4, %v6759_v5, 0.0 }
 0xb8b   : > { %v6808_v55 = vadd.f32 %v6807_v35, %v6806_v58  ;;  %v6696_v60 = vpop.permute.xlu1 %6695 }
 0xb8c   : > { %v6773_v18 = vadd.f32 %v6696_v60, %v6453_v20  ;;  %v6801_v20 = vadd.f32 %v6800_v52, %v6799_v44  ;;  %v6706_v40 = vpop.permute.xlu0 %6705 }
 0xb8d   : > { %v6809_v9 = vrot.slane %v6808_v55, 4 }
 0xb8e   : > { %v6869_v62 = vsel %vm6787_vm4, %v6773_v18, 0.0  ;;  %v6802_v6 = vrot.slane %v6801_v20, 2  ;;  %v12858_v18 = vld [vmem:[%s13002_s8] ss:$0 sm:$0xff] }
 0xb8f   : > { %v12833_v2 = vadd.f32 %v6870_v48, %v6869_v62  ;;  %v6076_v16 = vpop.permute.xlu1 %6075  ;;  %v6810_v50 = vadd.f32 %v6809_v9, %v6808_v55 }
 0xb90   : > { %v12836_v26 = vadd.f32 %v6076_v16, %v14517_v7  ;;  %v6803_v34 = vadd.f32 %v6802_v6, %v6801_v20  ;;  %v12868_v6 = vpop.permute.xlu0 %6369 }
 0xb91   : > { %v6811_v4 = vrot.slane %v6810_v50, 2 }
 0xb93   : > { %v6360_v33 = vpop.permute.xlu1 %6359  ;;  %v6812_v17 = vadd.f32 %v6811_v4, %v6810_v50 }
 0xb94   : > { %v12840_v42 = vadd.f32 %v6360_v33, %v6125_v21 }
 0xb95   : > { %v6813_v25 = vrot.slane %v6812_v17, 1 }
 0xb97   : > { %v6388_v12 = vpop.permute.xlu1 %6387  ;;  %v6814_v48 = vadd.f32 %v6813_v25, %v6812_v17 }
 0xb98   : > { %v12844_v53 = vadd.f32 %v6388_v12, %v6139_v46  ;;  %v6804_v46 = vrot.slane %v6803_v34, 1  ;;  %v6872_v12 = vrot.slane %v12833_v2, 4 }
 0xb99   : > { %v6941_v21 = vadd.f32 %v12858_v18, %v6814_v48 }
 0xb9a   : > { %v6805_v51 = vadd.f32 %v6804_v46, %v6803_v34 }
 0xb9b   : > { %v6660_v19 = vpop.permute.xlu1 %6659 }
 0xb9c   : > { %v6755_v10 = vadd.f32 %v6660_v19, %v6435_v27  ;;  %v6985_v19 = vrot.slane %v6941_v21, 6 }
 0xb9e   : > { %v6788_v44 = vsel %vm6787_vm4, %v6755_v10, 0.0 }
 0xb9f   : > { %v6790_v39 = vadd.f32 %v6789_v37, %v6788_v44  ;;  %v6672_v22 = vpop.permute.xlu1 %6671  ;;  %v6873_v44 = vadd.f32 %v6872_v12, %v12833_v2 }
 0xba0   : > { %v6761_v59 = vadd.f32 %v6672_v22, %v6441_v13  ;;  %v6879_v13 = vsel %vm6787_vm4, %v6776_v57, 0.0 }
 0xba1   : > { %v6791_v24 = vrot.slane %v6790_v39, 4  ;;  %v6874_v25 = vrot.slane %v6873_v44, 2 }
 0xba2   : > { %v6815_v27 = vsel %vm6787_vm4, %v6761_v59, 0.0  ;;  %v6764_v59 = vadd.f32 %v6678_v8, %v12749_v47 }
 0xba3   : > { %v6792_v5 = vadd.f32 %v6791_v24, %v6790_v39  ;;  %v6817_v35 = vadd.f32 %v6816_v56, %v6815_v27  ;;  %v6700_v58 = vpop.permute.xlu1 %6699  ;;  %v12876_v39 = vpop.permute.xlu0 %6397  ;;  %v6875_v8 = vadd.f32 %v6874_v25, %v6873_v44 }
 0xba4   : > { %v6775_v14 = vadd.f32 %v6700_v58, %v12807_v23  ;;  %v6940_v23 = vadd.f32 %v12858_v18, %v6805_v51 }
 0xba5   : > { %v6793_v55 = vrot.slane %v6792_v5, 2  ;;  %v6818_v60 = vrot.slane %v6817_v35, 4 }
 0xba6   : > { %v6878_v36 = vsel %vm6787_vm4, %v6775_v14, 0.0  ;;  %v6982_v50 = vrot.slane %v6940_v23, 7 }
 0xba7   : > { %v6794_v62 = vadd.f32 %v6793_v55, %v6792_v5  ;;  %v6819_v16 = vadd.f32 %v6818_v60, %v6817_v35  ;;  %v6880_v7 = vadd.f32 %v6879_v13, %v6878_v36  ;;  %v12861_v52 = vpop.permute.xlu1 %6079  ;;  %v6825_v5 = vsel %vm6787_vm4, %v6764_v59, 0.0  ;;  %v6682_v14 = vpop.permute.xlu0 %6681 }
 0xba8   : > { %v6772_v35 = vadd.f32 %v6694_v63, %v12764_v31 }
 0xba9   : > { %v6795_v43 = vrot.slane %v6794_v62, 1  ;;  %v6820_v15 = vrot.slane %v6819_v16, 2  ;;  %v6881_v10 = vrot.slane %v6880_v7, 4 }
 0xbaa   : > { %v6861_v13 = vsel %vm6787_vm4, %v6772_v35, 0.0 }
 0xbab   : > { %v6796_v9 = vadd.f32 %v6795_v43, %v6794_v62  ;;  %v6821_v33 = vadd.f32 %v6820_v15, %v6819_v16  ;;  %v12865_v20 = vpop.permute.xlu1 %6363  ;;  %v6882_v46 = vadd.f32 %v6881_v10, %v6880_v7  ;;  %v6876_v7 = vrot.slane %v6875_v8, 1  ;;  %v6710_v23 = vpop.permute.xlu0 %6709 }
 0xbad   : > { %v6939_v38 = vadd.f32 %v12858_v18, %v6796_v9  ;;  %v6822_v4 = vrot.slane %v6821_v33, 1  ;;  %v6883_v2 = vrot.slane %v6882_v46, 2  ;;  %v6877_v12 = vadd.f32 %v6876_v7, %v6875_v8 }
 0xbaf   : > { %v6984_v34 = vsel %vm6983_vm5, %v6982_v50, %v6939_v38  ;;  %v6823_v37 = vadd.f32 %v6822_v4, %v6821_v33  ;;  %v12872_v30 = vpop.permute.xlu1 %6391  ;;  %v6884_v48 = vadd.f32 %v6883_v2, %v6882_v46 }
 0xbb0   : > { %v6987_v17 = vsel %vm6986_vm6, %v6985_v19, %v6984_v34 }
 0xbb1   : > { %v6942_v22 = vadd.f32 %v12858_v18, %v6823_v37  ;;  %v6885_v21 = vrot.slane %v6884_v48, 1 }
 0xbb3   : > { %v6988_v24 = vrot.slane %v6942_v22, 5  ;;  %v6676_v56 = vpop.permute.xlu1 %6675  ;;  %v6886_v10 = vadd.f32 %v6885_v21, %v6884_v48  ;;  %v6948_v22 = vadd.f32 %v12858_v18, %v6877_v12 }
 0xbb4   : > { %v6763_v57 = vadd.f32 %v6676_v56, %v12817_v0  ;;  %v6778_v0 = vadd.f32 %v6706_v40, %v12773_v3  ;;  %v6766_v56 = vadd.f32 %v6682_v14, %v12796_v11  ;;  %v6780_v11 = vadd.f32 %v6710_v23, %v12803_v45 }
 0xbb5   : > { %v6990_v27 = vsel %vm6989_vm7, %v6988_v24, %v6987_v17 }
 0xbb6   : > { %v6824_v58 = vsel %vm6787_vm4, %v6763_v57, 0.0  ;;  %v6949_v57 = vadd.f32 %v12858_v18, %v6886_v10  ;;  %v6897_v45 = vsel %vm6787_vm4, %v6780_v11, 0.0  ;;  %v14526_v11 = vld [vmem:[#allocation54_spill] sm:$0xff] }
 0xbb7   : > { %v6826_v51 = vadd.f32 %v6825_v5, %v6824_v58  ;;  %v6692_v55 = vpop.permute.xlu1 %6691 }
 0xbb8   : > { %v6771_v47 = vadd.f32 %v6692_v55, %v12821_v29  ;;  %v6888_v29 = vsel %vm6787_vm4, %v6778_v0, 0.0  ;;  %v7003_v55 = vrot.slane %v6948_v22, 7  ;;  %v7005_v14 = vrot.slane %v6949_v57, 6  ;;  %v14524_v57 = vld [vmem:[#allocation107_spill] sm:$0xff] }
 0xbb9   : > { %v6827_v60 = vrot.slane %v6826_v51, 4 }
 0xbba   : > { %v6860_v36 = vsel %vm6787_vm4, %v6771_v47, 0.0 }
 0xbbb   : > { %v6828_v62 = vadd.f32 %v6827_v60, %v6826_v51  ;;  %v6862_v16 = vadd.f32 %v6861_v13, %v6860_v36  ;;  %v6704_v31 = vpop.permute.xlu1 %6703  ;;  %v6834_v13 = vsel %vm6787_vm4, %v6766_v56, 0.0 }
 0xbbc   : > { %v6777_v63 = vadd.f32 %v6704_v31, %v12823_v54  ;;  %v12894_v54 = vpop.permute.xlu0 %6401 }
 0xbbd   : > { %v6829_v43 = vrot.slane %v6828_v62, 2  ;;  %v6863_v15 = vrot.slane %v6862_v16, 4 }
 0xbbe   : > { %v6887_v9 = vsel %vm6787_vm4, %v6777_v63, 0.0 }
 0xbbf   : > { %v6830_v33 = vadd.f32 %v6829_v43, %v6828_v62  ;;  %v6864_v50 = vadd.f32 %v6863_v15, %v6862_v16  ;;  %v6889_v3 = vadd.f32 %v6888_v29, %v6887_v9  ;;  %v12892_v40 = vpop.permute.xlu1 %6367  ;;  %v14520_v43 = vld [vmem:[#allocation164_spill] sm:$0xff]  ;;  %v14521_v15 = vld [vmem:[#allocation261_spill] sm:$0xff] }
 0xbc0   : > { %v6686_v25 = vpop.permute.xlu0 %6685  ;;  %v6128_v29 = vadd.f32 %v14521_v15, %v14520_v43 }
 0xbc1   : > { %v6831_v38 = vrot.slane %v6830_v33, 1  ;;  %v6865_v4 = vrot.slane %v6864_v50, 2  ;;  %v6890_v19 = vrot.slane %v6889_v3, 4 }
 0xbc3   : > { %v6832_v34 = vadd.f32 %v6831_v38, %v6830_v33  ;;  %v6866_v37 = vadd.f32 %v6865_v4, %v6864_v50  ;;  %v6891_v17 = vadd.f32 %v6890_v19, %v6889_v3  ;;  %v12896_v44 = vpop.permute.xlu1 %6395  ;;  %v14522_v3 = vld [vmem:[#allocation102_spill] sm:$0xff]  ;;  %v6448_v38 = vadd.f32 %v12831_v41, %v6128_v29 }
 0xbc4   : > { %v6714_v63 = vpop.permute.xlu0 %6713 }
 0xbc5   : > { %v6943_v59 = vadd.f32 %v12858_v18, %v6832_v34  ;;  %v6867_v46 = vrot.slane %v6866_v37, 1  ;;  %v6892_v24 = vrot.slane %v6891_v17, 2 }
 0xbc7   : > { %v6991_v5 = vrot.slane %v6943_v59, 4  ;;  %v6868_v35 = vadd.f32 %v6867_v46, %v6866_v37  ;;  %v6893_v2 = vadd.f32 %v6892_v24, %v6891_v17  ;;  %v6680_v58 = vpop.permute.xlu1 %6679  ;;  %v6768_v37 = vadd.f32 %v6686_v25, %v6448_v38 }
 0xbc8   : > { %v6765_v51 = vadd.f32 %v6680_v58, %v12840_v42  ;;  %v6690_v17 = vpop.permute.xlu0 %6689  ;;  %v6462_v24 = vadd.f32 %v12842_v1, %v12740_v49  ;;  %v6461_v58 = vadd.f32 %v12872_v30, %v12813_v61  ;;  %v14527_v49 = vld [vmem:[#allocation91_spill] sm:$0xff] }
 0xbc9   : > { %v6947_v47 = vadd.f32 %v12858_v18, %v6868_v35  ;;  %v6894_v8 = vrot.slane %v6893_v2, 1  ;;  %v12905_v60 = vsel %vm6992_vm8, %v6991_v5, %v6990_v27  ;;  %v14525_v5 = vld [vmem:[#allocation201_spill] sm:$0xff]  ;;  %v6129_v1 = vadd.f32 %v14527_v49, %v14526_v11 }
 0xbca   : > { %v6833_v0 = vsel %vm6787_vm4, %v6765_v51, 0.0  ;;  %v6130_v35 = vadd.f32 %v14525_v5, %v14524_v57  ;;  %v6843_v51 = vsel %vm6787_vm4, %v6768_v37, 0.0 }
 0xbcb   : > { %v7004_v48 = vsel %vm6983_vm5, %v7003_v55, %v6947_v47  ;;  %v6895_v36 = vadd.f32 %v6894_v8, %v6893_v2  ;;  %v6835_v62 = vadd.f32 %v6834_v13, %v6833_v0  ;;  %v6708_v16 = vpop.permute.xlu1 %6707 }
 0xbcc   : > { %v6779_v42 = vadd.f32 %v6708_v16, %v12844_v53  ;;  %v7006_v31 = vsel %vm6986_vm6, %v7005_v14, %v7004_v48  ;;  %v14523_v53 = vld [vmem:[#allocation14_spill] sm:$0xff]  ;;  %v6450_v14 = vadd.f32 %v12868_v6, %v6130_v35  ;;  %v6718_v48 = vpop.permute.xlu0 %6717  ;;  %v14528_v6 = vld [vmem:[#allocation47_spill] sm:$0xff] }
 0xbcd   : > { %v6950_v27 = vadd.f32 %v12858_v18, %v6895_v36  ;;  %v6836_v7 = vrot.slane %v6835_v62, 4  ;;  %v6127_v12 = vadd.f32 %v14523_v53, %v14522_v3  ;;  %v6146_v29 = vadd.f32 %v12825_v32, %v14528_v6 }
 0xbce   : > { %v6896_v23 = vsel %vm6787_vm4, %v6779_v42, 0.0  ;;  %v6770_v16 = vadd.f32 %v6690_v17, %v6450_v14  ;;  %v6449_v42 = vadd.f32 %v12892_v40, %v6129_v1  ;;  %v14529_v17 = vld [vmem:[#allocation117_spill] sm:$0xff] }
 0xbcf   : > { %v7007_v21 = vrot.slane %v6950_v27, 5  ;;  %v6837_v9 = vadd.f32 %v6836_v7, %v6835_v62  ;;  %v6898_v33 = vadd.f32 %v6897_v45, %v6896_v23  ;;  %v12918_v50 = vpop.permute.xlu1 %6399  ;;  %v6447_v34 = vadd.f32 %v12865_v20, %v6127_v12 }
 0xbd0   : > { %v6782_v20 = vadd.f32 %v6714_v63, %v6462_v24  ;;  %v6464_v45 = vadd.f32 %v12876_v39, %v12790_v28  ;;  %v6852_v3 = vsel %vm6787_vm4, %v6770_v16, 0.0  ;;  %v6463_v12 = vadd.f32 %v12896_v44, %v12836_v26  ;;  %v6722_v32 = vpop.permute.xlu0 %6721 }
 0xbd1   : > { %v6838_v4 = vrot.slane %v6837_v9, 2  ;;  %v6899_v19 = vrot.slane %v6898_v33, 4  ;;  %v7008_v10 = vsel %vm6989_vm7, %v7007_v21, %v7006_v31  ;;  %v6466_v37 = vadd.f32 %v12894_v54, %v6146_v29 }
 0xbd2   : > { %v6906_v30 = vsel %vm6787_vm4, %v6782_v20, 0.0  ;;  %v6784_v53 = vadd.f32 %v6718_v48, %v6464_v45 }
 0xbd3   : > { %v6839_v22 = vadd.f32 %v6838_v4, %v6837_v9  ;;  %v6900_v59 = vadd.f32 %v6899_v19, %v6898_v33  ;;  %v6684_v46 = vpop.permute.xlu1 %6683  ;;  %v6786_v44 = vadd.f32 %v6722_v32, %v6466_v37 }
 0xbd4   : > { %v6767_v56 = vadd.f32 %v6684_v46, %v6447_v34  ;;  %v6915_v26 = vsel %vm6787_vm4, %v6784_v53, 0.0  ;;  %v7404_v53 = vld [vmem:[%s13004_s10] ss:$0 sm:$0xff] }
 0xbd5   : > { %v6840_v2 = vrot.slane %v6839_v22, 1  ;;  %v6901_v41 = vrot.slane %v6900_v59, 2 }
 0xbd6   : > { %v6842_v25 = vsel %vm6787_vm4, %v6767_v56, 0.0 }
 0xbd7   : > { %v6841_v55 = vadd.f32 %v6840_v2, %v6839_v22  ;;  %v6902_v47 = vadd.f32 %v6901_v41, %v6900_v59  ;;  %v6844_v8 = vadd.f32 %v6843_v51, %v6842_v25  ;;  %v6712_v13 = vpop.permute.xlu1 %6711  ;;  %v6145_v22 = vadd.f32 %v12861_v52, %v14529_v17 }
 0xbd8   : > { %v6781_v0 = vadd.f32 %v6712_v13, %v6461_v58 }
 0xbd9   : > { %v6944_v36 = vadd.f32 %v12858_v18, %v6841_v55  ;;  %v6903_v62 = vrot.slane %v6902_v47, 1  ;;  %v6845_v61 = vrot.slane %v6844_v8, 4  ;;  %v6465_v57 = vadd.f32 %v12918_v50, %v6145_v22 }
 0xbda   : > { %v6905_v31 = vsel %vm6787_vm4, %v6781_v0, 0.0 }
 0xbdb   : > { %v6994_v63 = vrot.slane %v6944_v36, 3  ;;  %v6904_v27 = vadd.f32 %v6903_v62, %v6902_v47  ;;  %v6846_v7 = vadd.f32 %v6845_v61, %v6844_v8  ;;  %v6907_v43 = vadd.f32 %v6906_v30, %v6905_v31  ;;  %v6688_v15 = vpop.permute.xlu1 %6687 }
 0xbdc   : > { %v6769_v23 = vadd.f32 %v6688_v15, %v6449_v42 }
 0xbdd   : > { %v6951_v21 = vadd.f32 %v12858_v18, %v6904_v27  ;;  %v6847_v9 = vrot.slane %v6846_v7, 2  ;;  %v6908_v33 = vrot.slane %v6907_v43, 4  ;;  %v6996_v40 = vsel %vm6995_vm9, %v6994_v63, %v12905_v60 }
 0xbde   : > { %v6851_v38 = vsel %vm6787_vm4, %v6769_v23, 0.0 }
 0xbdf   : > { %v7009_v4 = vrot.slane %v6951_v21, 4  ;;  %v6848_v19 = vadd.f32 %v6847_v9, %v6846_v7  ;;  %v6909_v28 = vadd.f32 %v6908_v33, %v6907_v43  ;;  %v6853_v39 = vadd.f32 %v6852_v3, %v6851_v38  ;;  %v6716_v34 = vpop.permute.xlu1 %6715 }
 0xbe0   : > { %v6783_v60 = vadd.f32 %v6716_v34, %v6463_v12 }
 0xbe1   : > { %v6849_v59 = vrot.slane %v6848_v19, 1  ;;  %v6910_v46 = vrot.slane %v6909_v28, 2  ;;  %v6854_v24 = vrot.slane %v6853_v39, 4  ;;  %v7010_v56 = vsel %vm6992_vm8, %v7009_v4, %v7008_v10 }
 0xbe2   : > { %v6914_v5 = vsel %vm6787_vm4, %v6783_v60, 0.0  ;;  %v6924_v10 = vsel %vm6787_vm4, %v6786_v44, 0.0 }
 0xbe3   : > { %v6850_v35 = vadd.f32 %v6849_v59, %v6848_v19  ;;  %v6911_v2 = vadd.f32 %v6910_v46, %v6909_v28  ;;  %v6855_v41 = vadd.f32 %v6854_v24, %v6853_v39  ;;  %v6916_v54 = vadd.f32 %v6915_v26, %v6914_v5  ;;  %v6720_v58 = vpop.permute.xlu1 %6719 }
 0xbe4   : > { %v6785_v51 = vadd.f32 %v6720_v58, %v6465_v57 }
 0xbe5   : > { %v6912_v52 = vrot.slane %v6911_v2, 1  ;;  %v6856_v20 = vrot.slane %v6855_v41, 2  ;;  %v6917_v25 = vrot.slane %v6916_v54, 4  ;;  %v6945_v55 = vadd.f32 %v12858_v18, %v6850_v35 }
 0xbe6   : > { %v6923_v47 = vsel %vm6787_vm4, %v6785_v51, 0.0 }
 0xbe7   : > { %v6913_v8 = vadd.f32 %v6912_v52, %v6911_v2  ;;  %v6857_v50 = vadd.f32 %v6856_v20, %v6855_v41  ;;  %v6918_v13 = vadd.f32 %v6917_v25, %v6916_v54  ;;  %v6925_v11 = vadd.f32 %v6924_v10, %v6923_v47 }
 0xbe8   : > { %v6997_v49 = vrot.slane %v6945_v55, 2 }
 0xbe9   : > { %v6952_v1 = vadd.f32 %v12858_v18, %v6913_v8  ;;  %v6858_v14 = vrot.slane %v6857_v50, 1  ;;  %v6919_v0 = vrot.slane %v6918_v13, 2  ;;  %v6926_v48 = vrot.slane %v6925_v11, 4 }
 0xbea   : > { %v6999_v36 = vsel %vm6998_vm10, %v6997_v49, %v6996_v40 }
 0xbeb   : > { %v7011_v62 = vrot.slane %v6952_v1, 3  ;;  %v6859_v61 = vadd.f32 %v6858_v14, %v6857_v50  ;;  %v6920_v30 = vadd.f32 %v6919_v0, %v6918_v13  ;;  %v6927_v16 = vadd.f32 %v6926_v48, %v6925_v11 }
 0xbed   : > { %v6921_v42 = vrot.slane %v6920_v30, 1  ;;  %v6928_v31 = vrot.slane %v6927_v16, 2  ;;  %v6946_v63 = vadd.f32 %v12858_v18, %v6859_v61  ;;  %v7012_v27 = vsel %vm6995_vm9, %v7011_v62, %v7010_v56 }
 0xbef   : > { %v6922_v7 = vadd.f32 %v6921_v42, %v6920_v30  ;;  %v6929_v43 = vadd.f32 %v6928_v31, %v6927_v16  ;;  %v7000_v15 = vrot.slane %v6946_v63, 1 }
 0xbf1   : > { %v6953_v6 = vadd.f32 %v12858_v18, %v6922_v7  ;;  %v6930_v29 = vrot.slane %v6929_v43, 1  ;;  %v7002_v45 = vsel %vm7001_vm11, %v7000_v15, %v6999_v36 }
 0xbf2   : > { %7674 = vmatprep.mubr.msk.f32.mxu1 %vm6787_vm4, %v7002_v45 }
 0xbf3   : > { %v7013_v23 = vrot.slane %v6953_v6, 2  ;;  %v6931_v21 = vadd.f32 %v6930_v29, %v6929_v43 }
 0xbf5   : > { %v6954_v9 = vadd.f32 %v12858_v18, %v6931_v21  ;;  %v7014_v33 = vsel %vm6998_vm10, %v7013_v23, %v7012_v27 }
 0xbf7   : > { %v7015_v40 = vrot.slane %v6954_v9, 1 }
 0xbf9   : > { %v7016_v3 = vsel %vm7001_vm11, %v7015_v40, %v7014_v33 }
 0xbfa   : > { %7675 = vmatmul.mubr.msk.f32.vlgmr.msra.gmra.mrb[110].mxu1 %vm6787_vm4, %v7016_v3 }
 0xccd   : > { %v7676_v12 = vpop.f32.mrb[110].mxu1 }
 0xcce   : > { %v7087_v38 = vpop.f32.mrb[111].mxu1  ;;  %v7093_v32 = vadd.f32 %v7676_v12, %v7404_v53 }
 0xccf   : > { %v7088_v4 = vadd.f32 %v7404_v53, %v7087_v38 }
 0xcd0   : > { %v7099_v28 = vmul.f32 0.1, %v7093_v32  ;;  %vm7097_vm13 = vcmp.gt.f32.partialorder %v7093_v32, 0.0 }
 0xcd1   : > { %vm7096_vm12 = vcmp.gt.f32.partialorder %v7088_v4, 0.0  ;;  %v7098_v19 = vmul.f32 0.1, %v7088_v4 }
 0xcd2   : > { %v7101_v18 = vsel %vm7097_vm13, %v7093_v32, %v7099_v28 }
 0xcd3   : > { %v7100_v39 = vsel %vm7096_vm12, %v7088_v4, %v7098_v19 }
 0xcd4   : > { %7102 = vxpose.xlu1.b32.start [1/2] (short) (narrow) %v7100_v39, 64 }
 0xcd8   : > { %7103 = vxpose.xlu1.b32.end [2/2] (short) (narrow) %v7101_v18, 64 }
 0xd54   : > { %v7118_v34 = vpop.trf.xlu1 }
 0xd55   : > { %7135 = vst.msk [vmem:[%s422_s28] sm:$0xff] %vm7134_vm14, %v7118_v34 }
 0xd58   : > { %v7119_v37 = vpop.trf.xlu1 }
 0xd59   : > { %7136 = vst.msk [vmem:[%s422_s28 + $0x8] sm:$0xff] %vm7134_vm14, %v7119_v37 }
 0xd5c   : > { %v7120_v17 = vpop.trf.xlu1 }
 0xd5d   : > { %7137 = vst.msk [vmem:[%s422_s28 + $0x10] sm:$0xff] %vm7134_vm14, %v7120_v17 }
 0xd60   : > { %v7121_v22 = vpop.trf.xlu1 }
 0xd61   : > { %7138 = vst.msk [vmem:[%s422_s28 + $0x18] sm:$0xff] %vm7134_vm14, %v7121_v22 }
 0xd64   : > { %v7122_v60 = vpop.trf.xlu1 }
 0xd65   : > { %7139 = vst.msk [vmem:[%s422_s28 + $0x20] sm:$0xff] %vm7134_vm14, %v7122_v60 }
 0xd68   : > { %v7123_v59 = vpop.trf.xlu1 }
 0xd69   : > { %7140 = vst.msk [vmem:[%s422_s28 + $0x28] sm:$0xff] %vm7134_vm14, %v7123_v59 }
 0xd6c   : > { %v7124_v46 = vpop.trf.xlu1 }
 0xd6d   : > { %7141 = vst.msk [vmem:[%s422_s28 + $0x30] sm:$0xff] %vm7134_vm14, %v7124_v46 }
 0xd70   : > { %v7125_v24 = vpop.trf.xlu1 }
 0xd71   : > { %7142 = vst.msk [vmem:[%s422_s28 + $0x38] sm:$0xff] %vm7134_vm14, %v7125_v24 }
 0xd72 PF: > { %s21_s19 = sadd.s32 1, %s8076_s19   ;;  %s14530_s17 = smov %s8072_s18 }
 0xd73   : > { %p18_p5 = scmp.ge.s32.totalorder %s21_s19, 4   ;;  %s14531_s18 = smov %s14533_s20 }
 0xd75   :  { %20 = sbr.rel (!%p18_p5) target bundleno = 2 (0x2), region = 94 }

</bundles_post_ra>
